<compile_context>
chip_gen: v6e
topology: v6e:2x2x1
jax: 0.10.0
libtpu: 0.0.40
codegen_flags: <defaults>
</compile_context>

<pallas_src>
import jax
import jax.numpy as jnp
from jax import lax
from jax.experimental import pallas as pl
from jax.experimental.pallas import tpu as pltpu

EPS = 1e-5


# ------------------------------------------------------------------ Pallas kernel
def _make_conv_bn_relu_kernel(nk):
    """Build the fused  out = relu(BN_train(patches @ W))  kernel for one Cout tile.

    Refs (per grid step):
      p_ref   : (M, tk)   im2col patches tile          (M = N*Ho*Wo)
      w_ref   : (tk, tn)  reshaped conv weight tile
      g_ref   : (1, tn)   BN gamma
      beta_ref: (1, tn)   BN beta
      o_ref   : (M, tn)   f32 output tile (also the accumulator when nk > 1)

    The conv bias is intentionally omitted: training-mode BatchNorm subtracts the
    per-channel batch mean, which cancels any per-channel bias exactly.
    """

    def _bn_relu_epilogue(conv, g_ref, beta_ref, o_ref):
        # One-pass batch statistics (biased variance) over the M = N*Ho*Wo rows.
        m = conv.shape[0]
        inv_m = 1.0 / m                                   # static, hoisted
        s1 = jnp.sum(conv, axis=0, keepdims=True)
        s2 = jnp.sum(conv * conv, axis=0, keepdims=True)
        mean = s1 * inv_m
        var = s2 * inv_m - mean * mean
        scale = lax.rsqrt(var + EPS) * g_ref[...]          # EUP rsqrt
        y = (conv - mean) * scale + beta_ref[...]
        o_ref[...] = jnp.maximum(y, 0.0).astype(o_ref.dtype)

    if nk == 1:
        # K fully collapsed: one MXU dot, one epilogue, single store, no branches.
        def kernel(p_ref, w_ref, g_ref, beta_ref, o_ref):
            conv = jnp.dot(p_ref[...], w_ref[...],
                           preferred_element_type=jnp.float32)
            _bn_relu_epilogue(conv, g_ref, beta_ref, o_ref)
    else:
        # K-tiled fallback: accumulate directly into the resident f32 output block
        # (its block index is constant across the K axis), no scratch buffer.
        def kernel(p_ref, w_ref, g_ref, beta_ref, o_ref):
            k = pl.program_id(1)

            @pl.when(k == 0)
            def _():
                o_ref[...] = jnp.zeros_like(o_ref)

            o_ref[...] += jnp.dot(p_ref[...], w_ref[...],
                                  preferred_element_type=jnp.float32)

            @pl.when(k == nk - 1)
            def _():
                _bn_relu_epilogue(o_ref[...], g_ref, beta_ref, o_ref)

    return kernel


def conv_bn_relu(patches, w_mat, gamma, beta):
    """One fused conv+BN(train)+ReLU layer. patches: (M, K), w_mat: (K, Cout)."""
    M, K = patches.shape
    Cout = w_mat.shape[1]
    assert patches.dtype == w_mat.dtype

    # Pad the reduction dim to a lane-dense multiple of 128 (zero rows are inert).
    Kp = -(-K // 128) * 128
    if Kp != K:
        patches = jnp.pad(patches, ((0, 0), (0, Kp - K)))
        w_mat = jnp.pad(w_mat, ((0, Kp - K), (0, 0)))

    # Cout tiling: >=128 lanes per tile (lane-dense stores); 2 tiles for the larger
    # layers so both v7x TensorCores get work via the "parallel" axis.
    tn = Cout if Cout <= 128 else max(128, Cout // 2)
    if Cout % tn:
        tn = Cout
    nj = Cout // tn

    # K tiling: collapse K entirely unless the weight tile would be large
    # (keeps the double-buffered weight tile well under the VMEM limit on v7x).
    itemsize = jnp.dtype(w_mat.dtype).itemsize
    max_w_tile_bytes = 4 * 1024 * 1024
    if Kp * tn * itemsize <= max_w_tile_bytes:
        tk, nk = Kp, 1
    else:
        tk = max(128, (max_w_tile_bytes // (tn * itemsize)) // 128 * 128)
        while Kp % tk:
            tk -= 128
        nk = Kp // tk

    kernel = _make_conv_bn_relu_kernel(nk)

    return pl.pallas_call(
        kernel,
        out_shape=jax.ShapeDtypeStruct((M, Cout), jnp.float32),
        grid_spec=pltpu.PrefetchScalarGridSpec(
            num_scalar_prefetch=0,
            grid=(nj, nk),                               # reduction (K) axis last
            in_specs=[
                pl.BlockSpec((M, tk), lambda j, k: (0, k)),
                pl.BlockSpec((tk, tn), lambda j, k: (k, j)),
                pl.BlockSpec((1, tn), lambda j, k: (0, j)),
                pl.BlockSpec((1, tn), lambda j, k: (0, j)),
            ],
            out_specs=pl.BlockSpec((M, tn), lambda j, k: (0, j)),
        ),
        compiler_params=pltpu.CompilerParams(
            dimension_semantics=("parallel", "arbitrary")
        ),
    )(patches, w_mat, gamma.reshape(1, Cout), beta.reshape(1, Cout))


# ------------------------------------------------------------------ JAX glue
def im2col(x_nhwc, k=4, s=2, p=1):
    """Extract k x k patches with stride s and padding p. Returns (N*Ho*Wo, k*k*C)."""
    N, H, W, C = x_nhwc.shape
    Ho = (H + 2 * p - k) // s + 1
    Wo = (W + 2 * p - k) // s + 1
    xp = jnp.pad(x_nhwc, ((0, 0), (p, p), (p, p), (0, 0)))
    cols = []
    for kh in range(k):
        for kw in range(k):
            cols.append(xp[:, kh:kh + s * Ho:s, kw:kw + s * Wo:s, :])  # (N,Ho,Wo,C)
    patches = jnp.stack(cols, axis=3)                 # (N, Ho, Wo, k*k, C)
    return patches.reshape(N * Ho * Wo, k * k * C), (N, Ho, Wo)


@jax.jit
def encoder_forward(x_nchw, params):
    """Forward pass of `Encoder` (conv stack only; fc1/fc2 unused in forward)."""
    x = jnp.transpose(x_nchw, (0, 2, 3, 1))           # NCHW -> NHWC
    for (w, b, gamma, beta) in params:
        cout, cin = w.shape[0], w.shape[1]
        K = 16 * cin
        # bf16 for the HBM-bound layers (halves weight + patch DMA bytes); layer 1
        # (K = 48) stays f32 — it is tiny and gains nothing from the cast.
        dt = jnp.bfloat16 if K >= 256 else jnp.float32
        patches, (N, Ho, Wo) = im2col(x.astype(dt))
        # PyTorch weight (Cout, Cin, kh, kw) -> (kh*kw*Cin, Cout), matching patch order.
        w_mat = jnp.transpose(w, (2, 3, 1, 0)).reshape(-1, cout).astype(dt)
        # conv bias `b` is intentionally not passed: train-mode BN cancels it exactly.
        out_flat = conv_bn_relu(patches, w_mat, gamma, beta)
        x = out_flat.reshape(N, Ho, Wo, cout)
    return jnp.transpose(x, (0, 3, 1, 2))             # NHWC -> NCHW


# ------------------------------------------------------------------ reference (pure JAX)
def encoder_forward_ref(x_nchw, params):
    x = jnp.transpose(x_nchw, (0, 2, 3, 1))
    for (w, b, gamma, beta) in params:
        w_hwio = jnp.transpose(w, (2, 3, 1, 0))
        y = lax.conv_general_dilated(
            x, w_hwio, window_strides=(2, 2), padding=[(1, 1), (1, 1)],
            dimension_numbers=("NHWC", "HWIO", "NHWC"),
            precision=lax.Precision.HIGHEST,
        ) + b
        mean = jnp.mean(y, axis=(0, 1, 2), keepdims=True)
        var = jnp.mean((y - mean) ** 2, axis=(0, 1, 2), keepdims=True)
        y = (y - mean) * lax.rsqrt(var + EPS) * gamma + beta
        x = jnp.maximum(y, 0.0)
    return jnp.transpose(x, (0, 3, 1, 2))


# ------------------------------------------------------------------ params
def init_encoder_params(key, zsize=32, layer_count=3, channels=3, d=128):
    """Deterministic init matching Encoder.__init__ shapes + weight_init(0, 0.02)."""
    params = []
    mul = 1
    inputs = channels
    for _ in range(layer_count):
        cout = d * mul
        key, wk = jax.random.split(key)
        w = jax.random.normal(wk, (cout, inputs, 4, 4), jnp.float32) * 0.02
        b = jnp.zeros((cout,), jnp.float32)          # normal_init zeroes conv bias
        gamma = jnp.ones((cout,), jnp.float32)       # BatchNorm2d default affine
        beta = jnp.zeros((cout,), jnp.float32)
        params.append((w, b, gamma, beta))
        inputs = cout
        mul *= 2
    # TODO(synk): fc1/fc2 (Linear(d_max*4*4, zsize)) exist in __init__ but are not
    #             used by forward(), so they are intentionally not implemented.
    return params


# ------------------------------------------------------------------ main
if __name__ == "__main__":
    key = jax.random.PRNGKey(0)
    kp, kx = jax.random.split(key)

    layer_count, channels = 3, 3
    params = init_encoder_params(kp, zsize=32, layer_count=layer_count,
                                 channels=channels, d=128)

    # 32x32 input -> 16 -> 8 -> 4 spatial, consistent with the 4x4 fc expectation.
    x = jax.random.normal(kx, (2, channels, 32, 32), jnp.float32)

    out = jax.block_until_ready(encoder_forward(x, params))
    assert out.shape == (2, 512, 4, 4), out.shape

    ref = jax.block_until_ready(encoder_forward_ref(x, params))
    max_err = float(jnp.max(jnp.abs(out - ref)))
    if max_err > 5e-2:
        raise AssertionError(f"Pallas output mismatch vs reference: {max_err}")

    print("KERNEL_OK")
</pallas_src>

<mosaic_0001>
module attributes {stable_mosaic.version = 11 : i64} {
  func.func @kernel(%arg0: i32, %arg1: i32, %arg2: memref<512x128xf32, #tpu.memory_space<vmem>>, %arg3: memref<128x128xf32, #tpu.memory_space<vmem>>, %arg4: memref<1x128xf32, #tpu.memory_space<vmem>>, %arg5: memref<1x128xf32, #tpu.memory_space<vmem>>, %arg6: memref<512x128xf32, #tpu.memory_space<vmem>>) attributes {dimension_semantics = [#tpu.dimension_semantics<parallel>, #tpu.dimension_semantics<arbitrary>], iteration_bounds = array<i64: 1, 1>, scalar_prefetch = 0 : i64, scratch_operands = 0 : i64, tpu.core_type = #tpu.core_type<tc>, window_params = [{transform_indices = @transform_0, window_bounds = array<i64: 512, 128>}, {transform_indices = @transform_1, window_bounds = array<i64: 128, 128>}, {transform_indices = @transform_2, window_bounds = array<i64: 1, 128>}, {transform_indices = @transform_3, window_bounds = array<i64: 1, 128>}, {transform_indices = @transform_4, window_bounds = array<i64: 512, 128>}]} {
    %c0 = arith.constant 0 : index
    %c0_0 = arith.constant 0 : index
    %0 = vector.load %arg2[%c0, %c0_0] : memref<512x128xf32, #tpu.memory_space<vmem>>, vector<512x128xf32>
    %c0_1 = arith.constant 0 : index
    %c0_2 = arith.constant 0 : index
    %1 = vector.load %arg3[%c0_1, %c0_2] : memref<128x128xf32, #tpu.memory_space<vmem>>, vector<128x128xf32>
    %cst = arith.constant dense<0.000000e+00> : vector<512x128xf32>
    %2 = tpu.matmul %0, %1, %cst {dimension_numbers = #tpu.dot_dimension_numbers<[1], [0], [0], [1], [0, 0, 1, 1], [], []>} : vector<512x128xf32>, vector<128x128xf32>, vector<512x128xf32> -> vector<512x128xf32>
    %cst_3 = arith.constant dense<0.000000e+00> : vector<128xf32>
    %3 = vector.multi_reduction <add>, %2, %cst_3 [0] : vector<512x128xf32> to vector<128xf32>
    %4 = vector.shape_cast %3 : vector<128xf32> to vector<1x128xf32>
    %5 = arith.mulf %2, %2 : vector<512x128xf32>
    %cst_4 = arith.constant dense<0.000000e+00> : vector<128xf32>
    %6 = vector.multi_reduction <add>, %5, %cst_4 [0] : vector<512x128xf32> to vector<128xf32>
    %7 = vector.shape_cast %6 : vector<128xf32> to vector<1x128xf32>
    %cst_5 = arith.constant 0.001953125 : f32
    %8 = vector.broadcast %cst_5 : f32 to vector<1x128xf32>
    %9 = arith.mulf %4, %8 : vector<1x128xf32>
    %cst_6 = arith.constant 0.001953125 : f32
    %10 = vector.broadcast %cst_6 : f32 to vector<1x128xf32>
    %11 = arith.mulf %7, %10 : vector<1x128xf32>
    %12 = arith.mulf %9, %9 : vector<1x128xf32>
    %13 = arith.subf %11, %12 : vector<1x128xf32>
    %cst_7 = arith.constant 9.99999974E-6 : f32
    %14 = vector.broadcast %cst_7 : f32 to vector<1x128xf32>
    %15 = arith.addf %13, %14 : vector<1x128xf32>
    %16 = math.rsqrt %15 : vector<1x128xf32>
    %c0_8 = arith.constant 0 : index
    %c0_9 = arith.constant 0 : index
    %17 = vector.load %arg4[%c0_8, %c0_9] : memref<1x128xf32, #tpu.memory_space<vmem>>, vector<1x128xf32>
    %18 = arith.mulf %16, %17 : vector<1x128xf32>
    %19 = vector.broadcast %9 : vector<1x128xf32> to vector<512x128xf32>
    %20 = arith.subf %2, %19 : vector<512x128xf32>
    %21 = vector.broadcast %18 : vector<1x128xf32> to vector<512x128xf32>
    %22 = arith.mulf %20, %21 : vector<512x128xf32>
    %c0_10 = arith.constant 0 : index
    %c0_11 = arith.constant 0 : index
    %23 = vector.load %arg5[%c0_10, %c0_11] : memref<1x128xf32, #tpu.memory_space<vmem>>, vector<1x128xf32>
    %24 = vector.broadcast %23 : vector<1x128xf32> to vector<512x128xf32>
    %25 = arith.addf %22, %24 : vector<512x128xf32>
    %cst_12 = arith.constant 0.000000e+00 : f32
    %26 = vector.broadcast %cst_12 : f32 to vector<512x128xf32>
    %27 = arith.maximumf %25, %26 : vector<512x128xf32>
    %c0_13 = arith.constant 0 : index
    %c0_14 = arith.constant 0 : index
    %28 = vector.load %arg6[%c0_13, %c0_14] : memref<512x128xf32, #tpu.memory_space<vmem>>, vector<512x128xf32>
    tpu.vector_store %arg6[%c0_13, %c0_14], %27 {strides = array<i32>} : memref<512x128xf32, #tpu.memory_space<vmem>>, vector<512x128xf32>,
    return
  }
  func.func @transform_0(%arg0: i32, %arg1: i32) -> (i32, i32) {
    %c0_i32 = arith.constant 0 : i32
    %c0_i32_0 = arith.constant 0 : i32
    return %c0_i32, %arg1 : i32, i32
  }
  func.func @transform_1(%arg0: i32, %arg1: i32) -> (i32, i32) {
    %c0_i32 = arith.constant 0 : i32
    return %arg1, %arg0 : i32, i32
  }
  func.func @transform_2(%arg0: i32, %arg1: i32) -> (i32, i32) {
    %c0_i32 = arith.constant 0 : i32
    %c0_i32_0 = arith.constant 0 : i32
    return %c0_i32, %arg0 : i32, i32
  }
  func.func @transform_3(%arg0: i32, %arg1: i32) -> (i32, i32) {
    %c0_i32 = arith.constant 0 : i32
    %c0_i32_0 = arith.constant 0 : i32
    return %c0_i32, %arg0 : i32, i32
  }
  func.func @transform_4(%arg0: i32, %arg1: i32) -> (i32, i32) {
    %c0_i32 = arith.constant 0 : i32
    %c0_i32_0 = arith.constant 0 : i32
    return %c0_i32, %arg0 : i32, i32
  }
}

module attributes {stable_mosaic.version = 11 : i64} {
  func.func @kernel(%arg0: i32, %arg1: i32, %arg2: memref<128x2048xbf16, #tpu.memory_space<vmem>>, %arg3: memref<2048x128xbf16, #tpu.memory_space<vmem>>, %arg4: memref<1x128xf32, #tpu.memory_space<vmem>>, %arg5: memref<1x128xf32, #tpu.memory_space<vmem>>, %arg6: memref<128x128xf32, #tpu.memory_space<vmem>>) attributes {dimension_semantics = [#tpu.dimension_semantics<parallel>, #tpu.dimension_semantics<arbitrary>], iteration_bounds = array<i64: 2, 1>, scalar_prefetch = 0 : i64, scratch_operands = 0 : i64, tpu.core_type = #tpu.core_type<tc>, window_params = [{transform_indices = @transform_0, window_bounds = array<i64: 128, 2048>}, {transform_indices = @transform_1, window_bounds = array<i64: 2048, 128>}, {transform_indices = @transform_2, window_bounds = array<i64: 1, 128>}, {transform_indices = @transform_3, window_bounds = array<i64: 1, 128>}, {transform_indices = @transform_4, window_bounds = array<i64: 128, 128>}]} {
    %c0 = arith.constant 0 : index
    %c0_0 = arith.constant 0 : index
    %0 = vector.load %arg2[%c0, %c0_0] : memref<128x2048xbf16, #tpu.memory_space<vmem>>, vector<128x2048xbf16>
    %c0_1 = arith.constant 0 : index
    %c0_2 = arith.constant 0 : index
    %1 = vector.load %arg3[%c0_1, %c0_2] : memref<2048x128xbf16, #tpu.memory_space<vmem>>, vector<2048x128xbf16>
    %cst = arith.constant dense<0.000000e+00> : vector<128x128xf32>
    %2 = tpu.matmul %0, %1, %cst {dimension_numbers = #tpu.dot_dimension_numbers<[1], [0], [0], [1], [0, 0, 1, 1], [], []>} : vector<128x2048xbf16>, vector<2048x128xbf16>, vector<128x128xf32> -> vector<128x128xf32>
    %cst_3 = arith.constant dense<0.000000e+00> : vector<128xf32>
    %3 = vector.multi_reduction <add>, %2, %cst_3 [0] : vector<128x128xf32> to vector<128xf32>
    %4 = vector.shape_cast %3 : vector<128xf32> to vector<1x128xf32>
    %5 = arith.mulf %2, %2 : vector<128x128xf32>
    %cst_4 = arith.constant dense<0.000000e+00> : vector<128xf32>
    %6 = vector.multi_reduction <add>, %5, %cst_4 [0] : vector<128x128xf32> to vector<128xf32>
    %7 = vector.shape_cast %6 : vector<128xf32> to vector<1x128xf32>
    %cst_5 = arith.constant 7.812500e-03 : f32
    %8 = vector.broadcast %cst_5 : f32 to vector<1x128xf32>
    %9 = arith.mulf %4, %8 : vector<1x128xf32>
    %cst_6 = arith.constant 7.812500e-03 : f32
    %10 = vector.broadcast %cst_6 : f32 to vector<1x128xf32>
    %11 = arith.mulf %7, %10 : vector<1x128xf32>
    %12 = arith.mulf %9, %9 : vector<1x128xf32>
    %13 = arith.subf %11, %12 : vector<1x128xf32>
    %cst_7 = arith.constant 9.99999974E-6 : f32
    %14 = vector.broadcast %cst_7 : f32 to vector<1x128xf32>
    %15 = arith.addf %13, %14 : vector<1x128xf32>
    %16 = math.rsqrt %15 : vector<1x128xf32>
    %c0_8 = arith.constant 0 : index
    %c0_9 = arith.constant 0 : index
    %17 = vector.load %arg4[%c0_8, %c0_9] : memref<1x128xf32, #tpu.memory_space<vmem>>, vector<1x128xf32>
    %18 = arith.mulf %16, %17 : vector<1x128xf32>
    %19 = vector.broadcast %9 : vector<1x128xf32> to vector<128x128xf32>
    %20 = arith.subf %2, %19 : vector<128x128xf32>
    %21 = vector.broadcast %18 : vector<1x128xf32> to vector<128x128xf32>
    %22 = arith.mulf %20, %21 : vector<128x128xf32>
    %c0_10 = arith.constant 0 : index
    %c0_11 = arith.constant 0 : index
    %23 = vector.load %arg5[%c0_10, %c0_11] : memref<1x128xf32, #tpu.memory_space<vmem>>, vector<1x128xf32>
    %24 = vector.broadcast %23 : vector<1x128xf32> to vector<128x128xf32>
    %25 = arith.addf %22, %24 : vector<128x128xf32>
    %cst_12 = arith.constant 0.000000e+00 : f32
    %26 = vector.broadcast %cst_12 : f32 to vector<128x128xf32>
    %27 = arith.maximumf %25, %26 : vector<128x128xf32>
    %c0_13 = arith.constant 0 : index
    %c0_14 = arith.constant 0 : index
    %28 = vector.load %arg6[%c0_13, %c0_14] : memref<128x128xf32, #tpu.memory_space<vmem>>, vector<128x128xf32>
    tpu.vector_store %arg6[%c0_13, %c0_14], %27 {strides = array<i32>} : memref<128x128xf32, #tpu.memory_space<vmem>>, vector<128x128xf32>,
    return
  }
  func.func @transform_0(%arg0: i32, %arg1: i32) -> (i32, i32) {
    %c0_i32 = arith.constant 0 : i32
    %c0_i32_0 = arith.constant 0 : i32
    return %c0_i32, %arg1 : i32, i32
  }
  func.func @transform_1(%arg0: i32, %arg1: i32) -> (i32, i32) {
    %c0_i32 = arith.constant 0 : i32
    return %arg1, %arg0 : i32, i32
  }
  func.func @transform_2(%arg0: i32, %arg1: i32) -> (i32, i32) {
    %c0_i32 = arith.constant 0 : i32
    %c0_i32_0 = arith.constant 0 : i32
    return %c0_i32, %arg0 : i32, i32
  }
  func.func @transform_3(%arg0: i32, %arg1: i32) -> (i32, i32) {
    %c0_i32 = arith.constant 0 : i32
    %c0_i32_0 = arith.constant 0 : i32
    return %c0_i32, %arg0 : i32, i32
  }
  func.func @transform_4(%arg0: i32, %arg1: i32) -> (i32, i32) {
    %c0_i32 = arith.constant 0 : i32
    %c0_i32_0 = arith.constant 0 : i32
    return %c0_i32, %arg0 : i32, i32
  }
}

module attributes {stable_mosaic.version = 11 : i64} {
  func.func @kernel(%arg0: i32, %arg1: i32, %arg2: memref<32x4096xbf16, #tpu.memory_space<vmem>>, %arg3: memref<4096x256xbf16, #tpu.memory_space<vmem>>, %arg4: memref<1x256xf32, #tpu.memory_space<vmem>>, %arg5: memref<1x256xf32, #tpu.memory_space<vmem>>, %arg6: memref<32x256xf32, #tpu.memory_space<vmem>>) attributes {dimension_semantics = [#tpu.dimension_semantics<parallel>, #tpu.dimension_semantics<arbitrary>], iteration_bounds = array<i64: 2, 1>, scalar_prefetch = 0 : i64, scratch_operands = 0 : i64, tpu.core_type = #tpu.core_type<tc>, window_params = [{transform_indices = @transform_0, window_bounds = array<i64: 32, 4096>}, {transform_indices = @transform_1, window_bounds = array<i64: 4096, 256>}, {transform_indices = @transform_2, window_bounds = array<i64: 1, 256>}, {transform_indices = @transform_3, window_bounds = array<i64: 1, 256>}, {transform_indices = @transform_4, window_bounds = array<i64: 32, 256>}]} {
    %c0 = arith.constant 0 : index
    %c0_0 = arith.constant 0 : index
    %0 = vector.load %arg2[%c0, %c0_0] : memref<32x4096xbf16, #tpu.memory_space<vmem>>, vector<32x4096xbf16>
    %c0_1 = arith.constant 0 : index
    %c0_2 = arith.constant 0 : index
    %1 = vector.load %arg3[%c0_1, %c0_2] : memref<4096x256xbf16, #tpu.memory_space<vmem>>, vector<4096x256xbf16>
    %cst = arith.constant dense<0.000000e+00> : vector<32x256xf32>
    %2 = tpu.matmul %0, %1, %cst {dimension_numbers = #tpu.dot_dimension_numbers<[1], [0], [0], [1], [0, 0, 1, 1], [], []>} : vector<32x4096xbf16>, vector<4096x256xbf16>, vector<32x256xf32> -> vector<32x256xf32>
    %cst_3 = arith.constant dense<0.000000e+00> : vector<256xf32>
    %3 = vector.multi_reduction <add>, %2, %cst_3 [0] : vector<32x256xf32> to vector<256xf32>
    %4 = vector.shape_cast %3 : vector<256xf32> to vector<1x256xf32>
    %5 = arith.mulf %2, %2 : vector<32x256xf32>
    %cst_4 = arith.constant dense<0.000000e+00> : vector<256xf32>
    %6 = vector.multi_reduction <add>, %5, %cst_4 [0] : vector<32x256xf32> to vector<256xf32>
    %7 = vector.shape_cast %6 : vector<256xf32> to vector<1x256xf32>
    %cst_5 = arith.constant 3.125000e-02 : f32
    %8 = vector.broadcast %cst_5 : f32 to vector<1x256xf32>
    %9 = arith.mulf %4, %8 : vector<1x256xf32>
    %cst_6 = arith.constant 3.125000e-02 : f32
    %10 = vector.broadcast %cst_6 : f32 to vector<1x256xf32>
    %11 = arith.mulf %7, %10 : vector<1x256xf32>
    %12 = arith.mulf %9, %9 : vector<1x256xf32>
    %13 = arith.subf %11, %12 : vector<1x256xf32>
    %cst_7 = arith.constant 9.99999974E-6 : f32
    %14 = vector.broadcast %cst_7 : f32 to vector<1x256xf32>
    %15 = arith.addf %13, %14 : vector<1x256xf32>
    %16 = math.rsqrt %15 : vector<1x256xf32>
    %c0_8 = arith.constant 0 : index
    %c0_9 = arith.constant 0 : index
    %17 = vector.load %arg4[%c0_8, %c0_9] : memref<1x256xf32, #tpu.memory_space<vmem>>, vector<1x256xf32>
    %18 = arith.mulf %16, %17 : vector<1x256xf32>
    %19 = vector.broadcast %9 : vector<1x256xf32> to vector<32x256xf32>
    %20 = arith.subf %2, %19 : vector<32x256xf32>
    %21 = vector.broadcast %18 : vector<1x256xf32> to vector<32x256xf32>
    %22 = arith.mulf %20, %21 : vector<32x256xf32>
    %c0_10 = arith.constant 0 : index
    %c0_11 = arith.constant 0 : index
    %23 = vector.load %arg5[%c0_10, %c0_11] : memref<1x256xf32, #tpu.memory_space<vmem>>, vector<1x256xf32>
    %24 = vector.broadcast %23 : vector<1x256xf32> to vector<32x256xf32>
    %25 = arith.addf %22, %24 : vector<32x256xf32>
    %cst_12 = arith.constant 0.000000e+00 : f32
    %26 = vector.broadcast %cst_12 : f32 to vector<32x256xf32>
    %27 = arith.maximumf %25, %26 : vector<32x256xf32>
    %c0_13 = arith.constant 0 : index
    %c0_14 = arith.constant 0 : index
    %28 = vector.load %arg6[%c0_13, %c0_14] : memref<32x256xf32, #tpu.memory_space<vmem>>, vector<32x256xf32>
    tpu.vector_store %arg6[%c0_13, %c0_14], %27 {strides = array<i32>} : memref<32x256xf32, #tpu.memory_space<vmem>>, vector<32x256xf32>,
    return
  }
  func.func @transform_0(%arg0: i32, %arg1: i32) -> (i32, i32) {
    %c0_i32 = arith.constant 0 : i32
    %c0_i32_0 = arith.constant 0 : i32
    return %c0_i32, %arg1 : i32, i32
  }
  func.func @transform_1(%arg0: i32, %arg1: i32) -> (i32, i32) {
    %c0_i32 = arith.constant 0 : i32
    return %arg1, %arg0 : i32, i32
  }
  func.func @transform_2(%arg0: i32, %arg1: i32) -> (i32, i32) {
    %c0_i32 = arith.constant 0 : i32
    %c0_i32_0 = arith.constant 0 : i32
    return %c0_i32, %arg0 : i32, i32
  }
  func.func @transform_3(%arg0: i32, %arg1: i32) -> (i32, i32) {
    %c0_i32 = arith.constant 0 : i32
    %c0_i32_0 = arith.constant 0 : i32
    return %c0_i32, %arg0 : i32, i32
  }
  func.func @transform_4(%arg0: i32, %arg1: i32) -> (i32, i32) {
    %c0_i32 = arith.constant 0 : i32
    %c0_i32_0 = arith.constant 0 : i32
    return %c0_i32, %arg0 : i32, i32
  }
}

</mosaic_0001>

<bundles_post_ra>
// kernel: encoder_forward.3
= control target key start
LH: loop header
LB: loop body
LE: loop exit
PB: predicated region body
PF: predicated region fallthrough
CT: control target
= control target key end

     0   :  { %s2898_s1 = inlined_call_operand.vmem [shape: f32[128,128], index: 1, kind: input, shape index: {}]   ;;  %s2899_s0 = inlined_call_operand.vmem [shape: f32[512,128], index: 0, kind: input, shape index: {}]   ;;  %s2900_s2 = inlined_call_operand.vmem [shape: f32[1,128], index: 2, kind: input, shape index: {}]   ;;  %s2901_s3 = inlined_call_operand.vmem [shape: f32[1,128], index: 3, kind: input, shape index: {}]   ;;  %s2902_s4 = inlined_call_operand.vmem [shape: f32[512,128], index: 4, kind: output, shape index: {}]  }
   0x1   :  { %v96_v0 = vld [vmem:[%s2898_s1 + $0x78] sm:$0xff]  ;;  %v95_v1 = vld [vmem:[%s2898_s1 + $0x70] sm:$0xff]  ;;  %v94_v2 = vld [vmem:[%s2898_s1 + $0x68] sm:$0xff] }
   0x2   :  { %1108 = vmatprep.subr.mxu0 %v96_v0  ;;  %1236 = vmatprep.subr.mxu1 %v96_v0  ;;  %v93_v3 = vld [vmem:[%s2898_s1 + $0x60] sm:$0xff]  ;;  %v92_v5 = vld [vmem:[%s2898_s1 + $0x58] sm:$0xff]  ;;  %v91_v6 = vld [vmem:[%s2898_s1 + $0x50] sm:$0xff] }
   0x3   :  { %1109 = vmatpush3.msra.mxu0 %v96_v0  ;;  %1252 = vmatpush3.msra.mxu1 %v96_v0  ;;  %v17_v4 = vld [vmem:[%s2899_s0] sm:$0xff]  ;;  %v90_v7 = vld [vmem:[%s2898_s1 + $0x48] sm:$0xff]  ;;  %v88_v9 = vld [vmem:[%s2898_s1 + $0x38] sm:$0xff] }
   0x4   :  { %1110 = vmatprep.subr.mxu0 %v95_v1  ;;  %1237 = vmatprep.subr.mxu1 %v95_v1  ;;  %v89_v8 = vld [vmem:[%s2898_s1 + $0x40] sm:$0xff]  ;;  %v87_v10 = vld [vmem:[%s2898_s1 + $0x30] sm:$0xff]  ;;  %v86_v11 = vld [vmem:[%s2898_s1 + $0x28] sm:$0xff] }
   0x5   :  { %1111 = vmatpush3.msra.mxu0 %v95_v1  ;;  %1253 = vmatpush3.msra.mxu1 %v95_v1  ;;  %v85_v12 = vld [vmem:[%s2898_s1 + $0x20] sm:$0xff]  ;;  %v84_v13 = vld [vmem:[%s2898_s1 + $0x18] sm:$0xff]  ;;  %v83_v14 = vld [vmem:[%s2898_s1 + $0x10] sm:$0xff] }
   0x6   :  { %1112 = vmatprep.subr.mxu0 %v94_v2  ;;  %1238 = vmatprep.subr.mxu1 %v94_v2  ;;  %v82_v15 = vld [vmem:[%s2898_s1 + $0x8] sm:$0xff]  ;;  %v81_v16 = vld [vmem:[%s2898_s1] sm:$0xff]  ;;  %v19_v18 = vld [vmem:[%s2899_s0 + $0x10] sm:$0xff] }
   0x7   :  { %1113 = vmatpush3.msra.mxu0 %v94_v2  ;;  %1140 = vmatprep.mubr.f32.mxu0 %v17_v4  ;;  %v18_v17 = vld [vmem:[%s2899_s0 + $0x8] sm:$0xff]  ;;  %v49_v19 = vld [vmem:[%s2899_s0 + $0x100] sm:$0xff]  ;;  %v51_v21 = vld [vmem:[%s2899_s0 + $0x110] sm:$0xff] }
   0x8   :  { %1114 = vmatprep.subr.mxu0 %v93_v3  ;;  %1254 = vmatpush3.msra.mxu1 %v94_v2  ;;  %v50_v20 = vld [vmem:[%s2899_s0 + $0x108] sm:$0xff]  ;;  %v20_v22 = vld [vmem:[%s2899_s0 + $0x18] sm:$0xff]  ;;  %v21_v23 = vld [vmem:[%s2899_s0 + $0x20] sm:$0xff] }
   0x9   :  { %1115 = vmatpush3.msra.mxu0 %v93_v3  ;;  %1239 = vmatprep.subr.mxu1 %v93_v3  ;;  %v52_v24 = vld [vmem:[%s2899_s0 + $0x118] sm:$0xff]  ;;  %v53_v25 = vld [vmem:[%s2899_s0 + $0x120] sm:$0xff]  ;;  %v22_v26 = vld [vmem:[%s2899_s0 + $0x28] sm:$0xff] }
   0xa   :  { %1116 = vmatprep.subr.mxu0 %v92_v5  ;;  %1255 = vmatpush3.msra.mxu1 %v93_v3  ;;  %v23_v27 = vld [vmem:[%s2899_s0 + $0x30] sm:$0xff]  ;;  %v54_v28 = vld [vmem:[%s2899_s0 + $0x128] sm:$0xff]  ;;  %v24_v30 = vld [vmem:[%s2899_s0 + $0x38] sm:$0xff] }
   0xb   :  { %1117 = vmatpush3.msra.mxu0 %v92_v5  ;;  %1240 = vmatprep.subr.mxu1 %v92_v5  ;;  %v55_v29 = vld [vmem:[%s2899_s0 + $0x130] sm:$0xff]  ;;  %v25_v31 = vld [vmem:[%s2899_s0 + $0x40] sm:$0xff]  ;;  %v56_v32 = vld [vmem:[%s2899_s0 + $0x138] sm:$0xff] }
   0xc   :  { %1118 = vmatprep.subr.mxu0 %v91_v6  ;;  %1256 = vmatpush3.msra.mxu1 %v92_v5  ;;  %v57_v33 = vld [vmem:[%s2899_s0 + $0x140] sm:$0xff]  ;;  %v26_v34 = vld [vmem:[%s2899_s0 + $0x48] sm:$0xff]  ;;  %v27_v35 = vld [vmem:[%s2899_s0 + $0x50] sm:$0xff] }
   0xd   :  { %1119 = vmatpush3.msra.mxu0 %v91_v6  ;;  %1241 = vmatprep.subr.mxu1 %v91_v6  ;;  %v58_v36 = vld [vmem:[%s2899_s0 + $0x148] sm:$0xff]  ;;  %v59_v37 = vld [vmem:[%s2899_s0 + $0x150] sm:$0xff]  ;;  %v28_v38 = vld [vmem:[%s2899_s0 + $0x58] sm:$0xff] }
   0xe   :  { %1120 = vmatprep.subr.mxu0 %v90_v7  ;;  %1257 = vmatpush3.msra.mxu1 %v91_v6  ;;  %v29_v39 = vld [vmem:[%s2899_s0 + $0x60] sm:$0xff]  ;;  %v60_v40 = vld [vmem:[%s2899_s0 + $0x158] sm:$0xff]  ;;  %v30_v42 = vld [vmem:[%s2899_s0 + $0x68] sm:$0xff] }
   0xf   :  { %1121 = vmatpush3.msra.mxu0 %v90_v7  ;;  %1242 = vmatprep.subr.mxu1 %v90_v7  ;;  %v61_v41 = vld [vmem:[%s2899_s0 + $0x160] sm:$0xff]  ;;  %v31_v43 = vld [vmem:[%s2899_s0 + $0x70] sm:$0xff]  ;;  %v62_v44 = vld [vmem:[%s2899_s0 + $0x168] sm:$0xff] }
  0x10   :  { %1122 = vmatprep.subr.mxu0 %v89_v8  ;;  %1258 = vmatpush3.msra.mxu1 %v90_v7  ;;  %v63_v45 = vld [vmem:[%s2899_s0 + $0x170] sm:$0xff]  ;;  %v32_v46 = vld [vmem:[%s2899_s0 + $0x78] sm:$0xff]  ;;  %v33_v47 = vld [vmem:[%s2899_s0 + $0x80] sm:$0xff] }
  0x11   :  { %1123 = vmatpush3.msra.mxu0 %v89_v8  ;;  %1243 = vmatprep.subr.mxu1 %v89_v8  ;;  %v64_v48 = vld [vmem:[%s2899_s0 + $0x178] sm:$0xff]  ;;  %v65_v49 = vld [vmem:[%s2899_s0 + $0x180] sm:$0xff]  ;;  %v34_v50 = vld [vmem:[%s2899_s0 + $0x88] sm:$0xff] }
  0x12   :  { %1124 = vmatprep.subr.mxu0 %v88_v9  ;;  %1259 = vmatpush3.msra.mxu1 %v89_v8  ;;  %v35_v51 = vld [vmem:[%s2899_s0 + $0x90] sm:$0xff]  ;;  %v66_v52 = vld [vmem:[%s2899_s0 + $0x188] sm:$0xff]  ;;  %v36_v54 = vld [vmem:[%s2899_s0 + $0x98] sm:$0xff] }
  0x13   :  { %1125 = vmatpush3.msra.mxu0 %v88_v9  ;;  %1244 = vmatprep.subr.mxu1 %v88_v9  ;;  %v67_v53 = vld [vmem:[%s2899_s0 + $0x190] sm:$0xff]  ;;  %v37_v55 = vld [vmem:[%s2899_s0 + $0xa0] sm:$0xff]  ;;  %v68_v56 = vld [vmem:[%s2899_s0 + $0x198] sm:$0xff] }
  0x14   :  { %1126 = vmatprep.subr.mxu0 %v87_v10  ;;  %1260 = vmatpush3.msra.mxu1 %v88_v9  ;;  %v69_v57 = vld [vmem:[%s2899_s0 + $0x1a0] sm:$0xff]  ;;  %v38_v58 = vld [vmem:[%s2899_s0 + $0xa8] sm:$0xff]  ;;  %v39_v59 = vld [vmem:[%s2899_s0 + $0xb0] sm:$0xff] }
  0x15   :  { %1127 = vmatpush3.msra.mxu0 %v87_v10  ;;  %1245 = vmatprep.subr.mxu1 %v87_v10  ;;  %v70_v60 = vld [vmem:[%s2899_s0 + $0x1a8] sm:$0xff]  ;;  %v71_v61 = vld [vmem:[%s2899_s0 + $0x1b0] sm:$0xff]  ;;  %v40_v62 = vld [vmem:[%s2899_s0 + $0xb8] sm:$0xff] }
  0x16   :  { %1128 = vmatprep.subr.mxu0 %v86_v11  ;;  %1261 = vmatpush3.msra.mxu1 %v87_v10  ;;  %v41_v63 = vld [vmem:[%s2899_s0 + $0xc0] sm:$0xff]  ;;  %v72_v0 = vld [vmem:[%s2899_s0 + $0x1b8] sm:$0xff]  ;;  %v42_v2 = vld [vmem:[%s2899_s0 + $0xc8] sm:$0xff] }
  0x17   :  { %1129 = vmatpush3.msra.mxu0 %v86_v11  ;;  %1246 = vmatprep.subr.mxu1 %v86_v11  ;;  %v73_v1 = vld [vmem:[%s2899_s0 + $0x1c0] sm:$0xff]  ;;  %v43_v3 = vld [vmem:[%s2899_s0 + $0xd0] sm:$0xff]  ;;  %v74_v4 = vld [vmem:[%s2899_s0 + $0x1c8] sm:$0xff] }
  0x18   :  { %1130 = vmatprep.subr.mxu0 %v85_v12  ;;  %1262 = vmatpush3.msra.mxu1 %v86_v11  ;;  %v75_v5 = vld [vmem:[%s2899_s0 + $0x1d0] sm:$0xff]  ;;  %v44_v6 = vld [vmem:[%s2899_s0 + $0xd8] sm:$0xff]  ;;  %v45_v7 = vld [vmem:[%s2899_s0 + $0xe0] sm:$0xff] }
  0x19   :  { %1131 = vmatpush3.msra.mxu0 %v85_v12  ;;  %1247 = vmatprep.subr.mxu1 %v85_v12  ;;  %v76_v8 = vld [vmem:[%s2899_s0 + $0x1d8] sm:$0xff]  ;;  %v77_v9 = vld [vmem:[%s2899_s0 + $0x1e0] sm:$0xff]  ;;  %v46_v10 = vld [vmem:[%s2899_s0 + $0xe8] sm:$0xff] }
  0x1a   :  { %1132 = vmatprep.subr.mxu0 %v84_v13  ;;  %1263 = vmatpush3.msra.mxu1 %v85_v12  ;;  %v47_v11 = vld [vmem:[%s2899_s0 + $0xf0] sm:$0xff]  ;;  %v78_v12 = vld [vmem:[%s2899_s0 + $0x1e8] sm:$0xff] }
  0x1b   :  { %1133 = vmatpush3.msra.mxu0 %v84_v13  ;;  %1248 = vmatprep.subr.mxu1 %v84_v13 }
  0x1c   :  { %1134 = vmatprep.subr.mxu0 %v83_v14  ;;  %1264 = vmatpush3.msra.mxu1 %v84_v13  ;;  %v79_v13 = vld [vmem:[%s2899_s0 + $0x1f0] sm:$0xff] }
  0x1d   :  { %1135 = vmatpush3.msra.mxu0 %v83_v14  ;;  %1249 = vmatprep.subr.mxu1 %v83_v14 }
  0x1e   :  { %1136 = vmatprep.subr.mxu0 %v82_v15  ;;  %1265 = vmatpush3.msra.mxu1 %v83_v14  ;;  %v48_v14 = vld [vmem:[%s2899_s0 + $0xf8] sm:$0xff] }
  0x1f   :  { %1137 = vmatpush3.msra.mxu0 %v82_v15  ;;  %1250 = vmatprep.subr.mxu1 %v82_v15 }
  0x20   :  { %1138 = vmatprep.subr.mxu0 %v81_v16  ;;  %1266 = vmatpush3.msra.mxu1 %v82_v15  ;;  %v80_v15 = vld [vmem:[%s2899_s0 + $0x1f8] sm:$0xff] }
  0x21   :  { %1139 = vmatpush3.msra.mxu0 %v81_v16  ;;  %1251 = vmatprep.subr.mxu1 %v81_v16 }
  0x22   :  { %1141 = vmatmul.mubr.f32.vlgmr.msra.gmra.mxu0 %v18_v17  ;;  %1267 = vmatpush3.msra.mxu1 %v81_v16 }
  0x23   :  { %1143 = vmatprep.mubr.f32.mxu0 %v19_v18  ;;  %1188 = vmatprep.mubr.f32.mxu1 %v49_v19 }
  0x24   :  { %1189 = vmatmul.mubr.f32.vlgmr.msra.gmra.mxu1 %v50_v20 }
  0x25   :  { %1191 = vmatprep.mubr.f32.mxu1 %v51_v21 }
  0x26   :  { %1144 = vmatmul.mubr.f32.gmra.mxu0 %v20_v22 }
  0x27   :  { %1146 = vmatprep.mubr.f32.mxu0 %v21_v23 }
  0x28   :  { %1192 = vmatmul.mubr.f32.gmra.mxu1 %v52_v24 }
  0x29   :  { %1194 = vmatprep.mubr.f32.mxu1 %v53_v25 }
  0x2a   :  { %1147 = vmatmul.mubr.f32.gmra.mxu0 %v22_v26 }
  0x2b   :  { %1149 = vmatprep.mubr.f32.mxu0 %v23_v27 }
  0x2c   :  { %1195 = vmatmul.mubr.f32.gmra.mxu1 %v54_v28 }
  0x2d   :  { %1197 = vmatprep.mubr.f32.mxu1 %v55_v29 }
  0x2e   :  { %1150 = vmatmul.mubr.f32.gmra.mxu0 %v24_v30 }
  0x2f   :  { %1152 = vmatprep.mubr.f32.mxu0 %v25_v31 }
  0x30   :  { %1198 = vmatmul.mubr.f32.gmra.mxu1 %v56_v32 }
  0x31   :  { %1200 = vmatprep.mubr.f32.mxu1 %v57_v33 }
  0x32   :  { %1153 = vmatmul.mubr.f32.gmra.mxu0 %v26_v34 }
  0x33   :  { %1155 = vmatprep.mubr.f32.mxu0 %v27_v35 }
  0x34   :  { %1201 = vmatmul.mubr.f32.gmra.mxu1 %v58_v36 }
  0x35   :  { %1203 = vmatprep.mubr.f32.mxu1 %v59_v37 }
  0x36   :  { %1156 = vmatmul.mubr.f32.gmra.mxu0 %v28_v38 }
  0x37   :  { %1158 = vmatprep.mubr.f32.mxu0 %v29_v39 }
  0x38   :  { %1204 = vmatmul.mubr.f32.gmra.mxu1 %v60_v40 }
  0x39   :  { %1206 = vmatprep.mubr.f32.mxu1 %v61_v41 }
  0x3a   :  { %1159 = vmatmul.mubr.f32.gmra.mxu0 %v30_v42 }
  0x3b   :  { %1161 = vmatprep.mubr.f32.mxu0 %v31_v43 }
  0x3c   :  { %1207 = vmatmul.mubr.f32.gmra.mxu1 %v62_v44 }
  0x3d   :  { %1209 = vmatprep.mubr.f32.mxu1 %v63_v45 }
  0x3e   :  { %1162 = vmatmul.mubr.f32.gmra.mxu0 %v32_v46 }
  0x3f   :  { %1164 = vmatprep.mubr.f32.mxu0 %v33_v47 }
  0x40   :  { %1210 = vmatmul.mubr.f32.gmra.mxu1 %v64_v48 }
  0x41   :  { %1212 = vmatprep.mubr.f32.mxu1 %v65_v49 }
  0x42   :  { %1165 = vmatmul.mubr.f32.gmra.mxu0 %v34_v50 }
  0x43   :  { %1167 = vmatprep.mubr.f32.mxu0 %v35_v51 }
  0x44   :  { %1213 = vmatmul.mubr.f32.gmra.mxu1 %v66_v52 }
  0x45   :  { %1215 = vmatprep.mubr.f32.mxu1 %v67_v53 }
  0x46   :  { %1168 = vmatmul.mubr.f32.gmra.mxu0 %v36_v54 }
  0x47   :  { %1170 = vmatprep.mubr.f32.mxu0 %v37_v55 }
  0x48   :  { %1216 = vmatmul.mubr.f32.gmra.mxu1 %v68_v56 }
  0x49   :  { %1218 = vmatprep.mubr.f32.mxu1 %v69_v57 }
  0x4a   :  { %1171 = vmatmul.mubr.f32.gmra.mxu0 %v38_v58 }
  0x4b   :  { %1173 = vmatprep.mubr.f32.mxu0 %v39_v59 }
  0x4c   :  { %1219 = vmatmul.mubr.f32.gmra.mxu1 %v70_v60 }
  0x4d   :  { %1221 = vmatprep.mubr.f32.mxu1 %v71_v61 }
  0x4e   :  { %1174 = vmatmul.mubr.f32.gmra.mxu0 %v40_v62 }
  0x4f   :  { %1176 = vmatprep.mubr.f32.mxu0 %v41_v63 }
  0x50   :  { %1222 = vmatmul.mubr.f32.gmra.mxu1 %v72_v0 }
  0x51   :  { %1224 = vmatprep.mubr.f32.mxu1 %v73_v1 }
  0x52   :  { %1177 = vmatmul.mubr.f32.gmra.mxu0 %v42_v2 }
  0x53   :  { %1179 = vmatprep.mubr.f32.mxu0 %v43_v3 }
  0x54   :  { %1225 = vmatmul.mubr.f32.gmra.mxu1 %v74_v4 }
  0x55   :  { %1227 = vmatprep.mubr.f32.mxu1 %v75_v5 }
  0x56   :  { %1180 = vmatmul.mubr.f32.gmra.mxu0 %v44_v6 }
  0x57   :  { %1182 = vmatprep.mubr.f32.mxu0 %v45_v7 }
  0x58   :  { %1228 = vmatmul.mubr.f32.gmra.mxu1 %v76_v8 }
  0x59   :  { %1230 = vmatprep.mubr.f32.mxu1 %v77_v9 }
  0x5a   :  { %1183 = vmatmul.mubr.f32.gmra.mxu0 %v46_v10 }
  0x5b   :  { %1185 = vmatprep.mubr.f32.mxu0 %v47_v11 }
  0x5c   :  { %1231 = vmatmul.mubr.f32.gmra.mxu1 %v78_v12 }
  0x5d   :  { %1233 = vmatprep.mubr.f32.mxu1 %v79_v13 }
  0x5e   :  { %1186 = vmatmul.mubr.f32.gmra.mxu0 %v48_v14 }
  0x60   :  { %1234 = vmatmul.mubr.f32.gmra.mxu1 %v80_v15 }
  0xe2   :  { %v1535_v16 = vpop.f32.mrf.mxu0 }
  0xe3   :  { %v552_v22 = vmul.f32 %v1535_v16, %v1535_v16 }
  0xe4   :  { %v1537_v17 = vpop.f32.mrf.mxu0  ;;  %v1539_v18 = vpop.f32.mrf.mxu1 }
  0xe5   :  { %v551_v19 = vmul.f32 %v1537_v17, %v1537_v17  ;;  %v482_v23 = vadd.f32 %v1535_v16, %v1537_v17 }
  0xe6   :  { %v1543_v20 = vpop.f32.mrf.mxu0  ;;  %v1545_v21 = vpop.f32.mrf.mxu1 }
  0xe7   :  { %v615_v25 = vadd.f32 %v552_v22, %v551_v19  ;;  %v554_v30 = vmul.f32 %v1543_v20, %v1543_v20 }
  0xe8   :  { %v1551_v24 = vpop.f32.mrf.mxu0  ;;  %v1558_v29 = vpop.f32.mrf.mxu1 }
  0xe9   :  { %v483_v26 = vadd.f32 %v482_v23, %v1551_v24  ;;  %v553_v27 = vmul.f32 %v1551_v24, %v1551_v24 }
  0xea   :  { %v1556_v28 = vpop.f32.mrf.mxu0  ;;  %v1570_v38 = vpop.f32.mrf.mxu1 }
  0xeb   :  { %v616_v31 = vadd.f32 %v615_v25, %v553_v27  ;;  %v484_v32 = vadd.f32 %v1543_v20, %v483_v26  ;;  %2949 = vst [vmem:[#allocation2_spill] sm:$0xff] %v1570_v38  ;;  %v556_v39 = vmul.f32 %v1556_v28, %v1556_v28 }
  0xec   :  { %v1563_v33 = vpop.f32.mrf.mxu0  ;;  %v1582_v47 = vpop.f32.mrf.mxu1 }
  0xed   :  { %v485_v34 = vadd.f32 %v484_v32, %v1563_v33  ;;  %v555_v35 = vmul.f32 %v1563_v33, %v1563_v33  ;;  %v617_v36 = vadd.f32 %v616_v31, %v554_v30 }
  0xee   :  { %v1568_v37 = vpop.f32.mrf.mxu0  ;;  %v1594_v56 = vpop.f32.mrf.mxu1 }
  0xef   :  { %v618_v40 = vadd.f32 %v617_v36, %v555_v35  ;;  %v486_v41 = vadd.f32 %v1556_v28, %v485_v34  ;;  %v558_v48 = vmul.f32 %v1568_v37, %v1568_v37  ;;  %2950 = vst [vmem:[#allocation3_spill] sm:$0xff] %v1594_v56 }
  0xf0   :  { %v1575_v42 = vpop.f32.mrf.mxu0  ;;  %v1606_v1 = vpop.f32.mrf.mxu1 }
  0xf1   :  { %v487_v43 = vadd.f32 %v486_v41, %v1575_v42  ;;  %v557_v44 = vmul.f32 %v1575_v42, %v1575_v42  ;;  %v619_v45 = vadd.f32 %v618_v40, %v556_v39 }
  0xf2   :  { %v1580_v46 = vpop.f32.mrf.mxu0  ;;  %v1618_v10 = vpop.f32.mrf.mxu1 }
  0xf3   :  { %v620_v49 = vadd.f32 %v619_v45, %v557_v44  ;;  %v488_v50 = vadd.f32 %v1568_v37, %v487_v43  ;;  %v560_v57 = vmul.f32 %v1580_v46, %v1580_v46  ;;  %2951 = vst [vmem:[#allocation4_spill] sm:$0xff] %v1618_v10 }
  0xf4   :  { %v1587_v51 = vpop.f32.mrf.mxu0  ;;  %v1630_v25 = vpop.f32.mrf.mxu1 }
  0xf5   :  { %v489_v52 = vadd.f32 %v488_v50, %v1587_v51  ;;  %v559_v53 = vmul.f32 %v1587_v51, %v1587_v51  ;;  %v621_v54 = vadd.f32 %v620_v49, %v558_v48 }
  0xf6   :  { %v1592_v55 = vpop.f32.mrf.mxu0  ;;  %v1642_v39 = vpop.f32.mrf.mxu1 }
  0xf7   :  { %v622_v58 = vadd.f32 %v621_v54, %v559_v53  ;;  %v490_v59 = vadd.f32 %v1580_v46, %v489_v52  ;;  %v562_v2 = vmul.f32 %v1592_v55, %v1592_v55  ;;  %2952 = vst [vmem:[#allocation5_spill] sm:$0xff] %v1642_v39 }
  0xf8   :  { %v1599_v60 = vpop.f32.mrf.mxu0  ;;  %v1654_v52 = vpop.f32.mrf.mxu1 }
  0xf9   :  { %v491_v61 = vadd.f32 %v490_v59, %v1599_v60  ;;  %v561_v62 = vmul.f32 %v1599_v60, %v1599_v60  ;;  %v623_v63 = vadd.f32 %v622_v58, %v560_v57 }
  0xfa   :  { %v1604_v0 = vpop.f32.mrf.mxu0 }
  0xfb   :  { %v624_v3 = vadd.f32 %v623_v63, %v561_v62  ;;  %v492_v4 = vadd.f32 %v1592_v55, %v491_v61  ;;  %v564_v11 = vmul.f32 %v1604_v0, %v1604_v0 }
  0xfc   :  { %v1611_v5 = vpop.f32.mrf.mxu0 }
  0xfd   :  { %v493_v6 = vadd.f32 %v492_v4, %v1611_v5  ;;  %v563_v7 = vmul.f32 %v1611_v5, %v1611_v5  ;;  %v625_v8 = vadd.f32 %v624_v3, %v562_v2  ;;  %v1666_v2 = vpop.f32.mrf.mxu1 }
  0xfe   :  { %v1616_v9 = vpop.f32.mrf.mxu0  ;;  %2953 = vst [vmem:[#allocation6_spill] sm:$0xff] %v1666_v2 }
  0xff   :  { %v626_v12 = vadd.f32 %v625_v8, %v563_v7  ;;  %v494_v13 = vadd.f32 %v1604_v0, %v493_v6  ;;  %v566_v26 = vmul.f32 %v1616_v9, %v1616_v9 }
 0x100   :  { %v1623_v14 = vpop.f32.mrf.mxu0 }
 0x101   :  { %v495_v15 = vadd.f32 %v494_v13, %v1623_v14  ;;  %v565_v19 = vmul.f32 %v1623_v14, %v1623_v14  ;;  %v627_v22 = vadd.f32 %v626_v12, %v564_v11 }
 0x102   :  { %v1628_v23 = vpop.f32.mrf.mxu0 }
 0x103   :  { %v628_v27 = vadd.f32 %v627_v22, %v565_v19  ;;  %v496_v30 = vadd.f32 %v1616_v9, %v495_v15  ;;  %v568_v40 = vmul.f32 %v1628_v23, %v1628_v23  ;;  %v1678_v15 = vpop.f32.mrf.mxu1 }
 0x104   :  { %v1635_v31 = vpop.f32.mrf.mxu0  ;;  %2954 = vst [vmem:[#allocation7_spill] sm:$0xff] %v1678_v15 }
 0x105   :  { %v497_v32 = vadd.f32 %v496_v30, %v1635_v31  ;;  %v567_v34 = vmul.f32 %v1635_v31, %v1635_v31  ;;  %v629_v35 = vadd.f32 %v628_v27, %v566_v26 }
 0x106   :  { %v1640_v36 = vpop.f32.mrf.mxu0 }
 0x107   :  { %v630_v41 = vadd.f32 %v629_v35, %v567_v34  ;;  %v498_v43 = vadd.f32 %v1628_v23, %v497_v32  ;;  %v570_v53 = vmul.f32 %v1640_v36, %v1640_v36 }
 0x108   :  { %v1647_v44 = vpop.f32.mrf.mxu0 }
 0x109   :  { %v499_v45 = vadd.f32 %v498_v43, %v1647_v44  ;;  %v569_v48 = vmul.f32 %v1647_v44, %v1647_v44  ;;  %v631_v49 = vadd.f32 %v630_v41, %v568_v40  ;;  %v1690_v40 = vpop.f32.mrf.mxu1 }
 0x10a   :  { %v1652_v50 = vpop.f32.mrf.mxu0  ;;  %2955 = vst [vmem:[#allocation8_spill] sm:$0xff] %v1690_v40 }
 0x10b   :  { %v632_v54 = vadd.f32 %v631_v49, %v569_v48  ;;  %v500_v57 = vadd.f32 %v1640_v36, %v499_v45  ;;  %v572_v3 = vmul.f32 %v1652_v50, %v1652_v50 }
 0x10c   :  { %v1659_v58 = vpop.f32.mrf.mxu0 }
 0x10d   :  { %v501_v59 = vadd.f32 %v500_v57, %v1659_v58  ;;  %v571_v61 = vmul.f32 %v1659_v58, %v1659_v58  ;;  %v633_v62 = vadd.f32 %v632_v54, %v570_v53 }
 0x10e   :  { %v1664_v63 = vpop.f32.mrf.mxu0 }
 0x10f   :  { %v634_v4 = vadd.f32 %v633_v62, %v571_v61  ;;  %v502_v6 = vadd.f32 %v1652_v50, %v501_v59  ;;  %v574_v19 = vmul.f32 %v1664_v63, %v1664_v63  ;;  %v1702_v59 = vpop.f32.mrf.mxu1 }
 0x110   :  { %v1671_v7 = vpop.f32.mrf.mxu0  ;;  %2956 = vst [vmem:[#allocation9_spill] sm:$0xff] %v1702_v59 }
 0x111   :  { %v503_v8 = vadd.f32 %v502_v6, %v1671_v7  ;;  %v573_v11 = vmul.f32 %v1671_v7, %v1671_v7  ;;  %v635_v12 = vadd.f32 %v634_v4, %v572_v3 }
 0x112   :  { %v1676_v13 = vpop.f32.mrf.mxu0 }
 0x113   :  { %v636_v22 = vadd.f32 %v635_v12, %v573_v11  ;;  %v504_v26 = vadd.f32 %v1664_v63, %v503_v8  ;;  %v576_v41 = vmul.f32 %v1676_v13, %v1676_v13 }
 0x114   :  { %v1683_v27 = vpop.f32.mrf.mxu0 }
 0x115   :  { %v505_v30 = vadd.f32 %v504_v26, %v1683_v27  ;;  %v575_v32 = vmul.f32 %v1683_v27, %v1683_v27  ;;  %v637_v34 = vadd.f32 %v636_v22, %v574_v19  ;;  %v1714_v19 = vpop.f32.mrf.mxu1 }
 0x116   :  { %v1688_v35 = vpop.f32.mrf.mxu0  ;;  %2957 = vst [vmem:[#allocation10_spill] sm:$0xff] %v1714_v19 }
 0x117   :  { %v638_v43 = vadd.f32 %v637_v34, %v575_v32  ;;  %v506_v45 = vadd.f32 %v1676_v13, %v505_v30  ;;  %v578_v61 = vmul.f32 %v1688_v35, %v1688_v35 }
 0x118   :  { %v1695_v48 = vpop.f32.mrf.mxu0 }
 0x119   :  { %v507_v49 = vadd.f32 %v506_v45, %v1695_v48  ;;  %v577_v53 = vmul.f32 %v1695_v48, %v1695_v48  ;;  %v639_v54 = vadd.f32 %v638_v43, %v576_v41  ;;  %v1724_v45 = vpop.f32.mrf.mxu1 }
 0x11a   :  { %v1700_v57 = vpop.f32.mrf.mxu0  ;;  %2958 = vst [vmem:[#allocation11_spill] sm:$0xff] %v1724_v45 }
 0x11b   :  { %v640_v62 = vadd.f32 %v639_v54, %v577_v53  ;;  %v508_v3 = vadd.f32 %v1688_v35, %v507_v49  ;;  %v580_v22 = vmul.f32 %v1700_v57, %v1700_v57 }
 0x11c   :  { %v1707_v4 = vpop.f32.mrf.mxu0 }
 0x11d   :  { %v509_v6 = vadd.f32 %v508_v3, %v1707_v4  ;;  %v579_v8 = vmul.f32 %v1707_v4, %v1707_v4  ;;  %v641_v11 = vadd.f32 %v640_v62, %v578_v61  ;;  %v583_v3 = vmul.f32 %v1545_v21, %v1545_v21 }
 0x11e   :  { %v1712_v12 = vpop.f32.mrf.mxu0 }
 0x11f   :  { %v642_v26 = vadd.f32 %v641_v11, %v579_v8  ;;  %v510_v30 = vadd.f32 %v1700_v57, %v509_v6  ;;  %v582_v49 = vmul.f32 %v1712_v12, %v1712_v12  ;;  %v1732_v6 = vpop.f32.mrf.mxu1  ;;  %v584_v8 = vmul.f32 %v1539_v18, %v1539_v18 }
 0x120   :  { %v1719_v32 = vpop.f32.mrf.mxu0  ;;  %2959 = vst [vmem:[#allocation12_spill] sm:$0xff] %v1732_v6 }
 0x121   :  { %v511_v34 = vadd.f32 %v510_v30, %v1719_v32  ;;  %v581_v41 = vmul.f32 %v1719_v32, %v1719_v32  ;;  %v643_v43 = vadd.f32 %v642_v26, %v580_v22  ;;  %v585_v30 = vmul.f32 %v1570_v38, %v1570_v38 }
 0x123   :  { %v512_v53 = vadd.f32 %v1712_v12, %v511_v34  ;;  %v644_v54 = vadd.f32 %v643_v43, %v581_v41  ;;  %v1740_v41 = vpop.f32.mrf.mxu1  ;;  %v586_v43 = vmul.f32 %v1558_v29, %v1558_v29 }
 0x124   :  { %2960 = vst [vmem:[#allocation13_spill] sm:$0xff] %v1740_v41 }
 0x125   :  { %v645_v61 = vadd.f32 %v644_v54, %v582_v49  ;;  %v513_v62 = vadd.f32 %v512_v53, %v1545_v21 }
 0x127   :  { %v646_v11 = vadd.f32 %v645_v61, %v583_v3  ;;  %v514_v22 = vadd.f32 %v1539_v18, %v513_v62  ;;  %v587_v61 = vmul.f32 %v1594_v56, %v1594_v56  ;;  %v1748_v3 = vpop.f32.mrf.mxu1 }
 0x128   :  { %2961 = vst [vmem:[#allocation14_spill] sm:$0xff] %v1748_v3 }
 0x129   :  { %v515_v26 = vadd.f32 %v514_v22, %v1570_v38  ;;  %v647_v34 = vadd.f32 %v646_v11, %v584_v8  ;;  %v588_v22 = vmul.f32 %v1582_v47, %v1582_v47 }
 0x12b   :  { %v648_v49 = vadd.f32 %v647_v34, %v585_v30  ;;  %v516_v53 = vadd.f32 %v1558_v29, %v515_v26  ;;  %v589_v30 = vmul.f32 %v1618_v10, %v1618_v10  ;;  %v1756_v34 = vpop.f32.mrf.mxu1 }
 0x12c   :  { %2962 = vst [vmem:[#allocation15_spill] sm:$0xff] %v1756_v34 }
 0x12d   :  { %v517_v54 = vadd.f32 %v516_v53, %v1594_v56  ;;  %v649_v62 = vadd.f32 %v648_v49, %v586_v43  ;;  %v590_v53 = vmul.f32 %v1606_v1, %v1606_v1 }
 0x12f   :  { %v650_v8 = vadd.f32 %v649_v62, %v587_v61  ;;  %v518_v11 = vadd.f32 %v1582_v47, %v517_v54  ;;  %v591_v61 = vmul.f32 %v1642_v39, %v1642_v39  ;;  %v1764_v62 = vpop.f32.mrf.mxu1 }
 0x130   :  { %2963 = vst [vmem:[#allocation16_spill] sm:$0xff] %v1764_v62 }
 0x131   :  { %v519_v38 = vadd.f32 %v518_v11, %v1618_v10  ;;  %v651_v26 = vadd.f32 %v650_v8, %v588_v22  ;;  %v592_v11 = vmul.f32 %v1630_v25, %v1630_v25 }
 0x133   :  { %v652_v43 = vadd.f32 %v651_v26, %v589_v30  ;;  %v520_v49 = vadd.f32 %v1606_v1, %v519_v38  ;;  %v593_v30 = vmul.f32 %v1666_v2, %v1666_v2  ;;  %v1772_v26 = vpop.f32.mrf.mxu1 }
 0x134   :  { %2964 = vst [vmem:[#allocation17_spill] sm:$0xff] %v1772_v26 }
 0x135   :  { %v521_v56 = vadd.f32 %v520_v49, %v1642_v39  ;;  %v653_v54 = vadd.f32 %v652_v43, %v590_v53  ;;  %v594_v49 = vmul.f32 %v1654_v52, %v1654_v52 }
 0x137   :  { %v654_v22 = vadd.f32 %v653_v54, %v591_v61  ;;  %v522_v8 = vadd.f32 %v1630_v25, %v521_v56  ;;  %v595_v61 = vmul.f32 %v1690_v40, %v1690_v40  ;;  %v1780_v54 = vpop.f32.mrf.mxu1 }
 0x138   :  { %2965 = vst [vmem:[#allocation18_spill] sm:$0xff] %v1780_v54 }
 0x139   :  { %v523_v10 = vadd.f32 %v522_v8, %v1666_v2  ;;  %v655_v38 = vadd.f32 %v654_v22, %v592_v11  ;;  %v596_v8 = vmul.f32 %v1678_v15, %v1678_v15 }
 0x13b   :  { %v656_v53 = vadd.f32 %v655_v38, %v593_v30  ;;  %v524_v43 = vadd.f32 %v1654_v52, %v523_v10  ;;  %v597_v30 = vmul.f32 %v1714_v19, %v1714_v19  ;;  %v1788_v38 = vpop.f32.mrf.mxu1 }
 0x13c   :  { %2966 = vst [vmem:[#allocation19_spill] sm:$0xff] %v1788_v38 }
 0x13d   :  { %v525_v39 = vadd.f32 %v524_v43, %v1690_v40  ;;  %v657_v56 = vadd.f32 %v656_v53, %v594_v49  ;;  %v598_v43 = vmul.f32 %v1702_v59, %v1702_v59 }
 0x13f   :  { %v658_v11 = vadd.f32 %v657_v56, %v595_v61  ;;  %v526_v22 = vadd.f32 %v1678_v15, %v525_v39  ;;  %v599_v61 = vmul.f32 %v1732_v6, %v1732_v6  ;;  %v1796_v56 = vpop.f32.mrf.mxu1 }
 0x140   :  { %2967 = vst [vmem:[#allocation20_spill] sm:$0xff] %v1796_v56 }
 0x141   :  { %v527_v2 = vadd.f32 %v526_v22, %v1714_v19  ;;  %v659_v10 = vadd.f32 %v658_v11, %v596_v8  ;;  %v600_v22 = vmul.f32 %v1724_v45, %v1724_v45 }
 0x143   :  { %v660_v49 = vadd.f32 %v659_v10, %v597_v30  ;;  %v528_v53 = vadd.f32 %v1702_v59, %v527_v2  ;;  %v601_v30 = vmul.f32 %v1748_v3, %v1748_v3  ;;  %v1804_v10 = vpop.f32.mrf.mxu1 }
 0x144   :  { %2968 = vst [vmem:[#allocation21_spill] sm:$0xff] %v1804_v10 }
 0x145   :  { %v529_v40 = vadd.f32 %v528_v53, %v1732_v6  ;;  %v661_v39 = vadd.f32 %v660_v49, %v598_v43  ;;  %v602_v53 = vmul.f32 %v1740_v41, %v1740_v41 }
 0x147   :  { %v662_v8 = vadd.f32 %v661_v39, %v599_v61  ;;  %v530_v11 = vadd.f32 %v1724_v45, %v529_v40  ;;  %v603_v61 = vmul.f32 %v1764_v62, %v1764_v62  ;;  %v1812_v39 = vpop.f32.mrf.mxu1 }
 0x148   :  { %2969 = vst [vmem:[#allocation22_spill] sm:$0xff] %v1812_v39 }
 0x149   :  { %v531_v19 = vadd.f32 %v530_v11, %v1748_v3  ;;  %v663_v2 = vadd.f32 %v662_v8, %v600_v22  ;;  %v604_v11 = vmul.f32 %v1756_v34, %v1756_v34 }
 0x14b   :  { %v664_v43 = vadd.f32 %v663_v2, %v601_v30  ;;  %v532_v49 = vadd.f32 %v1740_v41, %v531_v19  ;;  %v605_v30 = vmul.f32 %v1780_v54, %v1780_v54  ;;  %v1820_v2 = vpop.f32.mrf.mxu1 }
 0x14c   :  { %2970 = vst [vmem:[#allocation23_spill] sm:$0xff] %v1820_v2 }
 0x14d   :  { %v533_v6 = vadd.f32 %v532_v49, %v1764_v62  ;;  %v665_v40 = vadd.f32 %v664_v43, %v602_v53  ;;  %v606_v49 = vmul.f32 %v1772_v26, %v1772_v26 }
 0x14f   :  { %v666_v22 = vadd.f32 %v665_v40, %v603_v61  ;;  %v534_v8 = vadd.f32 %v1756_v34, %v533_v6  ;;  %v607_v61 = vmul.f32 %v1796_v56, %v1796_v56  ;;  %v1828_v40 = vpop.f32.mrf.mxu1 }
 0x150   :  { %2971 = vst [vmem:[#allocation24_spill] sm:$0xff] %v1828_v40 }
 0x151   :  { %v535_v3 = vadd.f32 %v534_v8, %v1780_v54  ;;  %v667_v19 = vadd.f32 %v666_v22, %v604_v11  ;;  %v608_v8 = vmul.f32 %v1788_v38, %v1788_v38 }
 0x153   :  { %v668_v53 = vadd.f32 %v667_v19, %v605_v30  ;;  %v536_v43 = vadd.f32 %v1772_v26, %v535_v3  ;;  %v609_v30 = vmul.f32 %v1812_v39, %v1812_v39  ;;  %v1836_v19 = vpop.f32.mrf.mxu1 }
 0x155   :  { %v537_v62 = vadd.f32 %v536_v43, %v1796_v56  ;;  %v669_v6 = vadd.f32 %v668_v53, %v606_v49  ;;  %v610_v43 = vmul.f32 %v1804_v10, %v1804_v10 }
 0x157   :  { %v670_v11 = vadd.f32 %v669_v6, %v607_v61  ;;  %v538_v22 = vadd.f32 %v1788_v38, %v537_v62  ;;  %v611_v61 = vmul.f32 %v1828_v40, %v1828_v40  ;;  %v1844_v6 = vpop.f32.mrf.mxu1  ;;  %v2993_v59 = vld [vmem:[#allocation24_spill] sm:$0xff] }
 0x158   :  { %2972 = vst [vmem:[#allocation25_spill] sm:$0xff] %v1844_v6 }
 0x159   :  { %v539_v54 = vadd.f32 %v538_v22, %v1812_v39  ;;  %v671_v3 = vadd.f32 %v670_v11, %v608_v8  ;;  %v612_v22 = vmul.f32 %v1820_v2, %v1820_v2 }
 0x15b   :  { %v672_v49 = vadd.f32 %v671_v3, %v609_v30  ;;  %v540_v53 = vadd.f32 %v1804_v10, %v539_v54  ;;  %v613_v30 = vmul.f32 %v1844_v6, %v1844_v6  ;;  %v614_v3 = vmul.f32 %v1836_v19, %v1836_v19 }
 0x15d   :  { %v541_v56 = vadd.f32 %v540_v53, %v1828_v40  ;;  %v673_v62 = vadd.f32 %v672_v49, %v610_v43 }
 0x15f   :  { %v674_v8 = vadd.f32 %v673_v62, %v611_v61  ;;  %v542_v11 = vadd.f32 %v1820_v2, %v541_v56 }
 0x161   :  { %v543_v39 = vadd.f32 %v542_v11, %v1844_v6  ;;  %v675_v54 = vadd.f32 %v674_v8, %v612_v22  ;;  %v756_v8 = vlaneseq }
 0x163   :  { %v544_v53 = vadd.f32 %v1836_v19, %v543_v39  ;;  %v676_v43 = vadd.f32 %v675_v54, %v613_v30  ;;  %v1859_v54 = vshrl.u32 %v756_v8, 7  ;;  %v2974_v8 = vld [vmem:[#allocation3_spill] sm:$0xff] }
 0x165   :  { %v545_v49 = vrot.slane %v544_v53, 4  ;;  %v677_v40 = vadd.f32 %v676_v43, %v614_v3  ;;  %v2990_v43 = vld [vmem:[#allocation22_spill] sm:$0xff] }
 0x167   :  { %v546_v10 = vadd.f32 %v545_v49, %v544_v53  ;;  %v678_v38 = vrot.slane %v677_v40, 4  ;;  %v2977_v49 = vld [vmem:[#allocation6_spill] sm:$0xff] }
 0x169   :  { %v547_v26 = vrot.slane %v546_v10, 2  ;;  %v679_v61 = vadd.f32 %v678_v38, %v677_v40  ;;  %v2991_v40 = vld [vmem:[#allocation21_spill] sm:$0xff] }
 0x16b   :  { %v548_v62 = vadd.f32 %v547_v26, %v546_v10  ;;  %v680_v56 = vrot.slane %v679_v61, 2  ;;  %v2982_v26 = vld [vmem:[#allocation14_spill] sm:$0xff] }
 0x16d   :  { %v549_v2 = vrot.slane %v548_v62, 1  ;;  %v681_v11 = vadd.f32 %v680_v56, %v679_v61  ;;  %v2973_v56 = vld [vmem:[#allocation2_spill] sm:$0xff]  ;;  %v2976_v61 = vld [vmem:[#allocation5_spill] sm:$0xff] }
 0x16f   :  { %v550_v34 = vadd.f32 %v549_v2, %v548_v62  ;;  %v682_v41 = vrot.slane %v681_v11, 1  ;;  %v2989_v2 = vld [vmem:[#allocation19_spill] sm:$0xff]  ;;  %v2992_v62 = vsub.s32 0, %v1859_v54 }
 0x171   :  { %v683_v6 = vadd.f32 %v682_v41, %v681_v11  ;;  %v1855_v22 = vmul.f32 0.001953125, %v550_v34  ;;  %v2994_v11 = vld [vmem:[#allocation23_spill] sm:$0xff] }
 0x173   :  { %v685_v45 = vmul.f32 0.001953125, %v683_v6  ;;  %v686_v39 = vmul.f32 %v1855_v22, %v1855_v22  ;;  %v2981_v6 = vld [vmem:[#allocation11_spill] sm:$0xff]  ;;  %v2996_v41 = vsub.f32 %v1537_v17, %v1855_v22  ;;  %v2997_v54 = vsub.f32 %v1535_v16, %v1855_v22 }
 0x174   :  { %v2999_v38 = vsub.f32 %v1543_v20, %v1855_v22 }
 0x175   :  { %v687_v30 = vsub.f32 %v685_v45, %v686_v39 }
 0x177   :  { %v688_v3 = vadd.f32 1e-05, %v687_v30  ;;  %v690_v30 = vld [vmem:[%s2900_s2] sm:$0x1] }
 0x179   :  { %1268 = vrsqrt.f32 %v688_v3  ;;  %v2975_v3 = vld [vmem:[#allocation4_spill] sm:$0xff] }
 0x186   :  { %v1269_v45 = vpop.eup %1268 }
 0x187   :  { %v691_v39 = vmul.f32 %v1269_v45, %v690_v30  ;;  %v2995_v30 = vld [vmem:[#allocation25_spill] sm:$0xff] }
 0x189   :  { %v1987_v10 = vrot.slane %v691_v39, %v2992_v62  ;;  %v2998_v39 = vsub.f32 %v1551_v24, %v1855_v22 }
 0x18b   :  { %v2001_v15 = vmul.f32 %v1987_v10, %v2996_v41  ;;  %v2007_v62 = vmul.f32 %v1987_v10, %v2997_v54  ;;  %v2013_v45 = vmul.f32 %v1987_v10, %v2998_v39  ;;  %v2019_v17 = vmul.f32 %v1987_v10, %v2999_v38 }
 0x18c   :  { %v3000_v41 = vsub.f32 %v1563_v33, %v1855_v22  ;;  %v3001_v54 = vsub.f32 %v1556_v28, %v1855_v22  ;;  %v3002_v39 = vsub.f32 %v1575_v42, %v1855_v22  ;;  %v3003_v38 = vsub.f32 %v1568_v37, %v1855_v22 }
 0x18e   :  { %v2025_v16 = vmul.f32 %v1987_v10, %v3000_v41  ;;  %v2031_v24 = vmul.f32 %v1987_v10, %v3001_v54  ;;  %v2037_v20 = vmul.f32 %v1987_v10, %v3002_v39  ;;  %v2043_v33 = vmul.f32 %v1987_v10, %v3003_v38 }
 0x18f   :  { %v3004_v41 = vsub.f32 %v1587_v51, %v1855_v22  ;;  %v3005_v54 = vsub.f32 %v1580_v46, %v1855_v22  ;;  %v3006_v39 = vsub.f32 %v1599_v60, %v1855_v22  ;;  %v3007_v38 = vsub.f32 %v1592_v55, %v1855_v22 }
 0x191   :  { %v2049_v28 = vmul.f32 %v1987_v10, %v3004_v41  ;;  %v2055_v42 = vmul.f32 %v1987_v10, %v3005_v54  ;;  %v2061_v37 = vmul.f32 %v1987_v10, %v3006_v39  ;;  %v2067_v51 = vmul.f32 %v1987_v10, %v3007_v38 }
 0x192   :  { %v3008_v41 = vsub.f32 %v1611_v5, %v1855_v22  ;;  %v3009_v54 = vsub.f32 %v1604_v0, %v1855_v22  ;;  %v3010_v39 = vsub.f32 %v1623_v14, %v1855_v22  ;;  %v3011_v38 = vsub.f32 %v1616_v9, %v1855_v22 }
 0x194   :  { %v2073_v46 = vmul.f32 %v1987_v10, %v3008_v41  ;;  %v2079_v60 = vmul.f32 %v1987_v10, %v3009_v54  ;;  %v2085_v55 = vmul.f32 %v1987_v10, %v3010_v39  ;;  %v2091_v5 = vmul.f32 %v1987_v10, %v3011_v38 }
 0x195   :  { %v3012_v41 = vsub.f32 %v1635_v31, %v1855_v22  ;;  %v3013_v54 = vsub.f32 %v1628_v23, %v1855_v22  ;;  %v3014_v39 = vsub.f32 %v1647_v44, %v1855_v22  ;;  %v3015_v38 = vsub.f32 %v1640_v36, %v1855_v22 }
 0x197   :  { %v2097_v0 = vmul.f32 %v1987_v10, %v3012_v41  ;;  %v2103_v14 = vmul.f32 %v1987_v10, %v3013_v54  ;;  %v2109_v9 = vmul.f32 %v1987_v10, %v3014_v39  ;;  %v2115_v31 = vmul.f32 %v1987_v10, %v3015_v38 }
 0x198   :  { %v3016_v41 = vsub.f32 %v1659_v58, %v1855_v22  ;;  %v3017_v54 = vsub.f32 %v1652_v50, %v1855_v22  ;;  %v3018_v39 = vsub.f32 %v1671_v7, %v1855_v22  ;;  %v3019_v38 = vsub.f32 %v1664_v63, %v1855_v22 }
 0x19a   :  { %v2121_v23 = vmul.f32 %v1987_v10, %v3016_v41  ;;  %v2127_v44 = vmul.f32 %v1987_v10, %v3017_v54  ;;  %v2133_v36 = vmul.f32 %v1987_v10, %v3018_v39  ;;  %v2139_v58 = vmul.f32 %v1987_v10, %v3019_v38 }
 0x19b   :  { %v3020_v41 = vsub.f32 %v1683_v27, %v1855_v22  ;;  %v3021_v54 = vsub.f32 %v1676_v13, %v1855_v22  ;;  %v3022_v39 = vsub.f32 %v1695_v48, %v1855_v22  ;;  %v3023_v38 = vsub.f32 %v1688_v35, %v1855_v22 }
 0x19d   :  { %v2145_v50 = vmul.f32 %v1987_v10, %v3020_v41  ;;  %v2151_v7 = vmul.f32 %v1987_v10, %v3021_v54  ;;  %v2157_v63 = vmul.f32 %v1987_v10, %v3022_v39  ;;  %v2163_v27 = vmul.f32 %v1987_v10, %v3023_v38 }
 0x19e   :  { %v3024_v41 = vsub.f32 %v1707_v4, %v1855_v22  ;;  %v3025_v54 = vsub.f32 %v1700_v57, %v1855_v22  ;;  %v3026_v39 = vsub.f32 %v1719_v32, %v1855_v22  ;;  %v3027_v38 = vsub.f32 %v1712_v12, %v1855_v22 }
 0x1a0   :  { %v2169_v13 = vmul.f32 %v1987_v10, %v3024_v41  ;;  %v2175_v48 = vmul.f32 %v1987_v10, %v3025_v54  ;;  %v2181_v35 = vmul.f32 %v1987_v10, %v3026_v39  ;;  %v2187_v4 = vmul.f32 %v1987_v10, %v3027_v38 }
 0x1a1   :  { %v3028_v41 = vsub.f32 %v1545_v21, %v1855_v22  ;;  %v3029_v54 = vsub.f32 %v1539_v18, %v1855_v22  ;;  %v3030_v39 = vsub.f32 %v2973_v56, %v1855_v22  ;;  %v3031_v38 = vsub.f32 %v1558_v29, %v1855_v22 }
 0x1a3   :  { %v2193_v57 = vmul.f32 %v1987_v10, %v3028_v41  ;;  %v2199_v32 = vmul.f32 %v1987_v10, %v3029_v54  ;;  %v2205_v12 = vmul.f32 %v1987_v10, %v3030_v39  ;;  %v2211_v21 = vmul.f32 %v1987_v10, %v3031_v38 }
 0x1a4   :  { %v3032_v41 = vsub.f32 %v2974_v8, %v1855_v22  ;;  %v3033_v54 = vsub.f32 %v1582_v47, %v1855_v22  ;;  %v3034_v39 = vsub.f32 %v2975_v3, %v1855_v22  ;;  %v3035_v38 = vsub.f32 %v1606_v1, %v1855_v22 }
 0x1a6   :  { %v2217_v18 = vmul.f32 %v1987_v10, %v3032_v41  ;;  %v2223_v56 = vmul.f32 %v1987_v10, %v3033_v54  ;;  %v2229_v29 = vmul.f32 %v1987_v10, %v3034_v39  ;;  %v2235_v8 = vmul.f32 %v1987_v10, %v3035_v38 }
 0x1a7   :  { %v3036_v41 = vsub.f32 %v2976_v61, %v1855_v22  ;;  %v3037_v54 = vsub.f32 %v1630_v25, %v1855_v22  ;;  %v3038_v39 = vsub.f32 %v2977_v49, %v1855_v22  ;;  %v3040_v38 = vsub.f32 %v1654_v52, %v1855_v22 }
 0x1a9   :  { %v2241_v47 = vmul.f32 %v1987_v10, %v3036_v41  ;;  %v2247_v3 = vmul.f32 %v1987_v10, %v3037_v54  ;;  %v2253_v1 = vmul.f32 %v1987_v10, %v3038_v39  ;;  %v2259_v61 = vmul.f32 %v1987_v10, %v3040_v38  ;;  %v3042_v41 = vld [vmem:[#allocation8_spill] sm:$0xff]  ;;  %v3045_v54 = vld [vmem:[#allocation7_spill] sm:$0xff]  ;;  %v3047_v39 = vld [vmem:[#allocation10_spill] sm:$0xff] }
 0x1aa   :  { %v3043_v34 = vsub.f32 %v3042_v41, %v1855_v22  ;;  %v3046_v53 = vsub.f32 %v3045_v54, %v1855_v22  ;;  %v3049_v38 = vld [vmem:[#allocation9_spill] sm:$0xff] }
 0x1ab   :  { %3039 = vst [vmem:[#allocation2_spill] sm:$0xff] %v2253_v1  ;;  %3041 = vst [vmem:[#allocation3_spill] sm:$0xff] %v2259_v61  ;;  %v3048_v1 = vsub.f32 %v3047_v39, %v1855_v22  ;;  %v3050_v61 = vsub.f32 %v3049_v38, %v1855_v22 }
 0x1ac   :  { %v2265_v25 = vmul.f32 %v1987_v10, %v3043_v34  ;;  %v2271_v49 = vmul.f32 %v1987_v10, %v3046_v53  ;;  %v3052_v34 = vld [vmem:[#allocation12_spill] sm:$0xff]  ;;  %v3055_v53 = vsub.f32 %v2981_v6, %v1855_v22 }
 0x1ad   :  { %v2277_v52 = vmul.f32 %v1987_v10, %v3048_v1  ;;  %v2283_v41 = vmul.f32 %v1987_v10, %v3050_v61  ;;  %v3057_v1 = vsub.f32 %v2982_v26, %v1855_v22  ;;  %v3059_v61 = vld [vmem:[#allocation13_spill] sm:$0xff] }
 0x1ae   :  { %3044 = vst [vmem:[#allocation4_spill] sm:$0xff] %v2265_v25  ;;  %v3053_v25 = vsub.f32 %v3052_v34, %v1855_v22  ;;  %v2295_v39 = vmul.f32 %v1987_v10, %v3055_v53  ;;  %v3064_v53 = vld [vmem:[#allocation15_spill] sm:$0xff] }
 0x1af   :  { %3051 = vst [vmem:[#allocation5_spill] sm:$0xff] %v2283_v41  ;;  %v2301_v38 = vmul.f32 %v1987_v10, %v3057_v1  ;;  %v3060_v41 = vsub.f32 %v3059_v61, %v1855_v22  ;;  %v3067_v1 = vld [vmem:[#allocation18_spill] sm:$0xff] }
 0x1b0   :  { %v2289_v54 = vmul.f32 %v1987_v10, %v3053_v25  ;;  %3056 = vst [vmem:[#allocation11_spill] sm:$0xff] %v2295_v39  ;;  %v3062_v25 = vld [vmem:[#allocation16_spill] sm:$0xff]  ;;  %v3065_v39 = vsub.f32 %v3064_v53, %v1855_v22 }
 0x1b1   :  { %3058 = vst [vmem:[#allocation14_spill] sm:$0xff] %v2301_v38  ;;  %v2307_v34 = vmul.f32 %v1987_v10, %v3060_v41  ;;  %v3068_v38 = vsub.f32 %v3067_v1, %v1855_v22  ;;  %v3069_v41 = vld [vmem:[#allocation17_spill] sm:$0xff]  ;;  %v3072_v53 = vld [vmem:[#allocation20_spill] sm:$0xff] }
 0x1b2   :  { %3054 = vst [vmem:[#allocation6_spill] sm:$0xff] %v2289_v54  ;;  %v3063_v54 = vsub.f32 %v3062_v25, %v1855_v22  ;;  %v2319_v26 = vmul.f32 %v1987_v10, %v3065_v39  ;;  %v3073_v39 = vsub.f32 %v3072_v53, %v1855_v22 }
 0x1b3   :  { %3061 = vst [vmem:[#allocation19_spill] sm:$0xff] %v2307_v34  ;;  %v2325_v61 = vmul.f32 %v1987_v10, %v3068_v38  ;;  %v3070_v34 = vsub.f32 %v3069_v41, %v1855_v22  ;;  %v3074_v38 = vsub.f32 %v2989_v2, %v1855_v22 }
 0x1b4   :  { %v2313_v6 = vmul.f32 %v1987_v10, %v3063_v54  ;;  %3066 = vst [vmem:[#allocation22_spill] sm:$0xff] %v2319_v26  ;;  %v2336_v54 = vld [vmem:[%s2901_s3] ss:$0 sm:$0xff]  ;;  %v2342_v26 = vmul.f32 %v1987_v10, %v3073_v39  ;;  %v3077_v39 = vsub.f32 %v2993_v59, %v1855_v22 }
 0x1b5   :  { %v2331_v25 = vmul.f32 %v1987_v10, %v3070_v34  ;;  %v2348_v1 = vmul.f32 %v1987_v10, %v3074_v38  ;;  %v3075_v34 = vsub.f32 %v2990_v43, %v1855_v22  ;;  %v3078_v38 = vsub.f32 %v2994_v11, %v1855_v22 }
 0x1b6   :  { %v2366_v2 = vmul.f32 %v1987_v10, %v3077_v39  ;;  %v2388_v39 = vadd.f32 %v2336_v54, %v2001_v15  ;;  %v2392_v11 = vadd.f32 %v2336_v54, %v2007_v62  ;;  %v2408_v15 = vadd.f32 %v2336_v54, %v2031_v24 }
 0x1b7   :  { %3071 = vst [vmem:[#allocation21_spill] sm:$0xff] %v2331_v25  ;;  %v2354_v41 = vmul.f32 %v1987_v10, %v3075_v34  ;;  %v3076_v25 = vsub.f32 %v2991_v40, %v1855_v22  ;;  %v2372_v43 = vmul.f32 %v1987_v10, %v3078_v38  ;;  %v3079_v34 = vsub.f32 %v2995_v30, %v1855_v22 }
 0x1b8   :  { %v2396_v30 = vadd.f32 %v2336_v54, %v2013_v45  ;;  %v2400_v38 = vadd.f32 %v2336_v54, %v2019_v17  ;;  %v2420_v45 = vadd.f32 %v2336_v54, %v2049_v28  ;;  %v2424_v62 = vadd.f32 %v2336_v54, %v2055_v42 }
 0x1b9   :  { %v2360_v53 = vmul.f32 %v1987_v10, %v3076_v25  ;;  %v2378_v40 = vmul.f32 %v1987_v10, %v3079_v34  ;;  %v3080_v25 = vsub.f32 %v1836_v19, %v1855_v22  ;;  %v2404_v19 = vadd.f32 %v2336_v54, %v2025_v16  ;;  %v3085_v34 = vld [vmem:[#allocation4_spill] sm:$0xff] }
 0x1ba   :  { %v2412_v22 = vadd.f32 %v2336_v54, %v2037_v20  ;;  %v2428_v17 = vadd.f32 %v2336_v54, %v2061_v37  ;;  %v2432_v16 = vadd.f32 %v2336_v54, %v2067_v51  ;;  %v2436_v24 = vadd.f32 %v2336_v54, %v2073_v46 }
 0x1bb   :  { %v2384_v59 = vmul.f32 %v1987_v10, %v3080_v25  ;;  %v2416_v10 = vadd.f32 %v2336_v54, %v2043_v33  ;;  %v2440_v20 = vadd.f32 %v2336_v54, %v2079_v60  ;;  %v2444_v33 = vadd.f32 %v2336_v54, %v2085_v55  ;;  %v3088_v25 = vld [vmem:[#allocation5_spill] sm:$0xff] }
 0x1bc   :  { %v2448_v28 = vadd.f32 %v2336_v54, %v2091_v5  ;;  %v2452_v42 = vadd.f32 %v2336_v54, %v2097_v0  ;;  %v2456_v37 = vadd.f32 %v2336_v54, %v2103_v14  ;;  %v2460_v51 = vadd.f32 %v2336_v54, %v2109_v9 }
 0x1bd   :  { %v2464_v46 = vadd.f32 %v2336_v54, %v2115_v31  ;;  %v2468_v60 = vadd.f32 %v2336_v54, %v2121_v23  ;;  %v2472_v55 = vadd.f32 %v2336_v54, %v2127_v44  ;;  %v2476_v5 = vadd.f32 %v2336_v54, %v2133_v36 }
 0x1be   :  { %v2480_v0 = vadd.f32 %v2336_v54, %v2139_v58  ;;  %v2484_v14 = vadd.f32 %v2336_v54, %v2145_v50  ;;  %v2488_v9 = vadd.f32 %v2336_v54, %v2151_v7  ;;  %v2492_v31 = vadd.f32 %v2336_v54, %v2157_v63 }
 0x1bf   :  { %v2496_v23 = vadd.f32 %v2336_v54, %v2163_v27  ;;  %v2500_v44 = vadd.f32 %v2336_v54, %v2169_v13  ;;  %v2504_v36 = vadd.f32 %v2336_v54, %v2175_v48  ;;  %v2508_v58 = vadd.f32 %v2336_v54, %v2181_v35 }
 0x1c0   :  { %v2512_v50 = vadd.f32 %v2336_v54, %v2187_v4  ;;  %v2516_v7 = vadd.f32 %v2336_v54, %v2193_v57  ;;  %v2520_v63 = vadd.f32 %v2336_v54, %v2199_v32  ;;  %v2524_v27 = vadd.f32 %v2336_v54, %v2205_v12 }
 0x1c1   :  { %v2528_v13 = vadd.f32 %v2336_v54, %v2211_v21  ;;  %v2532_v48 = vadd.f32 %v2336_v54, %v2217_v18  ;;  %v2536_v35 = vadd.f32 %v2336_v54, %v2223_v56  ;;  %v2540_v4 = vadd.f32 %v2336_v54, %v2229_v29  ;;  %v3081_v21 = vld [vmem:[#allocation2_spill] sm:$0xff]  ;;  %v3083_v56 = vld [vmem:[#allocation3_spill] sm:$0xff] }
 0x1c2   :  { %v2544_v57 = vadd.f32 %v2336_v54, %v2235_v8  ;;  %v2548_v32 = vadd.f32 %v2336_v54, %v2241_v47  ;;  %v2552_v12 = vadd.f32 %v2336_v54, %v2247_v3  ;;  %v2556_v18 = vadd.f32 %v2336_v54, %v3081_v21 }
 0x1c3   :  { %v2560_v29 = vadd.f32 %v2336_v54, %v3083_v56  ;;  %v2564_v8 = vadd.f32 %v2336_v54, %v3085_v34  ;;  %v2568_v47 = vadd.f32 %v2336_v54, %v2271_v49  ;;  %v2572_v3 = vadd.f32 %v2336_v54, %v2277_v52 }
 0x1c4   :  { %3082 = vst [vmem:[#allocation24_spill] sm:$0xff] %v2556_v18  ;;  %v2576_v21 = vadd.f32 %v2336_v54, %v3088_v25  ;;  %v3090_v18 = vld [vmem:[#allocation6_spill] sm:$0xff]  ;;  %v2596_v25 = vadd.f32 %v2336_v54, %v2313_v6  ;;  %v2616_v6 = vadd.f32 %v2336_v54, %v2348_v1  ;;  %v2636_v1 = vadd.f32 %v2336_v54, %v2378_v40 }
 0x1c5   :  { %3084 = vst [vmem:[#allocation23_spill] sm:$0xff] %v2560_v29  ;;  %3086 = vst [vmem:[#allocation25_spill] sm:$0xff] %v2564_v8  ;;  %v2580_v56 = vadd.f32 %v2336_v54, %v3090_v18  ;;  %v3091_v29 = vld [vmem:[#allocation11_spill] sm:$0xff]  ;;  %v3093_v8 = vld [vmem:[#allocation14_spill] sm:$0xff]  ;;  %v902_v40 = vmax.f32 %v2416_v10, 0.0  ;;  %v913_v10 = vmax.f32 %v2460_v51, 0.0 }
 0x1c6   :  { %3087 = vst [vmem:[#allocation8_spill] sm:$0xff] %v2568_v47  ;;  %3089 = vst [vmem:[#allocation7_spill] sm:$0xff] %v2576_v21  ;;  %v2584_v34 = vadd.f32 %v2336_v54, %v3091_v29  ;;  %v2588_v49 = vadd.f32 %v2336_v54, %v3093_v8  ;;  %v3094_v47 = vld [vmem:[#allocation19_spill] sm:$0xff]  ;;  %v3095_v21 = vld [vmem:[#allocation22_spill] sm:$0xff]  ;;  %v2604_v29 = vadd.f32 %v2336_v54, %v2325_v61  ;;  %v924_v51 = vmax.f32 %v2504_v36, 0.0 }
 0x1c7   :  { %v2592_v52 = vadd.f32 %v2336_v54, %v3094_v47  ;;  %v2600_v18 = vadd.f32 %v2336_v54, %v3095_v21  ;;  %v2612_v47 = vadd.f32 %v2336_v54, %v2342_v26  ;;  %v2620_v21 = vadd.f32 %v2336_v54, %v2354_v41  ;;  %3101 = vst [vmem:[#allocation15_spill] sm:$0xff] %v2636_v1 }
 0x1c8   :  { %3092 = vst [vmem:[#allocation10_spill] sm:$0xff] %v2584_v34  ;;  %v3096_v34 = vld [vmem:[#allocation21_spill] sm:$0xff]  ;;  %v2624_v61 = vadd.f32 %v2336_v54, %v2360_v53  ;;  %v2632_v26 = vadd.f32 %v2336_v54, %v2372_v43  ;;  %v2640_v41 = vadd.f32 %v2336_v54, %v2384_v59  ;;  %v896_v53 = vmax.f32 %v2392_v11, 0.0  ;;  %966 = vst [vmem:[%s2902_s4 + $0x38] sm:$0xff] %v902_v40 }
 0x1c9   :  { %v2608_v8 = vadd.f32 %v2336_v54, %v3096_v34  ;;  %3097 = vst [vmem:[#allocation9_spill] sm:$0xff] %v2620_v21  ;;  %v2628_v34 = vadd.f32 %v2336_v54, %v2366_v2  ;;  %v895_v21 = vmax.f32 %v2388_v39, 0.0  ;;  %v898_v2 = vmax.f32 %v2400_v38, 0.0  ;;  %977 = vst [vmem:[%s2902_s4 + $0x90] sm:$0xff] %v913_v10 }
 0x1ca   :  { %3098 = vst [vmem:[#allocation12_spill] sm:$0xff] %v2624_v61  ;;  %3100 = vst [vmem:[#allocation16_spill] sm:$0xff] %v2632_v26  ;;  %v897_v61 = vmax.f32 %v2396_v30, 0.0  ;;  %v900_v43 = vmax.f32 %v2408_v15, 0.0  ;;  %v901_v26 = vmax.f32 %v2412_v22, 0.0  ;;  %v903_v1 = vmax.f32 %v2420_v45, 0.0 }
 0x1cb   :  { %3099 = vst [vmem:[#allocation13_spill] sm:$0xff] %v2628_v34  ;;  %v899_v34 = vmax.f32 %v2404_v19, 0.0  ;;  %v904_v54 = vmax.f32 %v2424_v62, 0.0  ;;  %v905_v59 = vmax.f32 %v2428_v17, 0.0  ;;  %v906_v39 = vmax.f32 %v2432_v16, 0.0  ;;  %959 = vst [vmem:[%s2902_s4] sm:$0xff] %v895_v21 }
 0x1cc   :  { %960 = vst [vmem:[%s2902_s4 + $0x8] sm:$0xff] %v896_v53  ;;  %961 = vst [vmem:[%s2902_s4 + $0x10] sm:$0xff] %v897_v61  ;;  %v907_v11 = vmax.f32 %v2436_v24, 0.0  ;;  %v908_v30 = vmax.f32 %v2440_v20, 0.0  ;;  %v909_v38 = vmax.f32 %v2444_v33, 0.0  ;;  %v910_v19 = vmax.f32 %v2448_v28, 0.0 }
 0x1cd   :  { %962 = vst [vmem:[%s2902_s4 + $0x18] sm:$0xff] %v898_v2  ;;  %963 = vst [vmem:[%s2902_s4 + $0x20] sm:$0xff] %v899_v34  ;;  %v911_v15 = vmax.f32 %v2452_v42, 0.0  ;;  %v912_v22 = vmax.f32 %v2456_v37, 0.0  ;;  %v914_v45 = vmax.f32 %v2464_v46, 0.0  ;;  %v915_v62 = vmax.f32 %v2468_v60, 0.0 }
 0x1ce   :  { %964 = vst [vmem:[%s2902_s4 + $0x28] sm:$0xff] %v900_v43  ;;  %965 = vst [vmem:[%s2902_s4 + $0x30] sm:$0xff] %v901_v26  ;;  %v916_v17 = vmax.f32 %v2472_v55, 0.0  ;;  %v917_v16 = vmax.f32 %v2476_v5, 0.0  ;;  %v918_v24 = vmax.f32 %v2480_v0, 0.0  ;;  %v919_v20 = vmax.f32 %v2484_v14, 0.0 }
 0x1cf   :  { %967 = vst [vmem:[%s2902_s4 + $0x40] sm:$0xff] %v903_v1  ;;  %968 = vst [vmem:[%s2902_s4 + $0x48] sm:$0xff] %v904_v54  ;;  %v920_v33 = vmax.f32 %v2488_v9, 0.0  ;;  %v921_v28 = vmax.f32 %v2492_v31, 0.0  ;;  %v922_v42 = vmax.f32 %v2496_v23, 0.0  ;;  %v923_v37 = vmax.f32 %v2500_v44, 0.0 }
 0x1d0   :  { %969 = vst [vmem:[%s2902_s4 + $0x50] sm:$0xff] %v905_v59  ;;  %970 = vst [vmem:[%s2902_s4 + $0x58] sm:$0xff] %v906_v39  ;;  %v925_v46 = vmax.f32 %v2508_v58, 0.0  ;;  %v926_v60 = vmax.f32 %v2512_v50, 0.0  ;;  %v927_v55 = vmax.f32 %v2516_v7, 0.0  ;;  %v928_v5 = vmax.f32 %v2520_v63, 0.0 }
 0x1d1   :  { %971 = vst [vmem:[%s2902_s4 + $0x60] sm:$0xff] %v907_v11  ;;  %972 = vst [vmem:[%s2902_s4 + $0x68] sm:$0xff] %v908_v30  ;;  %v929_v0 = vmax.f32 %v2524_v27, 0.0  ;;  %v930_v14 = vmax.f32 %v2528_v13, 0.0  ;;  %v931_v9 = vmax.f32 %v2532_v48, 0.0  ;;  %v932_v31 = vmax.f32 %v2536_v35, 0.0 }
 0x1d2   :  { %973 = vst [vmem:[%s2902_s4 + $0x70] sm:$0xff] %v909_v38  ;;  %974 = vst [vmem:[%s2902_s4 + $0x78] sm:$0xff] %v910_v19  ;;  %v933_v23 = vmax.f32 %v2540_v4, 0.0  ;;  %v934_v44 = vmax.f32 %v2544_v57, 0.0  ;;  %v935_v36 = vmax.f32 %v2548_v32, 0.0  ;;  %v936_v58 = vmax.f32 %v2552_v12, 0.0 }
 0x1d3   :  { %975 = vst [vmem:[%s2902_s4 + $0x80] sm:$0xff] %v911_v15  ;;  %976 = vst [vmem:[%s2902_s4 + $0x88] sm:$0xff] %v912_v22  ;;  %v3102_v50 = vld [vmem:[#allocation24_spill] sm:$0xff]  ;;  %v3103_v63 = vld [vmem:[#allocation23_spill] sm:$0xff]  ;;  %v941_v57 = vmax.f32 %v2572_v3, 0.0  ;;  %v943_v3 = vmax.f32 %v2580_v56, 0.0 }
 0x1d4   :  { %978 = vst [vmem:[%s2902_s4 + $0x98] sm:$0xff] %v914_v45  ;;  %979 = vst [vmem:[%s2902_s4 + $0xa0] sm:$0xff] %v915_v62  ;;  %v937_v7 = vmax.f32 %v3102_v50, 0.0  ;;  %v938_v27 = vmax.f32 %v3103_v63, 0.0  ;;  %v3104_v13 = vld [vmem:[#allocation25_spill] sm:$0xff]  ;;  %v3105_v35 = vld [vmem:[#allocation8_spill] sm:$0xff] }
 0x1d5   :  { %980 = vst [vmem:[%s2902_s4 + $0xa8] sm:$0xff] %v916_v17  ;;  %981 = vst [vmem:[%s2902_s4 + $0xb0] sm:$0xff] %v917_v16  ;;  %v939_v48 = vmax.f32 %v3104_v13, 0.0  ;;  %v940_v4 = vmax.f32 %v3105_v35, 0.0  ;;  %v3106_v32 = vld [vmem:[#allocation7_spill] sm:$0xff]  ;;  %v3107_v21 = vld [vmem:[#allocation10_spill] sm:$0xff] }
 0x1d6   :  { %982 = vst [vmem:[%s2902_s4 + $0xb8] sm:$0xff] %v918_v24  ;;  %983 = vst [vmem:[%s2902_s4 + $0xc0] sm:$0xff] %v919_v20  ;;  %v942_v12 = vmax.f32 %v3106_v32, 0.0  ;;  %v944_v61 = vmax.f32 %v3107_v21, 0.0  ;;  %v945_v34 = vmax.f32 %v2588_v49, 0.0  ;;  %v946_v26 = vmax.f32 %v2592_v52, 0.0 }
 0x1d7   :  { %984 = vst [vmem:[%s2902_s4 + $0xc8] sm:$0xff] %v920_v33  ;;  %985 = vst [vmem:[%s2902_s4 + $0xd0] sm:$0xff] %v921_v28  ;;  %v947_v56 = vmax.f32 %v2596_v25, 0.0  ;;  %v948_v49 = vmax.f32 %v2600_v18, 0.0  ;;  %v949_v52 = vmax.f32 %v2604_v29, 0.0  ;;  %v950_v1 = vmax.f32 %v2608_v8, 0.0 }
 0x1d8   :  { %986 = vst [vmem:[%s2902_s4 + $0xd8] sm:$0xff] %v922_v42  ;;  %987 = vst [vmem:[%s2902_s4 + $0xe0] sm:$0xff] %v923_v37  ;;  %v951_v25 = vmax.f32 %v2612_v47, 0.0  ;;  %v952_v18 = vmax.f32 %v2616_v6, 0.0  ;;  %v3108_v29 = vld [vmem:[#allocation9_spill] sm:$0xff]  ;;  %v3109_v53 = vld [vmem:[#allocation12_spill] sm:$0xff] }
 0x1d9   :  { %988 = vst [vmem:[%s2902_s4 + $0xe8] sm:$0xff] %v924_v51  ;;  %989 = vst [vmem:[%s2902_s4 + $0xf0] sm:$0xff] %v925_v46  ;;  %v953_v8 = vmax.f32 %v3108_v29, 0.0  ;;  %v954_v2 = vmax.f32 %v3109_v53, 0.0  ;;  %v3110_v47 = vld [vmem:[#allocation13_spill] sm:$0xff]  ;;  %v3111_v43 = vld [vmem:[#allocation16_spill] sm:$0xff] }
 0x1da   :  { %990 = vst [vmem:[%s2902_s4 + $0xf8] sm:$0xff] %v926_v60  ;;  %991 = vst [vmem:[%s2902_s4 + $0x100] sm:$0xff] %v927_v55  ;;  %v955_v6 = vmax.f32 %v3110_v47, 0.0  ;;  %v956_v40 = vmax.f32 %v3111_v43, 0.0  ;;  %v3112_v54 = vld [vmem:[#allocation15_spill] sm:$0xff]  ;;  %v958_v39 = vmax.f32 %v2640_v41, 0.0 }
 0x1db   :  { %992 = vst [vmem:[%s2902_s4 + $0x108] sm:$0xff] %v928_v5  ;;  %993 = vst [vmem:[%s2902_s4 + $0x110] sm:$0xff] %v929_v0  ;;  %v957_v59 = vmax.f32 %v3112_v54, 0.0 }
 0x1dc   :  { %994 = vst [vmem:[%s2902_s4 + $0x118] sm:$0xff] %v930_v14  ;;  %995 = vst [vmem:[%s2902_s4 + $0x120] sm:$0xff] %v931_v9 }
 0x1dd   :  { %996 = vst [vmem:[%s2902_s4 + $0x128] sm:$0xff] %v932_v31  ;;  %997 = vst [vmem:[%s2902_s4 + $0x130] sm:$0xff] %v933_v23 }
 0x1de   :  { %998 = vst [vmem:[%s2902_s4 + $0x138] sm:$0xff] %v934_v44  ;;  %999 = vst [vmem:[%s2902_s4 + $0x140] sm:$0xff] %v935_v36 }
 0x1df   :  { %1000 = vst [vmem:[%s2902_s4 + $0x148] sm:$0xff] %v936_v58  ;;  %1001 = vst [vmem:[%s2902_s4 + $0x150] sm:$0xff] %v937_v7 }
 0x1e0   :  { %1002 = vst [vmem:[%s2902_s4 + $0x158] sm:$0xff] %v938_v27  ;;  %1003 = vst [vmem:[%s2902_s4 + $0x160] sm:$0xff] %v939_v48 }
 0x1e1   :  { %1004 = vst [vmem:[%s2902_s4 + $0x168] sm:$0xff] %v940_v4  ;;  %1005 = vst [vmem:[%s2902_s4 + $0x170] sm:$0xff] %v941_v57 }
 0x1e2   :  { %1006 = vst [vmem:[%s2902_s4 + $0x178] sm:$0xff] %v942_v12  ;;  %1007 = vst [vmem:[%s2902_s4 + $0x180] sm:$0xff] %v943_v3 }
 0x1e3   :  { %1008 = vst [vmem:[%s2902_s4 + $0x188] sm:$0xff] %v944_v61  ;;  %1009 = vst [vmem:[%s2902_s4 + $0x190] sm:$0xff] %v945_v34 }
 0x1e4   :  { %1010 = vst [vmem:[%s2902_s4 + $0x198] sm:$0xff] %v946_v26  ;;  %1011 = vst [vmem:[%s2902_s4 + $0x1a0] sm:$0xff] %v947_v56 }
 0x1e5   :  { %1012 = vst [vmem:[%s2902_s4 + $0x1a8] sm:$0xff] %v948_v49  ;;  %1013 = vst [vmem:[%s2902_s4 + $0x1b0] sm:$0xff] %v949_v52 }
 0x1e6   :  { %1014 = vst [vmem:[%s2902_s4 + $0x1b8] sm:$0xff] %v950_v1  ;;  %1015 = vst [vmem:[%s2902_s4 + $0x1c0] sm:$0xff] %v951_v25 }
 0x1e7   :  { %1016 = vst [vmem:[%s2902_s4 + $0x1c8] sm:$0xff] %v952_v18  ;;  %1017 = vst [vmem:[%s2902_s4 + $0x1d0] sm:$0xff] %v953_v8 }
 0x1e8   :  { %1018 = vst [vmem:[%s2902_s4 + $0x1d8] sm:$0xff] %v954_v2  ;;  %1019 = vst [vmem:[%s2902_s4 + $0x1e0] sm:$0xff] %v955_v6 }
 0x1e9   :  { %1020 = vst [vmem:[%s2902_s4 + $0x1e8] sm:$0xff] %v956_v40  ;;  %1021 = vst [vmem:[%s2902_s4 + $0x1f0] sm:$0xff] %v957_v59 }
 0x1ea   :  { %1022 = vst [vmem:[%s2902_s4 + $0x1f8] sm:$0xff] %v958_v39 }

// kernel: encoder_forward.4
= control target key start
LH: loop header
LB: loop body
LE: loop exit
PB: predicated region body
PF: predicated region fallthrough
CT: control target
= control target key end

     0   :  { %s5269_s15 = smov 0   ;;  %s5271_s16 = smov 0   ;;  %s6682_s0 = inlined_call_operand.vmem [shape: bf16[128,2048], index: 0, kind: input, shape index: {}]   ;;  %s6683_s1 = inlined_call_operand.vmem [shape: bf16[2048,256], index: 1, kind: input, shape index: {}]   ;;  %s6684_s2 = inlined_call_operand.vmem [shape: f32[1,256], index: 2, kind: input, shape index: {}]   ;;  %s6685_s3 = inlined_call_operand.vmem [shape: f32[1,256], index: 3, kind: input, shape index: {}]   ;;  %s6686_s4 = inlined_call_operand.vmem [shape: f32[128,256], index: 4, kind: output, shape index: {}]  }
   0x1   :  { %s5273_s17 = smov 0   ;;  %s5275_s18 = smov 0  }
   0x2   :  { %s5277_s19 = smov 0  }
   0x3 LB: > { %s26_s20 = sadd.s32 1, %s5238_s18  ;;  %s4251_s21 = sadd.s32 4294967295, %s5242_s19   ;;  %s5242_s19 = sphi %s5277_s19, %s14_s19   ;;  %s5238_s18 = sphi %s5275_s18, %s6691_s18   ;;  %s5234_s17 = sphi %s5273_s17, %s6690_s17   ;;  %s5230_s16 = sphi %s5271_s16, %s6689_s16   ;;  %s5226_s15 = sphi %s5269_s15, %s6688_s15  }
   0x4   : > { %p28_p0 = scmp.ge.s32.totalorder %s26_s20, 2  ;;  %p68_p1 = scmp.ne.s32.totalorder %s5230_s16, %s5226_s15 }
   0x5   : > { %p69_p2 = scmp.eq.s32.totalorder %s5242_s19, 0  ;;  %p150_p4 = scmp.eq.s32.totalorder %s4251_s21, 1 }
   0x6   : > { %s6693_s20 = smov (%p28_p0, %s26_s20), 0  ;;  %s61_s23 = sadd.s32 1, %s5230_s16 }
   0x7   : > { %p70_p3 = por %p69_p2, %p68_p1  ;;  %s57_s22 = ssub.s32 %s5238_s18, %s6693_s20 }
   0x8   : > { %p59_p5 = scmp.eq.s32.totalorder %s57_s22, 0  ;;  %p5304_p6 = por %p150_p4, %p68_p1 }
   0x9   : > { %p4255_p7 = scmp.ge.s32.totalorder %s5242_s19, 2 }
   0xa   : > { %s5309_s25 = scalar_select %p59_p5, %s5230_s16, %s61_s23  }
   0xb   : > { %181 = sbr.rel (%p4255_p7) target bundleno = 190 (0xbe), region = 20 }
  0x10   : > { %184 = sbr.rel (!%p70_p3) target bundleno = 190 (0xbe), region = 24  ;;  %s186_s26 = sand.u32 (%p70_p3), 1, %s5230_s16  }
  0x11   : > { %s4257_s27 = sshll.u32 (%p70_p3), %s5238_s18, 2  ;;  %s4256_s28 = sshll.u32 (%p70_p3), %s186_s26, 10 }
  0x12   : > { %s5317_s5 = scalar_lea.vmem (%p70_p3), %s6683_s1, %s4257_s27  ;;  %s5321_s6 = scalar_lea.vmem (%p70_p3), [#allocation2], %s4256_s28 }
  0x13   : > { %v210_v0 = vld [vmem:[%s5317_s5] sm:$0xf] (%p70_p3)  ;;  %v212_v1 = vld [vmem:[%s5317_s5 + $0x8] sm:$0xf] (%p70_p3)  ;;  %v214_v2 = vld [vmem:[%s5317_s5 + $0x10] sm:$0xf] (%p70_p3) }
  0x14   : > { %211 = vst [vmem:[%s5321_s6] sm:$0xf] (%p70_p3), %v210_v0  ;;  %213 = vst [vmem:[%s5321_s6 + $0x4] sm:$0xf] (%p70_p3), %v212_v1  ;;  %v216_v3 = vld [vmem:[%s5317_s5 + $0x18] sm:$0xf] (%p70_p3) }
  0x15   : > { %v218_v4 = vld [vmem:[%s5317_s5 + $0x20] sm:$0xf]  ;;  %215 = vst [vmem:[%s5321_s6 + $0x8] sm:$0xf] %v214_v2  ;;  %217 = vst [vmem:[%s5321_s6 + $0xc] sm:$0xf] %v216_v3 }
  0x16   : > { %219 = vst [vmem:[%s5321_s6 + $0x10] sm:$0xf] %v218_v4  ;;  %v220_v5 = vld [vmem:[%s5317_s5 + $0x28] sm:$0xf]  ;;  %v222_v6 = vld [vmem:[%s5317_s5 + $0x30] sm:$0xf] }
  0x17   : > { %v224_v7 = vld [vmem:[%s5317_s5 + $0x38] sm:$0xf]  ;;  %221 = vst [vmem:[%s5321_s6 + $0x14] sm:$0xf] %v220_v5  ;;  %223 = vst [vmem:[%s5321_s6 + $0x18] sm:$0xf] %v222_v6 }
  0x18   : > { %225 = vst [vmem:[%s5321_s6 + $0x1c] sm:$0xf] %v224_v7  ;;  %v226_v8 = vld [vmem:[%s5317_s5 + $0x40] sm:$0xf]  ;;  %v228_v9 = vld [vmem:[%s5317_s5 + $0x48] sm:$0xf] }
  0x19   : > { %v230_v10 = vld [vmem:[%s5317_s5 + $0x50] sm:$0xf]  ;;  %227 = vst [vmem:[%s5321_s6 + $0x20] sm:$0xf] %v226_v8  ;;  %229 = vst [vmem:[%s5321_s6 + $0x24] sm:$0xf] %v228_v9 }
  0x1a   : > { %231 = vst [vmem:[%s5321_s6 + $0x28] sm:$0xf] %v230_v10  ;;  %v232_v11 = vld [vmem:[%s5317_s5 + $0x58] sm:$0xf]  ;;  %v234_v12 = vld [vmem:[%s5317_s5 + $0x60] sm:$0xf] }
  0x1b   : > { %v236_v13 = vld [vmem:[%s5317_s5 + $0x68] sm:$0xf]  ;;  %233 = vst [vmem:[%s5321_s6 + $0x2c] sm:$0xf] %v232_v11  ;;  %235 = vst [vmem:[%s5321_s6 + $0x30] sm:$0xf] %v234_v12 }
  0x1c   : > { %237 = vst [vmem:[%s5321_s6 + $0x34] sm:$0xf] %v236_v13  ;;  %v238_v14 = vld [vmem:[%s5317_s5 + $0x70] sm:$0xf]  ;;  %v240_v15 = vld [vmem:[%s5317_s5 + $0x78] sm:$0xf] }
  0x1d   : > { %v242_v16 = vld [vmem:[%s5317_s5 + $0x80] sm:$0xf]  ;;  %239 = vst [vmem:[%s5321_s6 + $0x38] sm:$0xf] %v238_v14  ;;  %241 = vst [vmem:[%s5321_s6 + $0x3c] sm:$0xf] %v240_v15 }
  0x1e   : > { %243 = vst [vmem:[%s5321_s6 + $0x40] sm:$0xf] %v242_v16  ;;  %v244_v17 = vld [vmem:[%s5317_s5 + $0x88] sm:$0xf]  ;;  %v246_v18 = vld [vmem:[%s5317_s5 + $0x90] sm:$0xf] }
  0x1f   : > { %v248_v19 = vld [vmem:[%s5317_s5 + $0x98] sm:$0xf]  ;;  %245 = vst [vmem:[%s5321_s6 + $0x44] sm:$0xf] %v244_v17  ;;  %247 = vst [vmem:[%s5321_s6 + $0x48] sm:$0xf] %v246_v18 }
  0x20   : > { %249 = vst [vmem:[%s5321_s6 + $0x4c] sm:$0xf] %v248_v19  ;;  %v250_v20 = vld [vmem:[%s5317_s5 + $0xa0] sm:$0xf]  ;;  %v252_v21 = vld [vmem:[%s5317_s5 + $0xa8] sm:$0xf] }
  0x21   : > { %v254_v22 = vld [vmem:[%s5317_s5 + $0xb0] sm:$0xf]  ;;  %251 = vst [vmem:[%s5321_s6 + $0x50] sm:$0xf] %v250_v20  ;;  %253 = vst [vmem:[%s5321_s6 + $0x54] sm:$0xf] %v252_v21 }
  0x22   : > { %255 = vst [vmem:[%s5321_s6 + $0x58] sm:$0xf] %v254_v22  ;;  %v256_v23 = vld [vmem:[%s5317_s5 + $0xb8] sm:$0xf]  ;;  %v258_v24 = vld [vmem:[%s5317_s5 + $0xc0] sm:$0xf] }
  0x23   : > { %v260_v25 = vld [vmem:[%s5317_s5 + $0xc8] sm:$0xf]  ;;  %257 = vst [vmem:[%s5321_s6 + $0x5c] sm:$0xf] %v256_v23  ;;  %259 = vst [vmem:[%s5321_s6 + $0x60] sm:$0xf] %v258_v24 }
  0x24   : > { %261 = vst [vmem:[%s5321_s6 + $0x64] sm:$0xf] %v260_v25  ;;  %v262_v26 = vld [vmem:[%s5317_s5 + $0xd0] sm:$0xf]  ;;  %v264_v27 = vld [vmem:[%s5317_s5 + $0xd8] sm:$0xf] }
  0x25   : > { %v266_v28 = vld [vmem:[%s5317_s5 + $0xe0] sm:$0xf]  ;;  %263 = vst [vmem:[%s5321_s6 + $0x68] sm:$0xf] %v262_v26  ;;  %265 = vst [vmem:[%s5321_s6 + $0x6c] sm:$0xf] %v264_v27 }
  0x26   : > { %267 = vst [vmem:[%s5321_s6 + $0x70] sm:$0xf] %v266_v28  ;;  %v268_v29 = vld [vmem:[%s5317_s5 + $0xe8] sm:$0xf]  ;;  %v270_v30 = vld [vmem:[%s5317_s5 + $0xf0] sm:$0xf] }
  0x27   : > { %v272_v31 = vld [vmem:[%s5317_s5 + $0xf8] sm:$0xf]  ;;  %269 = vst [vmem:[%s5321_s6 + $0x74] sm:$0xf] %v268_v29  ;;  %271 = vst [vmem:[%s5321_s6 + $0x78] sm:$0xf] %v270_v30 }
  0x28   : > { %273 = vst [vmem:[%s5321_s6 + $0x7c] sm:$0xf] %v272_v31  ;;  %v274_v32 = vld [vmem:[%s5317_s5 + $0x100] sm:$0xf]  ;;  %v276_v33 = vld [vmem:[%s5317_s5 + $0x108] sm:$0xf] }
  0x29   : > { %v278_v34 = vld [vmem:[%s5317_s5 + $0x110] sm:$0xf]  ;;  %275 = vst [vmem:[%s5321_s6 + $0x80] sm:$0xf] %v274_v32  ;;  %277 = vst [vmem:[%s5321_s6 + $0x84] sm:$0xf] %v276_v33 }
  0x2a   : > { %279 = vst [vmem:[%s5321_s6 + $0x88] sm:$0xf] %v278_v34  ;;  %v280_v35 = vld [vmem:[%s5317_s5 + $0x118] sm:$0xf]  ;;  %v282_v36 = vld [vmem:[%s5317_s5 + $0x120] sm:$0xf] }
  0x2b   : > { %v284_v37 = vld [vmem:[%s5317_s5 + $0x128] sm:$0xf]  ;;  %281 = vst [vmem:[%s5321_s6 + $0x8c] sm:$0xf] %v280_v35  ;;  %283 = vst [vmem:[%s5321_s6 + $0x90] sm:$0xf] %v282_v36 }
  0x2c   : > { %285 = vst [vmem:[%s5321_s6 + $0x94] sm:$0xf] %v284_v37  ;;  %v286_v38 = vld [vmem:[%s5317_s5 + $0x130] sm:$0xf]  ;;  %v288_v39 = vld [vmem:[%s5317_s5 + $0x138] sm:$0xf] }
  0x2d   : > { %v290_v40 = vld [vmem:[%s5317_s5 + $0x140] sm:$0xf]  ;;  %287 = vst [vmem:[%s5321_s6 + $0x98] sm:$0xf] %v286_v38  ;;  %289 = vst [vmem:[%s5321_s6 + $0x9c] sm:$0xf] %v288_v39 }
  0x2e   : > { %291 = vst [vmem:[%s5321_s6 + $0xa0] sm:$0xf] %v290_v40  ;;  %v292_v41 = vld [vmem:[%s5317_s5 + $0x148] sm:$0xf]  ;;  %v294_v42 = vld [vmem:[%s5317_s5 + $0x150] sm:$0xf] }
  0x2f   : > { %v296_v43 = vld [vmem:[%s5317_s5 + $0x158] sm:$0xf]  ;;  %293 = vst [vmem:[%s5321_s6 + $0xa4] sm:$0xf] %v292_v41  ;;  %295 = vst [vmem:[%s5321_s6 + $0xa8] sm:$0xf] %v294_v42 }
  0x30   : > { %297 = vst [vmem:[%s5321_s6 + $0xac] sm:$0xf] %v296_v43  ;;  %v298_v44 = vld [vmem:[%s5317_s5 + $0x160] sm:$0xf]  ;;  %v300_v45 = vld [vmem:[%s5317_s5 + $0x168] sm:$0xf] }
  0x31   : > { %v302_v46 = vld [vmem:[%s5317_s5 + $0x170] sm:$0xf]  ;;  %299 = vst [vmem:[%s5321_s6 + $0xb0] sm:$0xf] %v298_v44  ;;  %301 = vst [vmem:[%s5321_s6 + $0xb4] sm:$0xf] %v300_v45 }
  0x32   : > { %303 = vst [vmem:[%s5321_s6 + $0xb8] sm:$0xf] %v302_v46  ;;  %v304_v47 = vld [vmem:[%s5317_s5 + $0x178] sm:$0xf]  ;;  %v306_v48 = vld [vmem:[%s5317_s5 + $0x180] sm:$0xf] }
  0x33   : > { %v308_v49 = vld [vmem:[%s5317_s5 + $0x188] sm:$0xf]  ;;  %305 = vst [vmem:[%s5321_s6 + $0xbc] sm:$0xf] %v304_v47  ;;  %307 = vst [vmem:[%s5321_s6 + $0xc0] sm:$0xf] %v306_v48 }
  0x34   : > { %309 = vst [vmem:[%s5321_s6 + $0xc4] sm:$0xf] %v308_v49  ;;  %v310_v50 = vld [vmem:[%s5317_s5 + $0x190] sm:$0xf]  ;;  %v312_v51 = vld [vmem:[%s5317_s5 + $0x198] sm:$0xf] }
  0x35   : > { %v314_v52 = vld [vmem:[%s5317_s5 + $0x1a0] sm:$0xf]  ;;  %311 = vst [vmem:[%s5321_s6 + $0xc8] sm:$0xf] %v310_v50  ;;  %313 = vst [vmem:[%s5321_s6 + $0xcc] sm:$0xf] %v312_v51 }
  0x36   : > { %315 = vst [vmem:[%s5321_s6 + $0xd0] sm:$0xf] %v314_v52  ;;  %v316_v53 = vld [vmem:[%s5317_s5 + $0x1a8] sm:$0xf]  ;;  %v318_v54 = vld [vmem:[%s5317_s5 + $0x1b0] sm:$0xf] }
  0x37   : > { %v320_v55 = vld [vmem:[%s5317_s5 + $0x1b8] sm:$0xf]  ;;  %317 = vst [vmem:[%s5321_s6 + $0xd4] sm:$0xf] %v316_v53  ;;  %319 = vst [vmem:[%s5321_s6 + $0xd8] sm:$0xf] %v318_v54 }
  0x38   : > { %321 = vst [vmem:[%s5321_s6 + $0xdc] sm:$0xf] %v320_v55  ;;  %v322_v56 = vld [vmem:[%s5317_s5 + $0x1c0] sm:$0xf]  ;;  %v324_v57 = vld [vmem:[%s5317_s5 + $0x1c8] sm:$0xf] }
  0x39   : > { %v326_v58 = vld [vmem:[%s5317_s5 + $0x1d0] sm:$0xf]  ;;  %323 = vst [vmem:[%s5321_s6 + $0xe0] sm:$0xf] %v322_v56  ;;  %325 = vst [vmem:[%s5321_s6 + $0xe4] sm:$0xf] %v324_v57 }
  0x3a   : > { %327 = vst [vmem:[%s5321_s6 + $0xe8] sm:$0xf] %v326_v58  ;;  %v328_v59 = vld [vmem:[%s5317_s5 + $0x1d8] sm:$0xf]  ;;  %v330_v60 = vld [vmem:[%s5317_s5 + $0x1e0] sm:$0xf] }
  0x3b   : > { %v332_v61 = vld [vmem:[%s5317_s5 + $0x1e8] sm:$0xf]  ;;  %329 = vst [vmem:[%s5321_s6 + $0xec] sm:$0xf] %v328_v59  ;;  %331 = vst [vmem:[%s5321_s6 + $0xf0] sm:$0xf] %v330_v60 }
  0x3c   : > { %333 = vst [vmem:[%s5321_s6 + $0xf4] sm:$0xf] %v332_v61  ;;  %v334_v62 = vld [vmem:[%s5317_s5 + $0x1f0] sm:$0xf]  ;;  %v336_v63 = vld [vmem:[%s5317_s5 + $0x1f8] sm:$0xf] }
  0x3d   : > { %v338_v0 = vld [vmem:[%s5317_s5 + $0x200] sm:$0xf]  ;;  %335 = vst [vmem:[%s5321_s6 + $0xf8] sm:$0xf] %v334_v62  ;;  %337 = vst [vmem:[%s5321_s6 + $0xfc] sm:$0xf] %v336_v63 }
  0x3e   : > { %339 = vst [vmem:[%s5321_s6 + $0x100] sm:$0xf] %v338_v0  ;;  %v340_v1 = vld [vmem:[%s5317_s5 + $0x208] sm:$0xf]  ;;  %v342_v2 = vld [vmem:[%s5317_s5 + $0x210] sm:$0xf] }
  0x3f   : > { %v344_v3 = vld [vmem:[%s5317_s5 + $0x218] sm:$0xf]  ;;  %341 = vst [vmem:[%s5321_s6 + $0x104] sm:$0xf] %v340_v1  ;;  %343 = vst [vmem:[%s5321_s6 + $0x108] sm:$0xf] %v342_v2 }
  0x40   : > { %345 = vst [vmem:[%s5321_s6 + $0x10c] sm:$0xf] %v344_v3  ;;  %v346_v4 = vld [vmem:[%s5317_s5 + $0x220] sm:$0xf]  ;;  %v348_v5 = vld [vmem:[%s5317_s5 + $0x228] sm:$0xf] }
  0x41   : > { %v350_v6 = vld [vmem:[%s5317_s5 + $0x230] sm:$0xf]  ;;  %347 = vst [vmem:[%s5321_s6 + $0x110] sm:$0xf] %v346_v4  ;;  %349 = vst [vmem:[%s5321_s6 + $0x114] sm:$0xf] %v348_v5 }
  0x42   : > { %351 = vst [vmem:[%s5321_s6 + $0x118] sm:$0xf] %v350_v6  ;;  %v352_v7 = vld [vmem:[%s5317_s5 + $0x238] sm:$0xf]  ;;  %v354_v8 = vld [vmem:[%s5317_s5 + $0x240] sm:$0xf] }
  0x43   : > { %v356_v9 = vld [vmem:[%s5317_s5 + $0x248] sm:$0xf]  ;;  %353 = vst [vmem:[%s5321_s6 + $0x11c] sm:$0xf] %v352_v7  ;;  %355 = vst [vmem:[%s5321_s6 + $0x120] sm:$0xf] %v354_v8 }
  0x44   : > { %357 = vst [vmem:[%s5321_s6 + $0x124] sm:$0xf] %v356_v9  ;;  %v358_v10 = vld [vmem:[%s5317_s5 + $0x250] sm:$0xf]  ;;  %v360_v11 = vld [vmem:[%s5317_s5 + $0x258] sm:$0xf] }
  0x45   : > { %v362_v12 = vld [vmem:[%s5317_s5 + $0x260] sm:$0xf]  ;;  %359 = vst [vmem:[%s5321_s6 + $0x128] sm:$0xf] %v358_v10  ;;  %361 = vst [vmem:[%s5321_s6 + $0x12c] sm:$0xf] %v360_v11 }
  0x46   : > { %363 = vst [vmem:[%s5321_s6 + $0x130] sm:$0xf] %v362_v12  ;;  %v364_v13 = vld [vmem:[%s5317_s5 + $0x268] sm:$0xf]  ;;  %v366_v14 = vld [vmem:[%s5317_s5 + $0x270] sm:$0xf] }
  0x47   : > { %v368_v15 = vld [vmem:[%s5317_s5 + $0x278] sm:$0xf]  ;;  %365 = vst [vmem:[%s5321_s6 + $0x134] sm:$0xf] %v364_v13  ;;  %367 = vst [vmem:[%s5321_s6 + $0x138] sm:$0xf] %v366_v14 }
  0x48   : > { %369 = vst [vmem:[%s5321_s6 + $0x13c] sm:$0xf] %v368_v15  ;;  %v370_v16 = vld [vmem:[%s5317_s5 + $0x280] sm:$0xf]  ;;  %v372_v17 = vld [vmem:[%s5317_s5 + $0x288] sm:$0xf] }
  0x49   : > { %v374_v18 = vld [vmem:[%s5317_s5 + $0x290] sm:$0xf]  ;;  %371 = vst [vmem:[%s5321_s6 + $0x140] sm:$0xf] %v370_v16  ;;  %373 = vst [vmem:[%s5321_s6 + $0x144] sm:$0xf] %v372_v17 }
  0x4a   : > { %375 = vst [vmem:[%s5321_s6 + $0x148] sm:$0xf] %v374_v18  ;;  %v376_v19 = vld [vmem:[%s5317_s5 + $0x298] sm:$0xf]  ;;  %v378_v20 = vld [vmem:[%s5317_s5 + $0x2a0] sm:$0xf] }
  0x4b   : > { %v380_v21 = vld [vmem:[%s5317_s5 + $0x2a8] sm:$0xf]  ;;  %377 = vst [vmem:[%s5321_s6 + $0x14c] sm:$0xf] %v376_v19  ;;  %379 = vst [vmem:[%s5321_s6 + $0x150] sm:$0xf] %v378_v20 }
  0x4c   : > { %381 = vst [vmem:[%s5321_s6 + $0x154] sm:$0xf] %v380_v21  ;;  %v382_v22 = vld [vmem:[%s5317_s5 + $0x2b0] sm:$0xf]  ;;  %v384_v23 = vld [vmem:[%s5317_s5 + $0x2b8] sm:$0xf] }
  0x4d   : > { %v386_v24 = vld [vmem:[%s5317_s5 + $0x2c0] sm:$0xf]  ;;  %383 = vst [vmem:[%s5321_s6 + $0x158] sm:$0xf] %v382_v22  ;;  %385 = vst [vmem:[%s5321_s6 + $0x15c] sm:$0xf] %v384_v23 }
  0x4e   : > { %387 = vst [vmem:[%s5321_s6 + $0x160] sm:$0xf] %v386_v24  ;;  %v388_v25 = vld [vmem:[%s5317_s5 + $0x2c8] sm:$0xf]  ;;  %v390_v26 = vld [vmem:[%s5317_s5 + $0x2d0] sm:$0xf] }
  0x4f   : > { %v392_v27 = vld [vmem:[%s5317_s5 + $0x2d8] sm:$0xf]  ;;  %389 = vst [vmem:[%s5321_s6 + $0x164] sm:$0xf] %v388_v25  ;;  %391 = vst [vmem:[%s5321_s6 + $0x168] sm:$0xf] %v390_v26 }
  0x50   : > { %393 = vst [vmem:[%s5321_s6 + $0x16c] sm:$0xf] %v392_v27  ;;  %v394_v28 = vld [vmem:[%s5317_s5 + $0x2e0] sm:$0xf]  ;;  %v396_v29 = vld [vmem:[%s5317_s5 + $0x2e8] sm:$0xf] }
  0x51   : > { %v398_v30 = vld [vmem:[%s5317_s5 + $0x2f0] sm:$0xf]  ;;  %395 = vst [vmem:[%s5321_s6 + $0x170] sm:$0xf] %v394_v28  ;;  %397 = vst [vmem:[%s5321_s6 + $0x174] sm:$0xf] %v396_v29 }
  0x52   : > { %399 = vst [vmem:[%s5321_s6 + $0x178] sm:$0xf] %v398_v30  ;;  %v400_v31 = vld [vmem:[%s5317_s5 + $0x2f8] sm:$0xf]  ;;  %v402_v32 = vld [vmem:[%s5317_s5 + $0x300] sm:$0xf] }
  0x53   : > { %v404_v33 = vld [vmem:[%s5317_s5 + $0x308] sm:$0xf]  ;;  %401 = vst [vmem:[%s5321_s6 + $0x17c] sm:$0xf] %v400_v31  ;;  %403 = vst [vmem:[%s5321_s6 + $0x180] sm:$0xf] %v402_v32 }
  0x54   : > { %405 = vst [vmem:[%s5321_s6 + $0x184] sm:$0xf] %v404_v33  ;;  %v406_v34 = vld [vmem:[%s5317_s5 + $0x310] sm:$0xf]  ;;  %v408_v35 = vld [vmem:[%s5317_s5 + $0x318] sm:$0xf] }
  0x55   : > { %v410_v36 = vld [vmem:[%s5317_s5 + $0x320] sm:$0xf]  ;;  %407 = vst [vmem:[%s5321_s6 + $0x188] sm:$0xf] %v406_v34  ;;  %409 = vst [vmem:[%s5321_s6 + $0x18c] sm:$0xf] %v408_v35 }
  0x56   : > { %411 = vst [vmem:[%s5321_s6 + $0x190] sm:$0xf] %v410_v36  ;;  %v412_v37 = vld [vmem:[%s5317_s5 + $0x328] sm:$0xf]  ;;  %v414_v38 = vld [vmem:[%s5317_s5 + $0x330] sm:$0xf] }
  0x57   : > { %v416_v39 = vld [vmem:[%s5317_s5 + $0x338] sm:$0xf]  ;;  %413 = vst [vmem:[%s5321_s6 + $0x194] sm:$0xf] %v412_v37  ;;  %415 = vst [vmem:[%s5321_s6 + $0x198] sm:$0xf] %v414_v38 }
  0x58   : > { %417 = vst [vmem:[%s5321_s6 + $0x19c] sm:$0xf] %v416_v39  ;;  %v418_v40 = vld [vmem:[%s5317_s5 + $0x340] sm:$0xf]  ;;  %v420_v41 = vld [vmem:[%s5317_s5 + $0x348] sm:$0xf] }
  0x59   : > { %v422_v42 = vld [vmem:[%s5317_s5 + $0x350] sm:$0xf]  ;;  %419 = vst [vmem:[%s5321_s6 + $0x1a0] sm:$0xf] %v418_v40  ;;  %421 = vst [vmem:[%s5321_s6 + $0x1a4] sm:$0xf] %v420_v41 }
  0x5a   : > { %423 = vst [vmem:[%s5321_s6 + $0x1a8] sm:$0xf] %v422_v42  ;;  %v424_v43 = vld [vmem:[%s5317_s5 + $0x358] sm:$0xf]  ;;  %v426_v44 = vld [vmem:[%s5317_s5 + $0x360] sm:$0xf] }
  0x5b   : > { %v428_v45 = vld [vmem:[%s5317_s5 + $0x368] sm:$0xf]  ;;  %425 = vst [vmem:[%s5321_s6 + $0x1ac] sm:$0xf] %v424_v43  ;;  %427 = vst [vmem:[%s5321_s6 + $0x1b0] sm:$0xf] %v426_v44 }
  0x5c   : > { %429 = vst [vmem:[%s5321_s6 + $0x1b4] sm:$0xf] %v428_v45  ;;  %v430_v46 = vld [vmem:[%s5317_s5 + $0x370] sm:$0xf]  ;;  %v432_v47 = vld [vmem:[%s5317_s5 + $0x378] sm:$0xf] }
  0x5d   : > { %v434_v48 = vld [vmem:[%s5317_s5 + $0x380] sm:$0xf]  ;;  %431 = vst [vmem:[%s5321_s6 + $0x1b8] sm:$0xf] %v430_v46  ;;  %433 = vst [vmem:[%s5321_s6 + $0x1bc] sm:$0xf] %v432_v47 }
  0x5e   : > { %435 = vst [vmem:[%s5321_s6 + $0x1c0] sm:$0xf] %v434_v48  ;;  %v436_v49 = vld [vmem:[%s5317_s5 + $0x388] sm:$0xf]  ;;  %v438_v50 = vld [vmem:[%s5317_s5 + $0x390] sm:$0xf] }
  0x5f   : > { %v440_v51 = vld [vmem:[%s5317_s5 + $0x398] sm:$0xf]  ;;  %437 = vst [vmem:[%s5321_s6 + $0x1c4] sm:$0xf] %v436_v49  ;;  %439 = vst [vmem:[%s5321_s6 + $0x1c8] sm:$0xf] %v438_v50 }
  0x60   : > { %441 = vst [vmem:[%s5321_s6 + $0x1cc] sm:$0xf] %v440_v51  ;;  %v442_v52 = vld [vmem:[%s5317_s5 + $0x3a0] sm:$0xf]  ;;  %v444_v53 = vld [vmem:[%s5317_s5 + $0x3a8] sm:$0xf] }
  0x61   : > { %v446_v54 = vld [vmem:[%s5317_s5 + $0x3b0] sm:$0xf]  ;;  %443 = vst [vmem:[%s5321_s6 + $0x1d0] sm:$0xf] %v442_v52  ;;  %445 = vst [vmem:[%s5321_s6 + $0x1d4] sm:$0xf] %v444_v53 }
  0x62   : > { %447 = vst [vmem:[%s5321_s6 + $0x1d8] sm:$0xf] %v446_v54  ;;  %v448_v55 = vld [vmem:[%s5317_s5 + $0x3b8] sm:$0xf]  ;;  %v450_v56 = vld [vmem:[%s5317_s5 + $0x3c0] sm:$0xf] }
  0x63   : > { %v452_v57 = vld [vmem:[%s5317_s5 + $0x3c8] sm:$0xf]  ;;  %449 = vst [vmem:[%s5321_s6 + $0x1dc] sm:$0xf] %v448_v55  ;;  %451 = vst [vmem:[%s5321_s6 + $0x1e0] sm:$0xf] %v450_v56 }
  0x64   : > { %453 = vst [vmem:[%s5321_s6 + $0x1e4] sm:$0xf] %v452_v57  ;;  %v454_v58 = vld [vmem:[%s5317_s5 + $0x3d0] sm:$0xf]  ;;  %v456_v59 = vld [vmem:[%s5317_s5 + $0x3d8] sm:$0xf] }
  0x65   : > { %v458_v60 = vld [vmem:[%s5317_s5 + $0x3e0] sm:$0xf]  ;;  %455 = vst [vmem:[%s5321_s6 + $0x1e8] sm:$0xf] %v454_v58  ;;  %457 = vst [vmem:[%s5321_s6 + $0x1ec] sm:$0xf] %v456_v59 }
  0x66   : > { %459 = vst [vmem:[%s5321_s6 + $0x1f0] sm:$0xf] %v458_v60  ;;  %v460_v61 = vld [vmem:[%s5317_s5 + $0x3e8] sm:$0xf]  ;;  %v462_v62 = vld [vmem:[%s5317_s5 + $0x3f0] sm:$0xf] }
  0x67   : > { %v464_v63 = vld [vmem:[%s5317_s5 + $0x3f8] sm:$0xf]  ;;  %461 = vst [vmem:[%s5321_s6 + $0x1f4] sm:$0xf] %v460_v61  ;;  %463 = vst [vmem:[%s5321_s6 + $0x1f8] sm:$0xf] %v462_v62 }
  0x68   : > { %465 = vst [vmem:[%s5321_s6 + $0x1fc] sm:$0xf] %v464_v63  ;;  %v466_v0 = vld [vmem:[%s5317_s5 + $0x400] sm:$0xf]  ;;  %v468_v1 = vld [vmem:[%s5317_s5 + $0x408] sm:$0xf] }
  0x69   : > { %v470_v2 = vld [vmem:[%s5317_s5 + $0x410] sm:$0xf]  ;;  %467 = vst [vmem:[%s5321_s6 + $0x200] sm:$0xf] %v466_v0  ;;  %469 = vst [vmem:[%s5321_s6 + $0x204] sm:$0xf] %v468_v1 }
  0x6a   : > { %471 = vst [vmem:[%s5321_s6 + $0x208] sm:$0xf] %v470_v2  ;;  %v472_v3 = vld [vmem:[%s5317_s5 + $0x418] sm:$0xf]  ;;  %v474_v4 = vld [vmem:[%s5317_s5 + $0x420] sm:$0xf] }
  0x6b   : > { %v476_v5 = vld [vmem:[%s5317_s5 + $0x428] sm:$0xf]  ;;  %473 = vst [vmem:[%s5321_s6 + $0x20c] sm:$0xf] %v472_v3  ;;  %475 = vst [vmem:[%s5321_s6 + $0x210] sm:$0xf] %v474_v4 }
  0x6c   : > { %477 = vst [vmem:[%s5321_s6 + $0x214] sm:$0xf] %v476_v5  ;;  %v478_v6 = vld [vmem:[%s5317_s5 + $0x430] sm:$0xf]  ;;  %v480_v7 = vld [vmem:[%s5317_s5 + $0x438] sm:$0xf] }
  0x6d   : > { %v482_v8 = vld [vmem:[%s5317_s5 + $0x440] sm:$0xf]  ;;  %479 = vst [vmem:[%s5321_s6 + $0x218] sm:$0xf] %v478_v6  ;;  %481 = vst [vmem:[%s5321_s6 + $0x21c] sm:$0xf] %v480_v7 }
  0x6e   : > { %483 = vst [vmem:[%s5321_s6 + $0x220] sm:$0xf] %v482_v8  ;;  %v484_v9 = vld [vmem:[%s5317_s5 + $0x448] sm:$0xf]  ;;  %v486_v10 = vld [vmem:[%s5317_s5 + $0x450] sm:$0xf] }
  0x6f   : > { %v488_v11 = vld [vmem:[%s5317_s5 + $0x458] sm:$0xf]  ;;  %485 = vst [vmem:[%s5321_s6 + $0x224] sm:$0xf] %v484_v9  ;;  %487 = vst [vmem:[%s5321_s6 + $0x228] sm:$0xf] %v486_v10 }
  0x70   : > { %489 = vst [vmem:[%s5321_s6 + $0x22c] sm:$0xf] %v488_v11  ;;  %v490_v12 = vld [vmem:[%s5317_s5 + $0x460] sm:$0xf]  ;;  %v492_v13 = vld [vmem:[%s5317_s5 + $0x468] sm:$0xf] }
  0x71   : > { %v494_v14 = vld [vmem:[%s5317_s5 + $0x470] sm:$0xf]  ;;  %491 = vst [vmem:[%s5321_s6 + $0x230] sm:$0xf] %v490_v12  ;;  %493 = vst [vmem:[%s5321_s6 + $0x234] sm:$0xf] %v492_v13 }
  0x72   : > { %495 = vst [vmem:[%s5321_s6 + $0x238] sm:$0xf] %v494_v14  ;;  %v496_v15 = vld [vmem:[%s5317_s5 + $0x478] sm:$0xf]  ;;  %v498_v16 = vld [vmem:[%s5317_s5 + $0x480] sm:$0xf] }
  0x73   : > { %v500_v17 = vld [vmem:[%s5317_s5 + $0x488] sm:$0xf]  ;;  %497 = vst [vmem:[%s5321_s6 + $0x23c] sm:$0xf] %v496_v15  ;;  %499 = vst [vmem:[%s5321_s6 + $0x240] sm:$0xf] %v498_v16 }
  0x74   : > { %501 = vst [vmem:[%s5321_s6 + $0x244] sm:$0xf] %v500_v17  ;;  %v502_v18 = vld [vmem:[%s5317_s5 + $0x490] sm:$0xf]  ;;  %v504_v19 = vld [vmem:[%s5317_s5 + $0x498] sm:$0xf] }
  0x75   : > { %v506_v20 = vld [vmem:[%s5317_s5 + $0x4a0] sm:$0xf]  ;;  %503 = vst [vmem:[%s5321_s6 + $0x248] sm:$0xf] %v502_v18  ;;  %505 = vst [vmem:[%s5321_s6 + $0x24c] sm:$0xf] %v504_v19 }
  0x76   : > { %507 = vst [vmem:[%s5321_s6 + $0x250] sm:$0xf] %v506_v20  ;;  %v508_v21 = vld [vmem:[%s5317_s5 + $0x4a8] sm:$0xf]  ;;  %v510_v22 = vld [vmem:[%s5317_s5 + $0x4b0] sm:$0xf] }
  0x77   : > { %v512_v23 = vld [vmem:[%s5317_s5 + $0x4b8] sm:$0xf]  ;;  %509 = vst [vmem:[%s5321_s6 + $0x254] sm:$0xf] %v508_v21  ;;  %511 = vst [vmem:[%s5321_s6 + $0x258] sm:$0xf] %v510_v22 }
  0x78   : > { %513 = vst [vmem:[%s5321_s6 + $0x25c] sm:$0xf] %v512_v23  ;;  %v514_v24 = vld [vmem:[%s5317_s5 + $0x4c0] sm:$0xf]  ;;  %v516_v25 = vld [vmem:[%s5317_s5 + $0x4c8] sm:$0xf] }
  0x79   : > { %v518_v26 = vld [vmem:[%s5317_s5 + $0x4d0] sm:$0xf]  ;;  %515 = vst [vmem:[%s5321_s6 + $0x260] sm:$0xf] %v514_v24  ;;  %517 = vst [vmem:[%s5321_s6 + $0x264] sm:$0xf] %v516_v25 }
  0x7a   : > { %519 = vst [vmem:[%s5321_s6 + $0x268] sm:$0xf] %v518_v26  ;;  %v520_v27 = vld [vmem:[%s5317_s5 + $0x4d8] sm:$0xf]  ;;  %v522_v28 = vld [vmem:[%s5317_s5 + $0x4e0] sm:$0xf] }
  0x7b   : > { %v524_v29 = vld [vmem:[%s5317_s5 + $0x4e8] sm:$0xf]  ;;  %521 = vst [vmem:[%s5321_s6 + $0x26c] sm:$0xf] %v520_v27  ;;  %523 = vst [vmem:[%s5321_s6 + $0x270] sm:$0xf] %v522_v28 }
  0x7c   : > { %525 = vst [vmem:[%s5321_s6 + $0x274] sm:$0xf] %v524_v29  ;;  %v526_v30 = vld [vmem:[%s5317_s5 + $0x4f0] sm:$0xf]  ;;  %v528_v31 = vld [vmem:[%s5317_s5 + $0x4f8] sm:$0xf] }
  0x7d   : > { %v530_v32 = vld [vmem:[%s5317_s5 + $0x500] sm:$0xf]  ;;  %527 = vst [vmem:[%s5321_s6 + $0x278] sm:$0xf] %v526_v30  ;;  %529 = vst [vmem:[%s5321_s6 + $0x27c] sm:$0xf] %v528_v31 }
  0x7e   : > { %531 = vst [vmem:[%s5321_s6 + $0x280] sm:$0xf] %v530_v32  ;;  %v532_v33 = vld [vmem:[%s5317_s5 + $0x508] sm:$0xf]  ;;  %v534_v34 = vld [vmem:[%s5317_s5 + $0x510] sm:$0xf] }
  0x7f   : > { %v536_v35 = vld [vmem:[%s5317_s5 + $0x518] sm:$0xf]  ;;  %533 = vst [vmem:[%s5321_s6 + $0x284] sm:$0xf] %v532_v33  ;;  %535 = vst [vmem:[%s5321_s6 + $0x288] sm:$0xf] %v534_v34 }
  0x80   : > { %537 = vst [vmem:[%s5321_s6 + $0x28c] sm:$0xf] %v536_v35  ;;  %v538_v36 = vld [vmem:[%s5317_s5 + $0x520] sm:$0xf]  ;;  %v540_v37 = vld [vmem:[%s5317_s5 + $0x528] sm:$0xf] }
  0x81   : > { %v542_v38 = vld [vmem:[%s5317_s5 + $0x530] sm:$0xf]  ;;  %539 = vst [vmem:[%s5321_s6 + $0x290] sm:$0xf] %v538_v36  ;;  %541 = vst [vmem:[%s5321_s6 + $0x294] sm:$0xf] %v540_v37 }
  0x82   : > { %543 = vst [vmem:[%s5321_s6 + $0x298] sm:$0xf] %v542_v38  ;;  %v544_v39 = vld [vmem:[%s5317_s5 + $0x538] sm:$0xf]  ;;  %v546_v40 = vld [vmem:[%s5317_s5 + $0x540] sm:$0xf] }
  0x83   : > { %v548_v41 = vld [vmem:[%s5317_s5 + $0x548] sm:$0xf]  ;;  %545 = vst [vmem:[%s5321_s6 + $0x29c] sm:$0xf] %v544_v39  ;;  %547 = vst [vmem:[%s5321_s6 + $0x2a0] sm:$0xf] %v546_v40 }
  0x84   : > { %549 = vst [vmem:[%s5321_s6 + $0x2a4] sm:$0xf] %v548_v41  ;;  %v550_v42 = vld [vmem:[%s5317_s5 + $0x550] sm:$0xf]  ;;  %v552_v43 = vld [vmem:[%s5317_s5 + $0x558] sm:$0xf] }
  0x85   : > { %v554_v44 = vld [vmem:[%s5317_s5 + $0x560] sm:$0xf]  ;;  %551 = vst [vmem:[%s5321_s6 + $0x2a8] sm:$0xf] %v550_v42  ;;  %553 = vst [vmem:[%s5321_s6 + $0x2ac] sm:$0xf] %v552_v43 }
  0x86   : > { %555 = vst [vmem:[%s5321_s6 + $0x2b0] sm:$0xf] %v554_v44  ;;  %v556_v45 = vld [vmem:[%s5317_s5 + $0x568] sm:$0xf]  ;;  %v558_v46 = vld [vmem:[%s5317_s5 + $0x570] sm:$0xf] }
  0x87   : > { %v560_v47 = vld [vmem:[%s5317_s5 + $0x578] sm:$0xf]  ;;  %557 = vst [vmem:[%s5321_s6 + $0x2b4] sm:$0xf] %v556_v45  ;;  %559 = vst [vmem:[%s5321_s6 + $0x2b8] sm:$0xf] %v558_v46 }
  0x88   : > { %561 = vst [vmem:[%s5321_s6 + $0x2bc] sm:$0xf] %v560_v47  ;;  %v562_v48 = vld [vmem:[%s5317_s5 + $0x580] sm:$0xf]  ;;  %v564_v49 = vld [vmem:[%s5317_s5 + $0x588] sm:$0xf] }
  0x89   : > { %v566_v50 = vld [vmem:[%s5317_s5 + $0x590] sm:$0xf]  ;;  %563 = vst [vmem:[%s5321_s6 + $0x2c0] sm:$0xf] %v562_v48  ;;  %565 = vst [vmem:[%s5321_s6 + $0x2c4] sm:$0xf] %v564_v49 }
  0x8a   : > { %567 = vst [vmem:[%s5321_s6 + $0x2c8] sm:$0xf] %v566_v50  ;;  %v568_v51 = vld [vmem:[%s5317_s5 + $0x598] sm:$0xf]  ;;  %v570_v52 = vld [vmem:[%s5317_s5 + $0x5a0] sm:$0xf] }
  0x8b   : > { %v572_v53 = vld [vmem:[%s5317_s5 + $0x5a8] sm:$0xf]  ;;  %569 = vst [vmem:[%s5321_s6 + $0x2cc] sm:$0xf] %v568_v51  ;;  %571 = vst [vmem:[%s5321_s6 + $0x2d0] sm:$0xf] %v570_v52 }
  0x8c   : > { %573 = vst [vmem:[%s5321_s6 + $0x2d4] sm:$0xf] %v572_v53  ;;  %v574_v54 = vld [vmem:[%s5317_s5 + $0x5b0] sm:$0xf]  ;;  %v576_v55 = vld [vmem:[%s5317_s5 + $0x5b8] sm:$0xf] }
  0x8d   : > { %v578_v56 = vld [vmem:[%s5317_s5 + $0x5c0] sm:$0xf]  ;;  %575 = vst [vmem:[%s5321_s6 + $0x2d8] sm:$0xf] %v574_v54  ;;  %577 = vst [vmem:[%s5321_s6 + $0x2dc] sm:$0xf] %v576_v55 }
  0x8e   : > { %579 = vst [vmem:[%s5321_s6 + $0x2e0] sm:$0xf] %v578_v56  ;;  %v580_v57 = vld [vmem:[%s5317_s5 + $0x5c8] sm:$0xf]  ;;  %v582_v58 = vld [vmem:[%s5317_s5 + $0x5d0] sm:$0xf] }
  0x8f   : > { %v584_v59 = vld [vmem:[%s5317_s5 + $0x5d8] sm:$0xf]  ;;  %581 = vst [vmem:[%s5321_s6 + $0x2e4] sm:$0xf] %v580_v57  ;;  %583 = vst [vmem:[%s5321_s6 + $0x2e8] sm:$0xf] %v582_v58 }
  0x90   : > { %585 = vst [vmem:[%s5321_s6 + $0x2ec] sm:$0xf] %v584_v59  ;;  %v586_v60 = vld [vmem:[%s5317_s5 + $0x5e0] sm:$0xf]  ;;  %v588_v61 = vld [vmem:[%s5317_s5 + $0x5e8] sm:$0xf] }
  0x91   : > { %v590_v62 = vld [vmem:[%s5317_s5 + $0x5f0] sm:$0xf]  ;;  %587 = vst [vmem:[%s5321_s6 + $0x2f0] sm:$0xf] %v586_v60  ;;  %589 = vst [vmem:[%s5321_s6 + $0x2f4] sm:$0xf] %v588_v61 }
  0x92   : > { %591 = vst [vmem:[%s5321_s6 + $0x2f8] sm:$0xf] %v590_v62  ;;  %v592_v63 = vld [vmem:[%s5317_s5 + $0x5f8] sm:$0xf]  ;;  %v594_v0 = vld [vmem:[%s5317_s5 + $0x600] sm:$0xf] }
  0x93   : > { %v596_v1 = vld [vmem:[%s5317_s5 + $0x608] sm:$0xf]  ;;  %593 = vst [vmem:[%s5321_s6 + $0x2fc] sm:$0xf] %v592_v63  ;;  %595 = vst [vmem:[%s5321_s6 + $0x300] sm:$0xf] %v594_v0 }
  0x94   : > { %597 = vst [vmem:[%s5321_s6 + $0x304] sm:$0xf] %v596_v1  ;;  %v598_v2 = vld [vmem:[%s5317_s5 + $0x610] sm:$0xf]  ;;  %v600_v3 = vld [vmem:[%s5317_s5 + $0x618] sm:$0xf] }
  0x95   : > { %v602_v4 = vld [vmem:[%s5317_s5 + $0x620] sm:$0xf]  ;;  %599 = vst [vmem:[%s5321_s6 + $0x308] sm:$0xf] %v598_v2  ;;  %601 = vst [vmem:[%s5321_s6 + $0x30c] sm:$0xf] %v600_v3 }
  0x96   : > { %603 = vst [vmem:[%s5321_s6 + $0x310] sm:$0xf] %v602_v4  ;;  %v604_v5 = vld [vmem:[%s5317_s5 + $0x628] sm:$0xf]  ;;  %v606_v6 = vld [vmem:[%s5317_s5 + $0x630] sm:$0xf] }
  0x97   : > { %v608_v7 = vld [vmem:[%s5317_s5 + $0x638] sm:$0xf]  ;;  %605 = vst [vmem:[%s5321_s6 + $0x314] sm:$0xf] %v604_v5  ;;  %607 = vst [vmem:[%s5321_s6 + $0x318] sm:$0xf] %v606_v6 }
  0x98   : > { %609 = vst [vmem:[%s5321_s6 + $0x31c] sm:$0xf] %v608_v7  ;;  %v610_v8 = vld [vmem:[%s5317_s5 + $0x640] sm:$0xf]  ;;  %v612_v9 = vld [vmem:[%s5317_s5 + $0x648] sm:$0xf] }
  0x99   : > { %v614_v10 = vld [vmem:[%s5317_s5 + $0x650] sm:$0xf]  ;;  %611 = vst [vmem:[%s5321_s6 + $0x320] sm:$0xf] %v610_v8  ;;  %613 = vst [vmem:[%s5321_s6 + $0x324] sm:$0xf] %v612_v9 }
  0x9a   : > { %615 = vst [vmem:[%s5321_s6 + $0x328] sm:$0xf] %v614_v10  ;;  %v616_v11 = vld [vmem:[%s5317_s5 + $0x658] sm:$0xf]  ;;  %v618_v12 = vld [vmem:[%s5317_s5 + $0x660] sm:$0xf] }
  0x9b   : > { %v620_v13 = vld [vmem:[%s5317_s5 + $0x668] sm:$0xf]  ;;  %617 = vst [vmem:[%s5321_s6 + $0x32c] sm:$0xf] %v616_v11  ;;  %619 = vst [vmem:[%s5321_s6 + $0x330] sm:$0xf] %v618_v12 }
  0x9c   : > { %621 = vst [vmem:[%s5321_s6 + $0x334] sm:$0xf] %v620_v13  ;;  %v622_v14 = vld [vmem:[%s5317_s5 + $0x670] sm:$0xf]  ;;  %v624_v15 = vld [vmem:[%s5317_s5 + $0x678] sm:$0xf] }
  0x9d   : > { %v626_v16 = vld [vmem:[%s5317_s5 + $0x680] sm:$0xf]  ;;  %623 = vst [vmem:[%s5321_s6 + $0x338] sm:$0xf] %v622_v14  ;;  %625 = vst [vmem:[%s5321_s6 + $0x33c] sm:$0xf] %v624_v15 }
  0x9e   : > { %627 = vst [vmem:[%s5321_s6 + $0x340] sm:$0xf] %v626_v16  ;;  %v628_v17 = vld [vmem:[%s5317_s5 + $0x688] sm:$0xf]  ;;  %v630_v18 = vld [vmem:[%s5317_s5 + $0x690] sm:$0xf] }
  0x9f   : > { %v632_v19 = vld [vmem:[%s5317_s5 + $0x698] sm:$0xf]  ;;  %629 = vst [vmem:[%s5321_s6 + $0x344] sm:$0xf] %v628_v17  ;;  %631 = vst [vmem:[%s5321_s6 + $0x348] sm:$0xf] %v630_v18 }
  0xa0   : > { %633 = vst [vmem:[%s5321_s6 + $0x34c] sm:$0xf] %v632_v19  ;;  %v634_v20 = vld [vmem:[%s5317_s5 + $0x6a0] sm:$0xf]  ;;  %v636_v21 = vld [vmem:[%s5317_s5 + $0x6a8] sm:$0xf] }
  0xa1   : > { %v638_v22 = vld [vmem:[%s5317_s5 + $0x6b0] sm:$0xf]  ;;  %635 = vst [vmem:[%s5321_s6 + $0x350] sm:$0xf] %v634_v20  ;;  %637 = vst [vmem:[%s5321_s6 + $0x354] sm:$0xf] %v636_v21 }
  0xa2   : > { %639 = vst [vmem:[%s5321_s6 + $0x358] sm:$0xf] %v638_v22  ;;  %v640_v23 = vld [vmem:[%s5317_s5 + $0x6b8] sm:$0xf]  ;;  %v642_v24 = vld [vmem:[%s5317_s5 + $0x6c0] sm:$0xf] }
  0xa3   : > { %v644_v25 = vld [vmem:[%s5317_s5 + $0x6c8] sm:$0xf]  ;;  %641 = vst [vmem:[%s5321_s6 + $0x35c] sm:$0xf] %v640_v23  ;;  %643 = vst [vmem:[%s5321_s6 + $0x360] sm:$0xf] %v642_v24 }
  0xa4   : > { %645 = vst [vmem:[%s5321_s6 + $0x364] sm:$0xf] %v644_v25  ;;  %v646_v26 = vld [vmem:[%s5317_s5 + $0x6d0] sm:$0xf]  ;;  %v648_v27 = vld [vmem:[%s5317_s5 + $0x6d8] sm:$0xf] }
  0xa5   : > { %v650_v28 = vld [vmem:[%s5317_s5 + $0x6e0] sm:$0xf]  ;;  %647 = vst [vmem:[%s5321_s6 + $0x368] sm:$0xf] %v646_v26  ;;  %649 = vst [vmem:[%s5321_s6 + $0x36c] sm:$0xf] %v648_v27 }
  0xa6   : > { %651 = vst [vmem:[%s5321_s6 + $0x370] sm:$0xf] %v650_v28  ;;  %v652_v29 = vld [vmem:[%s5317_s5 + $0x6e8] sm:$0xf]  ;;  %v654_v30 = vld [vmem:[%s5317_s5 + $0x6f0] sm:$0xf] }
  0xa7   : > { %v656_v31 = vld [vmem:[%s5317_s5 + $0x6f8] sm:$0xf]  ;;  %653 = vst [vmem:[%s5321_s6 + $0x374] sm:$0xf] %v652_v29  ;;  %655 = vst [vmem:[%s5321_s6 + $0x378] sm:$0xf] %v654_v30 }
  0xa8   : > { %657 = vst [vmem:[%s5321_s6 + $0x37c] sm:$0xf] %v656_v31  ;;  %v658_v32 = vld [vmem:[%s5317_s5 + $0x700] sm:$0xf]  ;;  %v660_v33 = vld [vmem:[%s5317_s5 + $0x708] sm:$0xf] }
  0xa9   : > { %v662_v34 = vld [vmem:[%s5317_s5 + $0x710] sm:$0xf]  ;;  %659 = vst [vmem:[%s5321_s6 + $0x380] sm:$0xf] %v658_v32  ;;  %661 = vst [vmem:[%s5321_s6 + $0x384] sm:$0xf] %v660_v33 }
  0xaa   : > { %663 = vst [vmem:[%s5321_s6 + $0x388] sm:$0xf] %v662_v34  ;;  %v664_v35 = vld [vmem:[%s5317_s5 + $0x718] sm:$0xf]  ;;  %v666_v36 = vld [vmem:[%s5317_s5 + $0x720] sm:$0xf] }
  0xab   : > { %v668_v37 = vld [vmem:[%s5317_s5 + $0x728] sm:$0xf]  ;;  %665 = vst [vmem:[%s5321_s6 + $0x38c] sm:$0xf] %v664_v35  ;;  %667 = vst [vmem:[%s5321_s6 + $0x390] sm:$0xf] %v666_v36 }
  0xac   : > { %669 = vst [vmem:[%s5321_s6 + $0x394] sm:$0xf] %v668_v37  ;;  %v670_v38 = vld [vmem:[%s5317_s5 + $0x730] sm:$0xf]  ;;  %v672_v39 = vld [vmem:[%s5317_s5 + $0x738] sm:$0xf] }
  0xad   : > { %v674_v40 = vld [vmem:[%s5317_s5 + $0x740] sm:$0xf]  ;;  %671 = vst [vmem:[%s5321_s6 + $0x398] sm:$0xf] %v670_v38  ;;  %673 = vst [vmem:[%s5321_s6 + $0x39c] sm:$0xf] %v672_v39 }
  0xae   : > { %675 = vst [vmem:[%s5321_s6 + $0x3a0] sm:$0xf] %v674_v40  ;;  %v676_v41 = vld [vmem:[%s5317_s5 + $0x748] sm:$0xf]  ;;  %v678_v42 = vld [vmem:[%s5317_s5 + $0x750] sm:$0xf] }
  0xaf   : > { %v680_v43 = vld [vmem:[%s5317_s5 + $0x758] sm:$0xf]  ;;  %677 = vst [vmem:[%s5321_s6 + $0x3a4] sm:$0xf] %v676_v41  ;;  %679 = vst [vmem:[%s5321_s6 + $0x3a8] sm:$0xf] %v678_v42 }
  0xb0   : > { %681 = vst [vmem:[%s5321_s6 + $0x3ac] sm:$0xf] %v680_v43  ;;  %v682_v44 = vld [vmem:[%s5317_s5 + $0x760] sm:$0xf]  ;;  %v684_v45 = vld [vmem:[%s5317_s5 + $0x768] sm:$0xf] }
  0xb1   : > { %v686_v46 = vld [vmem:[%s5317_s5 + $0x770] sm:$0xf]  ;;  %683 = vst [vmem:[%s5321_s6 + $0x3b0] sm:$0xf] %v682_v44  ;;  %685 = vst [vmem:[%s5321_s6 + $0x3b4] sm:$0xf] %v684_v45 }
  0xb2   : > { %687 = vst [vmem:[%s5321_s6 + $0x3b8] sm:$0xf] %v686_v46  ;;  %v688_v47 = vld [vmem:[%s5317_s5 + $0x778] sm:$0xf]  ;;  %v690_v48 = vld [vmem:[%s5317_s5 + $0x780] sm:$0xf] }
  0xb3   : > { %v692_v49 = vld [vmem:[%s5317_s5 + $0x788] sm:$0xf]  ;;  %689 = vst [vmem:[%s5321_s6 + $0x3bc] sm:$0xf] %v688_v47  ;;  %691 = vst [vmem:[%s5321_s6 + $0x3c0] sm:$0xf] %v690_v48 }
  0xb4   : > { %693 = vst [vmem:[%s5321_s6 + $0x3c4] sm:$0xf] %v692_v49  ;;  %v694_v50 = vld [vmem:[%s5317_s5 + $0x790] sm:$0xf]  ;;  %v696_v51 = vld [vmem:[%s5317_s5 + $0x798] sm:$0xf] }
  0xb5   : > { %v698_v52 = vld [vmem:[%s5317_s5 + $0x7a0] sm:$0xf]  ;;  %695 = vst [vmem:[%s5321_s6 + $0x3c8] sm:$0xf] %v694_v50  ;;  %697 = vst [vmem:[%s5321_s6 + $0x3cc] sm:$0xf] %v696_v51 }
  0xb6   : > { %699 = vst [vmem:[%s5321_s6 + $0x3d0] sm:$0xf] %v698_v52  ;;  %v700_v53 = vld [vmem:[%s5317_s5 + $0x7a8] sm:$0xf]  ;;  %v702_v54 = vld [vmem:[%s5317_s5 + $0x7b0] sm:$0xf] }
  0xb7   : > { %v704_v55 = vld [vmem:[%s5317_s5 + $0x7b8] sm:$0xf]  ;;  %701 = vst [vmem:[%s5321_s6 + $0x3d4] sm:$0xf] %v700_v53  ;;  %703 = vst [vmem:[%s5321_s6 + $0x3d8] sm:$0xf] %v702_v54 }
  0xb8   : > { %705 = vst [vmem:[%s5321_s6 + $0x3dc] sm:$0xf] %v704_v55  ;;  %v706_v56 = vld [vmem:[%s5317_s5 + $0x7c0] sm:$0xf]  ;;  %v708_v57 = vld [vmem:[%s5317_s5 + $0x7c8] sm:$0xf] }
  0xb9   : > { %v710_v58 = vld [vmem:[%s5317_s5 + $0x7d0] sm:$0xf]  ;;  %707 = vst [vmem:[%s5321_s6 + $0x3e0] sm:$0xf] %v706_v56  ;;  %709 = vst [vmem:[%s5321_s6 + $0x3e4] sm:$0xf] %v708_v57 }
  0xba   : > { %711 = vst [vmem:[%s5321_s6 + $0x3e8] sm:$0xf] %v710_v58  ;;  %v712_v59 = vld [vmem:[%s5317_s5 + $0x7d8] sm:$0xf]  ;;  %v714_v60 = vld [vmem:[%s5317_s5 + $0x7e0] sm:$0xf] }
  0xbb   : > { %v716_v61 = vld [vmem:[%s5317_s5 + $0x7e8] sm:$0xf]  ;;  %713 = vst [vmem:[%s5321_s6 + $0x3ec] sm:$0xf] %v712_v59  ;;  %715 = vst [vmem:[%s5321_s6 + $0x3f0] sm:$0xf] %v714_v60 }
  0xbc   : > { %717 = vst [vmem:[%s5321_s6 + $0x3f4] sm:$0xf] %v716_v61  ;;  %v718_v62 = vld [vmem:[%s5317_s5 + $0x7f0] sm:$0xf]  ;;  %v720_v63 = vld [vmem:[%s5317_s5 + $0x7f8] sm:$0xf] }
  0xbd   : > { %719 = vst [vmem:[%s5321_s6 + $0x3f8] sm:$0xf] %v718_v62  ;;  %721 = vst [vmem:[%s5321_s6 + $0x3fc] sm:$0xf] %v720_v63 }
  0xbe PF: > { %p4258_p8 = scmp.ge.s32.totalorder %s5242_s19, 1  ;;  %p1268_p9 = scmp.lt.s32.totalorder %s5242_s19, 3 }
  0xc0   : > { %p1269_p10 = pnand %p4258_p8, %p1268_p9 }
  0xc1   : > { %s1275_s7 = sand.u32 (!%p1269_p10), 1, %s5226_s15   ;;  %p1317_p11 = scmp.lt.s32.totalorder (!%p1269_p10), %s5234_s17, 1 }
  0xc2   : > { %1272 = sbr.rel (%p1269_p10) target bundleno = 752 (0x2f0), region = 73  ;;  %s4259_s14 = sshll.u32 (!%p1269_p10), %s1275_s7, 10 }
  0xc3   : > { %s5862_s23 = scalar_lea.vmem (!%p1269_p10), [#allocation2], %s4259_s14  ;;  %s4260_s11 = sshll.u32 (!%p1269_p10), %s1275_s7, 7 }
  0xc4   : > { %s6627_s15 = scalar_lea.vmem (!%p1269_p10), [#allocation3], %s4260_s11 }
  0xc7   : > { %v5839_v0 = vld [vmem:[%s6682_s0] sm:$0xff]  ;;  %v5849_v2 = vld [vmem:[%s6682_s0 + $0x8] sm:$0xff]  ;;  %v5074_v6 = vld [vmem:[%s5862_s23 + $0x78] sm:$0xff]   ;;  %s1318_s29 = scalar_select %p1317_p11, %s5234_s17, 1 }
  0xc8   : > { %v5844_v1 = vld [vmem:[%s6682_s0 + $0x40] sm:$0xff]  ;;  %v5858_v4 = vld [vmem:[%s6682_s0 + $0x48] sm:$0xff]  ;;  %v5075_v7 = vld [vmem:[%s5862_s23 + $0xf8] sm:$0xff]   ;;  %4522 = vmatprep.subr.bf16.mxu0 %v5074_v6  ;;  %s4519_s7 = sshll.u32 (%p5304_p6), %s5234_s17, 3 }
  0xc9   : > { %v4262_v3 = vcombine.high %v5839_v0, %v5844_v1  ;;  %v4264_v5 = vcombine.high %v5849_v2, %v5858_v4  ;;  %v5076_v8 = vld [vmem:[%s5862_s23 + $0x38] sm:$0xff]   ;;  %4586 = vmatprep.subr.bf16.mxu1 %v5075_v7  ;;  %v5078_v10 = vld [vmem:[%s5862_s23 + $0x70] sm:$0xff]   ;;  %v5082_v14 = vld [vmem:[%s5862_s23 + $0x68] sm:$0xff]   ;;  %v4261_v42 = vcombine.low %v5839_v0, %v5844_v1  ;;  %v4263_v43 = vcombine.low %v5849_v2, %v5858_v4  ;;  %s1319_s6 = scalar_lea.vmem %s6684_s2, %s1318_s29  ;;  %s1322_s10 = scalar_lea.vmem %s6685_s3, %s1318_s29 }
  0xca   : > { %v5077_v9 = vld [vmem:[%s5862_s23 + $0xb8] sm:$0xff]   ;;  %4523 = vmatpush3.bf16.msra.mxu0 %v5076_v8  ;;  %v5079_v11 = vld [vmem:[%s5862_s23 + $0xf0] sm:$0xff]   ;;  %v5083_v15 = vld [vmem:[%s5862_s23 + $0xe8] sm:$0xff]   ;;  %s4057_s13 = scalar_lea.vmem (%p5304_p6), %s6686_s4, %s4519_s7 }
  0xcb   : > { %3148 = vmatprep.mubr.bf16.mxu0 %v4262_v3  ;;  %3245 = vmatprep.mubr.bf16.mxu1 %v4264_v5  ;;  %v5080_v12 = vld [vmem:[%s5862_s23 + $0x30] sm:$0xff]   ;;  %v5084_v16 = vld [vmem:[%s5862_s23 + $0x28] sm:$0xff]   ;;  %v5086_v18 = vld [vmem:[%s5862_s23 + $0x60] sm:$0xff]  }
  0xcc   : > { %4587 = vmatpush3.bf16.msra.mxu1 %v5077_v9  ;;  %4524 = vmatprep.subr.bf16.mxu0 %v5078_v10  ;;  %v5081_v13 = vld [vmem:[%s5862_s23 + $0xb0] sm:$0xff]   ;;  %v5085_v17 = vld [vmem:[%s5862_s23 + $0xa8] sm:$0xff]   ;;  %v5087_v19 = vld [vmem:[%s5862_s23 + $0xe0] sm:$0xff]  }
  0xcd   : > { %4588 = vmatprep.subr.bf16.mxu1 %v5079_v11  ;;  %v5088_v20 = vld [vmem:[%s5862_s23 + $0x20] sm:$0xff]   ;;  %v5090_v22 = vld [vmem:[%s5862_s23 + $0x58] sm:$0xff]   ;;  %v5094_v26 = vld [vmem:[%s5862_s23 + $0x50] sm:$0xff]  }
  0xce   : > { %4525 = vmatpush3.bf16.msra.mxu0 %v5080_v12  ;;  %v5089_v21 = vld [vmem:[%s5862_s23 + $0xa0] sm:$0xff]   ;;  %v5091_v23 = vld [vmem:[%s5862_s23 + $0xd8] sm:$0xff]   ;;  %v5095_v27 = vld [vmem:[%s5862_s23 + $0xd0] sm:$0xff]  }
  0xcf   : > { %4526 = vmatprep.subr.bf16.mxu0 %v5082_v14  ;;  %v5092_v24 = vld [vmem:[%s5862_s23 + $0x18] sm:$0xff]   ;;  %v5096_v28 = vld [vmem:[%s5862_s23 + $0x10] sm:$0xff]   ;;  %v5098_v30 = vld [vmem:[%s5862_s23 + $0x48] sm:$0xff]  }
  0xd0   : > { %4589 = vmatpush3.bf16.msra.mxu1 %v5081_v13  ;;  %v5093_v25 = vld [vmem:[%s5862_s23 + $0x98] sm:$0xff]   ;;  %v5097_v29 = vld [vmem:[%s5862_s23 + $0x90] sm:$0xff]   ;;  %v5099_v31 = vld [vmem:[%s5862_s23 + $0xc8] sm:$0xff]  }
  0xd1   : > { %4590 = vmatprep.subr.bf16.mxu1 %v5083_v15  ;;  %v5100_v32 = vld [vmem:[%s5862_s23 + $0x8] sm:$0xff]   ;;  %v5102_v34 = vld [vmem:[%s5862_s23 + $0x40] sm:$0xff]   ;;  %v5106_v44 = vld [vmem:[%s5862_s23 + $0x178] sm:$0xff]  }
  0xd2   : > { %4527 = vmatpush3.bf16.msra.mxu0 %v5084_v16  ;;  %v5101_v33 = vld [vmem:[%s5862_s23 + $0x88] sm:$0xff]   ;;  %v1340_v35 = vld [vmem:[%s6682_s0 + $0x80] sm:$0xff]  ;;  %v5107_v45 = vld [vmem:[%s5862_s23 + $0x138] sm:$0xff]  }
  0xd3   : > { %4528 = vmatprep.subr.bf16.mxu0 %v5086_v18  ;;  %v1348_v36 = vld [vmem:[%s6682_s0 + $0xc0] sm:$0xff]  ;;  %v1341_v38 = vld [vmem:[%s6682_s0 + $0x88] sm:$0xff]  ;;  %v5108_v47 = vld [vmem:[%s5862_s23 + $0x1f8] sm:$0xff]  }
  0xd4   : > { %4591 = vmatpush3.bf16.msra.mxu1 %v5085_v17  ;;  %v5103_v37 = vld [vmem:[%s5862_s23 + $0xc0] sm:$0xff]   ;;  %v1349_v39 = vld [vmem:[%s6682_s0 + $0xc8] sm:$0xff]  ;;  %v4278_v46 = vcombine.high %v1340_v35, %v1348_v36  ;;  %v5109_v49 = vld [vmem:[%s5862_s23 + $0x1b8] sm:$0xff]   ;;  %v4277_v54 = vcombine.low %v1340_v35, %v1348_v36 }
  0xd5   : > { %4592 = vmatprep.subr.bf16.mxu1 %v5087_v19  ;;  %v5104_v40 = vld [vmem:[%s5862_s23] sm:$0xff]   ;;  %v4280_v48 = vcombine.high %v1341_v38, %v1349_v39  ;;  %v5110_v50 = vld [vmem:[%s5862_s23 + $0x170] sm:$0xff]   ;;  %v4279_v56 = vcombine.low %v1341_v38, %v1349_v39  ;;  %v1357_v58 = vld [vmem:[%s6682_s0 + $0x108] sm:$0xff] }
  0xd6   : > { %4529 = vmatpush3.bf16.msra.mxu0 %v5088_v20  ;;  %v5105_v41 = vld [vmem:[%s5862_s23 + $0x80] sm:$0xff]   ;;  %v5111_v52 = vld [vmem:[%s5862_s23 + $0x130] sm:$0xff]   ;;  %v1365_v59 = vld [vmem:[%s6682_s0 + $0x148] sm:$0xff] }
  0xd7   : > { %4530 = vmatprep.subr.bf16.mxu0 %v5090_v22  ;;  %v1356_v51 = vld [vmem:[%s6682_s0 + $0x100] sm:$0xff]  ;;  %v5112_v53 = vld [vmem:[%s5862_s23 + $0x1f0] sm:$0xff]   ;;  %v4296_v61 = vcombine.high %v1357_v58, %v1365_v59  ;;  %v5114_v62 = vld [vmem:[%s5862_s23 + $0x168] sm:$0xff]   ;;  %v4295_v8 = vcombine.low %v1357_v58, %v1365_v59 }
  0xd8   : > { %4593 = vmatpush3.bf16.msra.mxu1 %v5089_v21  ;;  %v5113_v55 = vld [vmem:[%s5862_s23 + $0x1b0] sm:$0xff]   ;;  %v1364_v57 = vld [vmem:[%s6682_s0 + $0x140] sm:$0xff]  ;;  %v5115_v63 = vld [vmem:[%s5862_s23 + $0x128] sm:$0xff]  }
  0xd9   : > { %4594 = vmatprep.subr.bf16.mxu1 %v5091_v23  ;;  %v4294_v60 = vcombine.high %v1356_v51, %v1364_v57  ;;  %v5116_v0 = vld [vmem:[%s5862_s23 + $0x1e8] sm:$0xff]   ;;  %v1372_v2 = vld [vmem:[%s6682_s0 + $0x180] sm:$0xff]  ;;  %v4293_v6 = vcombine.low %v1356_v51, %v1364_v57  ;;  %v5122_v18 = vld [vmem:[%s5862_s23 + $0x158] sm:$0xff]  }
  0xda   : > { %4531 = vmatpush3.bf16.msra.mxu0 %v5092_v24  ;;  %v5117_v1 = vld [vmem:[%s5862_s23 + $0x1a8] sm:$0xff]   ;;  %v1380_v3 = vld [vmem:[%s6682_s0 + $0x1c0] sm:$0xff]  ;;  %v5123_v19 = vld [vmem:[%s5862_s23 + $0x118] sm:$0xff]  }
  0xdb   : > { %4532 = vmatprep.subr.bf16.mxu0 %v5094_v26  ;;  %v1373_v4 = vld [vmem:[%s6682_s0 + $0x188] sm:$0xff]  ;;  %v5118_v7 = vld [vmem:[%s5862_s23 + $0x160] sm:$0xff]   ;;  %v4310_v9 = vcombine.high %v1372_v2, %v1380_v3  ;;  %v5124_v20 = vld [vmem:[%s5862_s23 + $0x1d8] sm:$0xff]   ;;  %v4309_v21 = vcombine.low %v1372_v2, %v1380_v3 }
  0xdc   : > { %4595 = vmatpush3.bf16.msra.mxu1 %v5093_v25  ;;  %v1381_v5 = vld [vmem:[%s6682_s0 + $0x1c8] sm:$0xff]  ;;  %v5119_v10 = vld [vmem:[%s5862_s23 + $0x120] sm:$0xff]   ;;  %v5125_v22 = vld [vmem:[%s5862_s23 + $0x198] sm:$0xff]  }
  0xdd   : > { %4596 = vmatprep.subr.bf16.mxu1 %v5095_v27  ;;  %v4312_v11 = vcombine.high %v1373_v4, %v1381_v5  ;;  %v5120_v12 = vld [vmem:[%s5862_s23 + $0x1e0] sm:$0xff]   ;;  %v1389_v16 = vld [vmem:[%s6682_s0 + $0x208] sm:$0xff]  ;;  %v4311_v23 = vcombine.low %v1373_v4, %v1381_v5  ;;  %v5126_v26 = vld [vmem:[%s5862_s23 + $0x150] sm:$0xff]  }
  0xde   : > { %4533 = vmatpush3.bf16.msra.mxu0 %v5096_v28  ;;  %v5121_v13 = vld [vmem:[%s5862_s23 + $0x1a0] sm:$0xff]   ;;  %v1397_v17 = vld [vmem:[%s6682_s0 + $0x248] sm:$0xff]  ;;  %v5127_v27 = vld [vmem:[%s5862_s23 + $0x110] sm:$0xff]  }
  0xdf   : > { %4534 = vmatprep.subr.bf16.mxu0 %v5098_v30  ;;  %v1388_v14 = vld [vmem:[%s6682_s0 + $0x200] sm:$0xff]  ;;  %v4328_v25 = vcombine.high %v1389_v16, %v1397_v17  ;;  %v5128_v28 = vld [vmem:[%s5862_s23 + $0x1d0] sm:$0xff]   ;;  %v5130_v35 = vld [vmem:[%s5862_s23 + $0x148] sm:$0xff]   ;;  %v4327_v36 = vcombine.low %v1389_v16, %v1397_v17 }
  0xe0   : > { %4597 = vmatpush3.bf16.msra.mxu1 %v5097_v29  ;;  %v1396_v15 = vld [vmem:[%s6682_s0 + $0x240] sm:$0xff]  ;;  %v5129_v29 = vld [vmem:[%s5862_s23 + $0x190] sm:$0xff]   ;;  %v5131_v38 = vld [vmem:[%s5862_s23 + $0x108] sm:$0xff]  }
  0xe1   : > { %4598 = vmatprep.subr.bf16.mxu1 %v5099_v31  ;;  %v4326_v24 = vcombine.high %v1388_v14, %v1396_v15  ;;  %v1404_v30 = vld [vmem:[%s6682_s0 + $0x280] sm:$0xff]  ;;  %v1437_v58 = vld [vmem:[%s6682_s0 + $0x388] sm:$0xff]  ;;  %v1327_v2 = vld [vmem:[%s6682_s0 + $0x18] sm:$0xff] }
  0xe2   : > { %4535 = vmatpush3.bf16.msra.mxu0 %v5100_v32  ;;  %v1412_v31 = vld [vmem:[%s6682_s0 + $0x2c0] sm:$0xff]  ;;  %v1405_v32 = vld [vmem:[%s6682_s0 + $0x288] sm:$0xff]  ;;  %v1335_v3 = vld [vmem:[%s6682_s0 + $0x58] sm:$0xff] }
  0xe3   : > { %4536 = vmatprep.subr.bf16.mxu0 %v5102_v34  ;;  %v4325_v34 = vcombine.low %v1388_v14, %v1396_v15  ;;  %v1444_v57 = vld [vmem:[%s6682_s0 + $0x3c0] sm:$0xff]  ;;  %v1445_v59 = vld [vmem:[%s6682_s0 + $0x3c8] sm:$0xff]  ;;  %v5139_v14 = vld [vmem:[%s5862_s23 + $0x238] sm:$0xff]  }
  0xe4   : > { %4599 = vmatpush3.bf16.msra.mxu1 %v5101_v33  ;;  %v1413_v33 = vld [vmem:[%s6682_s0 + $0x2c8] sm:$0xff]  ;;  %v4375_v5 = vcombine.low %v1437_v58, %v1445_v59  ;;  %v5141_v15 = vld [vmem:[%s5862_s23 + $0x2b8] sm:$0xff]  }
  0xe5   : > { %4600 = vmatprep.subr.bf16.mxu1 %v5103_v37  ;;  %v4342_v37 = vcombine.high %v1404_v30, %v1412_v31  ;;  %v4344_v39 = vcombine.high %v1405_v32, %v1413_v33  ;;  %v4343_v51 = vcombine.low %v1405_v32, %v1413_v33  ;;  %v5149_v33 = vld [vmem:[%s5862_s23 + $0x2a8] sm:$0xff]  }
  0xe6   : > { %4537 = vmatpush3.bf16.msra.mxu0 %v5104_v40  ;;  %v5132_v40 = vld [vmem:[%s5862_s23 + $0x1c8] sm:$0xff]  }
  0xe7   : > { %4650 = vmatprep.subr.bf16.mxu0 %v5106_v44  ;;  %v1421_v44 = vld [vmem:[%s6682_s0 + $0x308] sm:$0xff] }
  0xe8   : > { %4601 = vmatpush3.bf16.msra.mxu1 %v5105_v41  ;;  %v5133_v41 = vld [vmem:[%s5862_s23 + $0x188] sm:$0xff]  }
  0xe9   : > { %3149 = vmatmul.mubr.bf16.vlgmr.msra.gmra.mxu0 %v4261_v42  ;;  %4714 = vmatprep.subr.bf16.mxu1 %v5108_v47  ;;  %v1420_v42 = vld [vmem:[%s6682_s0 + $0x300] sm:$0xff] }
  0xea   : > { %4651 = vmatpush3.bf16.msra.mxu0 %v5107_v45  ;;  %3156 = vmatprep.mubr.bf16.mxu0 %v4278_v46  ;;  %v1429_v45 = vld [vmem:[%s6682_s0 + $0x348] sm:$0xff]  ;;  %v5134_v46 = vld [vmem:[%s5862_s23 + $0x140] sm:$0xff]  }
  0xeb   : > { %3246 = vmatmul.mubr.bf16.vlgmr.msra.gmra.mxu1 %v4263_v43  ;;  %4652 = vmatprep.subr.bf16.mxu0 %v5110_v50  ;;  %v1428_v43 = vld [vmem:[%s6682_s0 + $0x340] sm:$0xff] }
  0xec   : > { %4715 = vmatpush3.bf16.msra.mxu1 %v5109_v49  ;;  %3253 = vmatprep.mubr.bf16.mxu1 %v4280_v48  ;;  %v5135_v47 = vld [vmem:[%s5862_s23 + $0x100] sm:$0xff]   ;;  %v4341_v49 = vcombine.low %v1404_v30, %v1412_v31  ;;  %v5147_v31 = vld [vmem:[%s5862_s23 + $0x228] sm:$0xff]  }
  0xed   : > { %4716 = vmatprep.subr.bf16.mxu1 %v5112_v53  ;;  %v5136_v48 = vld [vmem:[%s5862_s23 + $0x1c0] sm:$0xff]   ;;  %v4360_v53 = vcombine.high %v1421_v44, %v1429_v45 }
  0xee   : > { %4653 = vmatpush3.bf16.msra.mxu0 %v5111_v52  ;;  %v5137_v50 = vld [vmem:[%s5862_s23 + $0x180] sm:$0xff]   ;;  %v4358_v52 = vcombine.high %v1420_v42, %v1428_v43 }
  0xef   : > { %4654 = vmatprep.subr.bf16.mxu0 %v5114_v62 }
  0xf0   : > { %4717 = vmatpush3.bf16.msra.mxu1 %v5113_v55  ;;  %v5140_v55 = vld [vmem:[%s5862_s23 + $0x2f8] sm:$0xff]  }
  0xf1   : > { %3157 = vmatmul.mubr.bf16.gmra.mxu0 %v4277_v54  ;;  %4718 = vmatprep.subr.bf16.mxu1 %v5116_v0  ;;  %v5138_v54 = vld [vmem:[%s5862_s23 + $0x278] sm:$0xff]   ;;  %v1326_v0 = vld [vmem:[%s6682_s0 + $0x10] sm:$0xff] }
  0xf2   : > { %3164 = vmatprep.mubr.bf16.mxu0 %v4294_v60  ;;  %4655 = vmatpush3.bf16.msra.mxu0 %v5115_v63  ;;  %v4357_v60 = vcombine.low %v1420_v42, %v1428_v43  ;;  %v4376_v63 = vcombine.high %v1437_v58, %v1445_v59  ;;  %v5154_v42 = vld [vmem:[%s5862_s23 + $0x258] sm:$0xff]   ;;  %v5162_v58 = vld [vmem:[%s5862_s23 + $0x248] sm:$0xff]  }
  0xf3   : > { %3254 = vmatmul.mubr.bf16.gmra.mxu1 %v4279_v56  ;;  %4656 = vmatprep.subr.bf16.mxu0 %v5118_v7  ;;  %v1436_v56 = vld [vmem:[%s6682_s0 + $0x380] sm:$0xff]  ;;  %v4268_v7 = vcombine.high %v1327_v2, %v1335_v3 }
  0xf4   : > { %3261 = vmatprep.mubr.bf16.mxu1 %v4296_v61  ;;  %4719 = vmatpush3.bf16.msra.mxu1 %v5117_v1  ;;  %v4359_v61 = vcombine.low %v1421_v44, %v1429_v45  ;;  %v4374_v62 = vcombine.high %v1436_v56, %v1444_v57  ;;  %v1334_v1 = vld [vmem:[%s6682_s0 + $0x50] sm:$0xff]  ;;  %v4373_v4 = vcombine.low %v1436_v56, %v1444_v57  ;;  %v5156_v44 = vld [vmem:[%s5862_s23 + $0x2d8] sm:$0xff]  }
  0xf5   : > { %4720 = vmatprep.subr.bf16.mxu1 %v5120_v12  ;;  %v1351_v12 = vld [vmem:[%s6682_s0 + $0xd8] sm:$0xff]  ;;  %v5159_v56 = vld [vmem:[%s5862_s23 + $0x210] sm:$0xff]  }
  0xf6   : > { %4657 = vmatpush3.bf16.msra.mxu0 %v5119_v10  ;;  %v1343_v10 = vld [vmem:[%s6682_s0 + $0x98] sm:$0xff]  ;;  %v5161_v57 = vld [vmem:[%s5862_s23 + $0x290] sm:$0xff]  }
  0xf7   : > { %4658 = vmatprep.subr.bf16.mxu0 %v5122_v18  ;;  %v4284_v17 = vcombine.high %v1343_v10, %v1351_v12  ;;  %v5142_v18 = vld [vmem:[%s5862_s23 + $0x270] sm:$0xff]  }
  0xf8   : > { %4721 = vmatpush3.bf16.msra.mxu1 %v5121_v13  ;;  %v4267_v13 = vcombine.low %v1327_v2, %v1335_v3  ;;  %v5166_v2 = vld [vmem:[%s5862_s23 + $0x240] sm:$0xff]   ;;  %v1406_v3 = vld [vmem:[%s6682_s0 + $0x290] sm:$0xff] }
  0xf9   : > { %3165 = vmatmul.mubr.bf16.gmra.mxu0 %v4293_v6  ;;  %4722 = vmatprep.subr.bf16.mxu1 %v5124_v20  ;;  %v4266_v6 = vcombine.high %v1326_v0, %v1334_v1  ;;  %v5144_v20 = vld [vmem:[%s5862_s23 + $0x2f0] sm:$0xff]  }
  0xfa   : > { %3172 = vmatprep.mubr.bf16.mxu0 %v4310_v9  ;;  %4659 = vmatpush3.bf16.msra.mxu0 %v5123_v19  ;;  %v1350_v9 = vld [vmem:[%s6682_s0 + $0xd0] sm:$0xff] }
  0xfb   : > { %3262 = vmatmul.mubr.bf16.gmra.mxu1 %v4295_v8  ;;  %4660 = vmatprep.subr.bf16.mxu0 %v5126_v26  ;;  %v1342_v8 = vld [vmem:[%s6682_s0 + $0x90] sm:$0xff]  ;;  %v5146_v26 = vld [vmem:[%s5862_s23 + $0x268] sm:$0xff]  }
  0xfc   : > { %3269 = vmatprep.mubr.bf16.mxu1 %v4312_v11  ;;  %4723 = vmatpush3.bf16.msra.mxu1 %v5125_v22  ;;  %v4265_v11 = vcombine.low %v1326_v0, %v1334_v1  ;;  %v4282_v16 = vcombine.high %v1342_v8, %v1350_v9  ;;  %v5143_v19 = vld [vmem:[%s5862_s23 + $0x230] sm:$0xff]   ;;  %v5165_v1 = vld [vmem:[%s5862_s23 + $0x288] sm:$0xff]  }
  0xfd   : > { %4724 = vmatprep.subr.bf16.mxu1 %v5128_v28  ;;  %v1358_v22 = vld [vmem:[%s6682_s0 + $0x110] sm:$0xff]  ;;  %v4281_v28 = vcombine.low %v1342_v8, %v1350_v9  ;;  %v5167_v8 = vld [vmem:[%s5862_s23 + $0x200] sm:$0xff]  }
  0xfe   : > { %4661 = vmatpush3.bf16.msra.mxu0 %v5127_v27  ;;  %v5148_v27 = vld [vmem:[%s5862_s23 + $0x2e8] sm:$0xff]   ;;  %v5169_v9 = vld [vmem:[%s5862_s23 + $0x280] sm:$0xff]  }
  0xff   : > { %4662 = vmatprep.subr.bf16.mxu0 %v5130_v35  ;;  %v1374_v35 = vld [vmem:[%s6682_s0 + $0x190] sm:$0xff] }
 0x100   : > { %4725 = vmatpush3.bf16.msra.mxu1 %v5129_v29  ;;  %v4283_v29 = vcombine.low %v1343_v10, %v1351_v12  ;;  %v5170_v10 = vld [vmem:[%s5862_s23 + $0x378] sm:$0xff]  }
 0x101   : > { %3173 = vmatmul.mubr.bf16.gmra.mxu0 %v4309_v21  ;;  %4726 = vmatprep.subr.bf16.mxu1 %v5132_v40  ;;  %v5145_v21 = vld [vmem:[%s5862_s23 + $0x2b0] sm:$0xff]   ;;  %v5151_v40 = vld [vmem:[%s5862_s23 + $0x220] sm:$0xff]   ;;  %v5172_v12 = vld [vmem:[%s5862_s23 + $0x3f8] sm:$0xff]  }
 0x102   : > { %3180 = vmatprep.mubr.bf16.mxu0 %v4326_v24  ;;  %4663 = vmatpush3.bf16.msra.mxu0 %v5131_v38  ;;  %v1359_v24 = vld [vmem:[%s6682_s0 + $0x118] sm:$0xff] }
 0x103   : > { %3270 = vmatmul.mubr.bf16.gmra.mxu1 %v4311_v23  ;;  %4664 = vmatprep.subr.bf16.mxu0 %v5134_v46  ;;  %v1366_v23 = vld [vmem:[%s6682_s0 + $0x150] sm:$0xff]  ;;  %v1375_v38 = vld [vmem:[%s6682_s0 + $0x198] sm:$0xff] }
 0x104   : > { %3277 = vmatprep.mubr.bf16.mxu1 %v4328_v25  ;;  %4727 = vmatpush3.bf16.msra.mxu1 %v5133_v41  ;;  %v1367_v25 = vld [vmem:[%s6682_s0 + $0x158] sm:$0xff]  ;;  %v4298_v30 = vcombine.high %v1358_v22, %v1366_v23  ;;  %v5153_v41 = vld [vmem:[%s5862_s23 + $0x2a0] sm:$0xff]   ;;  %v4297_v43 = vcombine.low %v1358_v22, %v1366_v23 }
 0x105   : > { %4728 = vmatprep.subr.bf16.mxu1 %v5136_v48  ;;  %v4300_v32 = vcombine.high %v1359_v24, %v1367_v25  ;;  %v4299_v45 = vcombine.low %v1359_v24, %v1367_v25  ;;  %v5155_v48 = vld [vmem:[%s5862_s23 + $0x218] sm:$0xff]   ;;  %v1438_v24 = vld [vmem:[%s6682_s0 + $0x390] sm:$0xff] }
 0x106   : > { %4665 = vmatpush3.bf16.msra.mxu0 %v5135_v47  ;;  %v1446_v25 = vld [vmem:[%s6682_s0 + $0x3d0] sm:$0xff] }
 0x107   : > { %4778 = vmatprep.subr.bf16.mxu0 %v5138_v54  ;;  %v1391_v54 = vld [vmem:[%s6682_s0 + $0x218] sm:$0xff] }
 0x108   : > { %4729 = vmatpush3.bf16.msra.mxu1 %v5137_v50  ;;  %v5158_v50 = vld [vmem:[%s5862_s23 + $0x250] sm:$0xff]  }
 0x109   : > { %3181 = vmatmul.mubr.bf16.gmra.mxu0 %v4325_v34  ;;  %4842 = vmatprep.subr.bf16.mxu1 %v5140_v55  ;;  %v5150_v34 = vld [vmem:[%s5862_s23 + $0x260] sm:$0xff]   ;;  %v1399_v55 = vld [vmem:[%s6682_s0 + $0x258] sm:$0xff] }
 0x10a   : > { %3188 = vmatprep.mubr.bf16.mxu0 %v4342_v37  ;;  %v5152_v37 = vld [vmem:[%s5862_s23 + $0x2e0] sm:$0xff]   ;;  %v4332_v0 = vcombine.high %v1391_v54, %v1399_v55 }
 0x10b   : > { %3278 = vmatmul.mubr.bf16.gmra.mxu1 %v4327_v36  ;;  %v1382_v36 = vld [vmem:[%s6682_s0 + $0x1d0] sm:$0xff] }
 0x10c   : > { %3285 = vmatprep.mubr.bf16.mxu1 %v4344_v39  ;;  %v1383_v39 = vld [vmem:[%s6682_s0 + $0x1d8] sm:$0xff]  ;;  %v4314_v46 = vcombine.high %v1374_v35, %v1382_v36  ;;  %v4313_v59 = vcombine.low %v1374_v35, %v1382_v36  ;;  %v1337_v35 = vld [vmem:[%s6682_s0 + $0x68] sm:$0xff]  ;;  %v4377_v36 = vcombine.low %v1438_v24, %v1446_v25 }
 0x10d   : > { %v4316_v47 = vcombine.high %v1375_v38, %v1383_v39 }
 0x111   : > { %3189 = vmatmul.mubr.bf16.gmra.mxu0 %v4341_v49  ;;  %v5157_v49 = vld [vmem:[%s5862_s23 + $0x298] sm:$0xff]  }
 0x112   : > { %3196 = vmatprep.mubr.bf16.mxu0 %v4358_v52  ;;  %v1398_v52 = vld [vmem:[%s6682_s0 + $0x250] sm:$0xff] }
 0x113   : > { %3286 = vmatmul.mubr.bf16.gmra.mxu1 %v4343_v51  ;;  %v1390_v51 = vld [vmem:[%s6682_s0 + $0x210] sm:$0xff] }
 0x114   : > { %3293 = vmatprep.mubr.bf16.mxu1 %v4360_v53  ;;  %v5160_v53 = vld [vmem:[%s5862_s23 + $0x2d0] sm:$0xff]  }
 0x119   : > { %3197 = vmatmul.mubr.bf16.gmra.mxu0 %v4357_v60  ;;  %v5164_v60 = vld [vmem:[%s5862_s23 + $0x2c8] sm:$0xff]  }
 0x11a   : > { %3204 = vmatprep.mubr.bf16.mxu0 %v4374_v62  ;;  %v4330_v62 = vcombine.high %v1390_v51, %v1398_v52 }
 0x11b   : > { %3294 = vmatmul.mubr.bf16.gmra.mxu1 %v4359_v61  ;;  %v4315_v61 = vcombine.low %v1375_v38, %v1383_v39 }
 0x11c   : > { %3301 = vmatprep.mubr.bf16.mxu1 %v4376_v63  ;;  %v5163_v63 = vld [vmem:[%s5862_s23 + $0x208] sm:$0xff]  }
 0x121   : > { %3205 = vmatmul.mubr.bf16.gmra.mxu0 %v4373_v4  ;;  %v1414_v4 = vld [vmem:[%s6682_s0 + $0x2d0] sm:$0xff] }
 0x122   : > { %3342 = vmatprep.mubr.bf16.mxu0 %v4266_v6  ;;  %v1407_v6 = vld [vmem:[%s6682_s0 + $0x298] sm:$0xff] }
 0x123   : > { %3302 = vmatmul.mubr.bf16.gmra.mxu1 %v4375_v5  ;;  %v5168_v5 = vld [vmem:[%s5862_s23 + $0x2c0] sm:$0xff]  }
 0x124   : > { %3439 = vmatprep.mubr.bf16.mxu1 %v4268_v7  ;;  %v1415_v7 = vld [vmem:[%s6682_s0 + $0x2d8] sm:$0xff] }
 0x129   : > { %3343 = vmatmul.mubr.bf16.vlgmr.msra.gmra.mxu0 %v4265_v11  ;;  %v4329_v11 = vcombine.low %v1390_v51, %v1398_v52  ;;  %v5176_v51 = vld [vmem:[%s5862_s23 + $0x3f0] sm:$0xff]  }
 0x12a   : > { %4779 = vmatpush3.bf16.msra.mxu0 %v5139_v14  ;;  %3350 = vmatprep.mubr.bf16.mxu0 %v4282_v16  ;;  %v4346_v14 = vcombine.high %v1406_v3, %v1414_v4  ;;  %v1422_v16 = vld [vmem:[%s6682_s0 + $0x310] sm:$0xff] }
 0x12b   : > { %3440 = vmatmul.mubr.bf16.vlgmr.msra.gmra.mxu1 %v4267_v13  ;;  %4780 = vmatprep.subr.bf16.mxu0 %v5142_v18  ;;  %v4331_v13 = vcombine.low %v1391_v54, %v1399_v55  ;;  %v1423_v18 = vld [vmem:[%s6682_s0 + $0x318] sm:$0xff]  ;;  %v5175_v52 = vld [vmem:[%s5862_s23 + $0x330] sm:$0xff]   ;;  %v1360_v54 = vld [vmem:[%s6682_s0 + $0x120] sm:$0xff] }
 0x12c   : > { %4843 = vmatpush3.bf16.msra.mxu1 %v5141_v15  ;;  %3447 = vmatprep.mubr.bf16.mxu1 %v4284_v17  ;;  %v4348_v15 = vcombine.high %v1407_v6, %v1415_v7  ;;  %v1430_v17 = vld [vmem:[%s6682_s0 + $0x350] sm:$0xff]  ;;  %v1368_v55 = vld [vmem:[%s6682_s0 + $0x160] sm:$0xff] }
 0x12d   : > { %4844 = vmatprep.subr.bf16.mxu1 %v5144_v20  ;;  %v4345_v20 = vcombine.low %v1406_v3, %v1414_v4  ;;  %v4362_v22 = vcombine.high %v1422_v16, %v1430_v17  ;;  %v5184_v3 = vld [vmem:[%s5862_s23 + $0x3e0] sm:$0xff]  }
 0x12e   : > { %4781 = vmatpush3.bf16.msra.mxu0 %v5143_v19  ;;  %v1431_v19 = vld [vmem:[%s6682_s0 + $0x358] sm:$0xff]  ;;  %v1376_v4 = vld [vmem:[%s6682_s0 + $0x1a0] sm:$0xff] }
 0x12f   : > { %4782 = vmatprep.subr.bf16.mxu0 %v5146_v26  ;;  %v4364_v23 = vcombine.high %v1423_v18, %v1431_v19  ;;  %v1439_v26 = vld [vmem:[%s6682_s0 + $0x398] sm:$0xff] }
 0x130   : > { %4845 = vmatpush3.bf16.msra.mxu1 %v5145_v21  ;;  %v4347_v21 = vcombine.low %v1407_v6, %v1415_v7  ;;  %v1377_v6 = vld [vmem:[%s6682_s0 + $0x1a8] sm:$0xff]  ;;  %v5183_v7 = vld [vmem:[%s5862_s23 + $0x320] sm:$0xff]  }
 0x131   : > { %4846 = vmatprep.subr.bf16.mxu1 %v5148_v27  ;;  %3351 = vmatmul.mubr.bf16.gmra.mxu0 %v4281_v28  ;;  %v1447_v27 = vld [vmem:[%s6682_s0 + $0x3d8] sm:$0xff]  ;;  %v4361_v28 = vcombine.low %v1422_v16, %v1430_v17 }
 0x132   : > { %3358 = vmatprep.mubr.bf16.mxu0 %v4298_v30  ;;  %4783 = vmatpush3.bf16.msra.mxu0 %v5147_v31  ;;  %v4378_v30 = vcombine.high %v1438_v24, %v1446_v25  ;;  %v4380_v31 = vcombine.high %v1439_v26, %v1447_v27  ;;  %v5187_v16 = vld [vmem:[%s5862_s23 + $0x318] sm:$0xff]   ;;  %v1401_v24 = vld [vmem:[%s6682_s0 + $0x268] sm:$0xff]  ;;  %v5193_v25 = vld [vmem:[%s5862_s23 + $0x390] sm:$0xff]  }
 0x133   : > { %3448 = vmatmul.mubr.bf16.gmra.mxu1 %v4283_v29  ;;  %4784 = vmatprep.subr.bf16.mxu0 %v5150_v34  ;;  %v4363_v29 = vcombine.low %v1423_v18, %v1431_v19  ;;  %v1329_v34 = vld [vmem:[%s6682_s0 + $0x28] sm:$0xff]  ;;  %v5189_v17 = vld [vmem:[%s5862_s23 + $0x398] sm:$0xff]   ;;  %v5190_v18 = vld [vmem:[%s5862_s23 + $0x350] sm:$0xff]  }
 0x134   : > { %3455 = vmatprep.mubr.bf16.mxu1 %v4300_v32  ;;  %4847 = vmatpush3.bf16.msra.mxu1 %v5149_v33  ;;  %v1328_v32 = vld [vmem:[%s6682_s0 + $0x20] sm:$0xff]  ;;  %v4272_v39 = vcombine.high %v1329_v34, %v1337_v35  ;;  %v5192_v19 = vld [vmem:[%s5862_s23 + $0x3d0] sm:$0xff]  }
 0x135   : > { %4848 = vmatprep.subr.bf16.mxu1 %v5152_v37  ;;  %v1336_v33 = vld [vmem:[%s6682_s0 + $0x60] sm:$0xff]  ;;  %v4379_v37 = vcombine.low %v1439_v26, %v1447_v27  ;;  %v5194_v26 = vld [vmem:[%s5862_s23 + $0x348] sm:$0xff]  }
 0x136   : > { %4785 = vmatpush3.bf16.msra.mxu0 %v5151_v40  ;;  %v4270_v38 = vcombine.high %v1328_v32, %v1336_v33  ;;  %v1344_v40 = vld [vmem:[%s6682_s0 + $0xa0] sm:$0xff] }
 0x137   : > { %4786 = vmatprep.subr.bf16.mxu0 %v5154_v42  ;;  %v4269_v42 = vcombine.low %v1328_v32, %v1336_v33  ;;  %v5195_v32 = vld [vmem:[%s5862_s23 + $0x308] sm:$0xff]  }
 0x138   : > { %4849 = vmatpush3.bf16.msra.mxu1 %v5153_v41  ;;  %v1352_v41 = vld [vmem:[%s6682_s0 + $0xe0] sm:$0xff]  ;;  %v5197_v33 = vld [vmem:[%s5862_s23 + $0x388] sm:$0xff]  }
 0x139   : > { %3359 = vmatmul.mubr.bf16.gmra.mxu0 %v4297_v43  ;;  %4850 = vmatprep.subr.bf16.mxu1 %v5156_v44  ;;  %v1345_v43 = vld [vmem:[%s6682_s0 + $0xa8] sm:$0xff] }
 0x13a   : > { %3366 = vmatprep.mubr.bf16.mxu0 %v4314_v46  ;;  %4787 = vmatpush3.bf16.msra.mxu0 %v5155_v48  ;;  %v1353_v44 = vld [vmem:[%s6682_s0 + $0xe8] sm:$0xff]  ;;  %v5171_v46 = vld [vmem:[%s5862_s23 + $0x338] sm:$0xff]   ;;  %v4286_v48 = vcombine.high %v1344_v40, %v1352_v41 }
 0x13b   : > { %3456 = vmatmul.mubr.bf16.gmra.mxu1 %v4299_v45  ;;  %4788 = vmatprep.subr.bf16.mxu0 %v5158_v50  ;;  %v4271_v45 = vcombine.low %v1329_v34, %v1337_v35  ;;  %v5174_v50 = vld [vmem:[%s5862_s23 + $0x370] sm:$0xff]   ;;  %v5198_v34 = vld [vmem:[%s5862_s23 + $0x340] sm:$0xff]  }
 0x13c   : > { %3463 = vmatprep.mubr.bf16.mxu1 %v4316_v47  ;;  %4851 = vmatpush3.bf16.msra.mxu1 %v5157_v49  ;;  %v5173_v47 = vld [vmem:[%s5862_s23 + $0x3b8] sm:$0xff]   ;;  %v4288_v49 = vcombine.high %v1345_v43, %v1353_v44  ;;  %v5200_v35 = vld [vmem:[%s5862_s23 + $0x3c0] sm:$0xff]  }
 0x13d   : > { %4852 = vmatprep.subr.bf16.mxu1 %v5160_v53  ;;  %v5177_v53 = vld [vmem:[%s5862_s23 + $0x3b0] sm:$0xff]  }
 0x13e   : > { %4789 = vmatpush3.bf16.msra.mxu0 %v5159_v56  ;;  %v5178_v56 = vld [vmem:[%s5862_s23 + $0x368] sm:$0xff]  }
 0x13f   : > { %4790 = vmatprep.subr.bf16.mxu0 %v5162_v58  ;;  %v1369_v58 = vld [vmem:[%s6682_s0 + $0x168] sm:$0xff] }
 0x140   : > { %4853 = vmatpush3.bf16.msra.mxu1 %v5161_v57  ;;  %v1361_v57 = vld [vmem:[%s6682_s0 + $0x128] sm:$0xff] }
 0x141   : > { %3367 = vmatmul.mubr.bf16.gmra.mxu0 %v4313_v59  ;;  %4854 = vmatprep.subr.bf16.mxu1 %v5164_v60  ;;  %v5180_v59 = vld [vmem:[%s5862_s23 + $0x3e8] sm:$0xff]   ;;  %v4285_v60 = vcombine.low %v1344_v40, %v1352_v41  ;;  %v5201_v41 = vld [vmem:[%s5862_s23 + $0x380] sm:$0xff]  }
 0x142   : > { %3374 = vmatprep.mubr.bf16.mxu0 %v4330_v62  ;;  %4791 = vmatpush3.bf16.msra.mxu0 %v5163_v63  ;;  %v4302_v62 = vcombine.high %v1360_v54, %v1368_v55  ;;  %v4304_v63 = vcombine.high %v1361_v57, %v1369_v58  ;;  %v1417_v40 = vld [vmem:[%s6682_s0 + $0x2e8] sm:$0xff] }
 0x143   : > { %3464 = vmatmul.mubr.bf16.gmra.mxu1 %v4315_v61  ;;  %4792 = vmatprep.subr.bf16.mxu0 %v5166_v2  ;;  %v4287_v61 = vcombine.low %v1345_v43, %v1353_v44  ;;  %v5182_v2 = vld [vmem:[%s5862_s23 + $0x360] sm:$0xff]  }
 0x144   : > { %3471 = vmatprep.mubr.bf16.mxu1 %v4332_v0  ;;  %4855 = vmatpush3.bf16.msra.mxu1 %v5165_v1  ;;  %v5179_v0 = vld [vmem:[%s5862_s23 + $0x328] sm:$0xff]  }
 0x145   : > { %4856 = vmatprep.subr.bf16.mxu1 %v5168_v5  ;;  %v5181_v1 = vld [vmem:[%s5862_s23 + $0x3a8] sm:$0xff]   ;;  %v1384_v5 = vld [vmem:[%s6682_s0 + $0x1e0] sm:$0xff] }
 0x146   : > { %4793 = vmatpush3.bf16.msra.mxu0 %v5167_v8  ;;  %v1385_v8 = vld [vmem:[%s6682_s0 + $0x1e8] sm:$0xff]  ;;  %v4317_v27 = vcombine.low %v1376_v4, %v1384_v5 }
 0x147   : > { %4906 = vmatprep.subr.bf16.mxu0 %v5170_v10  ;;  %v5186_v10 = vld [vmem:[%s5862_s23 + $0x358] sm:$0xff]  }
 0x148   : > { %4857 = vmatpush3.bf16.msra.mxu1 %v5169_v9  ;;  %v5185_v9 = vld [vmem:[%s5862_s23 + $0x3a0] sm:$0xff]  }
 0x149   : > { %3375 = vmatmul.mubr.bf16.gmra.mxu0 %v4329_v11  ;;  %4970 = vmatprep.subr.bf16.mxu1 %v5172_v12  ;;  %v4301_v11 = vcombine.low %v1360_v54, %v1368_v55  ;;  %v5188_v12 = vld [vmem:[%s5862_s23 + $0x3d8] sm:$0xff]   ;;  %v1440_v54 = vld [vmem:[%s6682_s0 + $0x3a0] sm:$0xff] }
 0x14a   : > { %3382 = vmatprep.mubr.bf16.mxu0 %v4346_v14  ;;  %v4318_v14 = vcombine.high %v1376_v4, %v1384_v5  ;;  %v1448_v55 = vld [vmem:[%s6682_s0 + $0x3e0] sm:$0xff] }
 0x14b   : > { %3472 = vmatmul.mubr.bf16.gmra.mxu1 %v4331_v13  ;;  %v4303_v13 = vcombine.low %v1361_v57, %v1369_v58  ;;  %v1449_v57 = vld [vmem:[%s6682_s0 + $0x3e8] sm:$0xff] }
 0x14c   : > { %3479 = vmatprep.mubr.bf16.mxu1 %v4348_v15  ;;  %v4320_v15 = vcombine.high %v1377_v6, %v1385_v8 }
 0x151   : > { %3383 = vmatmul.mubr.bf16.gmra.mxu0 %v4345_v20  ;;  %v1392_v20 = vld [vmem:[%s6682_s0 + $0x220] sm:$0xff] }
 0x152   : > { %3390 = vmatprep.mubr.bf16.mxu0 %v4362_v22  ;;  %v1393_v22 = vld [vmem:[%s6682_s0 + $0x228] sm:$0xff] }
 0x153   : > { %3480 = vmatmul.mubr.bf16.gmra.mxu1 %v4347_v21  ;;  %v1400_v21 = vld [vmem:[%s6682_s0 + $0x260] sm:$0xff]  ;;  %v4335_v43 = vcombine.low %v1393_v22, %v1401_v24 }
 0x154   : > { %3487 = vmatprep.mubr.bf16.mxu1 %v4364_v23  ;;  %v5191_v23 = vld [vmem:[%s5862_s23 + $0x310] sm:$0xff]  }
 0x159   : > { %3391 = vmatmul.mubr.bf16.gmra.mxu0 %v4361_v28  ;;  %v5196_v28 = vld [vmem:[%s5862_s23 + $0x3c8] sm:$0xff]  }
 0x15a   : > { %3398 = vmatprep.mubr.bf16.mxu0 %v4378_v30  ;;  %v4334_v30 = vcombine.high %v1392_v20, %v1400_v21 }
 0x15b   : > { %3488 = vmatmul.mubr.bf16.gmra.mxu1 %v4363_v29  ;;  %v4319_v29 = vcombine.low %v1377_v6, %v1385_v8  ;;  %v1346_v6 = vld [vmem:[%s6682_s0 + $0xb0] sm:$0xff]  ;;  %v1347_v8 = vld [vmem:[%s6682_s0 + $0xb8] sm:$0xff] }
 0x15c   : > { %3495 = vmatprep.mubr.bf16.mxu1 %v4380_v31  ;;  %v4336_v31 = vcombine.high %v1393_v22, %v1401_v24  ;;  %v1371_v22 = vld [vmem:[%s6682_s0 + $0x178] sm:$0xff] }
 0x161   : > { %3399 = vmatmul.mubr.bf16.gmra.mxu0 %v4377_v36  ;;  %v1408_v36 = vld [vmem:[%s6682_s0 + $0x2a0] sm:$0xff] }
 0x162   : > { %3536 = vmatprep.mubr.bf16.mxu0 %v4270_v38  ;;  %v5199_v38 = vld [vmem:[%s5862_s23 + $0x300] sm:$0xff]  }
 0x163   : > { %3496 = vmatmul.mubr.bf16.gmra.mxu1 %v4379_v37  ;;  %v1416_v37 = vld [vmem:[%s6682_s0 + $0x2e0] sm:$0xff] }
 0x164   : > { %3633 = vmatprep.mubr.bf16.mxu1 %v4272_v39  ;;  %v1409_v39 = vld [vmem:[%s6682_s0 + $0x2a8] sm:$0xff]  ;;  %v4350_v44 = vcombine.high %v1408_v36, %v1416_v37 }
 0x169   : > { %3537 = vmatmul.mubr.bf16.vlgmr.msra.gmra.mxu0 %v4269_v42  ;;  %v4333_v42 = vcombine.low %v1392_v20, %v1400_v21  ;;  %v1363_v21 = vld [vmem:[%s6682_s0 + $0x138] sm:$0xff] }
 0x16a   : > { %4907 = vmatpush3.bf16.msra.mxu0 %v5171_v46  ;;  %3544 = vmatprep.mubr.bf16.mxu0 %v4286_v48  ;;  %v1424_v46 = vld [vmem:[%s6682_s0 + $0x320] sm:$0xff]  ;;  %v1425_v48 = vld [vmem:[%s6682_s0 + $0x328] sm:$0xff] }
 0x16b   : > { %3634 = vmatmul.mubr.bf16.vlgmr.msra.gmra.mxu1 %v4271_v45  ;;  %4908 = vmatprep.subr.bf16.mxu0 %v5174_v50  ;;  %v4352_v45 = vcombine.high %v1409_v39, %v1417_v40  ;;  %v4349_v50 = vcombine.low %v1408_v36, %v1416_v37 }
 0x16c   : > { %4971 = vmatpush3.bf16.msra.mxu1 %v5173_v47  ;;  %3641 = vmatprep.mubr.bf16.mxu1 %v4288_v49  ;;  %v1432_v47 = vld [vmem:[%s6682_s0 + $0x360] sm:$0xff]  ;;  %v1433_v49 = vld [vmem:[%s6682_s0 + $0x368] sm:$0xff] }
 0x16d   : > { %4972 = vmatprep.subr.bf16.mxu1 %v5176_v51  ;;  %v4351_v51 = vcombine.low %v1409_v39, %v1417_v40  ;;  %v4365_v58 = vcombine.low %v1424_v46, %v1432_v47  ;;  %v1378_v39 = vld [vmem:[%s6682_s0 + $0x1b0] sm:$0xff] }
 0x16e   : > { %4909 = vmatpush3.bf16.msra.mxu0 %v5175_v52  ;;  %v4366_v52 = vcombine.high %v1424_v46, %v1432_v47  ;;  %v1386_v40 = vld [vmem:[%s6682_s0 + $0x1f0] sm:$0xff] }
 0x16f   : > { %4910 = vmatprep.subr.bf16.mxu0 %v5178_v56  ;;  %v1441_v56 = vld [vmem:[%s6682_s0 + $0x3a8] sm:$0xff] }
 0x170   : > { %4973 = vmatpush3.bf16.msra.mxu1 %v5177_v53  ;;  %v4368_v53 = vcombine.high %v1425_v48, %v1433_v49 }
 0x171   : > { %4974 = vmatprep.subr.bf16.mxu1 %v5180_v59  ;;  %3545 = vmatmul.mubr.bf16.gmra.mxu0 %v4285_v60  ;;  %v4367_v59 = vcombine.low %v1425_v48, %v1433_v49  ;;  %v4382_v60 = vcombine.high %v1440_v54, %v1448_v55  ;;  %v4307_v49 = vcombine.low %v1363_v21, %v1371_v22 }
 0x172   : > { %3552 = vmatprep.mubr.bf16.mxu0 %v4302_v62  ;;  %4911 = vmatpush3.bf16.msra.mxu0 %v5179_v0  ;;  %v1330_v62 = vld [vmem:[%s6682_s0 + $0x30] sm:$0xff]  ;;  %v1331_v0 = vld [vmem:[%s6682_s0 + $0x38] sm:$0xff] }
 0x173   : > { %3642 = vmatmul.mubr.bf16.gmra.mxu1 %v4287_v61  ;;  %4912 = vmatprep.subr.bf16.mxu0 %v5182_v2  ;;  %v4384_v61 = vcombine.high %v1441_v56, %v1449_v57  ;;  %v4381_v2 = vcombine.low %v1440_v54, %v1448_v55 }
 0x174   : > { %3649 = vmatprep.mubr.bf16.mxu1 %v4304_v63  ;;  %4975 = vmatpush3.bf16.msra.mxu1 %v5181_v1  ;;  %v1338_v63 = vld [vmem:[%s6682_s0 + $0x70] sm:$0xff]  ;;  %v1339_v1 = vld [vmem:[%s6682_s0 + $0x78] sm:$0xff] }
 0x175   : > { %4976 = vmatprep.subr.bf16.mxu1 %v5184_v3  ;;  %v4383_v3 = vcombine.low %v1441_v56, %v1449_v57  ;;  %v4274_v4 = vcombine.high %v1330_v62, %v1338_v63  ;;  %v4276_v5 = vcombine.high %v1331_v0, %v1339_v1 }
 0x176   : > { %4913 = vmatpush3.bf16.msra.mxu0 %v5183_v7  ;;  %v1354_v7 = vld [vmem:[%s6682_s0 + $0xf0] sm:$0xff] }
 0x177   : > { %4914 = vmatprep.subr.bf16.mxu0 %v5186_v10  ;;  %v4273_v10 = vcombine.low %v1330_v62, %v1338_v63  ;;  %v1402_v62 = vld [vmem:[%s6682_s0 + $0x270] sm:$0xff] }
 0x178   : > { %4977 = vmatpush3.bf16.msra.mxu1 %v5185_v9  ;;  %v1355_v9 = vld [vmem:[%s6682_s0 + $0xf8] sm:$0xff] }
 0x179   : > { %3553 = vmatmul.mubr.bf16.gmra.mxu0 %v4301_v11  ;;  %4978 = vmatprep.subr.bf16.mxu1 %v5188_v12  ;;  %v4275_v11 = vcombine.low %v1331_v0, %v1339_v1  ;;  %v4290_v12 = vcombine.high %v1346_v6, %v1354_v7  ;;  %v1395_v1 = vld [vmem:[%s6682_s0 + $0x238] sm:$0xff] }
 0x17a   : > { %3560 = vmatprep.mubr.bf16.mxu0 %v4318_v14  ;;  %4915 = vmatpush3.bf16.msra.mxu0 %v5187_v16 }
 0x17b   : > { %3650 = vmatmul.mubr.bf16.gmra.mxu1 %v4303_v13  ;;  %4916 = vmatprep.subr.bf16.mxu0 %v5190_v18  ;;  %v4292_v13 = vcombine.high %v1347_v8, %v1355_v9  ;;  %v1370_v18 = vld [vmem:[%s6682_s0 + $0x170] sm:$0xff] }
 0x17c   : > { %3657 = vmatprep.mubr.bf16.mxu1 %v4320_v15  ;;  %4979 = vmatpush3.bf16.msra.mxu1 %v5189_v17  ;;  %v1362_v17 = vld [vmem:[%s6682_s0 + $0x130] sm:$0xff] }
 0x17d   : > { %4980 = vmatprep.subr.bf16.mxu1 %v5192_v19  ;;  %v4305_v47 = vcombine.low %v1362_v17, %v1370_v18 }
 0x17e   : > { %4917 = vmatpush3.bf16.msra.mxu0 %v5191_v23 }
 0x17f   : > { %4918 = vmatprep.subr.bf16.mxu0 %v5194_v26 }
 0x180   : > { %4981 = vmatpush3.bf16.msra.mxu1 %v5193_v25  ;;  %v4289_v25 = vcombine.low %v1346_v6, %v1354_v7 }
 0x181   : > { %3561 = vmatmul.mubr.bf16.gmra.mxu0 %v4317_v27  ;;  %4982 = vmatprep.subr.bf16.mxu1 %v5196_v28  ;;  %v4291_v27 = vcombine.low %v1347_v8, %v1355_v9  ;;  %v4306_v28 = vcombine.high %v1362_v17, %v1370_v18 }
 0x182   : > { %3568 = vmatprep.mubr.bf16.mxu0 %v4334_v30  ;;  %4919 = vmatpush3.bf16.msra.mxu0 %v5195_v32 }
 0x183   : > { %3658 = vmatmul.mubr.bf16.gmra.mxu1 %v4319_v29  ;;  %4920 = vmatprep.subr.bf16.mxu0 %v5198_v34 }
 0x184   : > { %3665 = vmatprep.mubr.bf16.mxu1 %v4336_v31  ;;  %4983 = vmatpush3.bf16.msra.mxu1 %v5197_v33  ;;  %v4308_v31 = vcombine.high %v1363_v21, %v1371_v22 }
 0x185   : > { %4984 = vmatprep.subr.bf16.mxu1 %v5200_v35 }
 0x186   : > { %4921 = vmatpush3.bf16.msra.mxu0 %v5199_v38 }
 0x188   : > { %4985 = vmatpush3.bf16.msra.mxu1 %v5201_v41 }
 0x189   : > { %3569 = vmatmul.mubr.bf16.gmra.mxu0 %v4333_v42 }
 0x18a   : > { %3576 = vmatprep.mubr.bf16.mxu0 %v4350_v44  ;;  %v1387_v44 = vld [vmem:[%s6682_s0 + $0x1f8] sm:$0xff] }
 0x18b   : > { %3666 = vmatmul.mubr.bf16.gmra.mxu1 %v4335_v43  ;;  %v1379_v43 = vld [vmem:[%s6682_s0 + $0x1b8] sm:$0xff] }
 0x18c   : > { %3673 = vmatprep.mubr.bf16.mxu1 %v4352_v45  ;;  %v4323_v7 = vcombine.low %v1379_v43, %v1387_v44 }
 0x191   : > { %3577 = vmatmul.mubr.bf16.gmra.mxu0 %v4349_v50  ;;  %v4322_v50 = vcombine.high %v1378_v39, %v1386_v40 }
 0x192   : > { %3584 = vmatprep.mubr.bf16.mxu0 %v4366_v52 }
 0x193   : > { %3674 = vmatmul.mubr.bf16.gmra.mxu1 %v4351_v51 }
 0x194   : > { %3681 = vmatprep.mubr.bf16.mxu1 %v4368_v53  ;;  %v4324_v53 = vcombine.high %v1379_v43, %v1387_v44  ;;  %v1426_v43 = vld [vmem:[%s6682_s0 + $0x330] sm:$0xff] }
 0x195   : > { %v1434_v44 = vld [vmem:[%s6682_s0 + $0x370] sm:$0xff] }
 0x199   : > { %3585 = vmatmul.mubr.bf16.gmra.mxu0 %v4365_v58 }
 0x19a   : > { %3592 = vmatprep.mubr.bf16.mxu0 %v4382_v60 }
 0x19b   : > { %3682 = vmatmul.mubr.bf16.gmra.mxu1 %v4367_v59 }
 0x19c   : > { %3689 = vmatprep.mubr.bf16.mxu1 %v4384_v61  ;;  %v1394_v61 = vld [vmem:[%s6682_s0 + $0x230] sm:$0xff] }
 0x19d   : > { %v4338_v8 = vcombine.high %v1394_v61, %v1402_v62 }
 0x1a1   : > { %3593 = vmatmul.mubr.bf16.gmra.mxu0 %v4381_v2  ;;  %v1403_v2 = vld [vmem:[%s6682_s0 + $0x278] sm:$0xff] }
 0x1a2   : > { %3730 = vmatprep.mubr.bf16.mxu0 %v4274_v4 }
 0x1a3   : > { %3690 = vmatmul.mubr.bf16.gmra.mxu1 %v4383_v3 }
 0x1a4   : > { %3827 = vmatprep.mubr.bf16.mxu1 %v4276_v5  ;;  %v4321_v5 = vcombine.low %v1378_v39, %v1386_v40 }
 0x1a9   : > { %v4538_v14 = vpop.f32.mrf.mxu0  ;;  %3731 = vmatmul.mubr.bf16.vlgmr.msra.gmra.mxu0 %v4273_v10 }
 0x1aa   : > { %3738 = vmatprep.mubr.bf16.mxu0 %v4290_v12 }
 0x1ab   : > { %v4602_v15 = vpop.f32.mrf.mxu1  ;;  %3828 = vmatmul.mubr.bf16.vlgmr.msra.gmra.mxu1 %v4275_v11  ;;  %v4539_v16 = vpop.f32.mrf.mxu0  ;;  %v4340_v11 = vcombine.high %v1395_v1, %v1403_v2 }
 0x1ac   : > { %3835 = vmatprep.mubr.bf16.mxu1 %v4292_v13  ;;  %v4540_v19 = vadd.f32 %v4539_v16, %v4538_v14 }
 0x1ad   : > { %v4603_v20 = vpop.f32.mrf.mxu1  ;;  %v4541_v24 = vpop.f32.mrf.mxu0 }
 0x1ae   : > { %v4604_v23 = vadd.f32 %v4603_v20, %v4602_v15  ;;  %v1418_v20 = vld [vmem:[%s6682_s0 + $0x2f0] sm:$0xff] }
 0x1af   : > { %v4605_v26 = vpop.f32.mrf.mxu1  ;;  %v4542_v30 = vpop.f32.mrf.mxu0 }
 0x1b0   : > { %v6308_v29 = vadd.f32 %v4604_v23, %v4540_v19  ;;  %v4543_v32 = vadd.f32 %v4542_v30, %v4541_v24  ;;  %v1410_v19 = vld [vmem:[%s6682_s0 + $0x2b0] sm:$0xff]  ;;  %v1411_v23 = vld [vmem:[%s6682_s0 + $0x2b8] sm:$0xff]  ;;  %v4339_v30 = vcombine.low %v1395_v1, %v1403_v2 }
 0x1b1   : > { %v4606_v33 = vpop.f32.mrf.mxu1  ;;  %v4544_v35 = vpop.f32.mrf.mxu0  ;;  %3739 = vmatmul.mubr.bf16.gmra.mxu0 %v4289_v25  ;;  %v1419_v24 = vld [vmem:[%s6682_s0 + $0x2f8] sm:$0xff] }
 0x1b2   : > { %v4607_v34 = vadd.f32 %v4606_v33, %v4605_v26  ;;  %3746 = vmatprep.mubr.bf16.mxu0 %v4306_v28 }
 0x1b3   : > { %v4608_v36 = vpop.f32.mrf.mxu1  ;;  %3836 = vmatmul.mubr.bf16.gmra.mxu1 %v4291_v27  ;;  %v4545_v38 = vpop.f32.mrf.mxu0  ;;  %v4337_v27 = vcombine.low %v1394_v61, %v1402_v62 }
 0x1b4   : > { %v6310_v37 = vadd.f32 %v4607_v34, %v4543_v32  ;;  %3843 = vmatprep.mubr.bf16.mxu1 %v4308_v31  ;;  %v4546_v41 = vadd.f32 %v4545_v38, %v4544_v35  ;;  %v4354_v31 = vcombine.high %v1410_v19, %v1418_v20  ;;  %v4356_v34 = vcombine.high %v1411_v23, %v1419_v24 }
 0x1b5   : > { %v4609_v42 = vpop.f32.mrf.mxu1  ;;  %v4547_v46 = vpop.f32.mrf.mxu0 }
 0x1b6   : > { %v4610_v45 = vadd.f32 %v4609_v42, %v4608_v36 }
 0x1b7   : > { %v4611_v48 = vpop.f32.mrf.mxu1  ;;  %v4548_v52 = vpop.f32.mrf.mxu0 }
 0x1b8   : > { %v6324_v51 = vadd.f32 %v4610_v45, %v4546_v41  ;;  %v4549_v54 = vadd.f32 %v4548_v52, %v4547_v46  ;;  %v4353_v52 = vcombine.low %v1410_v19, %v1418_v20 }
 0x1b9   : > { %v4612_v55 = vpop.f32.mrf.mxu1  ;;  %v4550_v57 = vpop.f32.mrf.mxu0  ;;  %3747 = vmatmul.mubr.bf16.gmra.mxu0 %v4305_v47  ;;  %v1427_v47 = vld [vmem:[%s6682_s0 + $0x338] sm:$0xff] }
 0x1ba   : > { %v4613_v56 = vadd.f32 %v4612_v55, %v4611_v48  ;;  %3754 = vmatprep.mubr.bf16.mxu0 %v4322_v50  ;;  %v1435_v48 = vld [vmem:[%s6682_s0 + $0x378] sm:$0xff]  ;;  %v4370_v55 = vcombine.high %v1426_v43, %v1434_v44 }
 0x1bb   : > { %v4614_v58 = vpop.f32.mrf.mxu1  ;;  %3844 = vmatmul.mubr.bf16.gmra.mxu1 %v4307_v49  ;;  %v4551_v60 = vpop.f32.mrf.mxu0 }
 0x1bc   : > { %v6326_v59 = vadd.f32 %v4613_v56, %v4549_v54  ;;  %3851 = vmatprep.mubr.bf16.mxu1 %v4324_v53  ;;  %v4552_v63 = vadd.f32 %v4551_v60, %v4550_v57  ;;  %v4355_v54 = vcombine.low %v1411_v23, %v1419_v24 }
 0x1bd   : > { %v4615_v0 = vpop.f32.mrf.mxu1  ;;  %v4553_v4 = vpop.f32.mrf.mxu0 }
 0x1be   : > { %v4616_v3 = vadd.f32 %v4615_v0, %v4614_v58  ;;  %v4372_v58 = vcombine.high %v1427_v47, %v1435_v48 }
 0x1bf   : > { %v4617_v6 = vpop.f32.mrf.mxu1  ;;  %v4554_v10 = vpop.f32.mrf.mxu0 }
 0x1c0   : > { %v6340_v9 = vadd.f32 %v4616_v3, %v4552_v63  ;;  %v4555_v12 = vadd.f32 %v4554_v10, %v4553_v4  ;;  %v1442_v3 = vld [vmem:[%s6682_s0 + $0x3b0] sm:$0xff] }
 0x1c1   : > { %v4618_v13 = vpop.f32.mrf.mxu1  ;;  %v4556_v15 = vpop.f32.mrf.mxu0  ;;  %3755 = vmatmul.mubr.bf16.gmra.mxu0 %v4321_v5  ;;  %v1450_v4 = vld [vmem:[%s6682_s0 + $0x3f0] sm:$0xff] }
 0x1c2   : > { %v4619_v14 = vadd.f32 %v4618_v13, %v4617_v6  ;;  %3762 = vmatprep.mubr.bf16.mxu0 %v4338_v8  ;;  %v1451_v8 = vld [vmem:[%s6682_s0 + $0x3f8] sm:$0xff] }
 0x1c3   : > { %v4620_v16 = vpop.f32.mrf.mxu1  ;;  %3852 = vmatmul.mubr.bf16.gmra.mxu1 %v4323_v7  ;;  %v4557_v18 = vpop.f32.mrf.mxu0  ;;  %v1443_v7 = vld [vmem:[%s6682_s0 + $0x3b8] sm:$0xff] }
 0x1c4   : > { %v6342_v17 = vadd.f32 %v4619_v14, %v4555_v12  ;;  %3859 = vmatprep.mubr.bf16.mxu1 %v4340_v11  ;;  %v4558_v21 = vadd.f32 %v4557_v18, %v4556_v15  ;;  %v4369_v12 = vcombine.low %v1426_v43, %v1434_v44  ;;  %v4371_v14 = vcombine.low %v1427_v47, %v1435_v48 }
 0x1c5   : > { %v4621_v22 = vpop.f32.mrf.mxu1  ;;  %v4559_v26 = vpop.f32.mrf.mxu0  ;;  %v4386_v15 = vcombine.high %v1442_v3, %v1450_v4  ;;  %v4388_v19 = vcombine.high %v1443_v7, %v1451_v8 }
 0x1c6   : > { %v4622_v25 = vadd.f32 %v4621_v22, %v4620_v16 }
 0x1c7   : > { %v4623_v28 = vpop.f32.mrf.mxu1  ;;  %v4560_v33 = vpop.f32.mrf.mxu0 }
 0x1c8   : > { %v6356_v32 = vadd.f32 %v4622_v25, %v4558_v21  ;;  %v4561_v35 = vadd.f32 %v4560_v33, %v4559_v26  ;;  %v4385_v33 = vcombine.low %v1442_v3, %v1450_v4 }
 0x1c9   : > { %v4624_v36 = vpop.f32.mrf.mxu1  ;;  %v4562_v39 = vpop.f32.mrf.mxu0  ;;  %3763 = vmatmul.mubr.bf16.gmra.mxu0 %v4337_v27 }
 0x1ca   : > { %v4625_v38 = vadd.f32 %v4624_v36, %v4623_v28  ;;  %3770 = vmatprep.mubr.bf16.mxu0 %v4354_v31 }
 0x1cb   : > { %v4626_v40 = vpop.f32.mrf.mxu1  ;;  %3860 = vmatmul.mubr.bf16.gmra.mxu1 %v4339_v30  ;;  %v4563_v42 = vpop.f32.mrf.mxu0 }
 0x1cc   : > { %v6358_v41 = vadd.f32 %v4625_v38, %v4561_v35  ;;  %3867 = vmatprep.mubr.bf16.mxu1 %v4356_v34  ;;  %v4564_v45 = vadd.f32 %v4563_v42, %v4562_v39  ;;  %v4387_v35 = vcombine.low %v1443_v7, %v1451_v8 }
 0x1cd   : > { %v4627_v46 = vpop.f32.mrf.mxu1  ;;  %v4565_v50 = vpop.f32.mrf.mxu0 }
 0x1ce   : > { %v4628_v49 = vadd.f32 %v4627_v46, %v4626_v40 }
 0x1cf   : > { %v4629_v53 = vpop.f32.mrf.mxu1  ;;  %v4566_v57 = vpop.f32.mrf.mxu0 }
 0x1d0   : > { %v6372_v56 = vadd.f32 %v4628_v49, %v4564_v45  ;;  %v4567_v60 = vadd.f32 %v4566_v57, %v4565_v50 }
 0x1d1   : > { %v4630_v61 = vpop.f32.mrf.mxu1  ;;  %v4568_v63 = vpop.f32.mrf.mxu0  ;;  %3771 = vmatmul.mubr.bf16.gmra.mxu0 %v4353_v52 }
 0x1d2   : > { %v4631_v62 = vadd.f32 %v4630_v61, %v4629_v53  ;;  %3778 = vmatprep.mubr.bf16.mxu0 %v4370_v55 }
 0x1d3   : > { %v4632_v0 = vpop.f32.mrf.mxu1  ;;  %3868 = vmatmul.mubr.bf16.gmra.mxu1 %v4355_v54  ;;  %v4569_v2 = vpop.f32.mrf.mxu0 }
 0x1d4   : > { %v6374_v1 = vadd.f32 %v4631_v62, %v4567_v60  ;;  %3875 = vmatprep.mubr.bf16.mxu1 %v4372_v58  ;;  %v4570_v5 = vadd.f32 %v4569_v2, %v4568_v63 }
 0x1d5   : > { %v4633_v6 = vpop.f32.mrf.mxu1  ;;  %v4571_v11 = vpop.f32.mrf.mxu0 }
 0x1d6   : > { %v4634_v10 = vadd.f32 %v4633_v6, %v4632_v0 }
 0x1d7   : > { %v4635_v13 = vpop.f32.mrf.mxu1  ;;  %v4572_v18 = vpop.f32.mrf.mxu0 }
 0x1d8   : > { %v6388_v16 = vadd.f32 %v4634_v10, %v4570_v5  ;;  %v4573_v20 = vadd.f32 %v4572_v18, %v4571_v11 }
 0x1d9   : > { %v4636_v21 = vpop.f32.mrf.mxu1  ;;  %v4574_v23 = vpop.f32.mrf.mxu0  ;;  %3779 = vmatmul.mubr.bf16.gmra.mxu0 %v4369_v12 }
 0x1da   : > { %v4637_v22 = vadd.f32 %v4636_v21, %v4635_v13  ;;  %3786 = vmatprep.mubr.bf16.mxu0 %v4386_v15 }
 0x1db   : > { %v4638_v24 = vpop.f32.mrf.mxu1  ;;  %3876 = vmatmul.mubr.bf16.gmra.mxu1 %v4371_v14  ;;  %v4575_v26 = vpop.f32.mrf.mxu0 }
 0x1dc   : > { %v6390_v25 = vadd.f32 %v4637_v22, %v4573_v20  ;;  %3883 = vmatprep.mubr.bf16.mxu1 %v4388_v19  ;;  %v4576_v27 = vadd.f32 %v4575_v26, %v4574_v23 }
 0x1dd   : > { %v4639_v28 = vpop.f32.mrf.mxu1  ;;  %v4577_v31 = vpop.f32.mrf.mxu0 }
 0x1de   : > { %v4640_v30 = vadd.f32 %v4639_v28, %v4638_v24 }
 0x1df   : > { %v4641_v34 = vpop.f32.mrf.mxu1  ;;  %v4578_v38 = vpop.f32.mrf.mxu0 }
 0x1e0   : > { %v6392_v36 = vadd.f32 %v4640_v30, %v4576_v27  ;;  %v4579_v39 = vadd.f32 %v4578_v38, %v4577_v31 }
 0x1e1   : > { %v4642_v40 = vpop.f32.mrf.mxu1  ;;  %v4580_v43 = vpop.f32.mrf.mxu0  ;;  %3787 = vmatmul.mubr.bf16.gmra.mxu0 %v4385_v33 }
 0x1e2   : > { %v4643_v42 = vadd.f32 %v4642_v40, %v4641_v34 }
 0x1e3   : > { %v4644_v44 = vpop.f32.mrf.mxu1  ;;  %3884 = vmatmul.mubr.bf16.gmra.mxu1 %v4387_v35  ;;  %v4581_v46 = vpop.f32.mrf.mxu0 }
 0x1e4   : > { %v6394_v45 = vadd.f32 %v4643_v42, %v4579_v39  ;;  %v4582_v47 = vadd.f32 %v4581_v46, %v4580_v43 }
 0x1e5   : > { %v4645_v48 = vpop.f32.mrf.mxu1  ;;  %v4583_v50 = vpop.f32.mrf.mxu0 }
 0x1e6   : > { %v4646_v49 = vadd.f32 %v4645_v48, %v4644_v44 }
 0x1e7   : > { %v4647_v52 = vpop.f32.mrf.mxu1  ;;  %v4584_v54 = vpop.f32.mrf.mxu0 }
 0x1e8   : > { %v6396_v53 = vadd.f32 %v4646_v49, %v4582_v47  ;;  %v4585_v55 = vadd.f32 %v4584_v54, %v4583_v50 }
 0x1e9   : > { %v4648_v57 = vpop.f32.mrf.mxu1  ;;  %v4666_v60 = vpop.f32.mrf.mxu0 }
 0x1ea   : > { %v4649_v58 = vadd.f32 %v4648_v57, %v4647_v52 }
 0x1eb   : > { %v4730_v61 = vpop.f32.mrf.mxu1  ;;  %v4667_v63 = vpop.f32.mrf.mxu0 }
 0x1ec   : > { %v6398_v62 = vadd.f32 %v4649_v58, %v4585_v55  ;;  %v4668_v0 = vadd.f32 %v4667_v63, %v4666_v60 }
 0x1ed   : > { %v4731_v2 = vpop.f32.mrf.mxu1  ;;  %v4669_v4 = vpop.f32.mrf.mxu0 }
 0x1ee   : > { %v4732_v3 = vadd.f32 %v4731_v2, %v4730_v61  ;;  %v3345_v5 = vadd.f32 %v4668_v0, %v6308_v29 }
 0x1ef   : > { %v4733_v6 = vpop.f32.mrf.mxu1  ;;  %v4670_v7 = vpop.f32.mrf.mxu0 }
 0x1f0   : > { %v6401_v8 = vadd.f32 %v4732_v3, %v3345_v5  ;;  %v4671_v10 = vadd.f32 %v4670_v7, %v4669_v4 }
 0x1f1   : > { %v4734_v11 = vpop.f32.mrf.mxu1  ;;  %v4672_v13 = vpop.f32.mrf.mxu0 }
 0x1f2   : > { %v4735_v12 = vadd.f32 %v4734_v11, %v4733_v6  ;;  %v3348_v14 = vadd.f32 %v4671_v10, %v6310_v37 }
 0x1f3   : > { %v4736_v15 = vpop.f32.mrf.mxu1  ;;  %v4673_v18 = vpop.f32.mrf.mxu0 }
 0x1f4   : > { %v6404_v19 = vadd.f32 %v4735_v12, %v3348_v14  ;;  %v4674_v20 = vadd.f32 %v4673_v18, %v4672_v13 }
 0x1f5   : > { %v4737_v21 = vpop.f32.mrf.mxu1  ;;  %v4675_v23 = vpop.f32.mrf.mxu0 }
 0x1f6   : > { %v4738_v22 = vadd.f32 %v4737_v21, %v4736_v15  ;;  %v3353_v29 = vadd.f32 %v4674_v20, %v6324_v51 }
 0x1f7   : > { %v4739_v24 = vpop.f32.mrf.mxu1  ;;  %v4676_v26 = vpop.f32.mrf.mxu0 }
 0x1f8   : > { %v6407_v27 = vadd.f32 %v4738_v22, %v3353_v29  ;;  %v4677_v28 = vadd.f32 %v4676_v26, %v4675_v23 }
 0x1f9   : > { %v4740_v30 = vpop.f32.mrf.mxu1  ;;  %v4678_v33 = vpop.f32.mrf.mxu0 }
 0x1fa   : > { %v4741_v31 = vadd.f32 %v4740_v30, %v4739_v24  ;;  %v3356_v37 = vadd.f32 %v4677_v28, %v6326_v59 }
 0x1fb   : > { %v4742_v34 = vpop.f32.mrf.mxu1  ;;  %v4679_v35 = vpop.f32.mrf.mxu0 }
 0x1fc   : > { %v6410_v38 = vadd.f32 %v4741_v31, %v3356_v37  ;;  %v4680_v39 = vadd.f32 %v4679_v35, %v4678_v33 }
 0x1fd   : > { %v4743_v40 = vpop.f32.mrf.mxu1  ;;  %v4681_v43 = vpop.f32.mrf.mxu0 }
 0x1fe   : > { %v4744_v42 = vadd.f32 %v4743_v40, %v4742_v34  ;;  %v3361_v51 = vadd.f32 %v4680_v39, %v6340_v9 }
 0x1ff   : > { %v4745_v44 = vpop.f32.mrf.mxu1  ;;  %v4682_v46 = vpop.f32.mrf.mxu0 }
 0x200   : > { %v6413_v47 = vadd.f32 %v4744_v42, %v3361_v51  ;;  %v4683_v48 = vadd.f32 %v4682_v46, %v4681_v43 }
 0x201   : > { %v4746_v49 = vpop.f32.mrf.mxu1  ;;  %v4684_v52 = vpop.f32.mrf.mxu0 }
 0x202   : > { %v4747_v50 = vadd.f32 %v4746_v49, %v4745_v44  ;;  %v3364_v59 = vadd.f32 %v4683_v48, %v6342_v17 }
 0x203   : > { %v4748_v54 = vpop.f32.mrf.mxu1  ;;  %v4685_v55 = vpop.f32.mrf.mxu0 }
 0x204   : > { %v6416_v57 = vadd.f32 %v4747_v50, %v3364_v59  ;;  %v4686_v58 = vadd.f32 %v4685_v55, %v4684_v52 }
 0x205   : > { %v4749_v60 = vpop.f32.mrf.mxu1  ;;  %v4687_v63 = vpop.f32.mrf.mxu0 }
 0x206   : > { %v4750_v61 = vadd.f32 %v4749_v60, %v4748_v54  ;;  %v3369_v9 = vadd.f32 %v4686_v58, %v6356_v32 }
 0x207   : > { %v4751_v0 = vpop.f32.mrf.mxu1  ;;  %v4688_v2 = vpop.f32.mrf.mxu0 }
 0x208   : > { %v6419_v3 = vadd.f32 %v4750_v61, %v3369_v9  ;;  %v4689_v4 = vadd.f32 %v4688_v2, %v4687_v63 }
 0x209   : > { %v4752_v5 = vpop.f32.mrf.mxu1  ;;  %v4690_v7 = vpop.f32.mrf.mxu0 }
 0x20a   : > { %v4753_v6 = vadd.f32 %v4752_v5, %v4751_v0  ;;  %v3372_v17 = vadd.f32 %v4689_v4, %v6358_v41 }
 0x20b   : > { %v4754_v10 = vpop.f32.mrf.mxu1  ;;  %v4691_v11 = vpop.f32.mrf.mxu0 }
 0x20c   : > { %v6422_v12 = vadd.f32 %v4753_v6, %v3372_v17  ;;  %v4692_v13 = vadd.f32 %v4691_v11, %v4690_v7 }
 0x20d   : > { %v4755_v14 = vpop.f32.mrf.mxu1  ;;  %v4693_v18 = vpop.f32.mrf.mxu0 }
 0x20e   : > { %v4756_v15 = vadd.f32 %v4755_v14, %v4754_v10  ;;  %v3377_v32 = vadd.f32 %v4692_v13, %v6372_v56 }
 0x20f   : > { %v4757_v20 = vpop.f32.mrf.mxu1  ;;  %v4694_v21 = vpop.f32.mrf.mxu0 }
 0x210   : > { %v6425_v22 = vadd.f32 %v4756_v15, %v3377_v32  ;;  %v4695_v23 = vadd.f32 %v4694_v21, %v4693_v18 }
 0x211   : > { %v4758_v29 = vpop.f32.mrf.mxu1  ;;  %v4696_v26 = vpop.f32.mrf.mxu0 }
 0x212   : > { %v4759_v24 = vadd.f32 %v4758_v29, %v4757_v20  ;;  %v3380_v41 = vadd.f32 %v4695_v23, %v6374_v1 }
 0x213   : > { %v4760_v28 = vpop.f32.mrf.mxu1  ;;  %v4697_v30 = vpop.f32.mrf.mxu0 }
 0x214   : > { %v6428_v31 = vadd.f32 %v4759_v24, %v3380_v41  ;;  %v4698_v33 = vadd.f32 %v4697_v30, %v4696_v26 }
 0x215   : > { %v4761_v37 = vpop.f32.mrf.mxu1  ;;  %v4699_v35 = vpop.f32.mrf.mxu0 }
 0x216   : > { %v4762_v34 = vadd.f32 %v4761_v37, %v4760_v28  ;;  %v3385_v56 = vadd.f32 %v4698_v33, %v6388_v16 }
 0x217   : > { %v4763_v39 = vpop.f32.mrf.mxu1  ;;  %v4700_v40 = vpop.f32.mrf.mxu0 }
 0x218   : > { %v6431_v42 = vadd.f32 %v4762_v34, %v3385_v56  ;;  %v4701_v43 = vadd.f32 %v4700_v40, %v4699_v35 }
 0x219   : > { %v4764_v51 = vpop.f32.mrf.mxu1  ;;  %v4702_v46 = vpop.f32.mrf.mxu0 }
 0x21a   : > { %v4765_v44 = vadd.f32 %v4764_v51, %v4763_v39  ;;  %v3388_v1 = vadd.f32 %v4701_v43, %v6390_v25 }
 0x21b   : > { %v4766_v48 = vpop.f32.mrf.mxu1  ;;  %v4703_v49 = vpop.f32.mrf.mxu0 }
 0x21c   : > { %v6434_v50 = vadd.f32 %v4765_v44, %v3388_v1  ;;  %v4704_v52 = vadd.f32 %v4703_v49, %v4702_v46 }
 0x21d   : > { %v4767_v59 = vpop.f32.mrf.mxu1  ;;  %v4705_v55 = vpop.f32.mrf.mxu0 }
 0x21e   : > { %v4768_v54 = vadd.f32 %v4767_v59, %v4766_v48  ;;  %v3393_v16 = vadd.f32 %v4704_v52, %v6392_v36 }
 0x21f   : > { %v4769_v58 = vpop.f32.mrf.mxu1  ;;  %v4706_v60 = vpop.f32.mrf.mxu0 }
 0x220   : > { %v6437_v61 = vadd.f32 %v4768_v54, %v3393_v16  ;;  %v4707_v63 = vadd.f32 %v4706_v60, %v4705_v55 }
 0x221   : > { %v4770_v9 = vpop.f32.mrf.mxu1  ;;  %v4708_v2 = vpop.f32.mrf.mxu0 }
 0x222   : > { %v4771_v0 = vadd.f32 %v4770_v9, %v4769_v58  ;;  %v3396_v25 = vadd.f32 %v4707_v63, %v6394_v45 }
 0x223   : > { %v4772_v4 = vpop.f32.mrf.mxu1  ;;  %v4709_v5 = vpop.f32.mrf.mxu0 }
 0x224   : > { %v6440_v6 = vadd.f32 %v4771_v0, %v3396_v25  ;;  %v4710_v7 = vadd.f32 %v4709_v5, %v4708_v2 }
 0x225   : > { %v4773_v17 = vpop.f32.mrf.mxu1  ;;  %v4711_v11 = vpop.f32.mrf.mxu0 }
 0x226   : > { %v4774_v10 = vadd.f32 %v4773_v17, %v4772_v4  ;;  %v3401_v36 = vadd.f32 %v4710_v7, %v6396_v53 }
 0x227   : > { %v4775_v13 = vpop.f32.mrf.mxu1  ;;  %v4712_v14 = vpop.f32.mrf.mxu0 }
 0x228   : > { %v6443_v15 = vadd.f32 %v4774_v10, %v3401_v36  ;;  %v4713_v18 = vadd.f32 %v4712_v14, %v4711_v11 }
 0x229   : > { %v4776_v32 = vpop.f32.mrf.mxu1  ;;  %v4794_v21 = vpop.f32.mrf.mxu0 }
 0x22a   : > { %v4777_v20 = vadd.f32 %v4776_v32, %v4775_v13  ;;  %v3404_v45 = vadd.f32 %v4713_v18, %v6398_v62 }
 0x22b   : > { %v4858_v23 = vpop.f32.mrf.mxu1  ;;  %v4795_v29 = vpop.f32.mrf.mxu0 }
 0x22c   : > { %v6446_v24 = vadd.f32 %v4777_v20, %v3404_v45  ;;  %v4796_v26 = vadd.f32 %v4795_v29, %v4794_v21 }
 0x22d   : > { %v4859_v41 = vpop.f32.mrf.mxu1  ;;  %v4797_v30 = vpop.f32.mrf.mxu0 }
 0x22e   : > { %v4860_v28 = vadd.f32 %v4859_v41, %v4858_v23  ;;  %v3539_v53 = vadd.f32 %v4796_v26, %v6401_v8 }
 0x22f   : > { %v4861_v33 = vpop.f32.mrf.mxu1  ;;  %v4798_v37 = vpop.f32.mrf.mxu0 }
 0x230   : > { %v6449_v34 = vadd.f32 %v4860_v28, %v3539_v53  ;;  %v4799_v35 = vadd.f32 %v4798_v37, %v4797_v30 }
 0x231   : > { %v4862_v56 = vpop.f32.mrf.mxu1  ;;  %v4800_v40 = vpop.f32.mrf.mxu0 }
 0x232   : > { %v4863_v39 = vadd.f32 %v4862_v56, %v4861_v33  ;;  %v3542_v62 = vadd.f32 %v4799_v35, %v6404_v19 }
 0x233   : > { %v4864_v43 = vpop.f32.mrf.mxu1  ;;  %v4801_v51 = vpop.f32.mrf.mxu0 }
 0x234   : > { %v6452_v44 = vadd.f32 %v4863_v39, %v3542_v62  ;;  %v4802_v46 = vadd.f32 %v4801_v51, %v4800_v40 }
 0x235   : > { %v4865_v1 = vpop.f32.mrf.mxu1  ;;  %v4803_v49 = vpop.f32.mrf.mxu0 }
 0x236   : > { %v4866_v48 = vadd.f32 %v4865_v1, %v4864_v43  ;;  %v3547_v8 = vadd.f32 %v4802_v46, %v6407_v27 }
 0x237   : > { %v4867_v52 = vpop.f32.mrf.mxu1  ;;  %v4804_v59 = vpop.f32.mrf.mxu0 }
 0x238   : > { %v6455_v54 = vadd.f32 %v4866_v48, %v3547_v8  ;;  %v4805_v55 = vadd.f32 %v4804_v59, %v4803_v49 }
 0x239   : > { %v4868_v16 = vpop.f32.mrf.mxu1  ;;  %v4806_v60 = vpop.f32.mrf.mxu0 }
 0x23a   : > { %v4869_v58 = vadd.f32 %v4868_v16, %v4867_v52  ;;  %v3550_v19 = vadd.f32 %v4805_v55, %v6410_v38 }
 0x23b   : > { %v4870_v63 = vpop.f32.mrf.mxu1  ;;  %v4807_v9 = vpop.f32.mrf.mxu0 }
 0x23c   : > { %v6458_v0 = vadd.f32 %v4869_v58, %v3550_v19  ;;  %v4808_v2 = vadd.f32 %v4807_v9, %v4806_v60 }
 0x23d   : > { %v4871_v25 = vpop.f32.mrf.mxu1  ;;  %v4809_v5 = vpop.f32.mrf.mxu0 }
 0x23e   : > { %v4872_v4 = vadd.f32 %v4871_v25, %v4870_v63  ;;  %v3555_v27 = vadd.f32 %v4808_v2, %v6413_v47 }
 0x23f   : > { %v4873_v7 = vpop.f32.mrf.mxu1  ;;  %v4810_v17 = vpop.f32.mrf.mxu0 }
 0x240   : > { %v6461_v10 = vadd.f32 %v4872_v4, %v3555_v27  ;;  %v4811_v11 = vadd.f32 %v4810_v17, %v4809_v5 }
 0x241   : > { %v4874_v36 = vpop.f32.mrf.mxu1  ;;  %v4812_v14 = vpop.f32.mrf.mxu0 }
 0x242   : > { %v4875_v13 = vadd.f32 %v4874_v36, %v4873_v7  ;;  %v3558_v38 = vadd.f32 %v4811_v11, %v6416_v57 }
 0x243   : > { %v4876_v18 = vpop.f32.mrf.mxu1  ;;  %v4813_v32 = vpop.f32.mrf.mxu0 }
 0x244   : > { %v6464_v20 = vadd.f32 %v4875_v13, %v3558_v38  ;;  %v4814_v21 = vadd.f32 %v4813_v32, %v4812_v14 }
 0x245   : > { %v4877_v45 = vpop.f32.mrf.mxu1  ;;  %v4815_v29 = vpop.f32.mrf.mxu0 }
 0x246   : > { %v4878_v23 = vadd.f32 %v4877_v45, %v4876_v18  ;;  %v3563_v47 = vadd.f32 %v4814_v21, %v6419_v3 }
 0x247   : > { %v4879_v26 = vpop.f32.mrf.mxu1  ;;  %v4816_v41 = vpop.f32.mrf.mxu0 }
 0x248   : > { %v6467_v28 = vadd.f32 %v4878_v23, %v3563_v47  ;;  %v4817_v30 = vadd.f32 %v4816_v41, %v4815_v29 }
 0x249   : > { %v4880_v53 = vpop.f32.mrf.mxu1  ;;  %v4818_v37 = vpop.f32.mrf.mxu0 }
 0x24a   : > { %v4881_v33 = vadd.f32 %v4880_v53, %v4879_v26  ;;  %v3566_v57 = vadd.f32 %v4817_v30, %v6422_v12 }
 0x24b   : > { %v4882_v35 = vpop.f32.mrf.mxu1  ;;  %v4819_v56 = vpop.f32.mrf.mxu0 }
 0x24c   : > { %v6470_v39 = vadd.f32 %v4881_v33, %v3566_v57  ;;  %v4820_v40 = vadd.f32 %v4819_v56, %v4818_v37 }
 0x24d   : > { %v4883_v62 = vpop.f32.mrf.mxu1  ;;  %v4821_v51 = vpop.f32.mrf.mxu0 }
 0x24e   : > { %v4884_v43 = vadd.f32 %v4883_v62, %v4882_v35  ;;  %v3571_v3 = vadd.f32 %v4820_v40, %v6425_v22 }
 0x24f   : > { %v4885_v46 = vpop.f32.mrf.mxu1  ;;  %v4822_v1 = vpop.f32.mrf.mxu0 }
 0x250   : > { %v6473_v48 = vadd.f32 %v4884_v43, %v3571_v3  ;;  %v4823_v49 = vadd.f32 %v4822_v1, %v4821_v51 }
 0x251   : > { %v4886_v8 = vpop.f32.mrf.mxu1  ;;  %v4824_v59 = vpop.f32.mrf.mxu0 }
 0x252   : > { %v4887_v52 = vadd.f32 %v4886_v8, %v4885_v46  ;;  %v3574_v12 = vadd.f32 %v4823_v49, %v6428_v31 }
 0x253   : > { %v4888_v55 = vpop.f32.mrf.mxu1  ;;  %v4825_v16 = vpop.f32.mrf.mxu0 }
 0x254   : > { %v6476_v58 = vadd.f32 %v4887_v52, %v3574_v12  ;;  %v4826_v60 = vadd.f32 %v4825_v16, %v4824_v59 }
 0x255   : > { %v4889_v19 = vpop.f32.mrf.mxu1  ;;  %v4827_v9 = vpop.f32.mrf.mxu0 }
 0x256   : > { %v4890_v63 = vadd.f32 %v4889_v19, %v4888_v55  ;;  %v3579_v22 = vadd.f32 %v4826_v60, %v6431_v42 }
 0x257   : > { %v4891_v2 = vpop.f32.mrf.mxu1  ;;  %v4828_v25 = vpop.f32.mrf.mxu0 }
 0x258   : > { %v6479_v4 = vadd.f32 %v4890_v63, %v3579_v22  ;;  %v4829_v5 = vadd.f32 %v4828_v25, %v4827_v9 }
 0x259   : > { %v4892_v27 = vpop.f32.mrf.mxu1  ;;  %v4830_v17 = vpop.f32.mrf.mxu0 }
 0x25a   : > { %v4893_v7 = vadd.f32 %v4892_v27, %v4891_v2  ;;  %v3582_v31 = vadd.f32 %v4829_v5, %v6434_v50 }
 0x25b   : > { %v4894_v11 = vpop.f32.mrf.mxu1  ;;  %v4831_v36 = vpop.f32.mrf.mxu0 }
 0x25c   : > { %v6482_v13 = vadd.f32 %v4893_v7, %v3582_v31  ;;  %v4832_v14 = vadd.f32 %v4831_v36, %v4830_v17 }
 0x25d   : > { %v4895_v38 = vpop.f32.mrf.mxu1  ;;  %v4833_v32 = vpop.f32.mrf.mxu0 }
 0x25e   : > { %v4896_v18 = vadd.f32 %v4895_v38, %v4894_v11  ;;  %v3587_v42 = vadd.f32 %v4832_v14, %v6437_v61 }
 0x25f   : > { %v4897_v21 = vpop.f32.mrf.mxu1  ;;  %v4834_v45 = vpop.f32.mrf.mxu0 }
 0x260   : > { %v6485_v23 = vadd.f32 %v4896_v18, %v3587_v42  ;;  %v4835_v29 = vadd.f32 %v4834_v45, %v4833_v32 }
 0x261   : > { %v4898_v47 = vpop.f32.mrf.mxu1  ;;  %v4836_v41 = vpop.f32.mrf.mxu0 }
 0x262   : > { %v4899_v26 = vadd.f32 %v4898_v47, %v4897_v21  ;;  %v3590_v50 = vadd.f32 %v4835_v29, %v6440_v6 }
 0x263   : > { %v4900_v30 = vpop.f32.mrf.mxu1  ;;  %v4837_v53 = vpop.f32.mrf.mxu0 }
 0x264   : > { %v6488_v33 = vadd.f32 %v4899_v26, %v3590_v50  ;;  %v4838_v37 = vadd.f32 %v4837_v53, %v4836_v41 }
 0x265   : > { %v4901_v57 = vpop.f32.mrf.mxu1  ;;  %v6490_v35 = vpop.f32.mrf.mxu0 }
 0x266   : > { %v3595_v61 = vadd.f32 %v4838_v37, %v6443_v15  ;;  %v4902_v56 = vadd.f32 %v4901_v57, %v4900_v30 }
 0x267   : > { %v6493_v40 = vpop.f32.mrf.mxu1  ;;  %v6495_v62 = vpop.f32.mrf.mxu0 }
 0x268   : > { %v6497_v43 = vadd.f32 %v4902_v56, %v3595_v61 }
 0x269   : > { %v6499_v51 = vpop.f32.mrf.mxu1  ;;  %v4922_v6 = vpop.f32.mrf.mxu0 }
 0x26b   : > { %v4986_v3 = vpop.f32.mrf.mxu1  ;;  %v4923_v46 = vpop.f32.mrf.mxu0 }
 0x26c   : > { %v4924_v49 = vadd.f32 %v4923_v46, %v4922_v6 }
 0x26d   : > { %v4987_v1 = vpop.f32.mrf.mxu1  ;;  %v4925_v8 = vpop.f32.mrf.mxu0 }
 0x26e   : > { %v3733_v15 = vadd.f32 %v4924_v49, %v6449_v34  ;;  %v4988_v9 = vadd.f32 %v4987_v1, %v4986_v3 }
 0x26f   : > { %v4989_v52 = vpop.f32.mrf.mxu1  ;;  %v4926_v59 = vpop.f32.mrf.mxu0 }
 0x270   : > { %v4927_v12 = vadd.f32 %v4926_v59, %v4925_v8  ;;  %v6505_v27 = vadd.f32 %v4988_v9, %v3733_v15 }
 0x271   : > { %v4990_v55 = vpop.f32.mrf.mxu1  ;;  %v4928_v16 = vpop.f32.mrf.mxu0 }
 0x272   : > { %v3736_v60 = vadd.f32 %v4927_v12, %v6452_v44  ;;  %v4991_v19 = vadd.f32 %v4990_v55, %v4989_v52  ;;  %v3913_v18 = vmul.f32 %v6505_v27, %v6505_v27 }
 0x273   : > { %v4992_v63 = vpop.f32.mrf.mxu1  ;;  %v4929_v22 = vpop.f32.mrf.mxu0 }
 0x274   : > { %v6503_v2 = vadd.f32 %v4991_v19, %v3736_v60  ;;  %v4930_v25 = vadd.f32 %v4929_v22, %v4928_v16 }
 0x275   : > { %v4993_v5 = vpop.f32.mrf.mxu1  ;;  %v4931_v7 = vpop.f32.mrf.mxu0 }
 0x276   : > { %v3741_v17 = vadd.f32 %v4930_v25, %v6455_v54  ;;  %v4994_v31 = vadd.f32 %v4993_v5, %v4992_v63  ;;  %v3914_v34 = vmul.f32 %v6503_v2, %v6503_v2  ;;  %v3892_v42 = vadd.f32 %v6503_v2, %v6505_v27 }
 0x277   : > { %v4995_v11 = vpop.f32.mrf.mxu1  ;;  %v4932_v36 = vpop.f32.mrf.mxu0 }
 0x278   : > { %v6510_v44 = vadd.f32 %v4994_v31, %v3741_v17  ;;  %v4933_v14 = vadd.f32 %v4932_v36, %v4931_v7  ;;  %v3929_v47 = vadd.f32 %v3914_v34, %v3913_v18 }
 0x279   : > { %v4996_v38 = vpop.f32.mrf.mxu1  ;;  %v4934_v32 = vpop.f32.mrf.mxu0 }
 0x27a   : > { %v3915_v54 = vmul.f32 %v6510_v44, %v6510_v44  ;;  %v3744_v21 = vadd.f32 %v4933_v14, %v6458_v0  ;;  %v4997_v45 = vadd.f32 %v4996_v38, %v4995_v11  ;;  %v3893_v41 = vadd.f32 %v3892_v42, %v6510_v44 }
 0x27b   : > { %v4998_v29 = vpop.f32.mrf.mxu1  ;;  %v4935_v26 = vpop.f32.mrf.mxu0 }
 0x27c   : > { %v6520_v50 = vadd.f32 %v4997_v45, %v3744_v21  ;;  %v4936_v30 = vadd.f32 %v4935_v26, %v4934_v32  ;;  %v3930_v37 = vadd.f32 %v3929_v47, %v3915_v54 }
 0x27d   : > { %v4999_v53 = vpop.f32.mrf.mxu1  ;;  %v4937_v57 = vpop.f32.mrf.mxu0 }
 0x27e   : > { %v3894_v61 = vadd.f32 %v3893_v41, %v6520_v50  ;;  %v3916_v56 = vmul.f32 %v6520_v50, %v6520_v50  ;;  %v3749_v6 = vadd.f32 %v4936_v30, %v6461_v10  ;;  %v5000_v0 = vadd.f32 %v4999_v53, %v4998_v29 }
 0x27f   : > { %v5001_v3 = vpop.f32.mrf.mxu1  ;;  %v4938_v46 = vpop.f32.mrf.mxu0 }
 0x280   : > { %v3931_v1 = vadd.f32 %v3930_v37, %v3916_v56  ;;  %v6526_v49 = vadd.f32 %v5000_v0, %v3749_v6  ;;  %v4939_v8 = vadd.f32 %v4938_v46, %v4937_v57 }
 0x281   : > { %v5002_v52 = vpop.f32.mrf.mxu1  ;;  %v4940_v59 = vpop.f32.mrf.mxu0 }
 0x282   : > { %v3895_v12 = vadd.f32 %v3894_v61, %v6526_v49  ;;  %v3917_v55 = vmul.f32 %v6526_v49, %v6526_v49  ;;  %v3752_v15 = vadd.f32 %v4939_v8, %v6464_v20  ;;  %v5003_v16 = vadd.f32 %v5002_v52, %v5001_v3 }
 0x283   : > { %v5004_v60 = vpop.f32.mrf.mxu1  ;;  %v4941_v19 = vpop.f32.mrf.mxu0 }
 0x284   : > { %v3932_v10 = vadd.f32 %v3931_v1, %v3917_v55  ;;  %v6532_v63 = vadd.f32 %v5003_v16, %v3752_v15  ;;  %v4942_v9 = vadd.f32 %v4941_v19, %v4940_v59 }
 0x285   : > { %v5005_v22 = vpop.f32.mrf.mxu1  ;;  %v4943_v25 = vpop.f32.mrf.mxu0 }
 0x286   : > { %v3896_v5 = vadd.f32 %v3895_v12, %v6532_v63  ;;  %v3918_v7 = vmul.f32 %v6532_v63, %v6532_v63  ;;  %v3757_v17 = vadd.f32 %v4942_v9, %v6467_v28  ;;  %v5006_v31 = vadd.f32 %v5005_v22, %v5004_v60 }
 0x287   : > { %v5007_v11 = vpop.f32.mrf.mxu1  ;;  %v4944_v34 = vpop.f32.mrf.mxu0 }
 0x288   : > { %v3933_v20 = vadd.f32 %v3932_v10, %v3918_v7  ;;  %v6538_v36 = vadd.f32 %v5006_v31, %v3757_v17  ;;  %v4945_v14 = vadd.f32 %v4944_v34, %v4943_v25 }
 0x289   : > { %v5008_v38 = vpop.f32.mrf.mxu1  ;;  %v4946_v18 = vpop.f32.mrf.mxu0 }
 0x28a   : > { %v3897_v32 = vadd.f32 %v3896_v5, %v6538_v36  ;;  %v3919_v42 = vmul.f32 %v6538_v36, %v6538_v36  ;;  %v3760_v54 = vadd.f32 %v4945_v14, %v6470_v39  ;;  %v5009_v21 = vadd.f32 %v5008_v38, %v5007_v11 }
 0x28b   : > { %v5010_v45 = vpop.f32.mrf.mxu1  ;;  %v4947_v29 = vpop.f32.mrf.mxu0 }
 0x28c   : > { %v3934_v28 = vadd.f32 %v3933_v20, %v3919_v42  ;;  %v6544_v47 = vadd.f32 %v5009_v21, %v3760_v54  ;;  %v4948_v26 = vadd.f32 %v4947_v29, %v4946_v18 }
 0x28d   : > { %v5011_v41 = vpop.f32.mrf.mxu1  ;;  %v4949_v30 = vpop.f32.mrf.mxu0 }
 0x28e   : > { %v3898_v53 = vadd.f32 %v3897_v32, %v6544_v47  ;;  %v3920_v37 = vmul.f32 %v6544_v47, %v6544_v47  ;;  %v3765_v57 = vadd.f32 %v4948_v26, %v6473_v48  ;;  %v5012_v61 = vadd.f32 %v5011_v41, %v5010_v45 }
 0x28f   : > { %v5013_v56 = vpop.f32.mrf.mxu1  ;;  %v4950_v6 = vpop.f32.mrf.mxu0 }
 0x290   : > { %v3935_v39 = vadd.f32 %v3934_v28, %v3920_v37  ;;  %v6550_v0 = vadd.f32 %v5012_v61, %v3765_v57  ;;  %v4951_v3 = vadd.f32 %v4950_v6, %v4949_v30 }
 0x291   : > { %v5014_v46 = vpop.f32.mrf.mxu1  ;;  %v4952_v1 = vpop.f32.mrf.mxu0 }
 0x292   : > { %v3899_v8 = vadd.f32 %v3898_v53, %v6550_v0  ;;  %v3921_v52 = vmul.f32 %v6550_v0, %v6550_v0  ;;  %v3768_v59 = vadd.f32 %v4951_v3, %v6476_v58  ;;  %v5015_v12 = vadd.f32 %v5014_v46, %v5013_v56 }
 0x293   : > { %v5016_v55 = vpop.f32.mrf.mxu1  ;;  %v4953_v15 = vpop.f32.mrf.mxu0 }
 0x294   : > { %v3936_v48 = vadd.f32 %v3935_v39, %v3921_v52  ;;  %v6556_v16 = vadd.f32 %v5015_v12, %v3768_v59  ;;  %v4954_v60 = vadd.f32 %v4953_v15, %v4952_v1 }
 0x295   : > { %v5017_v19 = vpop.f32.mrf.mxu1  ;;  %v4955_v10 = vpop.f32.mrf.mxu0 }
 0x296   : > { %v3900_v9 = vadd.f32 %v3899_v8, %v6556_v16  ;;  %v3922_v22 = vmul.f32 %v6556_v16, %v6556_v16  ;;  %v3773_v25 = vadd.f32 %v4954_v60, %v6479_v4  ;;  %v5018_v5 = vadd.f32 %v5017_v19, %v5016_v55 }
 0x297   : > { %v5019_v7 = vpop.f32.mrf.mxu1  ;;  %v4956_v17 = vpop.f32.mrf.mxu0 }
 0x298   : > { %v3937_v58 = vadd.f32 %v3936_v48, %v3922_v22  ;;  %v6562_v31 = vadd.f32 %v5018_v5, %v3773_v25  ;;  %v4957_v11 = vadd.f32 %v4956_v17, %v4955_v10  ;;  %v4905_v48 = vadd.f32 %v6499_v51, %v6493_v40 }
 0x299   : > { %v5020_v34 = vpop.f32.mrf.mxu1  ;;  %v4958_v20 = vpop.f32.mrf.mxu0 }
 0x29a   : > { %v3901_v14 = vadd.f32 %v3900_v9, %v6562_v31  ;;  %v3923_v38 = vmul.f32 %v6562_v31, %v6562_v31  ;;  %v3776_v18 = vadd.f32 %v4957_v11, %v6482_v13  ;;  %v5021_v32 = vadd.f32 %v5020_v34, %v5019_v7 }
 0x29b   : > { %v5022_v42 = vpop.f32.mrf.mxu1  ;;  %v4959_v54 = vpop.f32.mrf.mxu0  ;;  %v4841_v13 = vadd.f32 %v6495_v62, %v6490_v35 }
 0x29c   : > { %v3938_v4 = vadd.f32 %v3937_v58, %v3923_v38  ;;  %v6568_v21 = vadd.f32 %v5021_v32, %v3776_v18  ;;  %v4960_v45 = vadd.f32 %v4959_v54, %v4958_v20 }
 0x29d   : > { %v5023_v29 = vpop.f32.mrf.mxu1  ;;  %v4961_v28 = vpop.f32.mrf.mxu0  ;;  %v3598_v12 = vadd.f32 %v4841_v13, %v6446_v24 }
 0x29e   : > { %v3902_v26 = vadd.f32 %v3901_v14, %v6568_v21  ;;  %v3924_v41 = vmul.f32 %v6568_v21, %v6568_v21  ;;  %v3781_v30 = vadd.f32 %v4960_v45, %v6485_v23  ;;  %v5024_v53 = vadd.f32 %v5023_v29, %v5022_v42 }
 0x29f   : > { %v5025_v37 = vpop.f32.mrf.mxu1  ;;  %v4962_v57 = vpop.f32.mrf.mxu0  ;;  %v3695_v24 = vadd.f32 %v4905_v48, %v3598_v12 }
 0x2a0   : > { %v3939_v61 = vadd.f32 %v3938_v4, %v3924_v41  ;;  %v6576_v56 = vadd.f32 %v5024_v53, %v3781_v30  ;;  %v4963_v6 = vadd.f32 %v4962_v57, %v4961_v28 }
 0x2a1   : > { %v5026_v39 = vpop.f32.mrf.mxu1  ;;  %v4964_v3 = vpop.f32.mrf.mxu0 }
 0x2a2   : > { %v3903_v46 = vadd.f32 %v3902_v26, %v6576_v56  ;;  %v3925_v1 = vmul.f32 %v6576_v56, %v6576_v56  ;;  %v3784_v8 = vadd.f32 %v4963_v6, %v6488_v33  ;;  %v5027_v23 = vadd.f32 %v5026_v39, %v5025_v37 }
 0x2a3   : > { %v5028_v52 = vpop.f32.mrf.mxu1  ;;  %v4965_v59 = vpop.f32.mrf.mxu0 }
 0x2a4   : > { %v3940_v55 = vadd.f32 %v3939_v61, %v3925_v1  ;;  %v6583_v35 = vadd.f32 %v5027_v23, %v3784_v8  ;;  %v4966_v62 = vadd.f32 %v4965_v59, %v4964_v3 }
 0x2a5   : > { %v5029_v15 = vpop.f32.mrf.mxu1  ;;  %v4967_v60 = vpop.f32.mrf.mxu0 }
 0x2a6   : > { %v3904_v19 = vadd.f32 %v3903_v46, %v6583_v35  ;;  %v3926_v10 = vmul.f32 %v6583_v35, %v6583_v35  ;;  %v3789_v33 = vadd.f32 %v4966_v62, %v6497_v43  ;;  %v5030_v9 = vadd.f32 %v5029_v15, %v5028_v52 }
 0x2a7   : > { %v5031_v22 = vpop.f32.mrf.mxu1  ;;  %v4968_v25 = vpop.f32.mrf.mxu0 }
 0x2a8   : > { %v3941_v5 = vadd.f32 %v3940_v55, %v3926_v10  ;;  %v6591_v7 = vadd.f32 %v5030_v9, %v3789_v33  ;;  %v4969_v17 = vadd.f32 %v4968_v25, %v4967_v60 }
 0x2a9   : > { %v5032_v58 = vpop.f32.mrf.mxu1 }
 0x2aa   : > { %v3905_v11 = vadd.f32 %v3904_v19, %v6591_v7  ;;  %v3927_v40 = vmul.f32 %v6591_v7, %v6591_v7  ;;  %v3792_v51 = vadd.f32 %v4969_v17, %v3695_v24  ;;  %v5033_v34 = vadd.f32 %v5032_v58, %v5031_v22  ;;  %v4517_v24 = vld [vmem:[%s1322_s10] ss:$0 sm:$0xff] }
 0x2ac   : > { %v3942_v20 = vadd.f32 %v3941_v5, %v3927_v40  ;;  %v6596_v14 = vadd.f32 %v5033_v34, %v3792_v51 }
 0x2ae   : > { %v3906_v43 = vadd.f32 %v3905_v11, %v6596_v14  ;;  %v3928_v38 = vmul.f32 %v6596_v14, %v6596_v14 }
 0x2b0   : > { %v3907_v18 = vrot.slane %v3906_v43, 4  ;;  %v3943_v32 = vadd.f32 %v3942_v20, %v3928_v38 }
 0x2b2   : > { %v3908_v42 = vadd.f32 %v3907_v18, %v3906_v43  ;;  %v3944_v54 = vrot.slane %v3943_v32, 4 }
 0x2b4   : > { %v3909_v4 = vrot.slane %v3908_v42, 2  ;;  %v3945_v45 = vadd.f32 %v3944_v54, %v3943_v32 }
 0x2b6   : > { %v3910_v29 = vadd.f32 %v3909_v4, %v3908_v42  ;;  %v3946_v28 = vrot.slane %v3945_v45, 2 }
 0x2b8   : > { %v3911_v26 = vrot.slane %v3910_v29, 1  ;;  %v3947_v41 = vadd.f32 %v3946_v28, %v3945_v45 }
 0x2ba   : > { %v3912_v30 = vadd.f32 %v3911_v26, %v3910_v29  ;;  %v3948_v53 = vrot.slane %v3947_v41, 1 }
 0x2bc   : > { %v3949_v37 = vadd.f32 %v3948_v53, %v3947_v41  ;;  %v3950_v57 = vmul.f32 0.0078125, %v3912_v30 }
 0x2be   : > { %v3951_v13 = vmul.f32 0.0078125, %v3949_v37  ;;  %v3952_v61 = vmul.f32 %v3950_v57, %v3950_v57  ;;  %v3960_v6 = vsub.f32 %v6510_v44, %v3950_v57  ;;  %v3961_v39 = vsub.f32 %v6520_v50, %v3950_v57 }
 0x2bf   : > { %v3962_v3 = vsub.f32 %v6526_v49, %v3950_v57  ;;  %v3963_v46 = vsub.f32 %v6532_v63, %v3950_v57  ;;  %v3964_v8 = vsub.f32 %v6538_v36, %v3950_v57  ;;  %v3965_v23 = vsub.f32 %v6544_v47, %v3950_v57 }
 0x2c0   : > { %v3953_v1 = vsub.f32 %v3951_v13, %v3952_v61  ;;  %v3966_v52 = vsub.f32 %v6550_v0, %v3950_v57  ;;  %v3967_v59 = vsub.f32 %v6556_v16, %v3950_v57  ;;  %v3968_v12 = vsub.f32 %v6562_v31, %v3950_v57  ;;  %v3956_v0 = vld [vmem:[%s1319_s6] sm:$0x1] }
 0x2c1   : > { %v3969_v44 = vsub.f32 %v6568_v21, %v3950_v57  ;;  %v3970_v50 = vsub.f32 %v6576_v56, %v3950_v57  ;;  %v3971_v49 = vsub.f32 %v6583_v35, %v3950_v57  ;;  %v3972_v63 = vsub.f32 %v6591_v7, %v3950_v57 }
 0x2c2   : > { %v3954_v55 = vadd.f32 1e-05, %v3953_v1  ;;  %v3973_v62 = vsub.f32 %v6596_v14, %v3950_v57  ;;  %v3974_v36 = vlaneseq  ;;  %v3958_v56 = vsub.f32 %v6505_v27, %v3950_v57 }
 0x2c3   : > { %v3959_v35 = vsub.f32 %v6503_v2, %v3950_v57 }
 0x2c4   : > { %5202 = vrsqrt.f32 %v3954_v55  ;;  %v3975_v47 = vshrl.u32 %v3974_v36, 7 }
 0x2c6   : > { %v3976_v16 = vsub.s32 0, %v3975_v47 }
 0x2d1   : > { %v5203_v31 = vpop.eup %5202 }
 0x2d2   : > { %v3957_v21 = vmul.f32 %v5203_v31, %v3956_v0 }
 0x2d4   : > { %v3977_v15 = vrot.slane %v3957_v21, %v3976_v16 }
 0x2d6   : > { %v3978_v48 = vmul.f32 %v3977_v15, %v3958_v56  ;;  %v3979_v60 = vmul.f32 %v3977_v15, %v3959_v35  ;;  %v3980_v19 = vmul.f32 %v3977_v15, %v3960_v6  ;;  %v3981_v10 = vmul.f32 %v3977_v15, %v3961_v39 }
 0x2d7   : > { %v3982_v33 = vmul.f32 %v3977_v15, %v3962_v3  ;;  %v3983_v9 = vmul.f32 %v3977_v15, %v3963_v46  ;;  %v3984_v22 = vmul.f32 %v3977_v15, %v3964_v8  ;;  %v3985_v25 = vmul.f32 %v3977_v15, %v3965_v23 }
 0x2d8   : > { %v3986_v5 = vmul.f32 %v3977_v15, %v3966_v52  ;;  %v3987_v7 = vmul.f32 %v3977_v15, %v3967_v59  ;;  %v3988_v17 = vmul.f32 %v3977_v15, %v3968_v12  ;;  %v3989_v58 = vmul.f32 %v3977_v15, %v3969_v44 }
 0x2d9   : > { %v3990_v11 = vmul.f32 %v3977_v15, %v3970_v50  ;;  %v3991_v40 = vmul.f32 %v3977_v15, %v3971_v49  ;;  %v3992_v27 = vmul.f32 %v3977_v15, %v3972_v63  ;;  %v3993_v51 = vmul.f32 %v3977_v15, %v3973_v62 }
 0x2da   : > { %v4001_v2 = vadd.f32 %v4517_v24, %v3978_v48  ;;  %v4002_v34 = vadd.f32 %v4517_v24, %v3979_v60  ;;  %v4003_v20 = vadd.f32 %v4517_v24, %v3980_v19  ;;  %v4004_v14 = vadd.f32 %v4517_v24, %v3981_v10 }
 0x2db   : > { %v4005_v43 = vadd.f32 %v4517_v24, %v3982_v33  ;;  %v4006_v38 = vadd.f32 %v4517_v24, %v3983_v9  ;;  %v4007_v18 = vadd.f32 %v4517_v24, %v3984_v22  ;;  %v4008_v32 = vadd.f32 %v4517_v24, %v3985_v25 }
 0x2dc   : > { %v4009_v42 = vadd.f32 %v4517_v24, %v3986_v5  ;;  %v4010_v54 = vadd.f32 %v4517_v24, %v3987_v7  ;;  %v4011_v4 = vadd.f32 %v4517_v24, %v3988_v17  ;;  %v4012_v45 = vadd.f32 %v4517_v24, %v3989_v58 }
 0x2dd   : > { %v4013_v29 = vadd.f32 %v4517_v24, %v3990_v11  ;;  %v4014_v28 = vadd.f32 %v4517_v24, %v3991_v40  ;;  %v4015_v26 = vadd.f32 %v4517_v24, %v3992_v27  ;;  %v4016_v41 = vadd.f32 %v4517_v24, %v3993_v51 }
 0x2de   : > { %v4017_v30 = vmax.f32 %v4001_v2, 0.0  ;;  %v4018_v53 = vmax.f32 %v4002_v34, 0.0  ;;  %v4019_v37 = vmax.f32 %v4003_v20, 0.0  ;;  %v4020_v57 = vmax.f32 %v4004_v14, 0.0 }
 0x2df   : > { %v4021_v13 = vmax.f32 %v4005_v43, 0.0  ;;  %v4022_v61 = vmax.f32 %v4006_v38, 0.0  ;;  %v4023_v6 = vmax.f32 %v4007_v18, 0.0  ;;  %v4024_v39 = vmax.f32 %v4008_v32, 0.0 }
 0x2e0   : > { %v4025_v3 = vmax.f32 %v4009_v42, 0.0  ;;  %v4026_v46 = vmax.f32 %v4010_v54, 0.0  ;;  %v4027_v1 = vmax.f32 %v4011_v4, 0.0  ;;  %v4028_v8 = vmax.f32 %v4012_v45, 0.0  ;;  %4033 = vst [vmem:[%s6627_s15] sm:$0xff] %v4017_v30  ;;  %4034 = vst [vmem:[%s6627_s15 + $0x8] sm:$0xff] %v4018_v53 }
 0x2e1   : > { %4035 = vst [vmem:[%s6627_s15 + $0x10] sm:$0xff] %v4019_v37  ;;  %4036 = vst [vmem:[%s6627_s15 + $0x18] sm:$0xff] %v4020_v57  ;;  %v4029_v23 = vmax.f32 %v4013_v29, 0.0  ;;  %v4030_v52 = vmax.f32 %v4014_v28, 0.0  ;;  %v4031_v59 = vmax.f32 %v4015_v26, 0.0  ;;  %v4032_v12 = vmax.f32 %v4016_v41, 0.0 }
 0x2e2   : > { %4037 = vst [vmem:[%s6627_s15 + $0x20] sm:$0xff] %v4021_v13  ;;  %4038 = vst [vmem:[%s6627_s15 + $0x28] sm:$0xff] %v4022_v61 }
 0x2e3   : > { %4039 = vst [vmem:[%s6627_s15 + $0x30] sm:$0xff] %v4023_v6  ;;  %4040 = vst [vmem:[%s6627_s15 + $0x38] sm:$0xff] %v4024_v39  ;;  %4055 = sbr.rel (!%p5304_p6) target bundleno = 752 (0x2f0), region = 81 }
 0x2e4   : > { %4041 = vst [vmem:[%s6627_s15 + $0x40] sm:$0xff] %v4025_v3  ;;  %4042 = vst [vmem:[%s6627_s15 + $0x48] sm:$0xff] %v4026_v46 }
 0x2e5   : > { %4043 = vst [vmem:[%s6627_s15 + $0x50] sm:$0xff] %v4027_v1  ;;  %4044 = vst [vmem:[%s6627_s15 + $0x58] sm:$0xff] %v4028_v8 }
 0x2e6   : > { %4045 = vst [vmem:[%s6627_s15 + $0x60] sm:$0xff] %v4029_v23  ;;  %4046 = vst [vmem:[%s6627_s15 + $0x68] sm:$0xff] %v4030_v52 }
 0x2e7   : > { %4047 = vst [vmem:[%s6627_s15 + $0x70] sm:$0xff] %v4031_v59  ;;  %4048 = vst [vmem:[%s6627_s15 + $0x78] sm:$0xff] %v4032_v12  ;;  %v4116_v44 = vld [vmem:[%s6627_s15] sm:$0xff] (%p5304_p6)  ;;  %v4118_v50 = vld [vmem:[%s6627_s15 + $0x8] sm:$0xff] (%p5304_p6) }
 0x2e8   : > { %v4120_v55 = vld [vmem:[%s6627_s15 + $0x10] sm:$0xff]  ;;  %v4122_v49 = vld [vmem:[%s6627_s15 + $0x18] sm:$0xff]  ;;  %4117 = vst [vmem:[%s4057_s13] sm:$0xff] %v4116_v44  ;;  %4119 = vst [vmem:[%s4057_s13 + $0x10] sm:$0xff] %v4118_v50 }
 0x2e9   : > { %v4124_v63 = vld [vmem:[%s6627_s15 + $0x20] sm:$0xff]  ;;  %v4126_v62 = vld [vmem:[%s6627_s15 + $0x28] sm:$0xff]  ;;  %4121 = vst [vmem:[%s4057_s13 + $0x20] sm:$0xff] %v4120_v55  ;;  %4123 = vst [vmem:[%s4057_s13 + $0x30] sm:$0xff] %v4122_v49 }
 0x2ea   : > { %4125 = vst [vmem:[%s4057_s13 + $0x40] sm:$0xff] %v4124_v63  ;;  %4127 = vst [vmem:[%s4057_s13 + $0x50] sm:$0xff] %v4126_v62  ;;  %v4128_v36 = vld [vmem:[%s6627_s15 + $0x30] sm:$0xff]  ;;  %v4130_v47 = vld [vmem:[%s6627_s15 + $0x38] sm:$0xff] }
 0x2eb   : > { %v4132_v0 = vld [vmem:[%s6627_s15 + $0x40] sm:$0xff]  ;;  %4129 = vst [vmem:[%s4057_s13 + $0x60] sm:$0xff] %v4128_v36  ;;  %4131 = vst [vmem:[%s4057_s13 + $0x70] sm:$0xff] %v4130_v47  ;;  %v4134_v16 = vld [vmem:[%s6627_s15 + $0x48] sm:$0xff] }
 0x2ec   : > { %4133 = vst [vmem:[%s4057_s13 + $0x80] sm:$0xff] %v4132_v0  ;;  %v4136_v31 = vld [vmem:[%s6627_s15 + $0x50] sm:$0xff]  ;;  %v4138_v21 = vld [vmem:[%s6627_s15 + $0x58] sm:$0xff]  ;;  %4135 = vst [vmem:[%s4057_s13 + $0x90] sm:$0xff] %v4134_v16 }
 0x2ed   : > { %4137 = vst [vmem:[%s4057_s13 + $0xa0] sm:$0xff] %v4136_v31  ;;  %4139 = vst [vmem:[%s4057_s13 + $0xb0] sm:$0xff] %v4138_v21  ;;  %v4140_v56 = vld [vmem:[%s6627_s15 + $0x60] sm:$0xff]  ;;  %v4142_v35 = vld [vmem:[%s6627_s15 + $0x68] sm:$0xff] }
 0x2ee   : > { %v4144_v15 = vld [vmem:[%s6627_s15 + $0x70] sm:$0xff]  ;;  %4141 = vst [vmem:[%s4057_s13 + $0xc0] sm:$0xff] %v4140_v56  ;;  %4143 = vst [vmem:[%s4057_s13 + $0xd0] sm:$0xff] %v4142_v35  ;;  %v4146_v48 = vld [vmem:[%s6627_s15 + $0x78] sm:$0xff] }
 0x2ef   : > { %4145 = vst [vmem:[%s4057_s13 + $0xe0] sm:$0xff] %v4144_v15  ;;  %4147 = vst [vmem:[%s4057_s13 + $0xf0] sm:$0xff] %v4146_v48 }
 0x2f0 PF: > { %s14_s19 = sadd.s32 1, %s5242_s19   ;;  %s6688_s15 = smov %s5230_s16 }
 0x2f1   : > { %p11_p12 = scmp.ge.s32.totalorder %s14_s19, 4   ;;  %s6689_s16 = smov %s5309_s25 }
 0x2f2   : > { %s6690_s17 = smov %s5238_s18  ;;  %s6691_s18 = smov %s6693_s20 }
 0x2f3   :  { %13 = sbr.rel (!%p11_p12) target bundleno = 3 (0x3), region = 159 }

// kernel: encoder_forward.5
= control target key start
LH: loop header
LB: loop body
LE: loop exit
PB: predicated region body
PF: predicated region fallthrough
CT: control target
= control target key end

     0   :  { %s10498_s15 = smov 0   ;;  %s10500_s16 = smov 0   ;;  %s12686_s0 = inlined_call_operand.vmem [shape: bf16[32,4096], index: 0, kind: input, shape index: {}]   ;;  %s12687_s1 = inlined_call_operand.vmem [shape: bf16[4096,512], index: 1, kind: input, shape index: {}]   ;;  %s12688_s2 = inlined_call_operand.vmem [shape: f32[1,512], index: 2, kind: input, shape index: {}]   ;;  %s12689_s3 = inlined_call_operand.vmem [shape: f32[1,512], index: 3, kind: input, shape index: {}]   ;;  %s12690_s4 = inlined_call_operand.vmem [shape: f32[32,512], index: 4, kind: output, shape index: {}]  }
   0x1   :  { %s10502_s17 = smov 0   ;;  %s10504_s18 = smov 0  }
   0x2   :  { %s10506_s19 = smov 0  }
   0x3 LB: > { %s26_s20 = sadd.s32 1, %s10467_s18  ;;  %s9025_s21 = sadd.s32 4294967295, %s10471_s19   ;;  %s10471_s19 = sphi %s10506_s19, %s14_s19   ;;  %s10467_s18 = sphi %s10504_s18, %s12725_s18   ;;  %s10463_s17 = sphi %s10502_s17, %s12724_s17   ;;  %s10459_s16 = sphi %s10500_s16, %s12723_s16   ;;  %s10455_s15 = sphi %s10498_s15, %s12722_s15  }
   0x4   : > { %p28_p0 = scmp.ge.s32.totalorder %s26_s20, 2  ;;  %p68_p1 = scmp.ne.s32.totalorder %s10459_s16, %s10455_s15 }
   0x5   : > { %p69_p2 = scmp.eq.s32.totalorder %s10471_s19, 0  ;;  %p150_p4 = scmp.eq.s32.totalorder %s9025_s21, 1 }
   0x6   : > { %s12727_s20 = smov (%p28_p0, %s26_s20), 0  ;;  %s61_s23 = sadd.s32 1, %s10459_s16 }
   0x7   : > { %p70_p3 = por %p69_p2, %p68_p1  ;;  %s57_s22 = ssub.s32 %s10467_s18, %s12727_s20 }
   0x8   : > { %p59_p5 = scmp.eq.s32.totalorder %s57_s22, 0  ;;  %p10533_p6 = por %p150_p4, %p68_p1 }
   0x9   : > { %p9029_p7 = scmp.ge.s32.totalorder %s10471_s19, 2 }
   0xa   : > { %s10538_s25 = scalar_select %p59_p5, %s10459_s16, %s61_s23  }
   0xb   : > { %181 = sbr.rel (%p9029_p7) target bundleno = 276 (0x114), region = 20 }
  0x10   : > { %184 = sbr.rel (!%p70_p3) target bundleno = 276 (0x114), region = 24  ;;  %s186_s26 = sand.u32 (%p70_p3), 1, %s10459_s16  }
  0x11   : > { %s9619_s27 = sshll.u32 (%p70_p3), %s10467_s18, 3  ;;  %s9030_s28 = sshll.u32 (%p70_p3), %s186_s26, 12 }
  0x12   : > { %s10546_s5 = scalar_lea.vmem (%p70_p3), %s12687_s1, %s9619_s27  ;;  %s10551_s6 = scalar_lea.vmem (%p70_p3), [#allocation2], %s9030_s28 }
  0x13   : > { %v1248_v0 = vld [vmem:[%s10546_s5] sm:$0xff] (%p70_p3)  ;;  %v1250_v1 = vld [vmem:[%s10546_s5 + $0x10] sm:$0xff] (%p70_p3) }
  0x14   : > { %v1252_v2 = vld [vmem:[%s10546_s5 + $0x20] sm:$0xff] (%p70_p3)  ;;  %1249 = vst [vmem:[%s10551_s6] sm:$0xff] (%p70_p3), %v1248_v0  ;;  %1251 = vst [vmem:[%s10551_s6 + $0x8] sm:$0xff] (%p70_p3), %v1250_v1  ;;  %v1254_v3 = vld [vmem:[%s10546_s5 + $0x30] sm:$0xff] (%p70_p3) }
  0x15   : > { %1253 = vst [vmem:[%s10551_s6 + $0x10] sm:$0xff] %v1252_v2  ;;  %v1256_v4 = vld [vmem:[%s10546_s5 + $0x40] sm:$0xff]  ;;  %v1258_v5 = vld [vmem:[%s10546_s5 + $0x50] sm:$0xff]  ;;  %1255 = vst [vmem:[%s10551_s6 + $0x18] sm:$0xff] %v1254_v3 }
  0x16   : > { %1257 = vst [vmem:[%s10551_s6 + $0x20] sm:$0xff] %v1256_v4  ;;  %1259 = vst [vmem:[%s10551_s6 + $0x28] sm:$0xff] %v1258_v5  ;;  %v1260_v6 = vld [vmem:[%s10546_s5 + $0x60] sm:$0xff]  ;;  %v1262_v7 = vld [vmem:[%s10546_s5 + $0x70] sm:$0xff] }
  0x17   : > { %v1264_v8 = vld [vmem:[%s10546_s5 + $0x80] sm:$0xff]  ;;  %1261 = vst [vmem:[%s10551_s6 + $0x30] sm:$0xff] %v1260_v6  ;;  %1263 = vst [vmem:[%s10551_s6 + $0x38] sm:$0xff] %v1262_v7  ;;  %v1266_v9 = vld [vmem:[%s10546_s5 + $0x90] sm:$0xff] }
  0x18   : > { %1265 = vst [vmem:[%s10551_s6 + $0x40] sm:$0xff] %v1264_v8  ;;  %v1268_v10 = vld [vmem:[%s10546_s5 + $0xa0] sm:$0xff]  ;;  %v1270_v11 = vld [vmem:[%s10546_s5 + $0xb0] sm:$0xff]  ;;  %1267 = vst [vmem:[%s10551_s6 + $0x48] sm:$0xff] %v1266_v9 }
  0x19   : > { %1269 = vst [vmem:[%s10551_s6 + $0x50] sm:$0xff] %v1268_v10  ;;  %1271 = vst [vmem:[%s10551_s6 + $0x58] sm:$0xff] %v1270_v11  ;;  %v1272_v12 = vld [vmem:[%s10546_s5 + $0xc0] sm:$0xff]  ;;  %v1274_v13 = vld [vmem:[%s10546_s5 + $0xd0] sm:$0xff] }
  0x1a   : > { %v1276_v14 = vld [vmem:[%s10546_s5 + $0xe0] sm:$0xff]  ;;  %1273 = vst [vmem:[%s10551_s6 + $0x60] sm:$0xff] %v1272_v12  ;;  %1275 = vst [vmem:[%s10551_s6 + $0x68] sm:$0xff] %v1274_v13  ;;  %v1278_v15 = vld [vmem:[%s10546_s5 + $0xf0] sm:$0xff] }
  0x1b   : > { %1277 = vst [vmem:[%s10551_s6 + $0x70] sm:$0xff] %v1276_v14  ;;  %v1280_v16 = vld [vmem:[%s10546_s5 + $0x100] sm:$0xff]  ;;  %v1282_v17 = vld [vmem:[%s10546_s5 + $0x110] sm:$0xff]  ;;  %1279 = vst [vmem:[%s10551_s6 + $0x78] sm:$0xff] %v1278_v15 }
  0x1c   : > { %1281 = vst [vmem:[%s10551_s6 + $0x80] sm:$0xff] %v1280_v16  ;;  %1283 = vst [vmem:[%s10551_s6 + $0x88] sm:$0xff] %v1282_v17  ;;  %v1284_v18 = vld [vmem:[%s10546_s5 + $0x120] sm:$0xff]  ;;  %v1286_v19 = vld [vmem:[%s10546_s5 + $0x130] sm:$0xff] }
  0x1d   : > { %v1288_v20 = vld [vmem:[%s10546_s5 + $0x140] sm:$0xff]  ;;  %1285 = vst [vmem:[%s10551_s6 + $0x90] sm:$0xff] %v1284_v18  ;;  %1287 = vst [vmem:[%s10551_s6 + $0x98] sm:$0xff] %v1286_v19  ;;  %v1290_v21 = vld [vmem:[%s10546_s5 + $0x150] sm:$0xff] }
  0x1e   : > { %1289 = vst [vmem:[%s10551_s6 + $0xa0] sm:$0xff] %v1288_v20  ;;  %v1292_v22 = vld [vmem:[%s10546_s5 + $0x160] sm:$0xff]  ;;  %v1294_v23 = vld [vmem:[%s10546_s5 + $0x170] sm:$0xff]  ;;  %1291 = vst [vmem:[%s10551_s6 + $0xa8] sm:$0xff] %v1290_v21 }
  0x1f   : > { %1293 = vst [vmem:[%s10551_s6 + $0xb0] sm:$0xff] %v1292_v22  ;;  %1295 = vst [vmem:[%s10551_s6 + $0xb8] sm:$0xff] %v1294_v23  ;;  %v1296_v24 = vld [vmem:[%s10546_s5 + $0x180] sm:$0xff]  ;;  %v1298_v25 = vld [vmem:[%s10546_s5 + $0x190] sm:$0xff] }
  0x20   : > { %v1300_v26 = vld [vmem:[%s10546_s5 + $0x1a0] sm:$0xff]  ;;  %1297 = vst [vmem:[%s10551_s6 + $0xc0] sm:$0xff] %v1296_v24  ;;  %1299 = vst [vmem:[%s10551_s6 + $0xc8] sm:$0xff] %v1298_v25  ;;  %v1302_v27 = vld [vmem:[%s10546_s5 + $0x1b0] sm:$0xff] }
  0x21   : > { %1301 = vst [vmem:[%s10551_s6 + $0xd0] sm:$0xff] %v1300_v26  ;;  %v1304_v28 = vld [vmem:[%s10546_s5 + $0x1c0] sm:$0xff]  ;;  %v1306_v29 = vld [vmem:[%s10546_s5 + $0x1d0] sm:$0xff]  ;;  %1303 = vst [vmem:[%s10551_s6 + $0xd8] sm:$0xff] %v1302_v27 }
  0x22   : > { %1305 = vst [vmem:[%s10551_s6 + $0xe0] sm:$0xff] %v1304_v28  ;;  %1307 = vst [vmem:[%s10551_s6 + $0xe8] sm:$0xff] %v1306_v29  ;;  %v1308_v30 = vld [vmem:[%s10546_s5 + $0x1e0] sm:$0xff]  ;;  %v1310_v31 = vld [vmem:[%s10546_s5 + $0x1f0] sm:$0xff] }
  0x23   : > { %v1312_v32 = vld [vmem:[%s10546_s5 + $0x200] sm:$0xff]  ;;  %1309 = vst [vmem:[%s10551_s6 + $0xf0] sm:$0xff] %v1308_v30  ;;  %1311 = vst [vmem:[%s10551_s6 + $0xf8] sm:$0xff] %v1310_v31  ;;  %v1314_v33 = vld [vmem:[%s10546_s5 + $0x210] sm:$0xff] }
  0x24   : > { %1313 = vst [vmem:[%s10551_s6 + $0x100] sm:$0xff] %v1312_v32  ;;  %v1316_v34 = vld [vmem:[%s10546_s5 + $0x220] sm:$0xff]  ;;  %v1318_v35 = vld [vmem:[%s10546_s5 + $0x230] sm:$0xff]  ;;  %1315 = vst [vmem:[%s10551_s6 + $0x108] sm:$0xff] %v1314_v33 }
  0x25   : > { %1317 = vst [vmem:[%s10551_s6 + $0x110] sm:$0xff] %v1316_v34  ;;  %1319 = vst [vmem:[%s10551_s6 + $0x118] sm:$0xff] %v1318_v35  ;;  %v1320_v36 = vld [vmem:[%s10546_s5 + $0x240] sm:$0xff]  ;;  %v1322_v37 = vld [vmem:[%s10546_s5 + $0x250] sm:$0xff] }
  0x26   : > { %v1324_v38 = vld [vmem:[%s10546_s5 + $0x260] sm:$0xff]  ;;  %1321 = vst [vmem:[%s10551_s6 + $0x120] sm:$0xff] %v1320_v36  ;;  %1323 = vst [vmem:[%s10551_s6 + $0x128] sm:$0xff] %v1322_v37  ;;  %v1326_v39 = vld [vmem:[%s10546_s5 + $0x270] sm:$0xff] }
  0x27   : > { %1325 = vst [vmem:[%s10551_s6 + $0x130] sm:$0xff] %v1324_v38  ;;  %v1328_v40 = vld [vmem:[%s10546_s5 + $0x280] sm:$0xff]  ;;  %v1330_v41 = vld [vmem:[%s10546_s5 + $0x290] sm:$0xff]  ;;  %1327 = vst [vmem:[%s10551_s6 + $0x138] sm:$0xff] %v1326_v39 }
  0x28   : > { %1329 = vst [vmem:[%s10551_s6 + $0x140] sm:$0xff] %v1328_v40  ;;  %1331 = vst [vmem:[%s10551_s6 + $0x148] sm:$0xff] %v1330_v41  ;;  %v1332_v42 = vld [vmem:[%s10546_s5 + $0x2a0] sm:$0xff]  ;;  %v1334_v43 = vld [vmem:[%s10546_s5 + $0x2b0] sm:$0xff] }
  0x29   : > { %v1336_v44 = vld [vmem:[%s10546_s5 + $0x2c0] sm:$0xff]  ;;  %1333 = vst [vmem:[%s10551_s6 + $0x150] sm:$0xff] %v1332_v42  ;;  %1335 = vst [vmem:[%s10551_s6 + $0x158] sm:$0xff] %v1334_v43  ;;  %v1338_v45 = vld [vmem:[%s10546_s5 + $0x2d0] sm:$0xff] }
  0x2a   : > { %1337 = vst [vmem:[%s10551_s6 + $0x160] sm:$0xff] %v1336_v44  ;;  %v1340_v46 = vld [vmem:[%s10546_s5 + $0x2e0] sm:$0xff]  ;;  %v1342_v47 = vld [vmem:[%s10546_s5 + $0x2f0] sm:$0xff]  ;;  %1339 = vst [vmem:[%s10551_s6 + $0x168] sm:$0xff] %v1338_v45 }
  0x2b   : > { %1341 = vst [vmem:[%s10551_s6 + $0x170] sm:$0xff] %v1340_v46  ;;  %1343 = vst [vmem:[%s10551_s6 + $0x178] sm:$0xff] %v1342_v47  ;;  %v1344_v48 = vld [vmem:[%s10546_s5 + $0x300] sm:$0xff]  ;;  %v1346_v49 = vld [vmem:[%s10546_s5 + $0x310] sm:$0xff] }
  0x2c   : > { %v1348_v50 = vld [vmem:[%s10546_s5 + $0x320] sm:$0xff]  ;;  %1345 = vst [vmem:[%s10551_s6 + $0x180] sm:$0xff] %v1344_v48  ;;  %1347 = vst [vmem:[%s10551_s6 + $0x188] sm:$0xff] %v1346_v49  ;;  %v1350_v51 = vld [vmem:[%s10546_s5 + $0x330] sm:$0xff] }
  0x2d   : > { %1349 = vst [vmem:[%s10551_s6 + $0x190] sm:$0xff] %v1348_v50  ;;  %v1352_v52 = vld [vmem:[%s10546_s5 + $0x340] sm:$0xff]  ;;  %v1354_v53 = vld [vmem:[%s10546_s5 + $0x350] sm:$0xff]  ;;  %1351 = vst [vmem:[%s10551_s6 + $0x198] sm:$0xff] %v1350_v51 }
  0x2e   : > { %1353 = vst [vmem:[%s10551_s6 + $0x1a0] sm:$0xff] %v1352_v52  ;;  %1355 = vst [vmem:[%s10551_s6 + $0x1a8] sm:$0xff] %v1354_v53  ;;  %v1356_v54 = vld [vmem:[%s10546_s5 + $0x360] sm:$0xff]  ;;  %v1358_v55 = vld [vmem:[%s10546_s5 + $0x370] sm:$0xff] }
  0x2f   : > { %v1360_v56 = vld [vmem:[%s10546_s5 + $0x380] sm:$0xff]  ;;  %1357 = vst [vmem:[%s10551_s6 + $0x1b0] sm:$0xff] %v1356_v54  ;;  %1359 = vst [vmem:[%s10551_s6 + $0x1b8] sm:$0xff] %v1358_v55  ;;  %v1362_v57 = vld [vmem:[%s10546_s5 + $0x390] sm:$0xff] }
  0x30   : > { %1361 = vst [vmem:[%s10551_s6 + $0x1c0] sm:$0xff] %v1360_v56  ;;  %v1364_v58 = vld [vmem:[%s10546_s5 + $0x3a0] sm:$0xff]  ;;  %v1366_v59 = vld [vmem:[%s10546_s5 + $0x3b0] sm:$0xff]  ;;  %1363 = vst [vmem:[%s10551_s6 + $0x1c8] sm:$0xff] %v1362_v57 }
  0x31   : > { %1365 = vst [vmem:[%s10551_s6 + $0x1d0] sm:$0xff] %v1364_v58  ;;  %1367 = vst [vmem:[%s10551_s6 + $0x1d8] sm:$0xff] %v1366_v59  ;;  %v1368_v60 = vld [vmem:[%s10546_s5 + $0x3c0] sm:$0xff]  ;;  %v1370_v61 = vld [vmem:[%s10546_s5 + $0x3d0] sm:$0xff] }
  0x32   : > { %v1372_v62 = vld [vmem:[%s10546_s5 + $0x3e0] sm:$0xff]  ;;  %1369 = vst [vmem:[%s10551_s6 + $0x1e0] sm:$0xff] %v1368_v60  ;;  %1371 = vst [vmem:[%s10551_s6 + $0x1e8] sm:$0xff] %v1370_v61  ;;  %v1374_v63 = vld [vmem:[%s10546_s5 + $0x3f0] sm:$0xff] }
  0x33   : > { %1373 = vst [vmem:[%s10551_s6 + $0x1f0] sm:$0xff] %v1372_v62  ;;  %v1376_v0 = vld [vmem:[%s10546_s5 + $0x400] sm:$0xff]  ;;  %v1378_v1 = vld [vmem:[%s10546_s5 + $0x410] sm:$0xff]  ;;  %1375 = vst [vmem:[%s10551_s6 + $0x1f8] sm:$0xff] %v1374_v63 }
  0x34   : > { %1377 = vst [vmem:[%s10551_s6 + $0x200] sm:$0xff] %v1376_v0  ;;  %1379 = vst [vmem:[%s10551_s6 + $0x208] sm:$0xff] %v1378_v1  ;;  %v1380_v2 = vld [vmem:[%s10546_s5 + $0x420] sm:$0xff]  ;;  %v1382_v3 = vld [vmem:[%s10546_s5 + $0x430] sm:$0xff] }
  0x35   : > { %v1384_v4 = vld [vmem:[%s10546_s5 + $0x440] sm:$0xff]  ;;  %1381 = vst [vmem:[%s10551_s6 + $0x210] sm:$0xff] %v1380_v2  ;;  %1383 = vst [vmem:[%s10551_s6 + $0x218] sm:$0xff] %v1382_v3  ;;  %v1386_v5 = vld [vmem:[%s10546_s5 + $0x450] sm:$0xff] }
  0x36   : > { %1385 = vst [vmem:[%s10551_s6 + $0x220] sm:$0xff] %v1384_v4  ;;  %v1388_v6 = vld [vmem:[%s10546_s5 + $0x460] sm:$0xff]  ;;  %v1390_v7 = vld [vmem:[%s10546_s5 + $0x470] sm:$0xff]  ;;  %1387 = vst [vmem:[%s10551_s6 + $0x228] sm:$0xff] %v1386_v5 }
  0x37   : > { %1389 = vst [vmem:[%s10551_s6 + $0x230] sm:$0xff] %v1388_v6  ;;  %1391 = vst [vmem:[%s10551_s6 + $0x238] sm:$0xff] %v1390_v7  ;;  %v1392_v8 = vld [vmem:[%s10546_s5 + $0x480] sm:$0xff]  ;;  %v1394_v9 = vld [vmem:[%s10546_s5 + $0x490] sm:$0xff] }
  0x38   : > { %v1396_v10 = vld [vmem:[%s10546_s5 + $0x4a0] sm:$0xff]  ;;  %1393 = vst [vmem:[%s10551_s6 + $0x240] sm:$0xff] %v1392_v8  ;;  %1395 = vst [vmem:[%s10551_s6 + $0x248] sm:$0xff] %v1394_v9  ;;  %v1398_v11 = vld [vmem:[%s10546_s5 + $0x4b0] sm:$0xff] }
  0x39   : > { %1397 = vst [vmem:[%s10551_s6 + $0x250] sm:$0xff] %v1396_v10  ;;  %v1400_v12 = vld [vmem:[%s10546_s5 + $0x4c0] sm:$0xff]  ;;  %v1402_v13 = vld [vmem:[%s10546_s5 + $0x4d0] sm:$0xff]  ;;  %1399 = vst [vmem:[%s10551_s6 + $0x258] sm:$0xff] %v1398_v11 }
  0x3a   : > { %1401 = vst [vmem:[%s10551_s6 + $0x260] sm:$0xff] %v1400_v12  ;;  %1403 = vst [vmem:[%s10551_s6 + $0x268] sm:$0xff] %v1402_v13  ;;  %v1404_v14 = vld [vmem:[%s10546_s5 + $0x4e0] sm:$0xff]  ;;  %v1406_v15 = vld [vmem:[%s10546_s5 + $0x4f0] sm:$0xff] }
  0x3b   : > { %v1408_v16 = vld [vmem:[%s10546_s5 + $0x500] sm:$0xff]  ;;  %1405 = vst [vmem:[%s10551_s6 + $0x270] sm:$0xff] %v1404_v14  ;;  %1407 = vst [vmem:[%s10551_s6 + $0x278] sm:$0xff] %v1406_v15  ;;  %v1410_v17 = vld [vmem:[%s10546_s5 + $0x510] sm:$0xff] }
  0x3c   : > { %1409 = vst [vmem:[%s10551_s6 + $0x280] sm:$0xff] %v1408_v16  ;;  %v1412_v18 = vld [vmem:[%s10546_s5 + $0x520] sm:$0xff]  ;;  %v1414_v19 = vld [vmem:[%s10546_s5 + $0x530] sm:$0xff]  ;;  %1411 = vst [vmem:[%s10551_s6 + $0x288] sm:$0xff] %v1410_v17 }
  0x3d   : > { %1413 = vst [vmem:[%s10551_s6 + $0x290] sm:$0xff] %v1412_v18  ;;  %1415 = vst [vmem:[%s10551_s6 + $0x298] sm:$0xff] %v1414_v19  ;;  %v1416_v20 = vld [vmem:[%s10546_s5 + $0x540] sm:$0xff]  ;;  %v1418_v21 = vld [vmem:[%s10546_s5 + $0x550] sm:$0xff] }
  0x3e   : > { %v1420_v22 = vld [vmem:[%s10546_s5 + $0x560] sm:$0xff]  ;;  %1417 = vst [vmem:[%s10551_s6 + $0x2a0] sm:$0xff] %v1416_v20  ;;  %1419 = vst [vmem:[%s10551_s6 + $0x2a8] sm:$0xff] %v1418_v21  ;;  %v1422_v23 = vld [vmem:[%s10546_s5 + $0x570] sm:$0xff] }
  0x3f   : > { %1421 = vst [vmem:[%s10551_s6 + $0x2b0] sm:$0xff] %v1420_v22  ;;  %v1424_v24 = vld [vmem:[%s10546_s5 + $0x580] sm:$0xff]  ;;  %v1426_v25 = vld [vmem:[%s10546_s5 + $0x590] sm:$0xff]  ;;  %1423 = vst [vmem:[%s10551_s6 + $0x2b8] sm:$0xff] %v1422_v23 }
  0x40   : > { %1425 = vst [vmem:[%s10551_s6 + $0x2c0] sm:$0xff] %v1424_v24  ;;  %1427 = vst [vmem:[%s10551_s6 + $0x2c8] sm:$0xff] %v1426_v25  ;;  %v1428_v26 = vld [vmem:[%s10546_s5 + $0x5a0] sm:$0xff]  ;;  %v1430_v27 = vld [vmem:[%s10546_s5 + $0x5b0] sm:$0xff] }
  0x41   : > { %v1432_v28 = vld [vmem:[%s10546_s5 + $0x5c0] sm:$0xff]  ;;  %1429 = vst [vmem:[%s10551_s6 + $0x2d0] sm:$0xff] %v1428_v26  ;;  %1431 = vst [vmem:[%s10551_s6 + $0x2d8] sm:$0xff] %v1430_v27  ;;  %v1434_v29 = vld [vmem:[%s10546_s5 + $0x5d0] sm:$0xff] }
  0x42   : > { %1433 = vst [vmem:[%s10551_s6 + $0x2e0] sm:$0xff] %v1432_v28  ;;  %v1436_v30 = vld [vmem:[%s10546_s5 + $0x5e0] sm:$0xff]  ;;  %v1438_v31 = vld [vmem:[%s10546_s5 + $0x5f0] sm:$0xff]  ;;  %1435 = vst [vmem:[%s10551_s6 + $0x2e8] sm:$0xff] %v1434_v29 }
  0x43   : > { %1437 = vst [vmem:[%s10551_s6 + $0x2f0] sm:$0xff] %v1436_v30  ;;  %1439 = vst [vmem:[%s10551_s6 + $0x2f8] sm:$0xff] %v1438_v31  ;;  %v1440_v32 = vld [vmem:[%s10546_s5 + $0x600] sm:$0xff]  ;;  %v1442_v33 = vld [vmem:[%s10546_s5 + $0x610] sm:$0xff] }
  0x44   : > { %v1444_v34 = vld [vmem:[%s10546_s5 + $0x620] sm:$0xff]  ;;  %1441 = vst [vmem:[%s10551_s6 + $0x300] sm:$0xff] %v1440_v32  ;;  %1443 = vst [vmem:[%s10551_s6 + $0x308] sm:$0xff] %v1442_v33  ;;  %v1446_v35 = vld [vmem:[%s10546_s5 + $0x630] sm:$0xff] }
  0x45   : > { %1445 = vst [vmem:[%s10551_s6 + $0x310] sm:$0xff] %v1444_v34  ;;  %v1448_v36 = vld [vmem:[%s10546_s5 + $0x640] sm:$0xff]  ;;  %v1450_v37 = vld [vmem:[%s10546_s5 + $0x650] sm:$0xff]  ;;  %1447 = vst [vmem:[%s10551_s6 + $0x318] sm:$0xff] %v1446_v35 }
  0x46   : > { %1449 = vst [vmem:[%s10551_s6 + $0x320] sm:$0xff] %v1448_v36  ;;  %1451 = vst [vmem:[%s10551_s6 + $0x328] sm:$0xff] %v1450_v37  ;;  %v1452_v38 = vld [vmem:[%s10546_s5 + $0x660] sm:$0xff]  ;;  %v1454_v39 = vld [vmem:[%s10546_s5 + $0x670] sm:$0xff] }
  0x47   : > { %v1456_v40 = vld [vmem:[%s10546_s5 + $0x680] sm:$0xff]  ;;  %1453 = vst [vmem:[%s10551_s6 + $0x330] sm:$0xff] %v1452_v38  ;;  %1455 = vst [vmem:[%s10551_s6 + $0x338] sm:$0xff] %v1454_v39  ;;  %v1458_v41 = vld [vmem:[%s10546_s5 + $0x690] sm:$0xff] }
  0x48   : > { %1457 = vst [vmem:[%s10551_s6 + $0x340] sm:$0xff] %v1456_v40  ;;  %v1460_v42 = vld [vmem:[%s10546_s5 + $0x6a0] sm:$0xff]  ;;  %v1462_v43 = vld [vmem:[%s10546_s5 + $0x6b0] sm:$0xff]  ;;  %1459 = vst [vmem:[%s10551_s6 + $0x348] sm:$0xff] %v1458_v41 }
  0x49   : > { %1461 = vst [vmem:[%s10551_s6 + $0x350] sm:$0xff] %v1460_v42  ;;  %1463 = vst [vmem:[%s10551_s6 + $0x358] sm:$0xff] %v1462_v43  ;;  %v1464_v44 = vld [vmem:[%s10546_s5 + $0x6c0] sm:$0xff]  ;;  %v1466_v45 = vld [vmem:[%s10546_s5 + $0x6d0] sm:$0xff] }
  0x4a   : > { %v1468_v46 = vld [vmem:[%s10546_s5 + $0x6e0] sm:$0xff]  ;;  %1465 = vst [vmem:[%s10551_s6 + $0x360] sm:$0xff] %v1464_v44  ;;  %1467 = vst [vmem:[%s10551_s6 + $0x368] sm:$0xff] %v1466_v45  ;;  %v1470_v47 = vld [vmem:[%s10546_s5 + $0x6f0] sm:$0xff] }
  0x4b   : > { %1469 = vst [vmem:[%s10551_s6 + $0x370] sm:$0xff] %v1468_v46  ;;  %v1472_v48 = vld [vmem:[%s10546_s5 + $0x700] sm:$0xff]  ;;  %v1474_v49 = vld [vmem:[%s10546_s5 + $0x710] sm:$0xff]  ;;  %1471 = vst [vmem:[%s10551_s6 + $0x378] sm:$0xff] %v1470_v47 }
  0x4c   : > { %1473 = vst [vmem:[%s10551_s6 + $0x380] sm:$0xff] %v1472_v48  ;;  %1475 = vst [vmem:[%s10551_s6 + $0x388] sm:$0xff] %v1474_v49  ;;  %v1476_v50 = vld [vmem:[%s10546_s5 + $0x720] sm:$0xff]  ;;  %v1478_v51 = vld [vmem:[%s10546_s5 + $0x730] sm:$0xff] }
  0x4d   : > { %v1480_v52 = vld [vmem:[%s10546_s5 + $0x740] sm:$0xff]  ;;  %1477 = vst [vmem:[%s10551_s6 + $0x390] sm:$0xff] %v1476_v50  ;;  %1479 = vst [vmem:[%s10551_s6 + $0x398] sm:$0xff] %v1478_v51  ;;  %v1482_v53 = vld [vmem:[%s10546_s5 + $0x750] sm:$0xff] }
  0x4e   : > { %1481 = vst [vmem:[%s10551_s6 + $0x3a0] sm:$0xff] %v1480_v52  ;;  %v1484_v54 = vld [vmem:[%s10546_s5 + $0x760] sm:$0xff]  ;;  %v1486_v55 = vld [vmem:[%s10546_s5 + $0x770] sm:$0xff]  ;;  %1483 = vst [vmem:[%s10551_s6 + $0x3a8] sm:$0xff] %v1482_v53 }
  0x4f   : > { %1485 = vst [vmem:[%s10551_s6 + $0x3b0] sm:$0xff] %v1484_v54  ;;  %1487 = vst [vmem:[%s10551_s6 + $0x3b8] sm:$0xff] %v1486_v55  ;;  %v1488_v56 = vld [vmem:[%s10546_s5 + $0x780] sm:$0xff]  ;;  %v1490_v57 = vld [vmem:[%s10546_s5 + $0x790] sm:$0xff] }
  0x50   : > { %v1492_v58 = vld [vmem:[%s10546_s5 + $0x7a0] sm:$0xff]  ;;  %1489 = vst [vmem:[%s10551_s6 + $0x3c0] sm:$0xff] %v1488_v56  ;;  %1491 = vst [vmem:[%s10551_s6 + $0x3c8] sm:$0xff] %v1490_v57  ;;  %v1494_v59 = vld [vmem:[%s10546_s5 + $0x7b0] sm:$0xff] }
  0x51   : > { %1493 = vst [vmem:[%s10551_s6 + $0x3d0] sm:$0xff] %v1492_v58  ;;  %v1496_v60 = vld [vmem:[%s10546_s5 + $0x7c0] sm:$0xff]  ;;  %v1498_v61 = vld [vmem:[%s10546_s5 + $0x7d0] sm:$0xff]  ;;  %1495 = vst [vmem:[%s10551_s6 + $0x3d8] sm:$0xff] %v1494_v59 }
  0x52   : > { %1497 = vst [vmem:[%s10551_s6 + $0x3e0] sm:$0xff] %v1496_v60  ;;  %1499 = vst [vmem:[%s10551_s6 + $0x3e8] sm:$0xff] %v1498_v61  ;;  %v1500_v62 = vld [vmem:[%s10546_s5 + $0x7e0] sm:$0xff]  ;;  %v1502_v63 = vld [vmem:[%s10546_s5 + $0x7f0] sm:$0xff] }
  0x53   : > { %v1504_v0 = vld [vmem:[%s10546_s5 + $0x800] sm:$0xff]  ;;  %1501 = vst [vmem:[%s10551_s6 + $0x3f0] sm:$0xff] %v1500_v62  ;;  %1503 = vst [vmem:[%s10551_s6 + $0x3f8] sm:$0xff] %v1502_v63  ;;  %v1506_v1 = vld [vmem:[%s10546_s5 + $0x810] sm:$0xff] }
  0x54   : > { %1505 = vst [vmem:[%s10551_s6 + $0x400] sm:$0xff] %v1504_v0  ;;  %v1508_v2 = vld [vmem:[%s10546_s5 + $0x820] sm:$0xff]  ;;  %v1510_v3 = vld [vmem:[%s10546_s5 + $0x830] sm:$0xff]  ;;  %1507 = vst [vmem:[%s10551_s6 + $0x408] sm:$0xff] %v1506_v1 }
  0x55   : > { %1509 = vst [vmem:[%s10551_s6 + $0x410] sm:$0xff] %v1508_v2  ;;  %1511 = vst [vmem:[%s10551_s6 + $0x418] sm:$0xff] %v1510_v3  ;;  %v1512_v4 = vld [vmem:[%s10546_s5 + $0x840] sm:$0xff]  ;;  %v1514_v5 = vld [vmem:[%s10546_s5 + $0x850] sm:$0xff] }
  0x56   : > { %v1516_v6 = vld [vmem:[%s10546_s5 + $0x860] sm:$0xff]  ;;  %1513 = vst [vmem:[%s10551_s6 + $0x420] sm:$0xff] %v1512_v4  ;;  %1515 = vst [vmem:[%s10551_s6 + $0x428] sm:$0xff] %v1514_v5  ;;  %v1518_v7 = vld [vmem:[%s10546_s5 + $0x870] sm:$0xff] }
  0x57   : > { %1517 = vst [vmem:[%s10551_s6 + $0x430] sm:$0xff] %v1516_v6  ;;  %v1520_v8 = vld [vmem:[%s10546_s5 + $0x880] sm:$0xff]  ;;  %v1522_v9 = vld [vmem:[%s10546_s5 + $0x890] sm:$0xff]  ;;  %1519 = vst [vmem:[%s10551_s6 + $0x438] sm:$0xff] %v1518_v7 }
  0x58   : > { %1521 = vst [vmem:[%s10551_s6 + $0x440] sm:$0xff] %v1520_v8  ;;  %1523 = vst [vmem:[%s10551_s6 + $0x448] sm:$0xff] %v1522_v9  ;;  %v1524_v10 = vld [vmem:[%s10546_s5 + $0x8a0] sm:$0xff]  ;;  %v1526_v11 = vld [vmem:[%s10546_s5 + $0x8b0] sm:$0xff] }
  0x59   : > { %v1528_v12 = vld [vmem:[%s10546_s5 + $0x8c0] sm:$0xff]  ;;  %1525 = vst [vmem:[%s10551_s6 + $0x450] sm:$0xff] %v1524_v10  ;;  %1527 = vst [vmem:[%s10551_s6 + $0x458] sm:$0xff] %v1526_v11  ;;  %v1530_v13 = vld [vmem:[%s10546_s5 + $0x8d0] sm:$0xff] }
  0x5a   : > { %1529 = vst [vmem:[%s10551_s6 + $0x460] sm:$0xff] %v1528_v12  ;;  %v1532_v14 = vld [vmem:[%s10546_s5 + $0x8e0] sm:$0xff]  ;;  %v1534_v15 = vld [vmem:[%s10546_s5 + $0x8f0] sm:$0xff]  ;;  %1531 = vst [vmem:[%s10551_s6 + $0x468] sm:$0xff] %v1530_v13 }
  0x5b   : > { %1533 = vst [vmem:[%s10551_s6 + $0x470] sm:$0xff] %v1532_v14  ;;  %1535 = vst [vmem:[%s10551_s6 + $0x478] sm:$0xff] %v1534_v15  ;;  %v1536_v16 = vld [vmem:[%s10546_s5 + $0x900] sm:$0xff]  ;;  %v1538_v17 = vld [vmem:[%s10546_s5 + $0x910] sm:$0xff] }
  0x5c   : > { %v1540_v18 = vld [vmem:[%s10546_s5 + $0x920] sm:$0xff]  ;;  %1537 = vst [vmem:[%s10551_s6 + $0x480] sm:$0xff] %v1536_v16  ;;  %1539 = vst [vmem:[%s10551_s6 + $0x488] sm:$0xff] %v1538_v17  ;;  %v1542_v19 = vld [vmem:[%s10546_s5 + $0x930] sm:$0xff] }
  0x5d   : > { %1541 = vst [vmem:[%s10551_s6 + $0x490] sm:$0xff] %v1540_v18  ;;  %v1544_v20 = vld [vmem:[%s10546_s5 + $0x940] sm:$0xff]  ;;  %v1546_v21 = vld [vmem:[%s10546_s5 + $0x950] sm:$0xff]  ;;  %1543 = vst [vmem:[%s10551_s6 + $0x498] sm:$0xff] %v1542_v19 }
  0x5e   : > { %1545 = vst [vmem:[%s10551_s6 + $0x4a0] sm:$0xff] %v1544_v20  ;;  %1547 = vst [vmem:[%s10551_s6 + $0x4a8] sm:$0xff] %v1546_v21  ;;  %v1548_v22 = vld [vmem:[%s10546_s5 + $0x960] sm:$0xff]  ;;  %v1550_v23 = vld [vmem:[%s10546_s5 + $0x970] sm:$0xff] }
  0x5f   : > { %v1552_v24 = vld [vmem:[%s10546_s5 + $0x980] sm:$0xff]  ;;  %1549 = vst [vmem:[%s10551_s6 + $0x4b0] sm:$0xff] %v1548_v22  ;;  %1551 = vst [vmem:[%s10551_s6 + $0x4b8] sm:$0xff] %v1550_v23  ;;  %v1554_v25 = vld [vmem:[%s10546_s5 + $0x990] sm:$0xff] }
  0x60   : > { %1553 = vst [vmem:[%s10551_s6 + $0x4c0] sm:$0xff] %v1552_v24  ;;  %v1556_v26 = vld [vmem:[%s10546_s5 + $0x9a0] sm:$0xff]  ;;  %v1558_v27 = vld [vmem:[%s10546_s5 + $0x9b0] sm:$0xff]  ;;  %1555 = vst [vmem:[%s10551_s6 + $0x4c8] sm:$0xff] %v1554_v25 }
  0x61   : > { %1557 = vst [vmem:[%s10551_s6 + $0x4d0] sm:$0xff] %v1556_v26  ;;  %1559 = vst [vmem:[%s10551_s6 + $0x4d8] sm:$0xff] %v1558_v27  ;;  %v1560_v28 = vld [vmem:[%s10546_s5 + $0x9c0] sm:$0xff]  ;;  %v1562_v29 = vld [vmem:[%s10546_s5 + $0x9d0] sm:$0xff] }
  0x62   : > { %v1564_v30 = vld [vmem:[%s10546_s5 + $0x9e0] sm:$0xff]  ;;  %1561 = vst [vmem:[%s10551_s6 + $0x4e0] sm:$0xff] %v1560_v28  ;;  %1563 = vst [vmem:[%s10551_s6 + $0x4e8] sm:$0xff] %v1562_v29  ;;  %v1566_v31 = vld [vmem:[%s10546_s5 + $0x9f0] sm:$0xff] }
  0x63   : > { %1565 = vst [vmem:[%s10551_s6 + $0x4f0] sm:$0xff] %v1564_v30  ;;  %v1568_v32 = vld [vmem:[%s10546_s5 + $0xa00] sm:$0xff]  ;;  %v1570_v33 = vld [vmem:[%s10546_s5 + $0xa10] sm:$0xff]  ;;  %1567 = vst [vmem:[%s10551_s6 + $0x4f8] sm:$0xff] %v1566_v31 }
  0x64   : > { %1569 = vst [vmem:[%s10551_s6 + $0x500] sm:$0xff] %v1568_v32  ;;  %1571 = vst [vmem:[%s10551_s6 + $0x508] sm:$0xff] %v1570_v33  ;;  %v1572_v34 = vld [vmem:[%s10546_s5 + $0xa20] sm:$0xff]  ;;  %v1574_v35 = vld [vmem:[%s10546_s5 + $0xa30] sm:$0xff] }
  0x65   : > { %v1576_v36 = vld [vmem:[%s10546_s5 + $0xa40] sm:$0xff]  ;;  %1573 = vst [vmem:[%s10551_s6 + $0x510] sm:$0xff] %v1572_v34  ;;  %1575 = vst [vmem:[%s10551_s6 + $0x518] sm:$0xff] %v1574_v35  ;;  %v1578_v37 = vld [vmem:[%s10546_s5 + $0xa50] sm:$0xff] }
  0x66   : > { %1577 = vst [vmem:[%s10551_s6 + $0x520] sm:$0xff] %v1576_v36  ;;  %v1580_v38 = vld [vmem:[%s10546_s5 + $0xa60] sm:$0xff]  ;;  %v1582_v39 = vld [vmem:[%s10546_s5 + $0xa70] sm:$0xff]  ;;  %1579 = vst [vmem:[%s10551_s6 + $0x528] sm:$0xff] %v1578_v37 }
  0x67   : > { %1581 = vst [vmem:[%s10551_s6 + $0x530] sm:$0xff] %v1580_v38  ;;  %1583 = vst [vmem:[%s10551_s6 + $0x538] sm:$0xff] %v1582_v39  ;;  %v1584_v40 = vld [vmem:[%s10546_s5 + $0xa80] sm:$0xff]  ;;  %v1586_v41 = vld [vmem:[%s10546_s5 + $0xa90] sm:$0xff] }
  0x68   : > { %v1588_v42 = vld [vmem:[%s10546_s5 + $0xaa0] sm:$0xff]  ;;  %1585 = vst [vmem:[%s10551_s6 + $0x540] sm:$0xff] %v1584_v40  ;;  %1587 = vst [vmem:[%s10551_s6 + $0x548] sm:$0xff] %v1586_v41  ;;  %v1590_v43 = vld [vmem:[%s10546_s5 + $0xab0] sm:$0xff] }
  0x69   : > { %1589 = vst [vmem:[%s10551_s6 + $0x550] sm:$0xff] %v1588_v42  ;;  %v1592_v44 = vld [vmem:[%s10546_s5 + $0xac0] sm:$0xff]  ;;  %v1594_v45 = vld [vmem:[%s10546_s5 + $0xad0] sm:$0xff]  ;;  %1591 = vst [vmem:[%s10551_s6 + $0x558] sm:$0xff] %v1590_v43 }
  0x6a   : > { %1593 = vst [vmem:[%s10551_s6 + $0x560] sm:$0xff] %v1592_v44  ;;  %1595 = vst [vmem:[%s10551_s6 + $0x568] sm:$0xff] %v1594_v45  ;;  %v1596_v46 = vld [vmem:[%s10546_s5 + $0xae0] sm:$0xff]  ;;  %v1598_v47 = vld [vmem:[%s10546_s5 + $0xaf0] sm:$0xff] }
  0x6b   : > { %v1600_v48 = vld [vmem:[%s10546_s5 + $0xb00] sm:$0xff]  ;;  %1597 = vst [vmem:[%s10551_s6 + $0x570] sm:$0xff] %v1596_v46  ;;  %1599 = vst [vmem:[%s10551_s6 + $0x578] sm:$0xff] %v1598_v47  ;;  %v1602_v49 = vld [vmem:[%s10546_s5 + $0xb10] sm:$0xff] }
  0x6c   : > { %1601 = vst [vmem:[%s10551_s6 + $0x580] sm:$0xff] %v1600_v48  ;;  %v1604_v50 = vld [vmem:[%s10546_s5 + $0xb20] sm:$0xff]  ;;  %v1606_v51 = vld [vmem:[%s10546_s5 + $0xb30] sm:$0xff]  ;;  %1603 = vst [vmem:[%s10551_s6 + $0x588] sm:$0xff] %v1602_v49 }
  0x6d   : > { %1605 = vst [vmem:[%s10551_s6 + $0x590] sm:$0xff] %v1604_v50  ;;  %1607 = vst [vmem:[%s10551_s6 + $0x598] sm:$0xff] %v1606_v51  ;;  %v1608_v52 = vld [vmem:[%s10546_s5 + $0xb40] sm:$0xff]  ;;  %v1610_v53 = vld [vmem:[%s10546_s5 + $0xb50] sm:$0xff] }
  0x6e   : > { %v1612_v54 = vld [vmem:[%s10546_s5 + $0xb60] sm:$0xff]  ;;  %1609 = vst [vmem:[%s10551_s6 + $0x5a0] sm:$0xff] %v1608_v52  ;;  %1611 = vst [vmem:[%s10551_s6 + $0x5a8] sm:$0xff] %v1610_v53  ;;  %v1614_v55 = vld [vmem:[%s10546_s5 + $0xb70] sm:$0xff] }
  0x6f   : > { %1613 = vst [vmem:[%s10551_s6 + $0x5b0] sm:$0xff] %v1612_v54  ;;  %v1616_v56 = vld [vmem:[%s10546_s5 + $0xb80] sm:$0xff]  ;;  %v1618_v57 = vld [vmem:[%s10546_s5 + $0xb90] sm:$0xff]  ;;  %1615 = vst [vmem:[%s10551_s6 + $0x5b8] sm:$0xff] %v1614_v55 }
  0x70   : > { %1617 = vst [vmem:[%s10551_s6 + $0x5c0] sm:$0xff] %v1616_v56  ;;  %1619 = vst [vmem:[%s10551_s6 + $0x5c8] sm:$0xff] %v1618_v57  ;;  %v1620_v58 = vld [vmem:[%s10546_s5 + $0xba0] sm:$0xff]  ;;  %v1622_v59 = vld [vmem:[%s10546_s5 + $0xbb0] sm:$0xff] }
  0x71   : > { %v1624_v60 = vld [vmem:[%s10546_s5 + $0xbc0] sm:$0xff]  ;;  %1621 = vst [vmem:[%s10551_s6 + $0x5d0] sm:$0xff] %v1620_v58  ;;  %1623 = vst [vmem:[%s10551_s6 + $0x5d8] sm:$0xff] %v1622_v59  ;;  %v1626_v61 = vld [vmem:[%s10546_s5 + $0xbd0] sm:$0xff] }
  0x72   : > { %1625 = vst [vmem:[%s10551_s6 + $0x5e0] sm:$0xff] %v1624_v60  ;;  %v1628_v62 = vld [vmem:[%s10546_s5 + $0xbe0] sm:$0xff]  ;;  %v1630_v63 = vld [vmem:[%s10546_s5 + $0xbf0] sm:$0xff]  ;;  %1627 = vst [vmem:[%s10551_s6 + $0x5e8] sm:$0xff] %v1626_v61 }
  0x73   : > { %1629 = vst [vmem:[%s10551_s6 + $0x5f0] sm:$0xff] %v1628_v62  ;;  %1631 = vst [vmem:[%s10551_s6 + $0x5f8] sm:$0xff] %v1630_v63  ;;  %v1632_v0 = vld [vmem:[%s10546_s5 + $0xc00] sm:$0xff]  ;;  %v1634_v1 = vld [vmem:[%s10546_s5 + $0xc10] sm:$0xff] }
  0x74   : > { %v1636_v2 = vld [vmem:[%s10546_s5 + $0xc20] sm:$0xff]  ;;  %1633 = vst [vmem:[%s10551_s6 + $0x600] sm:$0xff] %v1632_v0  ;;  %1635 = vst [vmem:[%s10551_s6 + $0x608] sm:$0xff] %v1634_v1  ;;  %v1638_v3 = vld [vmem:[%s10546_s5 + $0xc30] sm:$0xff] }
  0x75   : > { %1637 = vst [vmem:[%s10551_s6 + $0x610] sm:$0xff] %v1636_v2  ;;  %v1640_v4 = vld [vmem:[%s10546_s5 + $0xc40] sm:$0xff]  ;;  %v1642_v5 = vld [vmem:[%s10546_s5 + $0xc50] sm:$0xff]  ;;  %1639 = vst [vmem:[%s10551_s6 + $0x618] sm:$0xff] %v1638_v3 }
  0x76   : > { %1641 = vst [vmem:[%s10551_s6 + $0x620] sm:$0xff] %v1640_v4  ;;  %1643 = vst [vmem:[%s10551_s6 + $0x628] sm:$0xff] %v1642_v5  ;;  %v1644_v6 = vld [vmem:[%s10546_s5 + $0xc60] sm:$0xff]  ;;  %v1646_v7 = vld [vmem:[%s10546_s5 + $0xc70] sm:$0xff] }
  0x77   : > { %v1648_v8 = vld [vmem:[%s10546_s5 + $0xc80] sm:$0xff]  ;;  %1645 = vst [vmem:[%s10551_s6 + $0x630] sm:$0xff] %v1644_v6  ;;  %1647 = vst [vmem:[%s10551_s6 + $0x638] sm:$0xff] %v1646_v7  ;;  %v1650_v9 = vld [vmem:[%s10546_s5 + $0xc90] sm:$0xff] }
  0x78   : > { %1649 = vst [vmem:[%s10551_s6 + $0x640] sm:$0xff] %v1648_v8  ;;  %v1652_v10 = vld [vmem:[%s10546_s5 + $0xca0] sm:$0xff]  ;;  %v1654_v11 = vld [vmem:[%s10546_s5 + $0xcb0] sm:$0xff]  ;;  %1651 = vst [vmem:[%s10551_s6 + $0x648] sm:$0xff] %v1650_v9 }
  0x79   : > { %1653 = vst [vmem:[%s10551_s6 + $0x650] sm:$0xff] %v1652_v10  ;;  %1655 = vst [vmem:[%s10551_s6 + $0x658] sm:$0xff] %v1654_v11  ;;  %v1656_v12 = vld [vmem:[%s10546_s5 + $0xcc0] sm:$0xff]  ;;  %v1658_v13 = vld [vmem:[%s10546_s5 + $0xcd0] sm:$0xff] }
  0x7a   : > { %v1660_v14 = vld [vmem:[%s10546_s5 + $0xce0] sm:$0xff]  ;;  %1657 = vst [vmem:[%s10551_s6 + $0x660] sm:$0xff] %v1656_v12  ;;  %1659 = vst [vmem:[%s10551_s6 + $0x668] sm:$0xff] %v1658_v13  ;;  %v1662_v15 = vld [vmem:[%s10546_s5 + $0xcf0] sm:$0xff] }
  0x7b   : > { %1661 = vst [vmem:[%s10551_s6 + $0x670] sm:$0xff] %v1660_v14  ;;  %v1664_v16 = vld [vmem:[%s10546_s5 + $0xd00] sm:$0xff]  ;;  %v1666_v17 = vld [vmem:[%s10546_s5 + $0xd10] sm:$0xff]  ;;  %1663 = vst [vmem:[%s10551_s6 + $0x678] sm:$0xff] %v1662_v15 }
  0x7c   : > { %1665 = vst [vmem:[%s10551_s6 + $0x680] sm:$0xff] %v1664_v16  ;;  %1667 = vst [vmem:[%s10551_s6 + $0x688] sm:$0xff] %v1666_v17  ;;  %v1668_v18 = vld [vmem:[%s10546_s5 + $0xd20] sm:$0xff]  ;;  %v1670_v19 = vld [vmem:[%s10546_s5 + $0xd30] sm:$0xff] }
  0x7d   : > { %v1672_v20 = vld [vmem:[%s10546_s5 + $0xd40] sm:$0xff]  ;;  %1669 = vst [vmem:[%s10551_s6 + $0x690] sm:$0xff] %v1668_v18  ;;  %1671 = vst [vmem:[%s10551_s6 + $0x698] sm:$0xff] %v1670_v19  ;;  %v1674_v21 = vld [vmem:[%s10546_s5 + $0xd50] sm:$0xff] }
  0x7e   : > { %1673 = vst [vmem:[%s10551_s6 + $0x6a0] sm:$0xff] %v1672_v20  ;;  %v1676_v22 = vld [vmem:[%s10546_s5 + $0xd60] sm:$0xff]  ;;  %v1678_v23 = vld [vmem:[%s10546_s5 + $0xd70] sm:$0xff]  ;;  %1675 = vst [vmem:[%s10551_s6 + $0x6a8] sm:$0xff] %v1674_v21 }
  0x7f   : > { %1677 = vst [vmem:[%s10551_s6 + $0x6b0] sm:$0xff] %v1676_v22  ;;  %1679 = vst [vmem:[%s10551_s6 + $0x6b8] sm:$0xff] %v1678_v23  ;;  %v1680_v24 = vld [vmem:[%s10546_s5 + $0xd80] sm:$0xff]  ;;  %v1682_v25 = vld [vmem:[%s10546_s5 + $0xd90] sm:$0xff] }
  0x80   : > { %v1684_v26 = vld [vmem:[%s10546_s5 + $0xda0] sm:$0xff]  ;;  %1681 = vst [vmem:[%s10551_s6 + $0x6c0] sm:$0xff] %v1680_v24  ;;  %1683 = vst [vmem:[%s10551_s6 + $0x6c8] sm:$0xff] %v1682_v25  ;;  %v1686_v27 = vld [vmem:[%s10546_s5 + $0xdb0] sm:$0xff] }
  0x81   : > { %1685 = vst [vmem:[%s10551_s6 + $0x6d0] sm:$0xff] %v1684_v26  ;;  %v1688_v28 = vld [vmem:[%s10546_s5 + $0xdc0] sm:$0xff]  ;;  %v1690_v29 = vld [vmem:[%s10546_s5 + $0xdd0] sm:$0xff]  ;;  %1687 = vst [vmem:[%s10551_s6 + $0x6d8] sm:$0xff] %v1686_v27 }
  0x82   : > { %1689 = vst [vmem:[%s10551_s6 + $0x6e0] sm:$0xff] %v1688_v28  ;;  %1691 = vst [vmem:[%s10551_s6 + $0x6e8] sm:$0xff] %v1690_v29  ;;  %v1692_v30 = vld [vmem:[%s10546_s5 + $0xde0] sm:$0xff]  ;;  %v1694_v31 = vld [vmem:[%s10546_s5 + $0xdf0] sm:$0xff] }
  0x83   : > { %v1696_v32 = vld [vmem:[%s10546_s5 + $0xe00] sm:$0xff]  ;;  %1693 = vst [vmem:[%s10551_s6 + $0x6f0] sm:$0xff] %v1692_v30  ;;  %1695 = vst [vmem:[%s10551_s6 + $0x6f8] sm:$0xff] %v1694_v31  ;;  %v1698_v33 = vld [vmem:[%s10546_s5 + $0xe10] sm:$0xff] }
  0x84   : > { %1697 = vst [vmem:[%s10551_s6 + $0x700] sm:$0xff] %v1696_v32  ;;  %v1700_v34 = vld [vmem:[%s10546_s5 + $0xe20] sm:$0xff]  ;;  %v1702_v35 = vld [vmem:[%s10546_s5 + $0xe30] sm:$0xff]  ;;  %1699 = vst [vmem:[%s10551_s6 + $0x708] sm:$0xff] %v1698_v33 }
  0x85   : > { %1701 = vst [vmem:[%s10551_s6 + $0x710] sm:$0xff] %v1700_v34  ;;  %1703 = vst [vmem:[%s10551_s6 + $0x718] sm:$0xff] %v1702_v35  ;;  %v1704_v36 = vld [vmem:[%s10546_s5 + $0xe40] sm:$0xff]  ;;  %v1706_v37 = vld [vmem:[%s10546_s5 + $0xe50] sm:$0xff] }
  0x86   : > { %v1708_v38 = vld [vmem:[%s10546_s5 + $0xe60] sm:$0xff]  ;;  %1705 = vst [vmem:[%s10551_s6 + $0x720] sm:$0xff] %v1704_v36  ;;  %1707 = vst [vmem:[%s10551_s6 + $0x728] sm:$0xff] %v1706_v37  ;;  %v1710_v39 = vld [vmem:[%s10546_s5 + $0xe70] sm:$0xff] }
  0x87   : > { %1709 = vst [vmem:[%s10551_s6 + $0x730] sm:$0xff] %v1708_v38  ;;  %v1712_v40 = vld [vmem:[%s10546_s5 + $0xe80] sm:$0xff]  ;;  %v1714_v41 = vld [vmem:[%s10546_s5 + $0xe90] sm:$0xff]  ;;  %1711 = vst [vmem:[%s10551_s6 + $0x738] sm:$0xff] %v1710_v39 }
  0x88   : > { %1713 = vst [vmem:[%s10551_s6 + $0x740] sm:$0xff] %v1712_v40  ;;  %1715 = vst [vmem:[%s10551_s6 + $0x748] sm:$0xff] %v1714_v41  ;;  %v1716_v42 = vld [vmem:[%s10546_s5 + $0xea0] sm:$0xff]  ;;  %v1718_v43 = vld [vmem:[%s10546_s5 + $0xeb0] sm:$0xff] }
  0x89   : > { %v1720_v44 = vld [vmem:[%s10546_s5 + $0xec0] sm:$0xff]  ;;  %1717 = vst [vmem:[%s10551_s6 + $0x750] sm:$0xff] %v1716_v42  ;;  %1719 = vst [vmem:[%s10551_s6 + $0x758] sm:$0xff] %v1718_v43  ;;  %v1722_v45 = vld [vmem:[%s10546_s5 + $0xed0] sm:$0xff] }
  0x8a   : > { %1721 = vst [vmem:[%s10551_s6 + $0x760] sm:$0xff] %v1720_v44  ;;  %v1724_v46 = vld [vmem:[%s10546_s5 + $0xee0] sm:$0xff]  ;;  %v1726_v47 = vld [vmem:[%s10546_s5 + $0xef0] sm:$0xff]  ;;  %1723 = vst [vmem:[%s10551_s6 + $0x768] sm:$0xff] %v1722_v45 }
  0x8b   : > { %1725 = vst [vmem:[%s10551_s6 + $0x770] sm:$0xff] %v1724_v46  ;;  %1727 = vst [vmem:[%s10551_s6 + $0x778] sm:$0xff] %v1726_v47  ;;  %v1728_v48 = vld [vmem:[%s10546_s5 + $0xf00] sm:$0xff]  ;;  %v1730_v49 = vld [vmem:[%s10546_s5 + $0xf10] sm:$0xff] }
  0x8c   : > { %v1732_v50 = vld [vmem:[%s10546_s5 + $0xf20] sm:$0xff]  ;;  %1729 = vst [vmem:[%s10551_s6 + $0x780] sm:$0xff] %v1728_v48  ;;  %1731 = vst [vmem:[%s10551_s6 + $0x788] sm:$0xff] %v1730_v49  ;;  %v1734_v51 = vld [vmem:[%s10546_s5 + $0xf30] sm:$0xff] }
  0x8d   : > { %1733 = vst [vmem:[%s10551_s6 + $0x790] sm:$0xff] %v1732_v50  ;;  %v1736_v52 = vld [vmem:[%s10546_s5 + $0xf40] sm:$0xff]  ;;  %v1738_v53 = vld [vmem:[%s10546_s5 + $0xf50] sm:$0xff]  ;;  %1735 = vst [vmem:[%s10551_s6 + $0x798] sm:$0xff] %v1734_v51 }
  0x8e   : > { %1737 = vst [vmem:[%s10551_s6 + $0x7a0] sm:$0xff] %v1736_v52  ;;  %1739 = vst [vmem:[%s10551_s6 + $0x7a8] sm:$0xff] %v1738_v53  ;;  %v1740_v54 = vld [vmem:[%s10546_s5 + $0xf60] sm:$0xff]  ;;  %v1742_v55 = vld [vmem:[%s10546_s5 + $0xf70] sm:$0xff] }
  0x8f   : > { %v1744_v56 = vld [vmem:[%s10546_s5 + $0xf80] sm:$0xff]  ;;  %1741 = vst [vmem:[%s10551_s6 + $0x7b0] sm:$0xff] %v1740_v54  ;;  %1743 = vst [vmem:[%s10551_s6 + $0x7b8] sm:$0xff] %v1742_v55  ;;  %v1746_v57 = vld [vmem:[%s10546_s5 + $0xf90] sm:$0xff] }
  0x90   : > { %1745 = vst [vmem:[%s10551_s6 + $0x7c0] sm:$0xff] %v1744_v56  ;;  %v1748_v58 = vld [vmem:[%s10546_s5 + $0xfa0] sm:$0xff]  ;;  %v1750_v59 = vld [vmem:[%s10546_s5 + $0xfb0] sm:$0xff]  ;;  %1747 = vst [vmem:[%s10551_s6 + $0x7c8] sm:$0xff] %v1746_v57 }
  0x91   : > { %1749 = vst [vmem:[%s10551_s6 + $0x7d0] sm:$0xff] %v1748_v58  ;;  %1751 = vst [vmem:[%s10551_s6 + $0x7d8] sm:$0xff] %v1750_v59  ;;  %v1752_v60 = vld [vmem:[%s10546_s5 + $0xfc0] sm:$0xff]  ;;  %v1754_v61 = vld [vmem:[%s10546_s5 + $0xfd0] sm:$0xff] }
  0x92   : > { %v1756_v62 = vld [vmem:[%s10546_s5 + $0xfe0] sm:$0xff]  ;;  %1753 = vst [vmem:[%s10551_s6 + $0x7e0] sm:$0xff] %v1752_v60  ;;  %1755 = vst [vmem:[%s10551_s6 + $0x7e8] sm:$0xff] %v1754_v61  ;;  %v1758_v63 = vld [vmem:[%s10546_s5 + $0xff0] sm:$0xff] }
  0x93   : > { %1757 = vst [vmem:[%s10551_s6 + $0x7f0] sm:$0xff] %v1756_v62  ;;  %v1760_v0 = vld [vmem:[%s10546_s5 + $0x1000] sm:$0xff]  ;;  %v1762_v1 = vld [vmem:[%s10546_s5 + $0x1010] sm:$0xff]  ;;  %1759 = vst [vmem:[%s10551_s6 + $0x7f8] sm:$0xff] %v1758_v63 }
  0x94   : > { %1761 = vst [vmem:[%s10551_s6 + $0x800] sm:$0xff] %v1760_v0  ;;  %1763 = vst [vmem:[%s10551_s6 + $0x808] sm:$0xff] %v1762_v1  ;;  %v1764_v2 = vld [vmem:[%s10546_s5 + $0x1020] sm:$0xff]  ;;  %v1766_v3 = vld [vmem:[%s10546_s5 + $0x1030] sm:$0xff] }
  0x95   : > { %v1768_v4 = vld [vmem:[%s10546_s5 + $0x1040] sm:$0xff]  ;;  %1765 = vst [vmem:[%s10551_s6 + $0x810] sm:$0xff] %v1764_v2  ;;  %1767 = vst [vmem:[%s10551_s6 + $0x818] sm:$0xff] %v1766_v3  ;;  %v1770_v5 = vld [vmem:[%s10546_s5 + $0x1050] sm:$0xff] }
  0x96   : > { %1769 = vst [vmem:[%s10551_s6 + $0x820] sm:$0xff] %v1768_v4  ;;  %v1772_v6 = vld [vmem:[%s10546_s5 + $0x1060] sm:$0xff]  ;;  %v1774_v7 = vld [vmem:[%s10546_s5 + $0x1070] sm:$0xff]  ;;  %1771 = vst [vmem:[%s10551_s6 + $0x828] sm:$0xff] %v1770_v5 }
  0x97   : > { %1773 = vst [vmem:[%s10551_s6 + $0x830] sm:$0xff] %v1772_v6  ;;  %1775 = vst [vmem:[%s10551_s6 + $0x838] sm:$0xff] %v1774_v7  ;;  %v1776_v8 = vld [vmem:[%s10546_s5 + $0x1080] sm:$0xff]  ;;  %v1778_v9 = vld [vmem:[%s10546_s5 + $0x1090] sm:$0xff] }
  0x98   : > { %v1780_v10 = vld [vmem:[%s10546_s5 + $0x10a0] sm:$0xff]  ;;  %1777 = vst [vmem:[%s10551_s6 + $0x840] sm:$0xff] %v1776_v8  ;;  %1779 = vst [vmem:[%s10551_s6 + $0x848] sm:$0xff] %v1778_v9  ;;  %v1782_v11 = vld [vmem:[%s10546_s5 + $0x10b0] sm:$0xff] }
  0x99   : > { %1781 = vst [vmem:[%s10551_s6 + $0x850] sm:$0xff] %v1780_v10  ;;  %v1784_v12 = vld [vmem:[%s10546_s5 + $0x10c0] sm:$0xff]  ;;  %v1786_v13 = vld [vmem:[%s10546_s5 + $0x10d0] sm:$0xff]  ;;  %1783 = vst [vmem:[%s10551_s6 + $0x858] sm:$0xff] %v1782_v11 }
  0x9a   : > { %1785 = vst [vmem:[%s10551_s6 + $0x860] sm:$0xff] %v1784_v12  ;;  %1787 = vst [vmem:[%s10551_s6 + $0x868] sm:$0xff] %v1786_v13  ;;  %v1788_v14 = vld [vmem:[%s10546_s5 + $0x10e0] sm:$0xff]  ;;  %v1790_v15 = vld [vmem:[%s10546_s5 + $0x10f0] sm:$0xff] }
  0x9b   : > { %v1792_v16 = vld [vmem:[%s10546_s5 + $0x1100] sm:$0xff]  ;;  %1789 = vst [vmem:[%s10551_s6 + $0x870] sm:$0xff] %v1788_v14  ;;  %1791 = vst [vmem:[%s10551_s6 + $0x878] sm:$0xff] %v1790_v15  ;;  %v1794_v17 = vld [vmem:[%s10546_s5 + $0x1110] sm:$0xff] }
  0x9c   : > { %1793 = vst [vmem:[%s10551_s6 + $0x880] sm:$0xff] %v1792_v16  ;;  %v1796_v18 = vld [vmem:[%s10546_s5 + $0x1120] sm:$0xff]  ;;  %v1798_v19 = vld [vmem:[%s10546_s5 + $0x1130] sm:$0xff]  ;;  %1795 = vst [vmem:[%s10551_s6 + $0x888] sm:$0xff] %v1794_v17 }
  0x9d   : > { %1797 = vst [vmem:[%s10551_s6 + $0x890] sm:$0xff] %v1796_v18  ;;  %1799 = vst [vmem:[%s10551_s6 + $0x898] sm:$0xff] %v1798_v19  ;;  %v1800_v20 = vld [vmem:[%s10546_s5 + $0x1140] sm:$0xff]  ;;  %v1802_v21 = vld [vmem:[%s10546_s5 + $0x1150] sm:$0xff] }
  0x9e   : > { %v1804_v22 = vld [vmem:[%s10546_s5 + $0x1160] sm:$0xff]  ;;  %1801 = vst [vmem:[%s10551_s6 + $0x8a0] sm:$0xff] %v1800_v20  ;;  %1803 = vst [vmem:[%s10551_s6 + $0x8a8] sm:$0xff] %v1802_v21  ;;  %v1806_v23 = vld [vmem:[%s10546_s5 + $0x1170] sm:$0xff] }
  0x9f   : > { %1805 = vst [vmem:[%s10551_s6 + $0x8b0] sm:$0xff] %v1804_v22  ;;  %v1808_v24 = vld [vmem:[%s10546_s5 + $0x1180] sm:$0xff]  ;;  %v1810_v25 = vld [vmem:[%s10546_s5 + $0x1190] sm:$0xff]  ;;  %1807 = vst [vmem:[%s10551_s6 + $0x8b8] sm:$0xff] %v1806_v23 }
  0xa0   : > { %1809 = vst [vmem:[%s10551_s6 + $0x8c0] sm:$0xff] %v1808_v24  ;;  %1811 = vst [vmem:[%s10551_s6 + $0x8c8] sm:$0xff] %v1810_v25  ;;  %v1812_v26 = vld [vmem:[%s10546_s5 + $0x11a0] sm:$0xff]  ;;  %v1814_v27 = vld [vmem:[%s10546_s5 + $0x11b0] sm:$0xff] }
  0xa1   : > { %v1816_v28 = vld [vmem:[%s10546_s5 + $0x11c0] sm:$0xff]  ;;  %1813 = vst [vmem:[%s10551_s6 + $0x8d0] sm:$0xff] %v1812_v26  ;;  %1815 = vst [vmem:[%s10551_s6 + $0x8d8] sm:$0xff] %v1814_v27  ;;  %v1818_v29 = vld [vmem:[%s10546_s5 + $0x11d0] sm:$0xff] }
  0xa2   : > { %1817 = vst [vmem:[%s10551_s6 + $0x8e0] sm:$0xff] %v1816_v28  ;;  %v1820_v30 = vld [vmem:[%s10546_s5 + $0x11e0] sm:$0xff]  ;;  %v1822_v31 = vld [vmem:[%s10546_s5 + $0x11f0] sm:$0xff]  ;;  %1819 = vst [vmem:[%s10551_s6 + $0x8e8] sm:$0xff] %v1818_v29 }
  0xa3   : > { %1821 = vst [vmem:[%s10551_s6 + $0x8f0] sm:$0xff] %v1820_v30  ;;  %1823 = vst [vmem:[%s10551_s6 + $0x8f8] sm:$0xff] %v1822_v31  ;;  %v1824_v32 = vld [vmem:[%s10546_s5 + $0x1200] sm:$0xff]  ;;  %v1826_v33 = vld [vmem:[%s10546_s5 + $0x1210] sm:$0xff] }
  0xa4   : > { %v1828_v34 = vld [vmem:[%s10546_s5 + $0x1220] sm:$0xff]  ;;  %1825 = vst [vmem:[%s10551_s6 + $0x900] sm:$0xff] %v1824_v32  ;;  %1827 = vst [vmem:[%s10551_s6 + $0x908] sm:$0xff] %v1826_v33  ;;  %v1830_v35 = vld [vmem:[%s10546_s5 + $0x1230] sm:$0xff] }
  0xa5   : > { %1829 = vst [vmem:[%s10551_s6 + $0x910] sm:$0xff] %v1828_v34  ;;  %v1832_v36 = vld [vmem:[%s10546_s5 + $0x1240] sm:$0xff]  ;;  %v1834_v37 = vld [vmem:[%s10546_s5 + $0x1250] sm:$0xff]  ;;  %1831 = vst [vmem:[%s10551_s6 + $0x918] sm:$0xff] %v1830_v35 }
  0xa6   : > { %1833 = vst [vmem:[%s10551_s6 + $0x920] sm:$0xff] %v1832_v36  ;;  %1835 = vst [vmem:[%s10551_s6 + $0x928] sm:$0xff] %v1834_v37  ;;  %v1836_v38 = vld [vmem:[%s10546_s5 + $0x1260] sm:$0xff]  ;;  %v1838_v39 = vld [vmem:[%s10546_s5 + $0x1270] sm:$0xff] }
  0xa7   : > { %v1840_v40 = vld [vmem:[%s10546_s5 + $0x1280] sm:$0xff]  ;;  %1837 = vst [vmem:[%s10551_s6 + $0x930] sm:$0xff] %v1836_v38  ;;  %1839 = vst [vmem:[%s10551_s6 + $0x938] sm:$0xff] %v1838_v39  ;;  %v1842_v41 = vld [vmem:[%s10546_s5 + $0x1290] sm:$0xff] }
  0xa8   : > { %1841 = vst [vmem:[%s10551_s6 + $0x940] sm:$0xff] %v1840_v40  ;;  %v1844_v42 = vld [vmem:[%s10546_s5 + $0x12a0] sm:$0xff]  ;;  %v1846_v43 = vld [vmem:[%s10546_s5 + $0x12b0] sm:$0xff]  ;;  %1843 = vst [vmem:[%s10551_s6 + $0x948] sm:$0xff] %v1842_v41 }
  0xa9   : > { %1845 = vst [vmem:[%s10551_s6 + $0x950] sm:$0xff] %v1844_v42  ;;  %1847 = vst [vmem:[%s10551_s6 + $0x958] sm:$0xff] %v1846_v43  ;;  %v1848_v44 = vld [vmem:[%s10546_s5 + $0x12c0] sm:$0xff]  ;;  %v1850_v45 = vld [vmem:[%s10546_s5 + $0x12d0] sm:$0xff] }
  0xaa   : > { %v1852_v46 = vld [vmem:[%s10546_s5 + $0x12e0] sm:$0xff]  ;;  %1849 = vst [vmem:[%s10551_s6 + $0x960] sm:$0xff] %v1848_v44  ;;  %1851 = vst [vmem:[%s10551_s6 + $0x968] sm:$0xff] %v1850_v45  ;;  %v1854_v47 = vld [vmem:[%s10546_s5 + $0x12f0] sm:$0xff] }
  0xab   : > { %1853 = vst [vmem:[%s10551_s6 + $0x970] sm:$0xff] %v1852_v46  ;;  %v1856_v48 = vld [vmem:[%s10546_s5 + $0x1300] sm:$0xff]  ;;  %v1858_v49 = vld [vmem:[%s10546_s5 + $0x1310] sm:$0xff]  ;;  %1855 = vst [vmem:[%s10551_s6 + $0x978] sm:$0xff] %v1854_v47 }
  0xac   : > { %1857 = vst [vmem:[%s10551_s6 + $0x980] sm:$0xff] %v1856_v48  ;;  %1859 = vst [vmem:[%s10551_s6 + $0x988] sm:$0xff] %v1858_v49  ;;  %v1860_v50 = vld [vmem:[%s10546_s5 + $0x1320] sm:$0xff]  ;;  %v1862_v51 = vld [vmem:[%s10546_s5 + $0x1330] sm:$0xff] }
  0xad   : > { %v1864_v52 = vld [vmem:[%s10546_s5 + $0x1340] sm:$0xff]  ;;  %1861 = vst [vmem:[%s10551_s6 + $0x990] sm:$0xff] %v1860_v50  ;;  %1863 = vst [vmem:[%s10551_s6 + $0x998] sm:$0xff] %v1862_v51  ;;  %v1866_v53 = vld [vmem:[%s10546_s5 + $0x1350] sm:$0xff] }
  0xae   : > { %1865 = vst [vmem:[%s10551_s6 + $0x9a0] sm:$0xff] %v1864_v52  ;;  %v1868_v54 = vld [vmem:[%s10546_s5 + $0x1360] sm:$0xff]  ;;  %v1870_v55 = vld [vmem:[%s10546_s5 + $0x1370] sm:$0xff]  ;;  %1867 = vst [vmem:[%s10551_s6 + $0x9a8] sm:$0xff] %v1866_v53 }
  0xaf   : > { %1869 = vst [vmem:[%s10551_s6 + $0x9b0] sm:$0xff] %v1868_v54  ;;  %1871 = vst [vmem:[%s10551_s6 + $0x9b8] sm:$0xff] %v1870_v55  ;;  %v1872_v56 = vld [vmem:[%s10546_s5 + $0x1380] sm:$0xff]  ;;  %v1874_v57 = vld [vmem:[%s10546_s5 + $0x1390] sm:$0xff] }
  0xb0   : > { %v1876_v58 = vld [vmem:[%s10546_s5 + $0x13a0] sm:$0xff]  ;;  %1873 = vst [vmem:[%s10551_s6 + $0x9c0] sm:$0xff] %v1872_v56  ;;  %1875 = vst [vmem:[%s10551_s6 + $0x9c8] sm:$0xff] %v1874_v57  ;;  %v1878_v59 = vld [vmem:[%s10546_s5 + $0x13b0] sm:$0xff] }
  0xb1   : > { %1877 = vst [vmem:[%s10551_s6 + $0x9d0] sm:$0xff] %v1876_v58  ;;  %v1880_v60 = vld [vmem:[%s10546_s5 + $0x13c0] sm:$0xff]  ;;  %v1882_v61 = vld [vmem:[%s10546_s5 + $0x13d0] sm:$0xff]  ;;  %1879 = vst [vmem:[%s10551_s6 + $0x9d8] sm:$0xff] %v1878_v59 }
  0xb2   : > { %1881 = vst [vmem:[%s10551_s6 + $0x9e0] sm:$0xff] %v1880_v60  ;;  %1883 = vst [vmem:[%s10551_s6 + $0x9e8] sm:$0xff] %v1882_v61  ;;  %v1884_v62 = vld [vmem:[%s10546_s5 + $0x13e0] sm:$0xff]  ;;  %v1886_v63 = vld [vmem:[%s10546_s5 + $0x13f0] sm:$0xff] }
  0xb3   : > { %v1888_v0 = vld [vmem:[%s10546_s5 + $0x1400] sm:$0xff]  ;;  %1885 = vst [vmem:[%s10551_s6 + $0x9f0] sm:$0xff] %v1884_v62  ;;  %1887 = vst [vmem:[%s10551_s6 + $0x9f8] sm:$0xff] %v1886_v63  ;;  %v1890_v1 = vld [vmem:[%s10546_s5 + $0x1410] sm:$0xff] }
  0xb4   : > { %1889 = vst [vmem:[%s10551_s6 + $0xa00] sm:$0xff] %v1888_v0  ;;  %v1892_v2 = vld [vmem:[%s10546_s5 + $0x1420] sm:$0xff]  ;;  %v1894_v3 = vld [vmem:[%s10546_s5 + $0x1430] sm:$0xff]  ;;  %1891 = vst [vmem:[%s10551_s6 + $0xa08] sm:$0xff] %v1890_v1 }
  0xb5   : > { %1893 = vst [vmem:[%s10551_s6 + $0xa10] sm:$0xff] %v1892_v2  ;;  %1895 = vst [vmem:[%s10551_s6 + $0xa18] sm:$0xff] %v1894_v3  ;;  %v1896_v4 = vld [vmem:[%s10546_s5 + $0x1440] sm:$0xff]  ;;  %v1898_v5 = vld [vmem:[%s10546_s5 + $0x1450] sm:$0xff] }
  0xb6   : > { %v1900_v6 = vld [vmem:[%s10546_s5 + $0x1460] sm:$0xff]  ;;  %1897 = vst [vmem:[%s10551_s6 + $0xa20] sm:$0xff] %v1896_v4  ;;  %1899 = vst [vmem:[%s10551_s6 + $0xa28] sm:$0xff] %v1898_v5  ;;  %v1902_v7 = vld [vmem:[%s10546_s5 + $0x1470] sm:$0xff] }
  0xb7   : > { %1901 = vst [vmem:[%s10551_s6 + $0xa30] sm:$0xff] %v1900_v6  ;;  %v1904_v8 = vld [vmem:[%s10546_s5 + $0x1480] sm:$0xff]  ;;  %v1906_v9 = vld [vmem:[%s10546_s5 + $0x1490] sm:$0xff]  ;;  %1903 = vst [vmem:[%s10551_s6 + $0xa38] sm:$0xff] %v1902_v7 }
  0xb8   : > { %1905 = vst [vmem:[%s10551_s6 + $0xa40] sm:$0xff] %v1904_v8  ;;  %1907 = vst [vmem:[%s10551_s6 + $0xa48] sm:$0xff] %v1906_v9  ;;  %v1908_v10 = vld [vmem:[%s10546_s5 + $0x14a0] sm:$0xff]  ;;  %v1910_v11 = vld [vmem:[%s10546_s5 + $0x14b0] sm:$0xff] }
  0xb9   : > { %v1912_v12 = vld [vmem:[%s10546_s5 + $0x14c0] sm:$0xff]  ;;  %1909 = vst [vmem:[%s10551_s6 + $0xa50] sm:$0xff] %v1908_v10  ;;  %1911 = vst [vmem:[%s10551_s6 + $0xa58] sm:$0xff] %v1910_v11  ;;  %v1914_v13 = vld [vmem:[%s10546_s5 + $0x14d0] sm:$0xff] }
  0xba   : > { %1913 = vst [vmem:[%s10551_s6 + $0xa60] sm:$0xff] %v1912_v12  ;;  %v1916_v14 = vld [vmem:[%s10546_s5 + $0x14e0] sm:$0xff]  ;;  %v1918_v15 = vld [vmem:[%s10546_s5 + $0x14f0] sm:$0xff]  ;;  %1915 = vst [vmem:[%s10551_s6 + $0xa68] sm:$0xff] %v1914_v13 }
  0xbb   : > { %1917 = vst [vmem:[%s10551_s6 + $0xa70] sm:$0xff] %v1916_v14  ;;  %1919 = vst [vmem:[%s10551_s6 + $0xa78] sm:$0xff] %v1918_v15  ;;  %v1920_v16 = vld [vmem:[%s10546_s5 + $0x1500] sm:$0xff]  ;;  %v1922_v17 = vld [vmem:[%s10546_s5 + $0x1510] sm:$0xff] }
  0xbc   : > { %v1924_v18 = vld [vmem:[%s10546_s5 + $0x1520] sm:$0xff]  ;;  %1921 = vst [vmem:[%s10551_s6 + $0xa80] sm:$0xff] %v1920_v16  ;;  %1923 = vst [vmem:[%s10551_s6 + $0xa88] sm:$0xff] %v1922_v17  ;;  %v1926_v19 = vld [vmem:[%s10546_s5 + $0x1530] sm:$0xff] }
  0xbd   : > { %1925 = vst [vmem:[%s10551_s6 + $0xa90] sm:$0xff] %v1924_v18  ;;  %v1928_v20 = vld [vmem:[%s10546_s5 + $0x1540] sm:$0xff]  ;;  %v1930_v21 = vld [vmem:[%s10546_s5 + $0x1550] sm:$0xff]  ;;  %1927 = vst [vmem:[%s10551_s6 + $0xa98] sm:$0xff] %v1926_v19 }
  0xbe   : > { %1929 = vst [vmem:[%s10551_s6 + $0xaa0] sm:$0xff] %v1928_v20  ;;  %1931 = vst [vmem:[%s10551_s6 + $0xaa8] sm:$0xff] %v1930_v21  ;;  %v1932_v22 = vld [vmem:[%s10546_s5 + $0x1560] sm:$0xff]  ;;  %v1934_v23 = vld [vmem:[%s10546_s5 + $0x1570] sm:$0xff] }
  0xbf   : > { %v1936_v24 = vld [vmem:[%s10546_s5 + $0x1580] sm:$0xff]  ;;  %1933 = vst [vmem:[%s10551_s6 + $0xab0] sm:$0xff] %v1932_v22  ;;  %1935 = vst [vmem:[%s10551_s6 + $0xab8] sm:$0xff] %v1934_v23  ;;  %v1938_v25 = vld [vmem:[%s10546_s5 + $0x1590] sm:$0xff] }
  0xc0   : > { %1937 = vst [vmem:[%s10551_s6 + $0xac0] sm:$0xff] %v1936_v24  ;;  %v1940_v26 = vld [vmem:[%s10546_s5 + $0x15a0] sm:$0xff]  ;;  %v1942_v27 = vld [vmem:[%s10546_s5 + $0x15b0] sm:$0xff]  ;;  %1939 = vst [vmem:[%s10551_s6 + $0xac8] sm:$0xff] %v1938_v25 }
  0xc1   : > { %1941 = vst [vmem:[%s10551_s6 + $0xad0] sm:$0xff] %v1940_v26  ;;  %1943 = vst [vmem:[%s10551_s6 + $0xad8] sm:$0xff] %v1942_v27  ;;  %v1944_v28 = vld [vmem:[%s10546_s5 + $0x15c0] sm:$0xff]  ;;  %v1946_v29 = vld [vmem:[%s10546_s5 + $0x15d0] sm:$0xff] }
  0xc2   : > { %v1948_v30 = vld [vmem:[%s10546_s5 + $0x15e0] sm:$0xff]  ;;  %1945 = vst [vmem:[%s10551_s6 + $0xae0] sm:$0xff] %v1944_v28  ;;  %1947 = vst [vmem:[%s10551_s6 + $0xae8] sm:$0xff] %v1946_v29  ;;  %v1950_v31 = vld [vmem:[%s10546_s5 + $0x15f0] sm:$0xff] }
  0xc3   : > { %1949 = vst [vmem:[%s10551_s6 + $0xaf0] sm:$0xff] %v1948_v30  ;;  %v1952_v32 = vld [vmem:[%s10546_s5 + $0x1600] sm:$0xff]  ;;  %v1954_v33 = vld [vmem:[%s10546_s5 + $0x1610] sm:$0xff]  ;;  %1951 = vst [vmem:[%s10551_s6 + $0xaf8] sm:$0xff] %v1950_v31 }
  0xc4   : > { %1953 = vst [vmem:[%s10551_s6 + $0xb00] sm:$0xff] %v1952_v32  ;;  %1955 = vst [vmem:[%s10551_s6 + $0xb08] sm:$0xff] %v1954_v33  ;;  %v1956_v34 = vld [vmem:[%s10546_s5 + $0x1620] sm:$0xff]  ;;  %v1958_v35 = vld [vmem:[%s10546_s5 + $0x1630] sm:$0xff] }
  0xc5   : > { %v1960_v36 = vld [vmem:[%s10546_s5 + $0x1640] sm:$0xff]  ;;  %1957 = vst [vmem:[%s10551_s6 + $0xb10] sm:$0xff] %v1956_v34  ;;  %1959 = vst [vmem:[%s10551_s6 + $0xb18] sm:$0xff] %v1958_v35  ;;  %v1962_v37 = vld [vmem:[%s10546_s5 + $0x1650] sm:$0xff] }
  0xc6   : > { %1961 = vst [vmem:[%s10551_s6 + $0xb20] sm:$0xff] %v1960_v36  ;;  %v1964_v38 = vld [vmem:[%s10546_s5 + $0x1660] sm:$0xff]  ;;  %v1966_v39 = vld [vmem:[%s10546_s5 + $0x1670] sm:$0xff]  ;;  %1963 = vst [vmem:[%s10551_s6 + $0xb28] sm:$0xff] %v1962_v37 }
  0xc7   : > { %1965 = vst [vmem:[%s10551_s6 + $0xb30] sm:$0xff] %v1964_v38  ;;  %1967 = vst [vmem:[%s10551_s6 + $0xb38] sm:$0xff] %v1966_v39  ;;  %v1968_v40 = vld [vmem:[%s10546_s5 + $0x1680] sm:$0xff]  ;;  %v1970_v41 = vld [vmem:[%s10546_s5 + $0x1690] sm:$0xff] }
  0xc8   : > { %v1972_v42 = vld [vmem:[%s10546_s5 + $0x16a0] sm:$0xff]  ;;  %1969 = vst [vmem:[%s10551_s6 + $0xb40] sm:$0xff] %v1968_v40  ;;  %1971 = vst [vmem:[%s10551_s6 + $0xb48] sm:$0xff] %v1970_v41  ;;  %v1974_v43 = vld [vmem:[%s10546_s5 + $0x16b0] sm:$0xff] }
  0xc9   : > { %1973 = vst [vmem:[%s10551_s6 + $0xb50] sm:$0xff] %v1972_v42  ;;  %v1976_v44 = vld [vmem:[%s10546_s5 + $0x16c0] sm:$0xff]  ;;  %v1978_v45 = vld [vmem:[%s10546_s5 + $0x16d0] sm:$0xff]  ;;  %1975 = vst [vmem:[%s10551_s6 + $0xb58] sm:$0xff] %v1974_v43 }
  0xca   : > { %1977 = vst [vmem:[%s10551_s6 + $0xb60] sm:$0xff] %v1976_v44  ;;  %1979 = vst [vmem:[%s10551_s6 + $0xb68] sm:$0xff] %v1978_v45  ;;  %v1980_v46 = vld [vmem:[%s10546_s5 + $0x16e0] sm:$0xff]  ;;  %v1982_v47 = vld [vmem:[%s10546_s5 + $0x16f0] sm:$0xff] }
  0xcb   : > { %v1984_v48 = vld [vmem:[%s10546_s5 + $0x1700] sm:$0xff]  ;;  %1981 = vst [vmem:[%s10551_s6 + $0xb70] sm:$0xff] %v1980_v46  ;;  %1983 = vst [vmem:[%s10551_s6 + $0xb78] sm:$0xff] %v1982_v47  ;;  %v1986_v49 = vld [vmem:[%s10546_s5 + $0x1710] sm:$0xff] }
  0xcc   : > { %1985 = vst [vmem:[%s10551_s6 + $0xb80] sm:$0xff] %v1984_v48  ;;  %v1988_v50 = vld [vmem:[%s10546_s5 + $0x1720] sm:$0xff]  ;;  %v1990_v51 = vld [vmem:[%s10546_s5 + $0x1730] sm:$0xff]  ;;  %1987 = vst [vmem:[%s10551_s6 + $0xb88] sm:$0xff] %v1986_v49 }
  0xcd   : > { %1989 = vst [vmem:[%s10551_s6 + $0xb90] sm:$0xff] %v1988_v50  ;;  %1991 = vst [vmem:[%s10551_s6 + $0xb98] sm:$0xff] %v1990_v51  ;;  %v1992_v52 = vld [vmem:[%s10546_s5 + $0x1740] sm:$0xff]  ;;  %v1994_v53 = vld [vmem:[%s10546_s5 + $0x1750] sm:$0xff] }
  0xce   : > { %v1996_v54 = vld [vmem:[%s10546_s5 + $0x1760] sm:$0xff]  ;;  %1993 = vst [vmem:[%s10551_s6 + $0xba0] sm:$0xff] %v1992_v52  ;;  %1995 = vst [vmem:[%s10551_s6 + $0xba8] sm:$0xff] %v1994_v53  ;;  %v1998_v55 = vld [vmem:[%s10546_s5 + $0x1770] sm:$0xff] }
  0xcf   : > { %1997 = vst [vmem:[%s10551_s6 + $0xbb0] sm:$0xff] %v1996_v54  ;;  %v2000_v56 = vld [vmem:[%s10546_s5 + $0x1780] sm:$0xff]  ;;  %v2002_v57 = vld [vmem:[%s10546_s5 + $0x1790] sm:$0xff]  ;;  %1999 = vst [vmem:[%s10551_s6 + $0xbb8] sm:$0xff] %v1998_v55 }
  0xd0   : > { %2001 = vst [vmem:[%s10551_s6 + $0xbc0] sm:$0xff] %v2000_v56  ;;  %2003 = vst [vmem:[%s10551_s6 + $0xbc8] sm:$0xff] %v2002_v57  ;;  %v2004_v58 = vld [vmem:[%s10546_s5 + $0x17a0] sm:$0xff]  ;;  %v2006_v59 = vld [vmem:[%s10546_s5 + $0x17b0] sm:$0xff] }
  0xd1   : > { %v2008_v60 = vld [vmem:[%s10546_s5 + $0x17c0] sm:$0xff]  ;;  %2005 = vst [vmem:[%s10551_s6 + $0xbd0] sm:$0xff] %v2004_v58  ;;  %2007 = vst [vmem:[%s10551_s6 + $0xbd8] sm:$0xff] %v2006_v59  ;;  %v2010_v61 = vld [vmem:[%s10546_s5 + $0x17d0] sm:$0xff] }
  0xd2   : > { %2009 = vst [vmem:[%s10551_s6 + $0xbe0] sm:$0xff] %v2008_v60  ;;  %v2012_v62 = vld [vmem:[%s10546_s5 + $0x17e0] sm:$0xff]  ;;  %v2014_v63 = vld [vmem:[%s10546_s5 + $0x17f0] sm:$0xff]  ;;  %2011 = vst [vmem:[%s10551_s6 + $0xbe8] sm:$0xff] %v2010_v61 }
  0xd3   : > { %2013 = vst [vmem:[%s10551_s6 + $0xbf0] sm:$0xff] %v2012_v62  ;;  %2015 = vst [vmem:[%s10551_s6 + $0xbf8] sm:$0xff] %v2014_v63  ;;  %v2016_v0 = vld [vmem:[%s10546_s5 + $0x1800] sm:$0xff]  ;;  %v2018_v1 = vld [vmem:[%s10546_s5 + $0x1810] sm:$0xff] }
  0xd4   : > { %v2020_v2 = vld [vmem:[%s10546_s5 + $0x1820] sm:$0xff]  ;;  %2017 = vst [vmem:[%s10551_s6 + $0xc00] sm:$0xff] %v2016_v0  ;;  %2019 = vst [vmem:[%s10551_s6 + $0xc08] sm:$0xff] %v2018_v1  ;;  %v2022_v3 = vld [vmem:[%s10546_s5 + $0x1830] sm:$0xff] }
  0xd5   : > { %2021 = vst [vmem:[%s10551_s6 + $0xc10] sm:$0xff] %v2020_v2  ;;  %v2024_v4 = vld [vmem:[%s10546_s5 + $0x1840] sm:$0xff]  ;;  %v2026_v5 = vld [vmem:[%s10546_s5 + $0x1850] sm:$0xff]  ;;  %2023 = vst [vmem:[%s10551_s6 + $0xc18] sm:$0xff] %v2022_v3 }
  0xd6   : > { %2025 = vst [vmem:[%s10551_s6 + $0xc20] sm:$0xff] %v2024_v4  ;;  %2027 = vst [vmem:[%s10551_s6 + $0xc28] sm:$0xff] %v2026_v5  ;;  %v2028_v6 = vld [vmem:[%s10546_s5 + $0x1860] sm:$0xff]  ;;  %v2030_v7 = vld [vmem:[%s10546_s5 + $0x1870] sm:$0xff] }
  0xd7   : > { %v2032_v8 = vld [vmem:[%s10546_s5 + $0x1880] sm:$0xff]  ;;  %2029 = vst [vmem:[%s10551_s6 + $0xc30] sm:$0xff] %v2028_v6  ;;  %2031 = vst [vmem:[%s10551_s6 + $0xc38] sm:$0xff] %v2030_v7  ;;  %v2034_v9 = vld [vmem:[%s10546_s5 + $0x1890] sm:$0xff] }
  0xd8   : > { %2033 = vst [vmem:[%s10551_s6 + $0xc40] sm:$0xff] %v2032_v8  ;;  %v2036_v10 = vld [vmem:[%s10546_s5 + $0x18a0] sm:$0xff]  ;;  %v2038_v11 = vld [vmem:[%s10546_s5 + $0x18b0] sm:$0xff]  ;;  %2035 = vst [vmem:[%s10551_s6 + $0xc48] sm:$0xff] %v2034_v9 }
  0xd9   : > { %2037 = vst [vmem:[%s10551_s6 + $0xc50] sm:$0xff] %v2036_v10  ;;  %2039 = vst [vmem:[%s10551_s6 + $0xc58] sm:$0xff] %v2038_v11  ;;  %v2040_v12 = vld [vmem:[%s10546_s5 + $0x18c0] sm:$0xff]  ;;  %v2042_v13 = vld [vmem:[%s10546_s5 + $0x18d0] sm:$0xff] }
  0xda   : > { %v2044_v14 = vld [vmem:[%s10546_s5 + $0x18e0] sm:$0xff]  ;;  %2041 = vst [vmem:[%s10551_s6 + $0xc60] sm:$0xff] %v2040_v12  ;;  %2043 = vst [vmem:[%s10551_s6 + $0xc68] sm:$0xff] %v2042_v13  ;;  %v2046_v15 = vld [vmem:[%s10546_s5 + $0x18f0] sm:$0xff] }
  0xdb   : > { %2045 = vst [vmem:[%s10551_s6 + $0xc70] sm:$0xff] %v2044_v14  ;;  %v2048_v16 = vld [vmem:[%s10546_s5 + $0x1900] sm:$0xff]  ;;  %v2050_v17 = vld [vmem:[%s10546_s5 + $0x1910] sm:$0xff]  ;;  %2047 = vst [vmem:[%s10551_s6 + $0xc78] sm:$0xff] %v2046_v15 }
  0xdc   : > { %2049 = vst [vmem:[%s10551_s6 + $0xc80] sm:$0xff] %v2048_v16  ;;  %2051 = vst [vmem:[%s10551_s6 + $0xc88] sm:$0xff] %v2050_v17  ;;  %v2052_v18 = vld [vmem:[%s10546_s5 + $0x1920] sm:$0xff]  ;;  %v2054_v19 = vld [vmem:[%s10546_s5 + $0x1930] sm:$0xff] }
  0xdd   : > { %v2056_v20 = vld [vmem:[%s10546_s5 + $0x1940] sm:$0xff]  ;;  %2053 = vst [vmem:[%s10551_s6 + $0xc90] sm:$0xff] %v2052_v18  ;;  %2055 = vst [vmem:[%s10551_s6 + $0xc98] sm:$0xff] %v2054_v19  ;;  %v2058_v21 = vld [vmem:[%s10546_s5 + $0x1950] sm:$0xff] }
  0xde   : > { %2057 = vst [vmem:[%s10551_s6 + $0xca0] sm:$0xff] %v2056_v20  ;;  %v2060_v22 = vld [vmem:[%s10546_s5 + $0x1960] sm:$0xff]  ;;  %v2062_v23 = vld [vmem:[%s10546_s5 + $0x1970] sm:$0xff]  ;;  %2059 = vst [vmem:[%s10551_s6 + $0xca8] sm:$0xff] %v2058_v21 }
  0xdf   : > { %2061 = vst [vmem:[%s10551_s6 + $0xcb0] sm:$0xff] %v2060_v22  ;;  %2063 = vst [vmem:[%s10551_s6 + $0xcb8] sm:$0xff] %v2062_v23  ;;  %v2064_v24 = vld [vmem:[%s10546_s5 + $0x1980] sm:$0xff]  ;;  %v2066_v25 = vld [vmem:[%s10546_s5 + $0x1990] sm:$0xff] }
  0xe0   : > { %v2068_v26 = vld [vmem:[%s10546_s5 + $0x19a0] sm:$0xff]  ;;  %2065 = vst [vmem:[%s10551_s6 + $0xcc0] sm:$0xff] %v2064_v24  ;;  %2067 = vst [vmem:[%s10551_s6 + $0xcc8] sm:$0xff] %v2066_v25  ;;  %v2070_v27 = vld [vmem:[%s10546_s5 + $0x19b0] sm:$0xff] }
  0xe1   : > { %2069 = vst [vmem:[%s10551_s6 + $0xcd0] sm:$0xff] %v2068_v26  ;;  %v2072_v28 = vld [vmem:[%s10546_s5 + $0x19c0] sm:$0xff]  ;;  %v2074_v29 = vld [vmem:[%s10546_s5 + $0x19d0] sm:$0xff]  ;;  %2071 = vst [vmem:[%s10551_s6 + $0xcd8] sm:$0xff] %v2070_v27 }
  0xe2   : > { %2073 = vst [vmem:[%s10551_s6 + $0xce0] sm:$0xff] %v2072_v28  ;;  %2075 = vst [vmem:[%s10551_s6 + $0xce8] sm:$0xff] %v2074_v29  ;;  %v2076_v30 = vld [vmem:[%s10546_s5 + $0x19e0] sm:$0xff]  ;;  %v2078_v31 = vld [vmem:[%s10546_s5 + $0x19f0] sm:$0xff] }
  0xe3   : > { %v2080_v32 = vld [vmem:[%s10546_s5 + $0x1a00] sm:$0xff]  ;;  %2077 = vst [vmem:[%s10551_s6 + $0xcf0] sm:$0xff] %v2076_v30  ;;  %2079 = vst [vmem:[%s10551_s6 + $0xcf8] sm:$0xff] %v2078_v31  ;;  %v2082_v33 = vld [vmem:[%s10546_s5 + $0x1a10] sm:$0xff] }
  0xe4   : > { %2081 = vst [vmem:[%s10551_s6 + $0xd00] sm:$0xff] %v2080_v32  ;;  %v2084_v34 = vld [vmem:[%s10546_s5 + $0x1a20] sm:$0xff]  ;;  %v2086_v35 = vld [vmem:[%s10546_s5 + $0x1a30] sm:$0xff]  ;;  %2083 = vst [vmem:[%s10551_s6 + $0xd08] sm:$0xff] %v2082_v33 }
  0xe5   : > { %2085 = vst [vmem:[%s10551_s6 + $0xd10] sm:$0xff] %v2084_v34  ;;  %2087 = vst [vmem:[%s10551_s6 + $0xd18] sm:$0xff] %v2086_v35  ;;  %v2088_v36 = vld [vmem:[%s10546_s5 + $0x1a40] sm:$0xff]  ;;  %v2090_v37 = vld [vmem:[%s10546_s5 + $0x1a50] sm:$0xff] }
  0xe6   : > { %v2092_v38 = vld [vmem:[%s10546_s5 + $0x1a60] sm:$0xff]  ;;  %2089 = vst [vmem:[%s10551_s6 + $0xd20] sm:$0xff] %v2088_v36  ;;  %2091 = vst [vmem:[%s10551_s6 + $0xd28] sm:$0xff] %v2090_v37  ;;  %v2094_v39 = vld [vmem:[%s10546_s5 + $0x1a70] sm:$0xff] }
  0xe7   : > { %2093 = vst [vmem:[%s10551_s6 + $0xd30] sm:$0xff] %v2092_v38  ;;  %v2096_v40 = vld [vmem:[%s10546_s5 + $0x1a80] sm:$0xff]  ;;  %v2098_v41 = vld [vmem:[%s10546_s5 + $0x1a90] sm:$0xff]  ;;  %2095 = vst [vmem:[%s10551_s6 + $0xd38] sm:$0xff] %v2094_v39 }
  0xe8   : > { %2097 = vst [vmem:[%s10551_s6 + $0xd40] sm:$0xff] %v2096_v40  ;;  %2099 = vst [vmem:[%s10551_s6 + $0xd48] sm:$0xff] %v2098_v41  ;;  %v2100_v42 = vld [vmem:[%s10546_s5 + $0x1aa0] sm:$0xff]  ;;  %v2102_v43 = vld [vmem:[%s10546_s5 + $0x1ab0] sm:$0xff] }
  0xe9   : > { %v2104_v44 = vld [vmem:[%s10546_s5 + $0x1ac0] sm:$0xff]  ;;  %2101 = vst [vmem:[%s10551_s6 + $0xd50] sm:$0xff] %v2100_v42  ;;  %2103 = vst [vmem:[%s10551_s6 + $0xd58] sm:$0xff] %v2102_v43  ;;  %v2106_v45 = vld [vmem:[%s10546_s5 + $0x1ad0] sm:$0xff] }
  0xea   : > { %2105 = vst [vmem:[%s10551_s6 + $0xd60] sm:$0xff] %v2104_v44  ;;  %v2108_v46 = vld [vmem:[%s10546_s5 + $0x1ae0] sm:$0xff]  ;;  %v2110_v47 = vld [vmem:[%s10546_s5 + $0x1af0] sm:$0xff]  ;;  %2107 = vst [vmem:[%s10551_s6 + $0xd68] sm:$0xff] %v2106_v45 }
  0xeb   : > { %2109 = vst [vmem:[%s10551_s6 + $0xd70] sm:$0xff] %v2108_v46  ;;  %2111 = vst [vmem:[%s10551_s6 + $0xd78] sm:$0xff] %v2110_v47  ;;  %v2112_v48 = vld [vmem:[%s10546_s5 + $0x1b00] sm:$0xff]  ;;  %v2114_v49 = vld [vmem:[%s10546_s5 + $0x1b10] sm:$0xff] }
  0xec   : > { %v2116_v50 = vld [vmem:[%s10546_s5 + $0x1b20] sm:$0xff]  ;;  %2113 = vst [vmem:[%s10551_s6 + $0xd80] sm:$0xff] %v2112_v48  ;;  %2115 = vst [vmem:[%s10551_s6 + $0xd88] sm:$0xff] %v2114_v49  ;;  %v2118_v51 = vld [vmem:[%s10546_s5 + $0x1b30] sm:$0xff] }
  0xed   : > { %2117 = vst [vmem:[%s10551_s6 + $0xd90] sm:$0xff] %v2116_v50  ;;  %v2120_v52 = vld [vmem:[%s10546_s5 + $0x1b40] sm:$0xff]  ;;  %v2122_v53 = vld [vmem:[%s10546_s5 + $0x1b50] sm:$0xff]  ;;  %2119 = vst [vmem:[%s10551_s6 + $0xd98] sm:$0xff] %v2118_v51 }
  0xee   : > { %2121 = vst [vmem:[%s10551_s6 + $0xda0] sm:$0xff] %v2120_v52  ;;  %2123 = vst [vmem:[%s10551_s6 + $0xda8] sm:$0xff] %v2122_v53  ;;  %v2124_v54 = vld [vmem:[%s10546_s5 + $0x1b60] sm:$0xff]  ;;  %v2126_v55 = vld [vmem:[%s10546_s5 + $0x1b70] sm:$0xff] }
  0xef   : > { %v2128_v56 = vld [vmem:[%s10546_s5 + $0x1b80] sm:$0xff]  ;;  %2125 = vst [vmem:[%s10551_s6 + $0xdb0] sm:$0xff] %v2124_v54  ;;  %2127 = vst [vmem:[%s10551_s6 + $0xdb8] sm:$0xff] %v2126_v55  ;;  %v2130_v57 = vld [vmem:[%s10546_s5 + $0x1b90] sm:$0xff] }
  0xf0   : > { %2129 = vst [vmem:[%s10551_s6 + $0xdc0] sm:$0xff] %v2128_v56  ;;  %v2132_v58 = vld [vmem:[%s10546_s5 + $0x1ba0] sm:$0xff]  ;;  %v2134_v59 = vld [vmem:[%s10546_s5 + $0x1bb0] sm:$0xff]  ;;  %2131 = vst [vmem:[%s10551_s6 + $0xdc8] sm:$0xff] %v2130_v57 }
  0xf1   : > { %2133 = vst [vmem:[%s10551_s6 + $0xdd0] sm:$0xff] %v2132_v58  ;;  %2135 = vst [vmem:[%s10551_s6 + $0xdd8] sm:$0xff] %v2134_v59  ;;  %v2136_v60 = vld [vmem:[%s10546_s5 + $0x1bc0] sm:$0xff]  ;;  %v2138_v61 = vld [vmem:[%s10546_s5 + $0x1bd0] sm:$0xff] }
  0xf2   : > { %v2140_v62 = vld [vmem:[%s10546_s5 + $0x1be0] sm:$0xff]  ;;  %2137 = vst [vmem:[%s10551_s6 + $0xde0] sm:$0xff] %v2136_v60  ;;  %2139 = vst [vmem:[%s10551_s6 + $0xde8] sm:$0xff] %v2138_v61  ;;  %v2142_v63 = vld [vmem:[%s10546_s5 + $0x1bf0] sm:$0xff] }
  0xf3   : > { %2141 = vst [vmem:[%s10551_s6 + $0xdf0] sm:$0xff] %v2140_v62  ;;  %v2144_v0 = vld [vmem:[%s10546_s5 + $0x1c00] sm:$0xff]  ;;  %v2146_v1 = vld [vmem:[%s10546_s5 + $0x1c10] sm:$0xff]  ;;  %2143 = vst [vmem:[%s10551_s6 + $0xdf8] sm:$0xff] %v2142_v63 }
  0xf4   : > { %2145 = vst [vmem:[%s10551_s6 + $0xe00] sm:$0xff] %v2144_v0  ;;  %2147 = vst [vmem:[%s10551_s6 + $0xe08] sm:$0xff] %v2146_v1  ;;  %v2148_v2 = vld [vmem:[%s10546_s5 + $0x1c20] sm:$0xff]  ;;  %v2150_v3 = vld [vmem:[%s10546_s5 + $0x1c30] sm:$0xff] }
  0xf5   : > { %v2152_v4 = vld [vmem:[%s10546_s5 + $0x1c40] sm:$0xff]  ;;  %2149 = vst [vmem:[%s10551_s6 + $0xe10] sm:$0xff] %v2148_v2  ;;  %2151 = vst [vmem:[%s10551_s6 + $0xe18] sm:$0xff] %v2150_v3  ;;  %v2154_v5 = vld [vmem:[%s10546_s5 + $0x1c50] sm:$0xff] }
  0xf6   : > { %2153 = vst [vmem:[%s10551_s6 + $0xe20] sm:$0xff] %v2152_v4  ;;  %v2156_v6 = vld [vmem:[%s10546_s5 + $0x1c60] sm:$0xff]  ;;  %v2158_v7 = vld [vmem:[%s10546_s5 + $0x1c70] sm:$0xff]  ;;  %2155 = vst [vmem:[%s10551_s6 + $0xe28] sm:$0xff] %v2154_v5 }
  0xf7   : > { %2157 = vst [vmem:[%s10551_s6 + $0xe30] sm:$0xff] %v2156_v6  ;;  %2159 = vst [vmem:[%s10551_s6 + $0xe38] sm:$0xff] %v2158_v7  ;;  %v2160_v8 = vld [vmem:[%s10546_s5 + $0x1c80] sm:$0xff]  ;;  %v2162_v9 = vld [vmem:[%s10546_s5 + $0x1c90] sm:$0xff] }
  0xf8   : > { %v2164_v10 = vld [vmem:[%s10546_s5 + $0x1ca0] sm:$0xff]  ;;  %2161 = vst [vmem:[%s10551_s6 + $0xe40] sm:$0xff] %v2160_v8  ;;  %2163 = vst [vmem:[%s10551_s6 + $0xe48] sm:$0xff] %v2162_v9  ;;  %v2166_v11 = vld [vmem:[%s10546_s5 + $0x1cb0] sm:$0xff] }
  0xf9   : > { %2165 = vst [vmem:[%s10551_s6 + $0xe50] sm:$0xff] %v2164_v10  ;;  %v2168_v12 = vld [vmem:[%s10546_s5 + $0x1cc0] sm:$0xff]  ;;  %v2170_v13 = vld [vmem:[%s10546_s5 + $0x1cd0] sm:$0xff]  ;;  %2167 = vst [vmem:[%s10551_s6 + $0xe58] sm:$0xff] %v2166_v11 }
  0xfa   : > { %2169 = vst [vmem:[%s10551_s6 + $0xe60] sm:$0xff] %v2168_v12  ;;  %2171 = vst [vmem:[%s10551_s6 + $0xe68] sm:$0xff] %v2170_v13  ;;  %v2172_v14 = vld [vmem:[%s10546_s5 + $0x1ce0] sm:$0xff]  ;;  %v2174_v15 = vld [vmem:[%s10546_s5 + $0x1cf0] sm:$0xff] }
  0xfb   : > { %v2176_v16 = vld [vmem:[%s10546_s5 + $0x1d00] sm:$0xff]  ;;  %2173 = vst [vmem:[%s10551_s6 + $0xe70] sm:$0xff] %v2172_v14  ;;  %2175 = vst [vmem:[%s10551_s6 + $0xe78] sm:$0xff] %v2174_v15  ;;  %v2178_v17 = vld [vmem:[%s10546_s5 + $0x1d10] sm:$0xff] }
  0xfc   : > { %2177 = vst [vmem:[%s10551_s6 + $0xe80] sm:$0xff] %v2176_v16  ;;  %v2180_v18 = vld [vmem:[%s10546_s5 + $0x1d20] sm:$0xff]  ;;  %v2182_v19 = vld [vmem:[%s10546_s5 + $0x1d30] sm:$0xff]  ;;  %2179 = vst [vmem:[%s10551_s6 + $0xe88] sm:$0xff] %v2178_v17 }
  0xfd   : > { %2181 = vst [vmem:[%s10551_s6 + $0xe90] sm:$0xff] %v2180_v18  ;;  %2183 = vst [vmem:[%s10551_s6 + $0xe98] sm:$0xff] %v2182_v19  ;;  %v2184_v20 = vld [vmem:[%s10546_s5 + $0x1d40] sm:$0xff]  ;;  %v2186_v21 = vld [vmem:[%s10546_s5 + $0x1d50] sm:$0xff] }
  0xfe   : > { %v2188_v22 = vld [vmem:[%s10546_s5 + $0x1d60] sm:$0xff]  ;;  %2185 = vst [vmem:[%s10551_s6 + $0xea0] sm:$0xff] %v2184_v20  ;;  %2187 = vst [vmem:[%s10551_s6 + $0xea8] sm:$0xff] %v2186_v21  ;;  %v2190_v23 = vld [vmem:[%s10546_s5 + $0x1d70] sm:$0xff] }
  0xff   : > { %2189 = vst [vmem:[%s10551_s6 + $0xeb0] sm:$0xff] %v2188_v22  ;;  %v2192_v24 = vld [vmem:[%s10546_s5 + $0x1d80] sm:$0xff]  ;;  %v2194_v25 = vld [vmem:[%s10546_s5 + $0x1d90] sm:$0xff]  ;;  %2191 = vst [vmem:[%s10551_s6 + $0xeb8] sm:$0xff] %v2190_v23 }
 0x100   : > { %2193 = vst [vmem:[%s10551_s6 + $0xec0] sm:$0xff] %v2192_v24  ;;  %2195 = vst [vmem:[%s10551_s6 + $0xec8] sm:$0xff] %v2194_v25  ;;  %v2196_v26 = vld [vmem:[%s10546_s5 + $0x1da0] sm:$0xff]  ;;  %v2198_v27 = vld [vmem:[%s10546_s5 + $0x1db0] sm:$0xff] }
 0x101   : > { %v2200_v28 = vld [vmem:[%s10546_s5 + $0x1dc0] sm:$0xff]  ;;  %2197 = vst [vmem:[%s10551_s6 + $0xed0] sm:$0xff] %v2196_v26  ;;  %2199 = vst [vmem:[%s10551_s6 + $0xed8] sm:$0xff] %v2198_v27  ;;  %v2202_v29 = vld [vmem:[%s10546_s5 + $0x1dd0] sm:$0xff] }
 0x102   : > { %2201 = vst [vmem:[%s10551_s6 + $0xee0] sm:$0xff] %v2200_v28  ;;  %v2204_v30 = vld [vmem:[%s10546_s5 + $0x1de0] sm:$0xff]  ;;  %v2206_v31 = vld [vmem:[%s10546_s5 + $0x1df0] sm:$0xff]  ;;  %2203 = vst [vmem:[%s10551_s6 + $0xee8] sm:$0xff] %v2202_v29 }
 0x103   : > { %2205 = vst [vmem:[%s10551_s6 + $0xef0] sm:$0xff] %v2204_v30  ;;  %2207 = vst [vmem:[%s10551_s6 + $0xef8] sm:$0xff] %v2206_v31  ;;  %v2208_v32 = vld [vmem:[%s10546_s5 + $0x1e00] sm:$0xff]  ;;  %v2210_v33 = vld [vmem:[%s10546_s5 + $0x1e10] sm:$0xff] }
 0x104   : > { %v2212_v34 = vld [vmem:[%s10546_s5 + $0x1e20] sm:$0xff]  ;;  %2209 = vst [vmem:[%s10551_s6 + $0xf00] sm:$0xff] %v2208_v32  ;;  %2211 = vst [vmem:[%s10551_s6 + $0xf08] sm:$0xff] %v2210_v33  ;;  %v2214_v35 = vld [vmem:[%s10546_s5 + $0x1e30] sm:$0xff] }
 0x105   : > { %2213 = vst [vmem:[%s10551_s6 + $0xf10] sm:$0xff] %v2212_v34  ;;  %v2216_v36 = vld [vmem:[%s10546_s5 + $0x1e40] sm:$0xff]  ;;  %v2218_v37 = vld [vmem:[%s10546_s5 + $0x1e50] sm:$0xff]  ;;  %2215 = vst [vmem:[%s10551_s6 + $0xf18] sm:$0xff] %v2214_v35 }
 0x106   : > { %2217 = vst [vmem:[%s10551_s6 + $0xf20] sm:$0xff] %v2216_v36  ;;  %2219 = vst [vmem:[%s10551_s6 + $0xf28] sm:$0xff] %v2218_v37  ;;  %v2220_v38 = vld [vmem:[%s10546_s5 + $0x1e60] sm:$0xff]  ;;  %v2222_v39 = vld [vmem:[%s10546_s5 + $0x1e70] sm:$0xff] }
 0x107   : > { %v2224_v40 = vld [vmem:[%s10546_s5 + $0x1e80] sm:$0xff]  ;;  %2221 = vst [vmem:[%s10551_s6 + $0xf30] sm:$0xff] %v2220_v38  ;;  %2223 = vst [vmem:[%s10551_s6 + $0xf38] sm:$0xff] %v2222_v39  ;;  %v2226_v41 = vld [vmem:[%s10546_s5 + $0x1e90] sm:$0xff] }
 0x108   : > { %2225 = vst [vmem:[%s10551_s6 + $0xf40] sm:$0xff] %v2224_v40  ;;  %v2228_v42 = vld [vmem:[%s10546_s5 + $0x1ea0] sm:$0xff]  ;;  %v2230_v43 = vld [vmem:[%s10546_s5 + $0x1eb0] sm:$0xff]  ;;  %2227 = vst [vmem:[%s10551_s6 + $0xf48] sm:$0xff] %v2226_v41 }
 0x109   : > { %2229 = vst [vmem:[%s10551_s6 + $0xf50] sm:$0xff] %v2228_v42  ;;  %2231 = vst [vmem:[%s10551_s6 + $0xf58] sm:$0xff] %v2230_v43  ;;  %v2232_v44 = vld [vmem:[%s10546_s5 + $0x1ec0] sm:$0xff]  ;;  %v2234_v45 = vld [vmem:[%s10546_s5 + $0x1ed0] sm:$0xff] }
 0x10a   : > { %v2236_v46 = vld [vmem:[%s10546_s5 + $0x1ee0] sm:$0xff]  ;;  %2233 = vst [vmem:[%s10551_s6 + $0xf60] sm:$0xff] %v2232_v44  ;;  %2235 = vst [vmem:[%s10551_s6 + $0xf68] sm:$0xff] %v2234_v45  ;;  %v2238_v47 = vld [vmem:[%s10546_s5 + $0x1ef0] sm:$0xff] }
 0x10b   : > { %2237 = vst [vmem:[%s10551_s6 + $0xf70] sm:$0xff] %v2236_v46  ;;  %v2240_v48 = vld [vmem:[%s10546_s5 + $0x1f00] sm:$0xff]  ;;  %v2242_v49 = vld [vmem:[%s10546_s5 + $0x1f10] sm:$0xff]  ;;  %2239 = vst [vmem:[%s10551_s6 + $0xf78] sm:$0xff] %v2238_v47 }
 0x10c   : > { %2241 = vst [vmem:[%s10551_s6 + $0xf80] sm:$0xff] %v2240_v48  ;;  %2243 = vst [vmem:[%s10551_s6 + $0xf88] sm:$0xff] %v2242_v49  ;;  %v2244_v50 = vld [vmem:[%s10546_s5 + $0x1f20] sm:$0xff]  ;;  %v2246_v51 = vld [vmem:[%s10546_s5 + $0x1f30] sm:$0xff] }
 0x10d   : > { %v2248_v52 = vld [vmem:[%s10546_s5 + $0x1f40] sm:$0xff]  ;;  %2245 = vst [vmem:[%s10551_s6 + $0xf90] sm:$0xff] %v2244_v50  ;;  %2247 = vst [vmem:[%s10551_s6 + $0xf98] sm:$0xff] %v2246_v51  ;;  %v2250_v53 = vld [vmem:[%s10546_s5 + $0x1f50] sm:$0xff] }
 0x10e   : > { %2249 = vst [vmem:[%s10551_s6 + $0xfa0] sm:$0xff] %v2248_v52  ;;  %v2252_v54 = vld [vmem:[%s10546_s5 + $0x1f60] sm:$0xff]  ;;  %v2254_v55 = vld [vmem:[%s10546_s5 + $0x1f70] sm:$0xff]  ;;  %2251 = vst [vmem:[%s10551_s6 + $0xfa8] sm:$0xff] %v2250_v53 }
 0x10f   : > { %2253 = vst [vmem:[%s10551_s6 + $0xfb0] sm:$0xff] %v2252_v54  ;;  %2255 = vst [vmem:[%s10551_s6 + $0xfb8] sm:$0xff] %v2254_v55  ;;  %v2256_v56 = vld [vmem:[%s10546_s5 + $0x1f80] sm:$0xff]  ;;  %v2258_v57 = vld [vmem:[%s10546_s5 + $0x1f90] sm:$0xff] }
 0x110   : > { %v2260_v58 = vld [vmem:[%s10546_s5 + $0x1fa0] sm:$0xff]  ;;  %2257 = vst [vmem:[%s10551_s6 + $0xfc0] sm:$0xff] %v2256_v56  ;;  %2259 = vst [vmem:[%s10551_s6 + $0xfc8] sm:$0xff] %v2258_v57  ;;  %v2262_v59 = vld [vmem:[%s10546_s5 + $0x1fb0] sm:$0xff] }
 0x111   : > { %2261 = vst [vmem:[%s10551_s6 + $0xfd0] sm:$0xff] %v2260_v58  ;;  %v2264_v60 = vld [vmem:[%s10546_s5 + $0x1fc0] sm:$0xff]  ;;  %v2266_v61 = vld [vmem:[%s10546_s5 + $0x1fd0] sm:$0xff]  ;;  %2263 = vst [vmem:[%s10551_s6 + $0xfd8] sm:$0xff] %v2262_v59 }
 0x112   : > { %2265 = vst [vmem:[%s10551_s6 + $0xfe0] sm:$0xff] %v2264_v60  ;;  %2267 = vst [vmem:[%s10551_s6 + $0xfe8] sm:$0xff] %v2266_v61  ;;  %v2268_v62 = vld [vmem:[%s10546_s5 + $0x1fe0] sm:$0xff]  ;;  %v2270_v63 = vld [vmem:[%s10546_s5 + $0x1ff0] sm:$0xff] }
 0x113   : > { %2269 = vst [vmem:[%s10551_s6 + $0xff0] sm:$0xff] %v2268_v62  ;;  %2271 = vst [vmem:[%s10551_s6 + $0xff8] sm:$0xff] %v2270_v63 }
 0x114 PF: > { %p9033_p8 = scmp.ge.s32.totalorder %s10471_s19, 1  ;;  %p4377_p9 = scmp.lt.s32.totalorder %s10471_s19, 3 }
 0x116   : > { %p4378_p10 = pnand %p9033_p8, %p4377_p9 }
 0x118   : > { %4381 = sbr.rel (%p4378_p10) target bundleno = 1070 (0x42e), region = 84 }
 0x11d   : > { %s4384_s7 = sand.u32 1, %s10455_s15   ;;  %v11580_v0 = vld [vmem:[%s12686_s0] sm:$0xff]  ;;  %v11590_v2 = vld [vmem:[%s12686_s0 + $0x8] sm:$0xff] }
 0x11e   : > { %v11585_v1 = vld [vmem:[%s12686_s0 + $0x80] sm:$0xff]  ;;  %s9034_s14 = sshll.u32 %s4384_s7, 12  ;;  %v11601_v5 = vld [vmem:[%s12686_s0 + $0x88] sm:$0xff]  ;;  %s9035_s21 = sshll.u32 %s4384_s7, 6 }
 0x11f   : > { %v9038_v3 = vcombine.low %v11580_v0, %v11585_v1  ;;  %v9039_v4 = vcombine.high %v11580_v0, %v11585_v1  ;;  %v9040_v6 = vcombine.low %v11590_v2, %v11601_v5  ;;  %v9041_v7 = vcombine.high %v11590_v2, %v11601_v5  ;;  %s11607_s23 = scalar_lea.vmem [#allocation2], %s9034_s14  ;;  %s4420_s15 = scalar_lea.vmem [#allocation3], %s9035_s21 }
 0x120   : > { %v9661_v8 = vld [vmem:[%s11607_s23 + $0x74] ss:$8 sps:$4 sm:$0xff]   ;;  %v9665_v10 = vld [vmem:[%s11607_s23 + $0x70] ss:$8 sps:$4 sm:$0xff]   ;;  %v9667_v12 = vld [vmem:[%s11607_s23 + $0x64] ss:$8 sps:$4 sm:$0xff]  }
 0x121   : > { %7928 = vmatprep.mubr.bf16.mxu0 %v9039_v4  ;;  %v9663_v9 = vld [vmem:[%s11607_s23 + $0x174] ss:$8 sps:$4 sm:$0xff]   ;;  %7981 = vmatprep.mubr.bf16.mxu1 %v9041_v7  ;;  %v9666_v11 = vld [vmem:[%s11607_s23 + $0x170] ss:$8 sps:$4 sm:$0xff]   ;;  %v9669_v13 = vld [vmem:[%s11607_s23 + $0x164] ss:$8 sps:$4 sm:$0xff]  }
 0x122   : > { %7896 = vmatprep.subr.bf16.mxu0 %v9661_v8  ;;  %7949 = vmatprep.subr.bf16.mxu1 %v9663_v9  ;;  %v9671_v14 = vld [vmem:[%s11607_s23 + $0x60] ss:$8 sps:$4 sm:$0xff]   ;;  %v9673_v16 = vld [vmem:[%s11607_s23 + $0x54] ss:$8 sps:$4 sm:$0xff]   ;;  %v9677_v18 = vld [vmem:[%s11607_s23 + $0x50] ss:$8 sps:$4 sm:$0xff]  }
 0x123   : > { %7897 = vmatpush1.bf16.msra.mxu0 %v9665_v10  ;;  %7950 = vmatpush1.bf16.msra.mxu1 %v9666_v11  ;;  %v9672_v15 = vld [vmem:[%s11607_s23 + $0x160] ss:$8 sps:$4 sm:$0xff]   ;;  %v9675_v17 = vld [vmem:[%s11607_s23 + $0x154] ss:$8 sps:$4 sm:$0xff]   ;;  %v9678_v19 = vld [vmem:[%s11607_s23 + $0x150] ss:$8 sps:$4 sm:$0xff]  }
 0x124   : > { %7898 = vmatprep.subr.bf16.mxu0 %v9667_v12  ;;  %7951 = vmatprep.subr.bf16.mxu1 %v9669_v13  ;;  %v9679_v20 = vld [vmem:[%s11607_s23 + $0x44] ss:$8 sps:$4 sm:$0xff]   ;;  %v9683_v22 = vld [vmem:[%s11607_s23 + $0x40] ss:$8 sps:$4 sm:$0xff]   ;;  %v9685_v24 = vld [vmem:[%s11607_s23 + $0x34] ss:$8 sps:$4 sm:$0xff]  }
 0x125   : > { %v9681_v21 = vld [vmem:[%s11607_s23 + $0x144] ss:$8 sps:$4 sm:$0xff]   ;;  %v9684_v23 = vld [vmem:[%s11607_s23 + $0x140] ss:$8 sps:$4 sm:$0xff]   ;;  %v9687_v25 = vld [vmem:[%s11607_s23 + $0x134] ss:$8 sps:$4 sm:$0xff]  }
 0x126   : > { %v9689_v26 = vld [vmem:[%s11607_s23 + $0x30] ss:$8 sps:$4 sm:$0xff]   ;;  %v9691_v28 = vld [vmem:[%s11607_s23 + $0x24] ss:$8 sps:$4 sm:$0xff]   ;;  %v9695_v30 = vld [vmem:[%s11607_s23 + $0x20] ss:$8 sps:$4 sm:$0xff]  }
 0x127   : > { %7899 = vmatpush1.bf16.msra.mxu0 %v9671_v14  ;;  %7952 = vmatpush1.bf16.msra.mxu1 %v9672_v15  ;;  %v9690_v27 = vld [vmem:[%s11607_s23 + $0x130] ss:$8 sps:$4 sm:$0xff]   ;;  %v9693_v29 = vld [vmem:[%s11607_s23 + $0x124] ss:$8 sps:$4 sm:$0xff]   ;;  %v9696_v31 = vld [vmem:[%s11607_s23 + $0x120] ss:$8 sps:$4 sm:$0xff]  }
 0x128   : > { %7900 = vmatprep.subr.bf16.mxu0 %v9673_v16  ;;  %7953 = vmatprep.subr.bf16.mxu1 %v9675_v17  ;;  %v9697_v32 = vld [vmem:[%s11607_s23 + $0x14] ss:$8 sps:$4 sm:$0xff]   ;;  %v9701_v34 = vld [vmem:[%s11607_s23 + $0x10] ss:$8 sps:$4 sm:$0xff]   ;;  %v9703_v36 = vld [vmem:[%s11607_s23 + $0x4] ss:$8 sps:$4 sm:$0xff]  }
 0x129   : > { %v9699_v33 = vld [vmem:[%s11607_s23 + $0x114] ss:$8 sps:$4 sm:$0xff]   ;;  %v9702_v35 = vld [vmem:[%s11607_s23 + $0x110] ss:$8 sps:$4 sm:$0xff]   ;;  %v9705_v37 = vld [vmem:[%s11607_s23 + $0x104] ss:$8 sps:$4 sm:$0xff]  }
 0x12a   : > { %v9707_v38 = vld [vmem:[%s11607_s23] ss:$8 sps:$4 sm:$0xff]   ;;  %v9709_v40 = vld [vmem:[%s11607_s23 + $0xf4] ss:$8 sps:$4 sm:$0xff]   ;;  %v9713_v42 = vld [vmem:[%s11607_s23 + $0xf0] ss:$8 sps:$4 sm:$0xff]  }
 0x12b   : > { %7901 = vmatpush1.bf16.msra.mxu0 %v9677_v18  ;;  %7954 = vmatpush1.bf16.msra.mxu1 %v9678_v19  ;;  %v9708_v39 = vld [vmem:[%s11607_s23 + $0x100] ss:$8 sps:$4 sm:$0xff]   ;;  %v9711_v41 = vld [vmem:[%s11607_s23 + $0x1f4] ss:$8 sps:$4 sm:$0xff]   ;;  %v9714_v43 = vld [vmem:[%s11607_s23 + $0x1f0] ss:$8 sps:$4 sm:$0xff]  }
 0x12c   : > { %7902 = vmatprep.subr.bf16.mxu0 %v9679_v20  ;;  %7955 = vmatprep.subr.bf16.mxu1 %v9681_v21  ;;  %v9715_v44 = vld [vmem:[%s11607_s23 + $0xe4] ss:$8 sps:$4 sm:$0xff]   ;;  %v9719_v46 = vld [vmem:[%s11607_s23 + $0xe0] ss:$8 sps:$4 sm:$0xff]   ;;  %v9721_v48 = vld [vmem:[%s11607_s23 + $0xd4] ss:$8 sps:$4 sm:$0xff]  }
 0x12d   : > { %v9717_v45 = vld [vmem:[%s11607_s23 + $0x1e4] ss:$8 sps:$4 sm:$0xff]   ;;  %v9720_v47 = vld [vmem:[%s11607_s23 + $0x1e0] ss:$8 sps:$4 sm:$0xff]   ;;  %v9723_v49 = vld [vmem:[%s11607_s23 + $0x1d4] ss:$8 sps:$4 sm:$0xff]  }
 0x12e   : > { %v9725_v50 = vld [vmem:[%s11607_s23 + $0xd0] ss:$8 sps:$4 sm:$0xff]   ;;  %v9727_v52 = vld [vmem:[%s11607_s23 + $0xc4] ss:$8 sps:$4 sm:$0xff]   ;;  %v9731_v54 = vld [vmem:[%s11607_s23 + $0xc0] ss:$8 sps:$4 sm:$0xff]  }
 0x12f   : > { %7903 = vmatpush1.bf16.msra.mxu0 %v9683_v22  ;;  %7956 = vmatpush1.bf16.msra.mxu1 %v9684_v23  ;;  %v9726_v51 = vld [vmem:[%s11607_s23 + $0x1d0] ss:$8 sps:$4 sm:$0xff]   ;;  %v9729_v53 = vld [vmem:[%s11607_s23 + $0x1c4] ss:$8 sps:$4 sm:$0xff]   ;;  %v9732_v55 = vld [vmem:[%s11607_s23 + $0x1c0] ss:$8 sps:$4 sm:$0xff]  }
 0x130   : > { %7904 = vmatprep.subr.bf16.mxu0 %v9685_v24  ;;  %7957 = vmatprep.subr.bf16.mxu1 %v9687_v25  ;;  %v9733_v56 = vld [vmem:[%s11607_s23 + $0xb4] ss:$8 sps:$4 sm:$0xff]   ;;  %v9737_v58 = vld [vmem:[%s11607_s23 + $0xb0] ss:$8 sps:$4 sm:$0xff]   ;;  %v9739_v60 = vld [vmem:[%s11607_s23 + $0xa4] ss:$8 sps:$4 sm:$0xff]  }
 0x131   : > { %v9735_v57 = vld [vmem:[%s11607_s23 + $0x1b4] ss:$8 sps:$4 sm:$0xff]   ;;  %v9738_v59 = vld [vmem:[%s11607_s23 + $0x1b0] ss:$8 sps:$4 sm:$0xff]   ;;  %v9741_v61 = vld [vmem:[%s11607_s23 + $0x1a4] ss:$8 sps:$4 sm:$0xff]  }
 0x132   : > { %v9743_v62 = vld [vmem:[%s11607_s23 + $0xa0] ss:$8 sps:$4 sm:$0xff]   ;;  %v9745_v4 = vld [vmem:[%s11607_s23 + $0x94] ss:$8 sps:$4 sm:$0xff]   ;;  %v9749_v8 = vld [vmem:[%s11607_s23 + $0x90] ss:$8 sps:$4 sm:$0xff]  }
 0x133   : > { %7905 = vmatpush1.bf16.msra.mxu0 %v9689_v26  ;;  %7958 = vmatpush1.bf16.msra.mxu1 %v9690_v27  ;;  %v9744_v63 = vld [vmem:[%s11607_s23 + $0x1a0] ss:$8 sps:$4 sm:$0xff]   ;;  %v9747_v7 = vld [vmem:[%s11607_s23 + $0x194] ss:$8 sps:$4 sm:$0xff]   ;;  %v9750_v9 = vld [vmem:[%s11607_s23 + $0x190] ss:$8 sps:$4 sm:$0xff]  }
 0x134   : > { %7906 = vmatprep.subr.bf16.mxu0 %v9691_v28  ;;  %7959 = vmatprep.subr.bf16.mxu1 %v9693_v29  ;;  %v9751_v10 = vld [vmem:[%s11607_s23 + $0x84] ss:$8 sps:$4 sm:$0xff]   ;;  %v9755_v12 = vld [vmem:[%s11607_s23 + $0x80] ss:$8 sps:$4 sm:$0xff]   ;;  %v9759_v14 = vld [vmem:[%s11607_s23 + $0x274] ss:$8 sps:$4 sm:$0xff]  }
 0x135   : > { %v9753_v11 = vld [vmem:[%s11607_s23 + $0x184] ss:$8 sps:$4 sm:$0xff]   ;;  %v9756_v13 = vld [vmem:[%s11607_s23 + $0x180] ss:$8 sps:$4 sm:$0xff]   ;;  %v9762_v15 = vld [vmem:[%s11607_s23 + $0x374] ss:$8 sps:$4 sm:$0xff]  }
 0x136   : > { %v4472_v16 = vld [vmem:[%s12686_s0 + $0x100] sm:$0xff]  ;;  %v4473_v18 = vld [vmem:[%s12686_s0 + $0x108] sm:$0xff]  ;;  %v9757_v20 = vld [vmem:[%s11607_s23 + $0x270] ss:$8 sps:$4 sm:$0xff]   ;;  %s9620_s7 = sshll.u32 (%p10533_p6), %s10463_s17, 4 }
 0x137   : > { %7907 = vmatpush1.bf16.msra.mxu0 %v9695_v30  ;;  %7960 = vmatpush1.bf16.msra.mxu1 %v9696_v31  ;;  %v4488_v17 = vld [vmem:[%s12686_s0 + $0x180] sm:$0xff]  ;;  %v4489_v19 = vld [vmem:[%s12686_s0 + $0x188] sm:$0xff]  ;;  %v9760_v21 = vld [vmem:[%s11607_s23 + $0x370] ss:$8 sps:$4 sm:$0xff]   ;;  %s8883_s27 = scalar_lea.vmem (%p10533_p6), %s12690_s4, %s9620_s7 }
 0x138   : > { %7908 = vmatprep.subr.bf16.mxu0 %v9697_v32  ;;  %7961 = vmatprep.subr.bf16.mxu1 %v9699_v33  ;;  %v9765_v22 = vld [vmem:[%s11607_s23 + $0x264] ss:$8 sps:$4 sm:$0xff]   ;;  %v9071_v24 = vcombine.high %v4472_v16, %v4488_v17  ;;  %v9073_v25 = vcombine.high %v4473_v18, %v4489_v19  ;;  %v9763_v26 = vld [vmem:[%s11607_s23 + $0x260] ss:$8 sps:$4 sm:$0xff]   ;;  %v9771_v28 = vld [vmem:[%s11607_s23 + $0x254] ss:$8 sps:$4 sm:$0xff]   ;;  %v9072_v2 = vcombine.low %v4473_v18, %v4489_v19 }
 0x139   : > { %v9768_v23 = vld [vmem:[%s11607_s23 + $0x364] ss:$8 sps:$4 sm:$0xff]   ;;  %v9766_v27 = vld [vmem:[%s11607_s23 + $0x360] ss:$8 sps:$4 sm:$0xff]   ;;  %v9774_v29 = vld [vmem:[%s11607_s23 + $0x354] ss:$8 sps:$4 sm:$0xff]  }
 0x13a   : > { %v9769_v0 = vld [vmem:[%s11607_s23 + $0x250] ss:$8 sps:$4 sm:$0xff]   ;;  %v9777_v5 = vld [vmem:[%s11607_s23 + $0x244] ss:$8 sps:$4 sm:$0xff]   ;;  %v9775_v30 = vld [vmem:[%s11607_s23 + $0x240] ss:$8 sps:$4 sm:$0xff]  }
 0x13b   : > { %7909 = vmatpush1.bf16.msra.mxu0 %v9701_v34  ;;  %7962 = vmatpush1.bf16.msra.mxu1 %v9702_v35  ;;  %v9772_v1 = vld [vmem:[%s11607_s23 + $0x350] ss:$8 sps:$4 sm:$0xff]   ;;  %v9778_v31 = vld [vmem:[%s11607_s23 + $0x340] ss:$8 sps:$4 sm:$0xff]   ;;  %v9783_v32 = vld [vmem:[%s11607_s23 + $0x234] ss:$8 sps:$4 sm:$0xff]  }
 0x13c   : > { %7910 = vmatprep.subr.bf16.mxu0 %v9703_v36  ;;  %7963 = vmatprep.subr.bf16.mxu1 %v9705_v37  ;;  %v9786_v33 = vld [vmem:[%s11607_s23 + $0x334] ss:$8 sps:$4 sm:$0xff]   ;;  %v9781_v34 = vld [vmem:[%s11607_s23 + $0x230] ss:$8 sps:$4 sm:$0xff]   ;;  %v9789_v36 = vld [vmem:[%s11607_s23 + $0x224] ss:$8 sps:$4 sm:$0xff]  }
 0x13d   : > { %v9784_v35 = vld [vmem:[%s11607_s23 + $0x330] ss:$8 sps:$4 sm:$0xff]   ;;  %v9792_v37 = vld [vmem:[%s11607_s23 + $0x324] ss:$8 sps:$4 sm:$0xff]   ;;  %v9835_v18 = vld [vmem:[%s11607_s23 + $0x2a0] ss:$8 sps:$4 sm:$0xff]  }
 0x13e   : > { %v9838_v19 = vld [vmem:[%s11607_s23 + $0x3a0] ss:$8 sps:$4 sm:$0xff]  }
 0x13f   : > { %7911 = vmatpush1.bf16.msra.mxu0 %v9707_v38  ;;  %7964 = vmatpush1.bf16.msra.mxu1 %v9708_v39  ;;  %v11716_v38 = vld [vmem:[%s12686_s0 + $0x10] sm:$0xff]  ;;  %v9787_v39 = vld [vmem:[%s11607_s23 + $0x220] ss:$8 sps:$4 sm:$0xff]  }
 0x140   : > { %7912 = vmatprep.subr.bf16.mxu0 %v9709_v40  ;;  %7965 = vmatprep.subr.bf16.mxu1 %v9711_v41  ;;  %v9790_v40 = vld [vmem:[%s11607_s23 + $0x320] ss:$8 sps:$4 sm:$0xff]   ;;  %v9795_v41 = vld [vmem:[%s11607_s23 + $0x214] ss:$8 sps:$4 sm:$0xff]  }
 0x143   : > { %7913 = vmatpush2.bf16.msra.mxu0 %v9713_v42  ;;  %7966 = vmatpush2.bf16.msra.mxu1 %v9714_v43  ;;  %v9798_v42 = vld [vmem:[%s11607_s23 + $0x314] ss:$8 sps:$4 sm:$0xff]  }
 0x144   : > { %7914 = vmatprep.subr.bf16.mxu0 %v9715_v44  ;;  %7967 = vmatprep.subr.bf16.mxu1 %v9717_v45  ;;  %v11725_v43 = vld [vmem:[%s12686_s0 + $0x90] sm:$0xff]  ;;  %v11730_v44 = vld [vmem:[%s12686_s0 + $0x18] sm:$0xff] }
 0x145   : > { %v9043_v45 = vcombine.high %v11716_v38, %v11725_v43 }
 0x147   : > { %7915 = vmatpush2.bf16.msra.mxu0 %v9719_v46  ;;  %7968 = vmatpush2.bf16.msra.mxu1 %v9720_v47  ;;  %v11737_v46 = vld [vmem:[%s12686_s0 + $0x98] sm:$0xff] }
 0x148   : > { %7916 = vmatprep.subr.bf16.mxu0 %v9721_v48  ;;  %7969 = vmatprep.subr.bf16.mxu1 %v9723_v49  ;;  %v9793_v47 = vld [vmem:[%s11607_s23 + $0x210] ss:$8 sps:$4 sm:$0xff]   ;;  %v9045_v48 = vcombine.high %v11730_v44, %v11737_v46 }
 0x149   : > { %v9796_v49 = vld [vmem:[%s11607_s23 + $0x310] ss:$8 sps:$4 sm:$0xff]  }
 0x14b   : > { %7917 = vmatpush2.bf16.msra.mxu0 %v9725_v50  ;;  %7970 = vmatpush2.bf16.msra.mxu1 %v9726_v51  ;;  %v9801_v50 = vld [vmem:[%s11607_s23 + $0x204] ss:$8 sps:$4 sm:$0xff]  }
 0x14c   : > { %7918 = vmatprep.subr.bf16.mxu0 %v9727_v52  ;;  %7971 = vmatprep.subr.bf16.mxu1 %v9729_v53  ;;  %v9804_v51 = vld [vmem:[%s11607_s23 + $0x304] ss:$8 sps:$4 sm:$0xff]   ;;  %v9799_v52 = vld [vmem:[%s11607_s23 + $0x200] ss:$8 sps:$4 sm:$0xff]  }
 0x14d   : > { %v9802_v53 = vld [vmem:[%s11607_s23 + $0x300] ss:$8 sps:$4 sm:$0xff]  }
 0x14f   : > { %7919 = vmatpush2.bf16.msra.mxu0 %v9731_v54  ;;  %7972 = vmatpush2.bf16.msra.mxu1 %v9732_v55  ;;  %v9807_v54 = vld [vmem:[%s11607_s23 + $0x2f4] ss:$8 sps:$4 sm:$0xff]  }
 0x150   : > { %7920 = vmatprep.subr.bf16.mxu0 %v9733_v56  ;;  %7973 = vmatprep.subr.bf16.mxu1 %v9735_v57  ;;  %v9810_v55 = vld [vmem:[%s11607_s23 + $0x3f4] ss:$8 sps:$4 sm:$0xff]   ;;  %v9805_v56 = vld [vmem:[%s11607_s23 + $0x2f0] ss:$8 sps:$4 sm:$0xff]  }
 0x151   : > { %v9808_v57 = vld [vmem:[%s11607_s23 + $0x3f0] ss:$8 sps:$4 sm:$0xff]  }
 0x153   : > { %7921 = vmatpush2.bf16.msra.mxu0 %v9737_v58  ;;  %7974 = vmatpush2.bf16.msra.mxu1 %v9738_v59  ;;  %v9813_v58 = vld [vmem:[%s11607_s23 + $0x2e4] ss:$8 sps:$4 sm:$0xff]  }
 0x154   : > { %7922 = vmatprep.subr.bf16.mxu0 %v9739_v60  ;;  %7975 = vmatprep.subr.bf16.mxu1 %v9741_v61  ;;  %v9816_v59 = vld [vmem:[%s11607_s23 + $0x3e4] ss:$8 sps:$4 sm:$0xff]   ;;  %v9811_v60 = vld [vmem:[%s11607_s23 + $0x2e0] ss:$8 sps:$4 sm:$0xff]  }
 0x155   : > { %v9814_v61 = vld [vmem:[%s11607_s23 + $0x3e0] ss:$8 sps:$4 sm:$0xff]  }
 0x157   : > { %7923 = vmatpush2.bf16.msra.mxu0 %v9743_v62  ;;  %7976 = vmatpush2.bf16.msra.mxu1 %v9744_v63  ;;  %v9819_v62 = vld [vmem:[%s11607_s23 + $0x2d4] ss:$8 sps:$4 sm:$0xff]  }
 0x158   : > { %7924 = vmatprep.subr.bf16.mxu0 %v9745_v4  ;;  %7977 = vmatprep.subr.bf16.mxu1 %v9747_v7  ;;  %v9822_v63 = vld [vmem:[%s11607_s23 + $0x3d4] ss:$8 sps:$4 sm:$0xff]   ;;  %v9817_v4 = vld [vmem:[%s11607_s23 + $0x2d0] ss:$8 sps:$4 sm:$0xff]  }
 0x159   : > { %v9820_v7 = vld [vmem:[%s11607_s23 + $0x3d0] ss:$8 sps:$4 sm:$0xff]  }
 0x15b   : > { %7925 = vmatpush2.bf16.msra.mxu0 %v9749_v8  ;;  %7978 = vmatpush2.bf16.msra.mxu1 %v9750_v9  ;;  %v9825_v8 = vld [vmem:[%s11607_s23 + $0x2c4] ss:$8 sps:$4 sm:$0xff]  }
 0x15c   : > { %7926 = vmatprep.subr.bf16.mxu0 %v9751_v10  ;;  %7979 = vmatprep.subr.bf16.mxu1 %v9753_v11  ;;  %v9828_v9 = vld [vmem:[%s11607_s23 + $0x3c4] ss:$8 sps:$4 sm:$0xff]   ;;  %v9823_v10 = vld [vmem:[%s11607_s23 + $0x2c0] ss:$8 sps:$4 sm:$0xff]  }
 0x15d   : > { %v9826_v11 = vld [vmem:[%s11607_s23 + $0x3c0] ss:$8 sps:$4 sm:$0xff]  }
 0x15f   : > { %7927 = vmatpush2.bf16.msra.mxu0 %v9755_v12  ;;  %7980 = vmatpush2.bf16.msra.mxu1 %v9756_v13  ;;  %v9831_v12 = vld [vmem:[%s11607_s23 + $0x2b4] ss:$8 sps:$4 sm:$0xff]  }
 0x160   : > { %8002 = vmatprep.subr.bf16.mxu0 %v9759_v14  ;;  %8055 = vmatprep.subr.bf16.mxu1 %v9762_v15  ;;  %v9834_v13 = vld [vmem:[%s11607_s23 + $0x3b4] ss:$8 sps:$4 sm:$0xff]   ;;  %v9829_v14 = vld [vmem:[%s11607_s23 + $0x2b0] ss:$8 sps:$4 sm:$0xff]  }
 0x161   : > { %v9832_v15 = vld [vmem:[%s11607_s23 + $0x3b0] ss:$8 sps:$4 sm:$0xff]  }
 0x162   : > { %7929 = vmatmul.mubr.bf16.vlgmr.msra.gmra.mxu0 %v9038_v3  ;;  %7982 = vmatmul.mubr.bf16.vlgmr.msra.gmra.mxu1 %v9040_v6  ;;  %v9070_v3 = vcombine.low %v4472_v16, %v4488_v17  ;;  %v9780_v6 = vld [vmem:[%s11607_s23 + $0x344] ss:$8 sps:$4 sm:$0xff]  }
 0x163   : > { %8003 = vmatpush1.bf16.msra.mxu0 %v9757_v20  ;;  %8056 = vmatpush1.bf16.msra.mxu1 %v9760_v21  ;;  %v9837_v16 = vld [vmem:[%s11607_s23 + $0x2a4] ss:$8 sps:$4 sm:$0xff]   ;;  %v9843_v20 = vld [vmem:[%s11607_s23 + $0x294] ss:$8 sps:$4 sm:$0xff]  }
 0x164   : > { %8004 = vmatprep.subr.bf16.mxu0 %v9765_v22  ;;  %8057 = vmatprep.subr.bf16.mxu1 %v9768_v23  ;;  %v9840_v17 = vld [vmem:[%s11607_s23 + $0x3a4] ss:$8 sps:$4 sm:$0xff]   ;;  %v9846_v21 = vld [vmem:[%s11607_s23 + $0x394] ss:$8 sps:$4 sm:$0xff]   ;;  %v9841_v22 = vld [vmem:[%s11607_s23 + $0x290] ss:$8 sps:$4 sm:$0xff]  }
 0x165   : > { %7938 = vmatprep.mubr.bf16.mxu0 %v9071_v24  ;;  %7991 = vmatprep.mubr.bf16.mxu1 %v9073_v25  ;;  %v9844_v23 = vld [vmem:[%s11607_s23 + $0x390] ss:$8 sps:$4 sm:$0xff]   ;;  %v9849_v24 = vld [vmem:[%s11607_s23 + $0x284] ss:$8 sps:$4 sm:$0xff]  }
 0x166   : > { %v9852_v25 = vld [vmem:[%s11607_s23 + $0x384] ss:$8 sps:$4 sm:$0xff]  }
 0x167   : > { %8005 = vmatpush1.bf16.msra.mxu0 %v9763_v26  ;;  %8058 = vmatpush1.bf16.msra.mxu1 %v9766_v27  ;;  %v9847_v26 = vld [vmem:[%s11607_s23 + $0x280] ss:$8 sps:$4 sm:$0xff]  }
 0x168   : > { %8006 = vmatprep.subr.bf16.mxu0 %v9771_v28  ;;  %8059 = vmatprep.subr.bf16.mxu1 %v9774_v29  ;;  %v9850_v27 = vld [vmem:[%s11607_s23 + $0x380] ss:$8 sps:$4 sm:$0xff]   ;;  %v9855_v28 = vld [vmem:[%s11607_s23 + $0x474] ss:$8 sps:$4 sm:$0xff]  }
 0x169   : > { %v9858_v29 = vld [vmem:[%s11607_s23 + $0x574] ss:$8 sps:$4 sm:$0xff]  }
 0x16a   : > { %7939 = vmatmul.mubr.bf16.gmra.mxu0 %v9070_v3  ;;  %7992 = vmatmul.mubr.bf16.gmra.mxu1 %v9072_v2  ;;  %v4490_v3 = vld [vmem:[%s12686_s0 + $0x190] sm:$0xff]  ;;  %v9042_v2 = vcombine.low %v11716_v38, %v11725_v43 }
 0x16b   : > { %8007 = vmatpush1.bf16.msra.mxu0 %v9769_v0  ;;  %8060 = vmatpush1.bf16.msra.mxu1 %v9772_v1  ;;  %v4474_v0 = vld [vmem:[%s12686_s0 + $0x110] sm:$0xff] }
 0x16c   : > { %8008 = vmatprep.subr.bf16.mxu0 %v9777_v5  ;;  %8061 = vmatprep.subr.bf16.mxu1 %v9780_v6  ;;  %v9853_v1 = vld [vmem:[%s11607_s23 + $0x470] ss:$8 sps:$4 sm:$0xff]   ;;  %v9044_v5 = vcombine.low %v11730_v44, %v11737_v46  ;;  %v9867_v38 = vld [vmem:[%s11607_s23 + $0x454] ss:$8 sps:$4 sm:$0xff]   ;;  %v11818_v44 = vld [vmem:[%s12686_s0 + $0x28] sm:$0xff] }
 0x16d   : > { %8034 = vmatprep.mubr.bf16.mxu0 %v9043_v45  ;;  %8087 = vmatprep.mubr.bf16.mxu1 %v9045_v48  ;;  %v4475_v6 = vld [vmem:[%s12686_s0 + $0x118] sm:$0xff]  ;;  %v11823_v45 = vld [vmem:[%s12686_s0 + $0xa8] sm:$0xff] }
 0x16e   : > { %v9865_v46 = vld [vmem:[%s11607_s23 + $0x450] ss:$8 sps:$4 sm:$0xff]   ;;  %v9873_v48 = vld [vmem:[%s11607_s23 + $0x444] ss:$8 sps:$4 sm:$0xff]  }
 0x16f   : > { %8009 = vmatpush1.bf16.msra.mxu0 %v9775_v30  ;;  %8062 = vmatpush1.bf16.msra.mxu1 %v9778_v31  ;;  %v4491_v30 = vld [vmem:[%s12686_s0 + $0x198] sm:$0xff] }
 0x170   : > { %8010 = vmatprep.subr.bf16.mxu0 %v9783_v32  ;;  %8063 = vmatprep.subr.bf16.mxu1 %v9786_v33  ;;  %v9856_v31 = vld [vmem:[%s11607_s23 + $0x570] ss:$8 sps:$4 sm:$0xff]   ;;  %v9861_v32 = vld [vmem:[%s11607_s23 + $0x464] ss:$8 sps:$4 sm:$0xff]   ;;  %v9076_v43 = vcombine.low %v4475_v6, %v4491_v30 }
 0x171   : > { %v9864_v33 = vld [vmem:[%s11607_s23 + $0x564] ss:$8 sps:$4 sm:$0xff]  }
 0x173   : > { %8011 = vmatpush1.bf16.msra.mxu0 %v9781_v34  ;;  %8064 = vmatpush1.bf16.msra.mxu1 %v9784_v35  ;;  %v9075_v34 = vcombine.high %v4474_v0, %v4490_v3  ;;  %v9077_v35 = vcombine.high %v4475_v6, %v4491_v30  ;;  %v9934_v6 = vld [vmem:[%s11607_s23 + $0x5a0] ss:$8 sps:$4 sm:$0xff]   ;;  %v9939_v30 = vld [vmem:[%s11607_s23 + $0x494] ss:$8 sps:$4 sm:$0xff]  }
 0x174   : > { %8012 = vmatprep.subr.bf16.mxu0 %v9789_v36  ;;  %8065 = vmatprep.subr.bf16.mxu1 %v9792_v37  ;;  %v9859_v36 = vld [vmem:[%s11607_s23 + $0x460] ss:$8 sps:$4 sm:$0xff]  }
 0x175   : > { %v9862_v37 = vld [vmem:[%s11607_s23 + $0x560] ss:$8 sps:$4 sm:$0xff]  }
 0x177   : > { %8013 = vmatpush1.bf16.msra.mxu0 %v9787_v39  ;;  %8066 = vmatpush1.bf16.msra.mxu1 %v9790_v40  ;;  %v9870_v39 = vld [vmem:[%s11607_s23 + $0x554] ss:$8 sps:$4 sm:$0xff]   ;;  %v11808_v40 = vld [vmem:[%s12686_s0 + $0x20] sm:$0xff] }
 0x178   : > { %8014 = vmatprep.subr.bf16.mxu0 %v9795_v41  ;;  %8067 = vmatprep.subr.bf16.mxu1 %v9798_v42  ;;  %v11813_v41 = vld [vmem:[%s12686_s0 + $0xa0] sm:$0xff]  ;;  %v9074_v42 = vcombine.low %v4474_v0, %v4490_v3  ;;  %v9925_v0 = vld [vmem:[%s11607_s23 + $0x4b0] ss:$8 sps:$4 sm:$0xff]  }
 0x179   : > { %v9933_v3 = vld [vmem:[%s11607_s23 + $0x4a4] ss:$8 sps:$4 sm:$0xff]  }
 0x17b   : > { %8015 = vmatpush1.bf16.msra.mxu0 %v9793_v47  ;;  %8068 = vmatpush1.bf16.msra.mxu1 %v9796_v49  ;;  %v9868_v47 = vld [vmem:[%s11607_s23 + $0x550] ss:$8 sps:$4 sm:$0xff]   ;;  %v9876_v49 = vld [vmem:[%s11607_s23 + $0x544] ss:$8 sps:$4 sm:$0xff]  }
 0x17c   : > { %8016 = vmatprep.subr.bf16.mxu0 %v9801_v50  ;;  %8069 = vmatprep.subr.bf16.mxu1 %v9804_v51  ;;  %v9047_v50 = vcombine.high %v11808_v40, %v11813_v41  ;;  %v9049_v51 = vcombine.high %v11818_v44, %v11823_v45 }
 0x17f   : > { %8017 = vmatpush1.bf16.msra.mxu0 %v9799_v52  ;;  %8070 = vmatpush1.bf16.msra.mxu1 %v9802_v53  ;;  %v9871_v52 = vld [vmem:[%s11607_s23 + $0x440] ss:$8 sps:$4 sm:$0xff]  }
 0x180   : > { %8018 = vmatprep.subr.bf16.mxu0 %v9807_v54  ;;  %8071 = vmatprep.subr.bf16.mxu1 %v9810_v55  ;;  %v9874_v53 = vld [vmem:[%s11607_s23 + $0x540] ss:$8 sps:$4 sm:$0xff]   ;;  %v9879_v54 = vld [vmem:[%s11607_s23 + $0x434] ss:$8 sps:$4 sm:$0xff]  }
 0x181   : > { %v9882_v55 = vld [vmem:[%s11607_s23 + $0x534] ss:$8 sps:$4 sm:$0xff]  }
 0x183   : > { %8019 = vmatpush2.bf16.msra.mxu0 %v9805_v56  ;;  %8072 = vmatpush2.bf16.msra.mxu1 %v9808_v57  ;;  %v9877_v56 = vld [vmem:[%s11607_s23 + $0x430] ss:$8 sps:$4 sm:$0xff]  }
 0x184   : > { %8020 = vmatprep.subr.bf16.mxu0 %v9813_v58  ;;  %8073 = vmatprep.subr.bf16.mxu1 %v9816_v59  ;;  %v9880_v57 = vld [vmem:[%s11607_s23 + $0x530] ss:$8 sps:$4 sm:$0xff]   ;;  %v9885_v58 = vld [vmem:[%s11607_s23 + $0x424] ss:$8 sps:$4 sm:$0xff]  }
 0x185   : > { %v9888_v59 = vld [vmem:[%s11607_s23 + $0x524] ss:$8 sps:$4 sm:$0xff]  }
 0x187   : > { %8021 = vmatpush2.bf16.msra.mxu0 %v9811_v60  ;;  %8074 = vmatpush2.bf16.msra.mxu1 %v9814_v61  ;;  %v9883_v60 = vld [vmem:[%s11607_s23 + $0x420] ss:$8 sps:$4 sm:$0xff]  }
 0x188   : > { %8022 = vmatprep.subr.bf16.mxu0 %v9819_v62  ;;  %8075 = vmatprep.subr.bf16.mxu1 %v9822_v63  ;;  %v9886_v61 = vld [vmem:[%s11607_s23 + $0x520] ss:$8 sps:$4 sm:$0xff]   ;;  %v9891_v62 = vld [vmem:[%s11607_s23 + $0x414] ss:$8 sps:$4 sm:$0xff]  }
 0x189   : > { %v9894_v63 = vld [vmem:[%s11607_s23 + $0x514] ss:$8 sps:$4 sm:$0xff]  }
 0x18b   : > { %8023 = vmatpush2.bf16.msra.mxu0 %v9817_v4  ;;  %8076 = vmatpush2.bf16.msra.mxu1 %v9820_v7  ;;  %v9889_v4 = vld [vmem:[%s11607_s23 + $0x410] ss:$8 sps:$4 sm:$0xff]  }
 0x18c   : > { %8024 = vmatprep.subr.bf16.mxu0 %v9825_v8  ;;  %8077 = vmatprep.subr.bf16.mxu1 %v9828_v9  ;;  %v9892_v7 = vld [vmem:[%s11607_s23 + $0x510] ss:$8 sps:$4 sm:$0xff]   ;;  %v9897_v8 = vld [vmem:[%s11607_s23 + $0x404] ss:$8 sps:$4 sm:$0xff]  }
 0x18d   : > { %v9900_v9 = vld [vmem:[%s11607_s23 + $0x504] ss:$8 sps:$4 sm:$0xff]  }
 0x18f   : > { %8025 = vmatpush2.bf16.msra.mxu0 %v9823_v10  ;;  %8078 = vmatpush2.bf16.msra.mxu1 %v9826_v11  ;;  %v9895_v10 = vld [vmem:[%s11607_s23 + $0x400] ss:$8 sps:$4 sm:$0xff]  }
 0x190   : > { %8026 = vmatprep.subr.bf16.mxu0 %v9831_v12  ;;  %8079 = vmatprep.subr.bf16.mxu1 %v9834_v13  ;;  %v9898_v11 = vld [vmem:[%s11607_s23 + $0x500] ss:$8 sps:$4 sm:$0xff]   ;;  %v9903_v12 = vld [vmem:[%s11607_s23 + $0x4f4] ss:$8 sps:$4 sm:$0xff]  }
 0x191   : > { %v9906_v13 = vld [vmem:[%s11607_s23 + $0x5f4] ss:$8 sps:$4 sm:$0xff]  }
 0x193   : > { %8027 = vmatpush2.bf16.msra.mxu0 %v9829_v14  ;;  %8080 = vmatpush2.bf16.msra.mxu1 %v9832_v15  ;;  %v9901_v14 = vld [vmem:[%s11607_s23 + $0x4f0] ss:$8 sps:$4 sm:$0xff]  }
 0x194   : > { %8028 = vmatprep.subr.bf16.mxu0 %v9837_v16  ;;  %8081 = vmatprep.subr.bf16.mxu1 %v9840_v17  ;;  %v9904_v15 = vld [vmem:[%s11607_s23 + $0x5f0] ss:$8 sps:$4 sm:$0xff]   ;;  %v9909_v16 = vld [vmem:[%s11607_s23 + $0x4e4] ss:$8 sps:$4 sm:$0xff]  }
 0x195   : > { %v9912_v17 = vld [vmem:[%s11607_s23 + $0x5e4] ss:$8 sps:$4 sm:$0xff]  }
 0x197   : > { %8029 = vmatpush2.bf16.msra.mxu0 %v9835_v18  ;;  %8082 = vmatpush2.bf16.msra.mxu1 %v9838_v19  ;;  %v9907_v18 = vld [vmem:[%s11607_s23 + $0x4e0] ss:$8 sps:$4 sm:$0xff]  }
 0x198   : > { %8030 = vmatprep.subr.bf16.mxu0 %v9843_v20  ;;  %8083 = vmatprep.subr.bf16.mxu1 %v9846_v21  ;;  %v9910_v19 = vld [vmem:[%s11607_s23 + $0x5e0] ss:$8 sps:$4 sm:$0xff]   ;;  %v9915_v20 = vld [vmem:[%s11607_s23 + $0x4d4] ss:$8 sps:$4 sm:$0xff]  }
 0x199   : > { %v9918_v21 = vld [vmem:[%s11607_s23 + $0x5d4] ss:$8 sps:$4 sm:$0xff]  }
 0x19b   : > { %8031 = vmatpush2.bf16.msra.mxu0 %v9841_v22  ;;  %8084 = vmatpush2.bf16.msra.mxu1 %v9844_v23  ;;  %v9913_v22 = vld [vmem:[%s11607_s23 + $0x4d0] ss:$8 sps:$4 sm:$0xff]  }
 0x19c   : > { %8032 = vmatprep.subr.bf16.mxu0 %v9849_v24  ;;  %8085 = vmatprep.subr.bf16.mxu1 %v9852_v25  ;;  %v9916_v23 = vld [vmem:[%s11607_s23 + $0x5d0] ss:$8 sps:$4 sm:$0xff]   ;;  %v9921_v24 = vld [vmem:[%s11607_s23 + $0x4c4] ss:$8 sps:$4 sm:$0xff]  }
 0x19d   : > { %v9924_v25 = vld [vmem:[%s11607_s23 + $0x5c4] ss:$8 sps:$4 sm:$0xff]  }
 0x19f   : > { %8033 = vmatpush2.bf16.msra.mxu0 %v9847_v26  ;;  %8086 = vmatpush2.bf16.msra.mxu1 %v9850_v27  ;;  %v9919_v26 = vld [vmem:[%s11607_s23 + $0x4c0] ss:$8 sps:$4 sm:$0xff]  }
 0x1a0   : > { %8108 = vmatprep.subr.bf16.mxu0 %v9855_v28  ;;  %8161 = vmatprep.subr.bf16.mxu1 %v9858_v29  ;;  %v9922_v27 = vld [vmem:[%s11607_s23 + $0x5c0] ss:$8 sps:$4 sm:$0xff]   ;;  %v9927_v28 = vld [vmem:[%s11607_s23 + $0x4b4] ss:$8 sps:$4 sm:$0xff]  }
 0x1a1   : > { %v9930_v29 = vld [vmem:[%s11607_s23 + $0x5b4] ss:$8 sps:$4 sm:$0xff]  }
 0x1a2   : > { %8035 = vmatmul.mubr.bf16.vlgmr.msra.gmra.mxu0 %v9042_v2  ;;  %8088 = vmatmul.mubr.bf16.vlgmr.msra.gmra.mxu1 %v9044_v5  ;;  %v9936_v2 = vld [vmem:[%s11607_s23 + $0x5a4] ss:$8 sps:$4 sm:$0xff]   ;;  %v9931_v5 = vld [vmem:[%s11607_s23 + $0x4a0] ss:$8 sps:$4 sm:$0xff]  }
 0x1a3   : > { %8109 = vmatpush1.bf16.msra.mxu0 %v9853_v1  ;;  %8162 = vmatpush1.bf16.msra.mxu1 %v9856_v31  ;;  %v9928_v1 = vld [vmem:[%s11607_s23 + $0x5b0] ss:$8 sps:$4 sm:$0xff]   ;;  %v9942_v31 = vld [vmem:[%s11607_s23 + $0x594] ss:$8 sps:$4 sm:$0xff]  }
 0x1a4   : > { %8110 = vmatprep.subr.bf16.mxu0 %v9861_v32  ;;  %8163 = vmatprep.subr.bf16.mxu1 %v9864_v33  ;;  %v9937_v32 = vld [vmem:[%s11607_s23 + $0x490] ss:$8 sps:$4 sm:$0xff]  }
 0x1a5   : > { %8044 = vmatprep.mubr.bf16.mxu0 %v9075_v34  ;;  %8097 = vmatprep.mubr.bf16.mxu1 %v9077_v35  ;;  %v9940_v33 = vld [vmem:[%s11607_s23 + $0x590] ss:$8 sps:$4 sm:$0xff]   ;;  %v9945_v34 = vld [vmem:[%s11607_s23 + $0x484] ss:$8 sps:$4 sm:$0xff]  }
 0x1a6   : > { %v9948_v35 = vld [vmem:[%s11607_s23 + $0x584] ss:$8 sps:$4 sm:$0xff]  }
 0x1a7   : > { %8111 = vmatpush1.bf16.msra.mxu0 %v9859_v36  ;;  %8164 = vmatpush1.bf16.msra.mxu1 %v9862_v37  ;;  %v9943_v36 = vld [vmem:[%s11607_s23 + $0x480] ss:$8 sps:$4 sm:$0xff]  }
 0x1a8   : > { %8112 = vmatprep.subr.bf16.mxu0 %v9867_v38  ;;  %8165 = vmatprep.subr.bf16.mxu1 %v9870_v39  ;;  %v9946_v37 = vld [vmem:[%s11607_s23 + $0x580] ss:$8 sps:$4 sm:$0xff]   ;;  %v9951_v38 = vld [vmem:[%s11607_s23 + $0x674] ss:$8 sps:$4 sm:$0xff]  }
 0x1a9   : > { %v9954_v39 = vld [vmem:[%s11607_s23 + $0x774] ss:$8 sps:$4 sm:$0xff]  }
 0x1aa   : > { %8045 = vmatmul.mubr.bf16.gmra.mxu0 %v9074_v42  ;;  %8098 = vmatmul.mubr.bf16.gmra.mxu1 %v9076_v43  ;;  %v4476_v42 = vld [vmem:[%s12686_s0 + $0x120] sm:$0xff]  ;;  %v9949_v43 = vld [vmem:[%s11607_s23 + $0x670] ss:$8 sps:$4 sm:$0xff]  }
 0x1ab   : > { %8113 = vmatpush1.bf16.msra.mxu0 %v9865_v46  ;;  %8166 = vmatpush1.bf16.msra.mxu1 %v9868_v47  ;;  %v4492_v46 = vld [vmem:[%s12686_s0 + $0x1a0] sm:$0xff]  ;;  %v9046_v47 = vcombine.low %v11808_v40, %v11813_v41 }
 0x1ac   : > { %8114 = vmatprep.subr.bf16.mxu0 %v9873_v48  ;;  %8167 = vmatprep.subr.bf16.mxu1 %v9876_v49  ;;  %v9048_v48 = vcombine.low %v11818_v44, %v11823_v45  ;;  %v4477_v49 = vld [vmem:[%s12686_s0 + $0x128] sm:$0xff]  ;;  %v9079_v41 = vcombine.high %v4476_v42, %v4492_v46 }
 0x1ad   : > { %8140 = vmatprep.mubr.bf16.mxu0 %v9047_v50  ;;  %8193 = vmatprep.mubr.bf16.mxu1 %v9049_v51  ;;  %v4493_v50 = vld [vmem:[%s12686_s0 + $0x1a8] sm:$0xff]  ;;  %v9952_v51 = vld [vmem:[%s11607_s23 + $0x770] ss:$8 sps:$4 sm:$0xff]  }
 0x1ae   : > { %v9960_v40 = vld [vmem:[%s11607_s23 + $0x764] ss:$8 sps:$4 sm:$0xff]   ;;  %v9081_v44 = vcombine.high %v4477_v49, %v4493_v50  ;;  %v9955_v45 = vld [vmem:[%s11607_s23 + $0x660] ss:$8 sps:$4 sm:$0xff]  }
 0x1af   : > { %8115 = vmatpush1.bf16.msra.mxu0 %v9871_v52  ;;  %8168 = vmatpush1.bf16.msra.mxu1 %v9874_v53  ;;  %v9957_v52 = vld [vmem:[%s11607_s23 + $0x664] ss:$8 sps:$4 sm:$0xff]   ;;  %v9958_v53 = vld [vmem:[%s11607_s23 + $0x760] ss:$8 sps:$4 sm:$0xff]  }
 0x1b0   : > { %8116 = vmatprep.subr.bf16.mxu0 %v9879_v54  ;;  %8169 = vmatprep.subr.bf16.mxu1 %v9882_v55  ;;  %v9963_v54 = vld [vmem:[%s11607_s23 + $0x654] ss:$8 sps:$4 sm:$0xff]  }
 0x1b1   : > { %v9966_v55 = vld [vmem:[%s11607_s23 + $0x754] ss:$8 sps:$4 sm:$0xff]  }
 0x1b3   : > { %8117 = vmatpush1.bf16.msra.mxu0 %v9877_v56  ;;  %8170 = vmatpush1.bf16.msra.mxu1 %v9880_v57  ;;  %v11912_v56 = vld [vmem:[%s12686_s0 + $0x30] sm:$0xff] }
 0x1b4   : > { %8118 = vmatprep.subr.bf16.mxu0 %v9885_v58  ;;  %8171 = vmatprep.subr.bf16.mxu1 %v9888_v59  ;;  %v9961_v57 = vld [vmem:[%s11607_s23 + $0x650] ss:$8 sps:$4 sm:$0xff]   ;;  %v9078_v59 = vcombine.low %v4476_v42, %v4492_v46  ;;  %v10029_v46 = vld [vmem:[%s11607_s23 + $0x6a4] ss:$8 sps:$4 sm:$0xff]  }
 0x1b5   : > { %v11918_v58 = vld [vmem:[%s12686_s0 + $0xb0] sm:$0xff] }
 0x1b6   : > { %v10021_v42 = vld [vmem:[%s11607_s23 + $0x6b0] ss:$8 sps:$4 sm:$0xff]  }
 0x1b7   : > { %8119 = vmatpush1.bf16.msra.mxu0 %v9883_v60  ;;  %8172 = vmatpush1.bf16.msra.mxu1 %v9886_v61  ;;  %v9080_v60 = vcombine.low %v4477_v49, %v4493_v50  ;;  %v11923_v61 = vld [vmem:[%s12686_s0 + $0x38] sm:$0xff]  ;;  %v10030_v49 = vld [vmem:[%s11607_s23 + $0x7a0] ss:$8 sps:$4 sm:$0xff]  }
 0x1b8   : > { %8120 = vmatprep.subr.bf16.mxu0 %v9891_v62  ;;  %8173 = vmatprep.subr.bf16.mxu1 %v9894_v63  ;;  %v11928_v62 = vld [vmem:[%s12686_s0 + $0xb8] sm:$0xff] }
 0x1b9   : > { %v9964_v63 = vld [vmem:[%s11607_s23 + $0x750] ss:$8 sps:$4 sm:$0xff]   ;;  %v10035_v50 = vld [vmem:[%s11607_s23 + $0x694] ss:$8 sps:$4 sm:$0xff]  }
 0x1bb   : > { %8121 = vmatpush1.bf16.msra.mxu0 %v9889_v4  ;;  %8174 = vmatpush1.bf16.msra.mxu1 %v9892_v7  ;;  %v9969_v4 = vld [vmem:[%s11607_s23 + $0x644] ss:$8 sps:$4 sm:$0xff]  }
 0x1bc   : > { %8122 = vmatprep.subr.bf16.mxu0 %v9897_v8  ;;  %8175 = vmatprep.subr.bf16.mxu1 %v9900_v9  ;;  %v9972_v7 = vld [vmem:[%s11607_s23 + $0x744] ss:$8 sps:$4 sm:$0xff]   ;;  %v9051_v8 = vcombine.high %v11912_v56, %v11918_v58  ;;  %v9053_v9 = vcombine.high %v11923_v61, %v11928_v62 }
 0x1bf   : > { %8123 = vmatpush1.bf16.msra.mxu0 %v9895_v10  ;;  %8176 = vmatpush1.bf16.msra.mxu1 %v9898_v11  ;;  %v9967_v10 = vld [vmem:[%s11607_s23 + $0x640] ss:$8 sps:$4 sm:$0xff]  }
 0x1c0   : > { %8124 = vmatprep.subr.bf16.mxu0 %v9903_v12  ;;  %8177 = vmatprep.subr.bf16.mxu1 %v9906_v13  ;;  %v9970_v11 = vld [vmem:[%s11607_s23 + $0x740] ss:$8 sps:$4 sm:$0xff]   ;;  %v9975_v12 = vld [vmem:[%s11607_s23 + $0x634] ss:$8 sps:$4 sm:$0xff]  }
 0x1c1   : > { %v9978_v13 = vld [vmem:[%s11607_s23 + $0x734] ss:$8 sps:$4 sm:$0xff]  }
 0x1c3   : > { %8125 = vmatpush2.bf16.msra.mxu0 %v9901_v14  ;;  %8178 = vmatpush2.bf16.msra.mxu1 %v9904_v15  ;;  %v9973_v14 = vld [vmem:[%s11607_s23 + $0x630] ss:$8 sps:$4 sm:$0xff]  }
 0x1c4   : > { %8126 = vmatprep.subr.bf16.mxu0 %v9909_v16  ;;  %8179 = vmatprep.subr.bf16.mxu1 %v9912_v17  ;;  %v9976_v15 = vld [vmem:[%s11607_s23 + $0x730] ss:$8 sps:$4 sm:$0xff]   ;;  %v9981_v16 = vld [vmem:[%s11607_s23 + $0x624] ss:$8 sps:$4 sm:$0xff]  }
 0x1c5   : > { %v9984_v17 = vld [vmem:[%s11607_s23 + $0x724] ss:$8 sps:$4 sm:$0xff]  }
 0x1c7   : > { %8127 = vmatpush2.bf16.msra.mxu0 %v9907_v18  ;;  %8180 = vmatpush2.bf16.msra.mxu1 %v9910_v19  ;;  %v9979_v18 = vld [vmem:[%s11607_s23 + $0x620] ss:$8 sps:$4 sm:$0xff]  }
 0x1c8   : > { %8128 = vmatprep.subr.bf16.mxu0 %v9915_v20  ;;  %8181 = vmatprep.subr.bf16.mxu1 %v9918_v21  ;;  %v9982_v19 = vld [vmem:[%s11607_s23 + $0x720] ss:$8 sps:$4 sm:$0xff]   ;;  %v9987_v20 = vld [vmem:[%s11607_s23 + $0x614] ss:$8 sps:$4 sm:$0xff]  }
 0x1c9   : > { %v9990_v21 = vld [vmem:[%s11607_s23 + $0x714] ss:$8 sps:$4 sm:$0xff]  }
 0x1cb   : > { %8129 = vmatpush2.bf16.msra.mxu0 %v9913_v22  ;;  %8182 = vmatpush2.bf16.msra.mxu1 %v9916_v23  ;;  %v9985_v22 = vld [vmem:[%s11607_s23 + $0x610] ss:$8 sps:$4 sm:$0xff]  }
 0x1cc   : > { %8130 = vmatprep.subr.bf16.mxu0 %v9921_v24  ;;  %8183 = vmatprep.subr.bf16.mxu1 %v9924_v25  ;;  %v9988_v23 = vld [vmem:[%s11607_s23 + $0x710] ss:$8 sps:$4 sm:$0xff]   ;;  %v9993_v24 = vld [vmem:[%s11607_s23 + $0x604] ss:$8 sps:$4 sm:$0xff]  }
 0x1cd   : > { %v9996_v25 = vld [vmem:[%s11607_s23 + $0x704] ss:$8 sps:$4 sm:$0xff]  }
 0x1cf   : > { %8131 = vmatpush2.bf16.msra.mxu0 %v9919_v26  ;;  %8184 = vmatpush2.bf16.msra.mxu1 %v9922_v27  ;;  %v9991_v26 = vld [vmem:[%s11607_s23 + $0x600] ss:$8 sps:$4 sm:$0xff]  }
 0x1d0   : > { %8132 = vmatprep.subr.bf16.mxu0 %v9927_v28  ;;  %8185 = vmatprep.subr.bf16.mxu1 %v9930_v29  ;;  %v9994_v27 = vld [vmem:[%s11607_s23 + $0x700] ss:$8 sps:$4 sm:$0xff]   ;;  %v9999_v28 = vld [vmem:[%s11607_s23 + $0x6f4] ss:$8 sps:$4 sm:$0xff]  }
 0x1d1   : > { %v10002_v29 = vld [vmem:[%s11607_s23 + $0x7f4] ss:$8 sps:$4 sm:$0xff]  }
 0x1d3   : > { %8133 = vmatpush2.bf16.msra.mxu0 %v9925_v0  ;;  %8186 = vmatpush2.bf16.msra.mxu1 %v9928_v1  ;;  %v9997_v0 = vld [vmem:[%s11607_s23 + $0x6f0] ss:$8 sps:$4 sm:$0xff]  }
 0x1d4   : > { %8134 = vmatprep.subr.bf16.mxu0 %v9933_v3  ;;  %8187 = vmatprep.subr.bf16.mxu1 %v9936_v2  ;;  %v10000_v1 = vld [vmem:[%s11607_s23 + $0x7f0] ss:$8 sps:$4 sm:$0xff]   ;;  %v10005_v3 = vld [vmem:[%s11607_s23 + $0x6e4] ss:$8 sps:$4 sm:$0xff]  }
 0x1d5   : > { %v10008_v2 = vld [vmem:[%s11607_s23 + $0x7e4] ss:$8 sps:$4 sm:$0xff]  }
 0x1d7   : > { %8135 = vmatpush2.bf16.msra.mxu0 %v9931_v5  ;;  %8188 = vmatpush2.bf16.msra.mxu1 %v9934_v6  ;;  %v10003_v5 = vld [vmem:[%s11607_s23 + $0x6e0] ss:$8 sps:$4 sm:$0xff]  }
 0x1d8   : > { %8136 = vmatprep.subr.bf16.mxu0 %v9939_v30  ;;  %8189 = vmatprep.subr.bf16.mxu1 %v9942_v31  ;;  %v10006_v6 = vld [vmem:[%s11607_s23 + $0x7e0] ss:$8 sps:$4 sm:$0xff]   ;;  %v10011_v30 = vld [vmem:[%s11607_s23 + $0x6d4] ss:$8 sps:$4 sm:$0xff]  }
 0x1d9   : > { %v10014_v31 = vld [vmem:[%s11607_s23 + $0x7d4] ss:$8 sps:$4 sm:$0xff]  }
 0x1db   : > { %8137 = vmatpush2.bf16.msra.mxu0 %v9937_v32  ;;  %8190 = vmatpush2.bf16.msra.mxu1 %v9940_v33  ;;  %v10009_v32 = vld [vmem:[%s11607_s23 + $0x6d0] ss:$8 sps:$4 sm:$0xff]  }
 0x1dc   : > { %8138 = vmatprep.subr.bf16.mxu0 %v9945_v34  ;;  %8191 = vmatprep.subr.bf16.mxu1 %v9948_v35  ;;  %v10012_v33 = vld [vmem:[%s11607_s23 + $0x7d0] ss:$8 sps:$4 sm:$0xff]   ;;  %v10017_v34 = vld [vmem:[%s11607_s23 + $0x6c4] ss:$8 sps:$4 sm:$0xff]  }
 0x1dd   : > { %v10020_v35 = vld [vmem:[%s11607_s23 + $0x7c4] ss:$8 sps:$4 sm:$0xff]  }
 0x1df   : > { %8139 = vmatpush2.bf16.msra.mxu0 %v9943_v36  ;;  %8192 = vmatpush2.bf16.msra.mxu1 %v9946_v37  ;;  %v10015_v36 = vld [vmem:[%s11607_s23 + $0x6c0] ss:$8 sps:$4 sm:$0xff]  }
 0x1e0   : > { %8214 = vmatprep.subr.bf16.mxu0 %v9951_v38  ;;  %8267 = vmatprep.subr.bf16.mxu1 %v9954_v39  ;;  %v10018_v37 = vld [vmem:[%s11607_s23 + $0x7c0] ss:$8 sps:$4 sm:$0xff]   ;;  %v10023_v38 = vld [vmem:[%s11607_s23 + $0x6b4] ss:$8 sps:$4 sm:$0xff]  }
 0x1e1   : > { %v10026_v39 = vld [vmem:[%s11607_s23 + $0x7b4] ss:$8 sps:$4 sm:$0xff]  }
 0x1e2   : > { %8141 = vmatmul.mubr.bf16.vlgmr.msra.gmra.mxu0 %v9046_v47  ;;  %8194 = vmatmul.mubr.bf16.vlgmr.msra.gmra.mxu1 %v9048_v48  ;;  %v10032_v47 = vld [vmem:[%s11607_s23 + $0x7a4] ss:$8 sps:$4 sm:$0xff]   ;;  %v10027_v48 = vld [vmem:[%s11607_s23 + $0x6a0] ss:$8 sps:$4 sm:$0xff]  }
 0x1e3   : > { %8215 = vmatpush1.bf16.msra.mxu0 %v9949_v43  ;;  %8268 = vmatpush1.bf16.msra.mxu1 %v9952_v51  ;;  %v10024_v43 = vld [vmem:[%s11607_s23 + $0x7b0] ss:$8 sps:$4 sm:$0xff]   ;;  %v10038_v51 = vld [vmem:[%s11607_s23 + $0x794] ss:$8 sps:$4 sm:$0xff]  }
 0x1e4   : > { %8216 = vmatprep.subr.bf16.mxu0 %v9957_v52  ;;  %8269 = vmatprep.subr.bf16.mxu1 %v9960_v40  ;;  %v10033_v52 = vld [vmem:[%s11607_s23 + $0x690] ss:$8 sps:$4 sm:$0xff]  }
 0x1e5   : > { %8150 = vmatprep.mubr.bf16.mxu0 %v9079_v41  ;;  %8203 = vmatprep.mubr.bf16.mxu1 %v9081_v44  ;;  %v10036_v40 = vld [vmem:[%s11607_s23 + $0x790] ss:$8 sps:$4 sm:$0xff]   ;;  %v10041_v41 = vld [vmem:[%s11607_s23 + $0x684] ss:$8 sps:$4 sm:$0xff]  }
 0x1e6   : > { %v10044_v44 = vld [vmem:[%s11607_s23 + $0x784] ss:$8 sps:$4 sm:$0xff]  }
 0x1e7   : > { %8217 = vmatpush1.bf16.msra.mxu0 %v9955_v45  ;;  %8270 = vmatpush1.bf16.msra.mxu1 %v9958_v53  ;;  %v10039_v45 = vld [vmem:[%s11607_s23 + $0x680] ss:$8 sps:$4 sm:$0xff]  }
 0x1e8   : > { %8218 = vmatprep.subr.bf16.mxu0 %v9963_v54  ;;  %8271 = vmatprep.subr.bf16.mxu1 %v9966_v55  ;;  %v10042_v53 = vld [vmem:[%s11607_s23 + $0x780] ss:$8 sps:$4 sm:$0xff]   ;;  %v10047_v54 = vld [vmem:[%s11607_s23 + $0x874] ss:$8 sps:$4 sm:$0xff]  }
 0x1e9   : > { %v10050_v55 = vld [vmem:[%s11607_s23 + $0x974] ss:$8 sps:$4 sm:$0xff]  }
 0x1ea   : > { %8151 = vmatmul.mubr.bf16.gmra.mxu0 %v9078_v59  ;;  %8204 = vmatmul.mubr.bf16.gmra.mxu1 %v9080_v60  ;;  %v10045_v59 = vld [vmem:[%s11607_s23 + $0x870] ss:$8 sps:$4 sm:$0xff]  }
 0x1eb   : > { %8219 = vmatpush1.bf16.msra.mxu0 %v9961_v57  ;;  %8272 = vmatpush1.bf16.msra.mxu1 %v9964_v63  ;;  %v4478_v57 = vld [vmem:[%s12686_s0 + $0x130] sm:$0xff]  ;;  %v9050_v63 = vcombine.low %v11912_v56, %v11918_v58  ;;  %v10056_v56 = vld [vmem:[%s11607_s23 + $0x964] ss:$8 sps:$4 sm:$0xff]  }
 0x1ec   : > { %8220 = vmatprep.subr.bf16.mxu0 %v9969_v4  ;;  %8273 = vmatprep.subr.bf16.mxu1 %v9972_v7  ;;  %v4494_v60 = vld [vmem:[%s12686_s0 + $0x1b0] sm:$0xff]  ;;  %v9052_v4 = vcombine.low %v11923_v61, %v11928_v62  ;;  %v4479_v7 = vld [vmem:[%s12686_s0 + $0x138] sm:$0xff] }
 0x1ed   : > { %8246 = vmatprep.mubr.bf16.mxu0 %v9051_v8  ;;  %8299 = vmatprep.mubr.bf16.mxu1 %v9053_v9  ;;  %v4495_v8 = vld [vmem:[%s12686_s0 + $0x1b8] sm:$0xff]  ;;  %v9083_v58 = vcombine.high %v4478_v57, %v4494_v60 }
 0x1ee   : > { %v10048_v9 = vld [vmem:[%s11607_s23 + $0x970] ss:$8 sps:$4 sm:$0xff]   ;;  %v9085_v61 = vcombine.high %v4479_v7, %v4495_v8 }
 0x1ef   : > { %8221 = vmatpush1.bf16.msra.mxu0 %v9967_v10  ;;  %8274 = vmatpush1.bf16.msra.mxu1 %v9970_v11  ;;  %v10053_v10 = vld [vmem:[%s11607_s23 + $0x864] ss:$8 sps:$4 sm:$0xff]  }
 0x1f0   : > { %8222 = vmatprep.subr.bf16.mxu0 %v9975_v12  ;;  %8275 = vmatprep.subr.bf16.mxu1 %v9978_v13  ;;  %v10051_v12 = vld [vmem:[%s11607_s23 + $0x860] ss:$8 sps:$4 sm:$0xff]  }
 0x1f1   : > { %v10054_v13 = vld [vmem:[%s11607_s23 + $0x960] ss:$8 sps:$4 sm:$0xff]  }
 0x1f3   : > { %8223 = vmatpush1.bf16.msra.mxu0 %v9973_v14  ;;  %8276 = vmatpush1.bf16.msra.mxu1 %v9976_v15  ;;  %v10059_v15 = vld [vmem:[%s11607_s23 + $0x854] ss:$8 sps:$4 sm:$0xff]  }
 0x1f4   : > { %8224 = vmatprep.subr.bf16.mxu0 %v9981_v16  ;;  %8277 = vmatprep.subr.bf16.mxu1 %v9984_v17  ;;  %v10062_v16 = vld [vmem:[%s11607_s23 + $0x954] ss:$8 sps:$4 sm:$0xff]  }
 0x1f7   : > { %8225 = vmatpush1.bf16.msra.mxu0 %v9979_v18  ;;  %8278 = vmatpush1.bf16.msra.mxu1 %v9982_v19  ;;  %v12018_v19 = vld [vmem:[%s12686_s0 + $0x40] sm:$0xff] }
 0x1f8   : > { %8226 = vmatprep.subr.bf16.mxu0 %v9987_v20  ;;  %8279 = vmatprep.subr.bf16.mxu1 %v9990_v21  ;;  %v10057_v21 = vld [vmem:[%s11607_s23 + $0x850] ss:$8 sps:$4 sm:$0xff]  }
 0x1fb   : > { %8227 = vmatpush1.bf16.msra.mxu0 %v9985_v22  ;;  %8280 = vmatpush1.bf16.msra.mxu1 %v9988_v23  ;;  %v12026_v22 = vld [vmem:[%s12686_s0 + $0xc0] sm:$0xff] }
 0x1fc   : > { %8228 = vmatprep.subr.bf16.mxu0 %v9993_v24  ;;  %8281 = vmatprep.subr.bf16.mxu1 %v9996_v25  ;;  %v9082_v25 = vcombine.low %v4478_v57, %v4494_v60  ;;  %v10081_v57 = vld [vmem:[%s11607_s23 + $0x810] ss:$8 sps:$4 sm:$0xff]   ;;  %v10089_v60 = vld [vmem:[%s11607_s23 + $0x804] ss:$8 sps:$4 sm:$0xff]  }
 0x1ff   : > { %8229 = vmatpush1.bf16.msra.mxu0 %v9991_v26  ;;  %8282 = vmatpush1.bf16.msra.mxu1 %v9994_v27  ;;  %v9084_v26 = vcombine.low %v4479_v7, %v4495_v8  ;;  %v12031_v27 = vld [vmem:[%s12686_s0 + $0x48] sm:$0xff]  ;;  %v10095_v8 = vld [vmem:[%s11607_s23 + $0x8f4] ss:$8 sps:$4 sm:$0xff]  }
 0x200   : > { %8230 = vmatprep.subr.bf16.mxu0 %v9999_v28  ;;  %8283 = vmatprep.subr.bf16.mxu1 %v10002_v29  ;;  %v12036_v28 = vld [vmem:[%s12686_s0 + $0xc8] sm:$0xff] }
 0x201   : > { %v10090_v7 = vld [vmem:[%s11607_s23 + $0x900] ss:$8 sps:$4 sm:$0xff]  }
 0x203   : > { %8231 = vmatpush2.bf16.msra.mxu0 %v9997_v0  ;;  %8284 = vmatpush2.bf16.msra.mxu1 %v10000_v1  ;;  %v10060_v0 = vld [vmem:[%s11607_s23 + $0x950] ss:$8 sps:$4 sm:$0xff]   ;;  %v10065_v1 = vld [vmem:[%s11607_s23 + $0x844] ss:$8 sps:$4 sm:$0xff]  }
 0x204   : > { %8232 = vmatprep.subr.bf16.mxu0 %v10005_v3  ;;  %8285 = vmatprep.subr.bf16.mxu1 %v10008_v2 }
 0x207   : > { %8233 = vmatpush2.bf16.msra.mxu0 %v10003_v5  ;;  %8286 = vmatpush2.bf16.msra.mxu1 %v10006_v6  ;;  %v10068_v5 = vld [vmem:[%s11607_s23 + $0x944] ss:$8 sps:$4 sm:$0xff]  }
 0x208   : > { %8234 = vmatprep.subr.bf16.mxu0 %v10011_v30  ;;  %8287 = vmatprep.subr.bf16.mxu1 %v10014_v31  ;;  %v9055_v30 = vcombine.high %v12018_v19, %v12026_v22  ;;  %v9057_v31 = vcombine.high %v12031_v27, %v12036_v28 }
 0x20b   : > { %8235 = vmatpush2.bf16.msra.mxu0 %v10009_v32  ;;  %8288 = vmatpush2.bf16.msra.mxu1 %v10012_v33  ;;  %v10063_v32 = vld [vmem:[%s11607_s23 + $0x840] ss:$8 sps:$4 sm:$0xff]  }
 0x20c   : > { %8236 = vmatprep.subr.bf16.mxu0 %v10017_v34  ;;  %8289 = vmatprep.subr.bf16.mxu1 %v10020_v35  ;;  %v10066_v35 = vld [vmem:[%s11607_s23 + $0x940] ss:$8 sps:$4 sm:$0xff]  }
 0x20f   : > { %8237 = vmatpush2.bf16.msra.mxu0 %v10015_v36  ;;  %8290 = vmatpush2.bf16.msra.mxu1 %v10018_v37  ;;  %v10071_v36 = vld [vmem:[%s11607_s23 + $0x834] ss:$8 sps:$4 sm:$0xff]  }
 0x210   : > { %8238 = vmatprep.subr.bf16.mxu0 %v10023_v38  ;;  %8291 = vmatprep.subr.bf16.mxu1 %v10026_v39  ;;  %v10074_v38 = vld [vmem:[%s11607_s23 + $0x934] ss:$8 sps:$4 sm:$0xff]  }
 0x213   : > { %8239 = vmatpush2.bf16.msra.mxu0 %v10021_v42  ;;  %8292 = vmatpush2.bf16.msra.mxu1 %v10024_v43 }
 0x214   : > { %8240 = vmatprep.subr.bf16.mxu0 %v10029_v46  ;;  %8293 = vmatprep.subr.bf16.mxu1 %v10032_v47 }
 0x217   : > { %8241 = vmatpush2.bf16.msra.mxu0 %v10027_v48  ;;  %8294 = vmatpush2.bf16.msra.mxu1 %v10030_v49  ;;  %v10069_v48 = vld [vmem:[%s11607_s23 + $0x830] ss:$8 sps:$4 sm:$0xff]  }
 0x218   : > { %8242 = vmatprep.subr.bf16.mxu0 %v10035_v50  ;;  %8295 = vmatprep.subr.bf16.mxu1 %v10038_v51  ;;  %v10072_v49 = vld [vmem:[%s11607_s23 + $0x930] ss:$8 sps:$4 sm:$0xff]   ;;  %v10077_v51 = vld [vmem:[%s11607_s23 + $0x824] ss:$8 sps:$4 sm:$0xff]  }
 0x21b   : > { %8243 = vmatpush2.bf16.msra.mxu0 %v10033_v52  ;;  %8296 = vmatpush2.bf16.msra.mxu1 %v10036_v40  ;;  %v10080_v52 = vld [vmem:[%s11607_s23 + $0x924] ss:$8 sps:$4 sm:$0xff]  }
 0x21c   : > { %8244 = vmatprep.subr.bf16.mxu0 %v10041_v41  ;;  %8297 = vmatprep.subr.bf16.mxu1 %v10044_v44 }
 0x21f   : > { %8245 = vmatpush2.bf16.msra.mxu0 %v10039_v45  ;;  %8298 = vmatpush2.bf16.msra.mxu1 %v10042_v53  ;;  %v10075_v45 = vld [vmem:[%s11607_s23 + $0x820] ss:$8 sps:$4 sm:$0xff]  }
 0x220   : > { %8320 = vmatprep.subr.bf16.mxu0 %v10047_v54  ;;  %8373 = vmatprep.subr.bf16.mxu1 %v10050_v55  ;;  %v10078_v53 = vld [vmem:[%s11607_s23 + $0x920] ss:$8 sps:$4 sm:$0xff]   ;;  %v10083_v54 = vld [vmem:[%s11607_s23 + $0x814] ss:$8 sps:$4 sm:$0xff]  }
 0x221   : > { %v10086_v55 = vld [vmem:[%s11607_s23 + $0x914] ss:$8 sps:$4 sm:$0xff]  }
 0x222   : > { %v7930_v62 = vpop.f32.mrf.mxu0  ;;  %v7983_v11 = vpop.f32.mrf.mxu1  ;;  %8247 = vmatmul.mubr.bf16.vlgmr.msra.gmra.mxu0 %v9050_v63  ;;  %8300 = vmatmul.mubr.bf16.vlgmr.msra.gmra.mxu1 %v9052_v4  ;;  %v10092_v63 = vld [vmem:[%s11607_s23 + $0x904] ss:$8 sps:$4 sm:$0xff]   ;;  %v10087_v4 = vld [vmem:[%s11607_s23 + $0x800] ss:$8 sps:$4 sm:$0xff]  }
 0x223   : > { %v12011_v14 = vadd.f32 %v7983_v11, %v7930_v62  ;;  %8321 = vmatpush1.bf16.msra.mxu0 %v10045_v59  ;;  %8374 = vmatpush1.bf16.msra.mxu1 %v10048_v9  ;;  %v10084_v59 = vld [vmem:[%s11607_s23 + $0x910] ss:$8 sps:$4 sm:$0xff]   ;;  %v10098_v9 = vld [vmem:[%s11607_s23 + $0x9f4] ss:$8 sps:$4 sm:$0xff]   ;;  %v10099_v62 = vld [vmem:[%s11607_s23 + $0x8e0] ss:$8 sps:$4 sm:$0xff]  }
 0x224   : > { %v7932_v17 = vpop.f32.mrf.mxu0  ;;  %v7985_v18 = vpop.f32.mrf.mxu1  ;;  %8322 = vmatprep.subr.bf16.mxu0 %v10053_v10  ;;  %8375 = vmatprep.subr.bf16.mxu1 %v10056_v56  ;;  %v10093_v10 = vld [vmem:[%s11607_s23 + $0x8f0] ss:$8 sps:$4 sm:$0xff]   ;;  %v10102_v11 = vld [vmem:[%s11607_s23 + $0x9e0] ss:$8 sps:$4 sm:$0xff]  }
 0x225   : > { %v12020_v20 = vadd.f32 %v7985_v18, %v7932_v17  ;;  %8256 = vmatprep.mubr.bf16.mxu0 %v9083_v58  ;;  %8309 = vmatprep.mubr.bf16.mxu1 %v9085_v61  ;;  %v10096_v56 = vld [vmem:[%s11607_s23 + $0x9f0] ss:$8 sps:$4 sm:$0xff]   ;;  %v10101_v58 = vld [vmem:[%s11607_s23 + $0x8e4] ss:$8 sps:$4 sm:$0xff]  }
 0x226   : > { %v7934_v23 = vpop.f32.mrf.mxu0  ;;  %v7987_v24 = vpop.f32.mrf.mxu1  ;;  %v10104_v61 = vld [vmem:[%s11607_s23 + $0x9e4] ss:$8 sps:$4 sm:$0xff]  }
 0x227   : > { %v12038_v29 = vadd.f32 %v7987_v24, %v7934_v23  ;;  %8323 = vmatpush1.bf16.msra.mxu0 %v10051_v12  ;;  %8376 = vmatpush1.bf16.msra.mxu1 %v10054_v13  ;;  %v10107_v12 = vld [vmem:[%s11607_s23 + $0x8d4] ss:$8 sps:$4 sm:$0xff]   ;;  %v10113_v17 = vld [vmem:[%s11607_s23 + $0x8c4] ss:$8 sps:$4 sm:$0xff]   ;;  %v10114_v23 = vld [vmem:[%s11607_s23 + $0x9c0] ss:$8 sps:$4 sm:$0xff]  }
 0x228   : > { %v7936_v3 = vpop.f32.mrf.mxu0  ;;  %v7989_v2 = vpop.f32.mrf.mxu1  ;;  %8324 = vmatprep.subr.bf16.mxu0 %v10059_v15  ;;  %8377 = vmatprep.subr.bf16.mxu1 %v10062_v16  ;;  %v10110_v13 = vld [vmem:[%s11607_s23 + $0x9d4] ss:$8 sps:$4 sm:$0xff]   ;;  %v10105_v15 = vld [vmem:[%s11607_s23 + $0x8d0] ss:$8 sps:$4 sm:$0xff]   ;;  %v10116_v18 = vld [vmem:[%s11607_s23 + $0x9c4] ss:$8 sps:$4 sm:$0xff]  }
 0x229   : > { %v12043_v6 = vadd.f32 %v7989_v2, %v7936_v3  ;;  %v10108_v16 = vld [vmem:[%s11607_s23 + $0x9d0] ss:$8 sps:$4 sm:$0xff]   ;;  %v10119_v24 = vld [vmem:[%s11607_s23 + $0x8b4] ss:$8 sps:$4 sm:$0xff]   ;;  %v10128_v3 = vld [vmem:[%s11607_s23 + $0x9a4] ss:$8 sps:$4 sm:$0xff]  }
 0x22a   : > { %8257 = vmatmul.mubr.bf16.gmra.mxu0 %v9082_v25  ;;  %8310 = vmatmul.mubr.bf16.gmra.mxu1 %v9084_v26  ;;  %v7940_v33 = vpop.f32.mrf.mxu0  ;;  %v7993_v34 = vpop.f32.mrf.mxu1  ;;  %v10122_v25 = vld [vmem:[%s11607_s23 + $0x9b4] ss:$8 sps:$4 sm:$0xff]   ;;  %v10117_v26 = vld [vmem:[%s11607_s23 + $0x8b0] ss:$8 sps:$4 sm:$0xff]   ;;  %v10123_v2 = vld [vmem:[%s11607_s23 + $0x8a0] ss:$8 sps:$4 sm:$0xff]  }
 0x22b   : > { %8325 = vmatpush1.bf16.msra.mxu0 %v10057_v21  ;;  %8378 = vmatpush1.bf16.msra.mxu1 %v10060_v0  ;;  %v12052_v37 = vadd.f32 %v7993_v34, %v7940_v33  ;;  %v10111_v21 = vld [vmem:[%s11607_s23 + $0x8c0] ss:$8 sps:$4 sm:$0xff]   ;;  %v10120_v0 = vld [vmem:[%s11607_s23 + $0x9b0] ss:$8 sps:$4 sm:$0xff]   ;;  %v10137_v34 = vld [vmem:[%s11607_s23 + $0x884] ss:$8 sps:$4 sm:$0xff]  }
 0x22c   : > { %8326 = vmatprep.subr.bf16.mxu0 %v10065_v1  ;;  %8379 = vmatprep.subr.bf16.mxu1 %v10068_v5  ;;  %v7942_v39 = vpop.f32.mrf.mxu0  ;;  %v7995_v42 = vpop.f32.mrf.mxu1  ;;  %v10125_v1 = vld [vmem:[%s11607_s23 + $0x8a4] ss:$8 sps:$4 sm:$0xff]   ;;  %v10126_v5 = vld [vmem:[%s11607_s23 + $0x9a0] ss:$8 sps:$4 sm:$0xff]   ;;  %v10132_v33 = vld [vmem:[%s11607_s23 + $0x990] ss:$8 sps:$4 sm:$0xff]  }
 0x22d   : > { %v12055_v43 = vadd.f32 %v7995_v42, %v7942_v39  ;;  %8352 = vmatprep.mubr.bf16.mxu0 %v9055_v30  ;;  %8405 = vmatprep.mubr.bf16.mxu1 %v9057_v31  ;;  %v10131_v30 = vld [vmem:[%s11607_s23 + $0x894] ss:$8 sps:$4 sm:$0xff]  }
 0x22e   : > { %v7944_v46 = vpop.f32.mrf.mxu0  ;;  %v7997_v47 = vpop.f32.mrf.mxu1  ;;  %v10134_v31 = vld [vmem:[%s11607_s23 + $0x994] ss:$8 sps:$4 sm:$0xff]  }
 0x22f   : > { %8327 = vmatpush1.bf16.msra.mxu0 %v10063_v32  ;;  %8380 = vmatpush1.bf16.msra.mxu1 %v10066_v35  ;;  %v12059_v50 = vadd.f32 %v7997_v47, %v7944_v46  ;;  %v10129_v32 = vld [vmem:[%s11607_s23 + $0x890] ss:$8 sps:$4 sm:$0xff]   ;;  %v10140_v35 = vld [vmem:[%s11607_s23 + $0x984] ss:$8 sps:$4 sm:$0xff]   ;;  %v10143_v39 = vld [vmem:[%s11607_s23 + $0xa74] ss:$8 sps:$4 sm:$0xff]  }
 0x230   : > { %8328 = vmatprep.subr.bf16.mxu0 %v10071_v36  ;;  %8381 = vmatprep.subr.bf16.mxu1 %v10074_v38  ;;  %v7946_v40 = vpop.f32.mrf.mxu0  ;;  %v7999_v41 = vpop.f32.mrf.mxu1  ;;  %v10135_v36 = vld [vmem:[%s11607_s23 + $0x880] ss:$8 sps:$4 sm:$0xff]   ;;  %v10146_v42 = vld [vmem:[%s11607_s23 + $0xb74] ss:$8 sps:$4 sm:$0xff]   ;;  %v10141_v47 = vld [vmem:[%s11607_s23 + $0xa70] ss:$8 sps:$4 sm:$0xff]  }
 0x231   : > { %v12063_v44 = vadd.f32 %v7999_v41, %v7946_v40  ;;  %v10138_v38 = vld [vmem:[%s11607_s23 + $0x980] ss:$8 sps:$4 sm:$0xff]   ;;  %v10144_v41 = vld [vmem:[%s11607_s23 + $0xb70] ss:$8 sps:$4 sm:$0xff]  }
 0x232   : > { %v4480_v46 = vld [vmem:[%s12686_s0 + $0x140] sm:$0xff]  ;;  %v4497_v40 = vld [vmem:[%s12686_s0 + $0x1c8] sm:$0xff] }
 0x233   : > { %8329 = vmatpush1.bf16.msra.mxu0 %v10069_v48  ;;  %8382 = vmatpush1.bf16.msra.mxu1 %v10072_v49  ;;  %v9054_v48 = vcombine.low %v12018_v19, %v12026_v22  ;;  %v9056_v49 = vcombine.low %v12031_v27, %v12036_v28  ;;  %v10149_v19 = vld [vmem:[%s11607_s23 + $0xa64] ss:$8 sps:$4 sm:$0xff]   ;;  %v10147_v27 = vld [vmem:[%s11607_s23 + $0xa60] ss:$8 sps:$4 sm:$0xff]  }
 0x234   : > { %8330 = vmatprep.subr.bf16.mxu0 %v10077_v51  ;;  %8383 = vmatprep.subr.bf16.mxu1 %v10080_v52  ;;  %v4496_v51 = vld [vmem:[%s12686_s0 + $0x1c0] sm:$0xff]  ;;  %v4481_v52 = vld [vmem:[%s12686_s0 + $0x148] sm:$0xff] }
 0x235   : > { %v10152_v22 = vld [vmem:[%s11607_s23 + $0xb64] ss:$8 sps:$4 sm:$0xff]   ;;  %v10150_v28 = vld [vmem:[%s11607_s23 + $0xb60] ss:$8 sps:$4 sm:$0xff]  }
 0x237   : > { %8331 = vmatpush1.bf16.msra.mxu0 %v10075_v45  ;;  %8384 = vmatpush1.bf16.msra.mxu1 %v10078_v53  ;;  %v9087_v45 = vcombine.high %v4480_v46, %v4496_v51  ;;  %v9089_v53 = vcombine.high %v4481_v52, %v4497_v40 }
 0x238   : > { %8332 = vmatprep.subr.bf16.mxu0 %v10083_v54  ;;  %8385 = vmatprep.subr.bf16.mxu1 %v10086_v55 }
 0x23b   : > { %8333 = vmatpush1.bf16.msra.mxu0 %v10081_v57  ;;  %8386 = vmatpush1.bf16.msra.mxu1 %v10084_v59 }
 0x23c   : > { %8334 = vmatprep.subr.bf16.mxu0 %v10089_v60  ;;  %8387 = vmatprep.subr.bf16.mxu1 %v10092_v63  ;;  %v10155_v63 = vld [vmem:[%s11607_s23 + $0xa54] ss:$8 sps:$4 sm:$0xff]  }
 0x23f   : > { %8335 = vmatpush1.bf16.msra.mxu0 %v10087_v4  ;;  %8388 = vmatpush1.bf16.msra.mxu1 %v10090_v7  ;;  %v10158_v4 = vld [vmem:[%s11607_s23 + $0xb54] ss:$8 sps:$4 sm:$0xff]  }
 0x240   : > { %8336 = vmatprep.subr.bf16.mxu0 %v10095_v8  ;;  %8389 = vmatprep.subr.bf16.mxu1 %v10098_v9  ;;  %v10153_v9 = vld [vmem:[%s11607_s23 + $0xa50] ss:$8 sps:$4 sm:$0xff]  }
 0x243   : > { %8337 = vmatpush2.bf16.msra.mxu0 %v10093_v10  ;;  %8390 = vmatpush2.bf16.msra.mxu1 %v10096_v56  ;;  %v10156_v10 = vld [vmem:[%s11607_s23 + $0xb50] ss:$8 sps:$4 sm:$0xff]  }
 0x244   : > { %8338 = vmatprep.subr.bf16.mxu0 %v10101_v58  ;;  %8391 = vmatprep.subr.bf16.mxu1 %v10104_v61  ;;  %v12147_v56 = vld [vmem:[%s12686_s0 + $0xd0] sm:$0xff] }
 0x247   : > { %8339 = vmatpush2.bf16.msra.mxu0 %v10099_v62  ;;  %8392 = vmatpush2.bf16.msra.mxu1 %v10102_v11  ;;  %v9086_v62 = vcombine.low %v4480_v46, %v4496_v51  ;;  %v12152_v11 = vld [vmem:[%s12686_s0 + $0x58] sm:$0xff] }
 0x248   : > { %8340 = vmatprep.subr.bf16.mxu0 %v10107_v12  ;;  %8393 = vmatprep.subr.bf16.mxu1 %v10110_v13  ;;  %v12157_v12 = vld [vmem:[%s12686_s0 + $0xd8] sm:$0xff] }
 0x24b   : > { %8341 = vmatpush2.bf16.msra.mxu0 %v10105_v15  ;;  %8394 = vmatpush2.bf16.msra.mxu1 %v10108_v16 }
 0x24c   : > { %8342 = vmatprep.subr.bf16.mxu0 %v10113_v17  ;;  %8395 = vmatprep.subr.bf16.mxu1 %v10116_v18  ;;  %v10161_v18 = vld [vmem:[%s11607_s23 + $0xa44] ss:$8 sps:$4 sm:$0xff]  }
 0x24f   : > { %8343 = vmatpush2.bf16.msra.mxu0 %v10111_v21  ;;  %8396 = vmatpush2.bf16.msra.mxu1 %v10114_v23  ;;  %v10164_v21 = vld [vmem:[%s11607_s23 + $0xb44] ss:$8 sps:$4 sm:$0xff]  }
 0x250   : > { %8344 = vmatprep.subr.bf16.mxu0 %v10119_v24  ;;  %8397 = vmatprep.subr.bf16.mxu1 %v10122_v25  ;;  %v10159_v25 = vld [vmem:[%s11607_s23 + $0xa40] ss:$8 sps:$4 sm:$0xff]  }
 0x253   : > { %8345 = vmatpush2.bf16.msra.mxu0 %v10117_v26  ;;  %8398 = vmatpush2.bf16.msra.mxu1 %v10120_v0  ;;  %v10162_v26 = vld [vmem:[%s11607_s23 + $0xb40] ss:$8 sps:$4 sm:$0xff]  }
 0x254   : > { %8346 = vmatprep.subr.bf16.mxu0 %v10125_v1  ;;  %8399 = vmatprep.subr.bf16.mxu1 %v10128_v3 }
 0x257   : > { %8347 = vmatpush2.bf16.msra.mxu0 %v10123_v2  ;;  %8400 = vmatpush2.bf16.msra.mxu1 %v10126_v5 }
 0x258   : > { %8348 = vmatprep.subr.bf16.mxu0 %v10131_v30  ;;  %8401 = vmatprep.subr.bf16.mxu1 %v10134_v31  ;;  %v10167_v31 = vld [vmem:[%s11607_s23 + $0xa34] ss:$8 sps:$4 sm:$0xff]  }
 0x25b   : > { %8349 = vmatpush2.bf16.msra.mxu0 %v10129_v32  ;;  %8402 = vmatpush2.bf16.msra.mxu1 %v10132_v33  ;;  %v10170_v32 = vld [vmem:[%s11607_s23 + $0xb34] ss:$8 sps:$4 sm:$0xff]  }
 0x25c   : > { %8350 = vmatprep.subr.bf16.mxu0 %v10137_v34  ;;  %8403 = vmatprep.subr.bf16.mxu1 %v10140_v35  ;;  %v10165_v35 = vld [vmem:[%s11607_s23 + $0xa30] ss:$8 sps:$4 sm:$0xff]  }
 0x25f   : > { %8351 = vmatpush2.bf16.msra.mxu0 %v10135_v36  ;;  %8404 = vmatpush2.bf16.msra.mxu1 %v10138_v38  ;;  %v10168_v36 = vld [vmem:[%s11607_s23 + $0xb30] ss:$8 sps:$4 sm:$0xff]  }
 0x260   : > { %8426 = vmatprep.subr.bf16.mxu0 %v10143_v39  ;;  %8479 = vmatprep.subr.bf16.mxu1 %v10146_v42 }
 0x262   : > { %v8036_v54 = vpop.f32.mrf.mxu0  ;;  %v8089_v55 = vpop.f32.mrf.mxu1  ;;  %8353 = vmatmul.mubr.bf16.vlgmr.msra.gmra.mxu0 %v9054_v48  ;;  %8406 = vmatmul.mubr.bf16.vlgmr.msra.gmra.mxu1 %v9056_v49  ;;  %v10176_v48 = vld [vmem:[%s11607_s23 + $0xb24] ss:$8 sps:$4 sm:$0xff]  }
 0x263   : > { %v8037_v57 = vadd.f32 %v8036_v54, %v12011_v14  ;;  %8427 = vmatpush1.bf16.msra.mxu0 %v10141_v47  ;;  %8480 = vmatpush1.bf16.msra.mxu1 %v10144_v41  ;;  %v12142_v14 = vld [vmem:[%s12686_s0 + $0x50] sm:$0xff]  ;;  %v10173_v47 = vld [vmem:[%s11607_s23 + $0xa24] ss:$8 sps:$4 sm:$0xff]  }
 0x264   : > { %v8038_v59 = vpop.f32.mrf.mxu0  ;;  %v8091_v60 = vpop.f32.mrf.mxu1  ;;  %8428 = vmatprep.subr.bf16.mxu0 %v10149_v19  ;;  %8481 = vmatprep.subr.bf16.mxu1 %v10152_v22  ;;  %v9059_v0 = vcombine.high %v12142_v14, %v12147_v56  ;;  %v10179_v41 = vld [vmem:[%s11607_s23 + $0xa14] ss:$8 sps:$4 sm:$0xff]   ;;  %v10180_v22 = vld [vmem:[%s11607_s23 + $0xb10] ss:$8 sps:$4 sm:$0xff]  }
 0x265   : > { %v12134_v7 = vadd.f32 %v8089_v55, %v8037_v57  ;;  %v8039_v8 = vadd.f32 %v8038_v59, %v12020_v20  ;;  %8362 = vmatprep.mubr.bf16.mxu0 %v9087_v45  ;;  %8415 = vmatprep.mubr.bf16.mxu1 %v9089_v53  ;;  %v9088_v20 = vcombine.low %v4481_v52, %v4497_v40  ;;  %v10171_v52 = vld [vmem:[%s11607_s23 + $0xa20] ss:$8 sps:$4 sm:$0xff]   ;;  %v10182_v19 = vld [vmem:[%s11607_s23 + $0xb14] ss:$8 sps:$4 sm:$0xff]   ;;  %v10189_v57 = vld [vmem:[%s11607_s23 + $0xaf0] ss:$8 sps:$4 sm:$0xff]  }
 0x266   : > { %v8040_v58 = vpop.f32.mrf.mxu0  ;;  %v8093_v61 = vpop.f32.mrf.mxu1  ;;  %v10174_v40 = vld [vmem:[%s11607_s23 + $0xb20] ss:$8 sps:$4 sm:$0xff]   ;;  %v10191_v54 = vld [vmem:[%s11607_s23 + $0xaf4] ss:$8 sps:$4 sm:$0xff]   ;;  %v10192_v59 = vld [vmem:[%s11607_s23 + $0xbf0] ss:$8 sps:$4 sm:$0xff]  }
 0x267   : > { %v12159_v13 = vadd.f32 %v8091_v60, %v8039_v8  ;;  %v8041_v15 = vadd.f32 %v8040_v58, %v12038_v29  ;;  %8429 = vmatpush1.bf16.msra.mxu0 %v10147_v27  ;;  %8482 = vmatpush1.bf16.msra.mxu1 %v10150_v28  ;;  %v9061_v29 = vcombine.high %v12152_v11, %v12157_v12  ;;  %v10185_v27 = vld [vmem:[%s11607_s23 + $0xa04] ss:$8 sps:$4 sm:$0xff]   ;;  %v10183_v45 = vld [vmem:[%s11607_s23 + $0xa00] ss:$8 sps:$4 sm:$0xff]   ;;  %v10194_v55 = vld [vmem:[%s11607_s23 + $0xbf4] ss:$8 sps:$4 sm:$0xff]  }
 0x268   : > { %v8042_v16 = vpop.f32.mrf.mxu0  ;;  %v8095_v17 = vpop.f32.mrf.mxu1  ;;  %8430 = vmatprep.subr.bf16.mxu0 %v10155_v63  ;;  %8483 = vmatprep.subr.bf16.mxu1 %v10158_v4  ;;  %v10188_v28 = vld [vmem:[%s11607_s23 + $0xb04] ss:$8 sps:$4 sm:$0xff]   ;;  %v10186_v53 = vld [vmem:[%s11607_s23 + $0xb00] ss:$8 sps:$4 sm:$0xff]   ;;  %v10201_v58 = vld [vmem:[%s11607_s23 + $0xad0] ss:$8 sps:$4 sm:$0xff]  }
 0x269   : > { %v12164_v23 = vadd.f32 %v8093_v61, %v8041_v15  ;;  %v8043_v24 = vadd.f32 %v8042_v16, %v12043_v6  ;;  %v10197_v60 = vld [vmem:[%s11607_s23 + $0xae4] ss:$8 sps:$4 sm:$0xff]   ;;  %v10195_v4 = vld [vmem:[%s11607_s23 + $0xae0] ss:$8 sps:$4 sm:$0xff]   ;;  %v10204_v61 = vld [vmem:[%s11607_s23 + $0xbd0] ss:$8 sps:$4 sm:$0xff]  }
 0x26a   : > { %v8046_v1 = vpop.f32.mrf.mxu0  ;;  %8363 = vmatmul.mubr.bf16.gmra.mxu0 %v9086_v62  ;;  %v8099_v3 = vpop.f32.mrf.mxu1  ;;  %8416 = vmatmul.mubr.bf16.gmra.mxu1 %v9088_v20  ;;  %v10200_v63 = vld [vmem:[%s11607_s23 + $0xbe4] ss:$8 sps:$4 sm:$0xff]   ;;  %v10198_v8 = vld [vmem:[%s11607_s23 + $0xbe0] ss:$8 sps:$4 sm:$0xff]  }
 0x26b   : > { %v12173_v2 = vadd.f32 %v8095_v17, %v8043_v24  ;;  %v8047_v6 = vadd.f32 %v8046_v1, %v12052_v37  ;;  %8431 = vmatpush1.bf16.msra.mxu0 %v10153_v9  ;;  %8484 = vmatpush1.bf16.msra.mxu1 %v10156_v10  ;;  %v10203_v9 = vld [vmem:[%s11607_s23 + $0xad4] ss:$8 sps:$4 sm:$0xff]   ;;  %v10209_v62 = vld [vmem:[%s11607_s23 + $0xac4] ss:$8 sps:$4 sm:$0xff]   ;;  %v10207_v15 = vld [vmem:[%s11607_s23 + $0xac0] ss:$8 sps:$4 sm:$0xff]  }
 0x26c   : > { %v8048_v5 = vpop.f32.mrf.mxu0  ;;  %v8101_v30 = vpop.f32.mrf.mxu1  ;;  %8432 = vmatprep.subr.bf16.mxu0 %v10161_v18  ;;  %8485 = vmatprep.subr.bf16.mxu1 %v10164_v21  ;;  %v10206_v10 = vld [vmem:[%s11607_s23 + $0xbd4] ss:$8 sps:$4 sm:$0xff]   ;;  %v10212_v20 = vld [vmem:[%s11607_s23 + $0xbc4] ss:$8 sps:$4 sm:$0xff]   ;;  %v10210_v16 = vld [vmem:[%s11607_s23 + $0xbc0] ss:$8 sps:$4 sm:$0xff]  }
 0x26d   : > { %v8049_v33 = vadd.f32 %v8048_v5, %v12055_v43  ;;  %v12179_v34 = vadd.f32 %v8099_v3, %v8047_v6  ;;  %8458 = vmatprep.mubr.bf16.mxu0 %v9059_v0  ;;  %8511 = vmatprep.mubr.bf16.mxu1 %v9061_v29  ;;  %v10215_v17 = vld [vmem:[%s11607_s23 + $0xab4] ss:$8 sps:$4 sm:$0xff]   ;;  %v10213_v21 = vld [vmem:[%s11607_s23 + $0xab0] ss:$8 sps:$4 sm:$0xff]   ;;  %v10219_v0 = vld [vmem:[%s11607_s23 + $0xaa0] ss:$8 sps:$4 sm:$0xff]  }
 0x26e   : > { %v8050_v38 = vpop.f32.mrf.mxu0  ;;  %v8103_v37 = vpop.f32.mrf.mxu1  ;;  %v10218_v18 = vld [vmem:[%s11607_s23 + $0xbb4] ss:$8 sps:$4 sm:$0xff]   ;;  %v10216_v24 = vld [vmem:[%s11607_s23 + $0xbb0] ss:$8 sps:$4 sm:$0xff]   ;;  %v10222_v29 = vld [vmem:[%s11607_s23 + $0xba0] ss:$8 sps:$4 sm:$0xff]  }
 0x26f   : > { %v8051_v39 = vadd.f32 %v8050_v38, %v12059_v50  ;;  %v12184_v42 = vadd.f32 %v8101_v30, %v8049_v33  ;;  %8433 = vmatpush1.bf16.msra.mxu0 %v10159_v25  ;;  %8486 = vmatpush1.bf16.msra.mxu1 %v10162_v26  ;;  %v10221_v25 = vld [vmem:[%s11607_s23 + $0xaa4] ss:$8 sps:$4 sm:$0xff]   ;;  %v10227_v1 = vld [vmem:[%s11607_s23 + $0xa94] ss:$8 sps:$4 sm:$0xff]   ;;  %v10225_v6 = vld [vmem:[%s11607_s23 + $0xa90] ss:$8 sps:$4 sm:$0xff]  }
 0x270   : > { %v8052_v43 = vpop.f32.mrf.mxu0  ;;  %v8105_v46 = vpop.f32.mrf.mxu1  ;;  %8434 = vmatprep.subr.bf16.mxu0 %v10167_v31  ;;  %8487 = vmatprep.subr.bf16.mxu1 %v10170_v32  ;;  %v10224_v26 = vld [vmem:[%s11607_s23 + $0xba4] ss:$8 sps:$4 sm:$0xff]   ;;  %v10230_v3 = vld [vmem:[%s11607_s23 + $0xb94] ss:$8 sps:$4 sm:$0xff]   ;;  %v10228_v5 = vld [vmem:[%s11607_s23 + $0xb90] ss:$8 sps:$4 sm:$0xff]  }
 0x271   : > { %v8053_v49 = vadd.f32 %v8052_v43, %v12063_v44  ;;  %v12189_v51 = vadd.f32 %v8103_v37, %v8051_v39  ;;  %v10177_v44 = vld [vmem:[%s11607_s23 + $0xa10] ss:$8 sps:$4 sm:$0xff]   ;;  %v10233_v30 = vld [vmem:[%s11607_s23 + $0xa84] ss:$8 sps:$4 sm:$0xff]   ;;  %v10231_v32 = vld [vmem:[%s11607_s23 + $0xa80] ss:$8 sps:$4 sm:$0xff]   ;;  %v9058_v37 = vcombine.low %v12142_v14, %v12147_v56  ;;  %v9060_v39 = vcombine.low %v12152_v11, %v12157_v12 }
 0x272   : > { %v10236_v31 = vld [vmem:[%s11607_s23 + $0xb84] ss:$8 sps:$4 sm:$0xff]   ;;  %v10234_v33 = vld [vmem:[%s11607_s23 + $0xb80] ss:$8 sps:$4 sm:$0xff]   ;;  %v4482_v38 = vld [vmem:[%s12686_s0 + $0x150] sm:$0xff] }
 0x273   : > { %v12191_v50 = vadd.f32 %v8105_v46, %v8053_v49  ;;  %8435 = vmatpush1.bf16.msra.mxu0 %v10165_v35  ;;  %8488 = vmatpush1.bf16.msra.mxu1 %v10168_v36  ;;  %v10239_v35 = vld [vmem:[%s11607_s23 + $0xc74] ss:$8 sps:$4 sm:$0xff]   ;;  %v10240_v14 = vld [vmem:[%s11607_s23 + $0xd70] ss:$8 sps:$4 sm:$0xff]   ;;  %v10245_v56 = vld [vmem:[%s11607_s23 + $0xc64] ss:$8 sps:$4 sm:$0xff]  }
 0x274   : > { %8436 = vmatprep.subr.bf16.mxu0 %v10173_v47  ;;  %8489 = vmatprep.subr.bf16.mxu1 %v10176_v48  ;;  %v10242_v36 = vld [vmem:[%s11607_s23 + $0xd74] ss:$8 sps:$4 sm:$0xff]   ;;  %v10237_v48 = vld [vmem:[%s11607_s23 + $0xc70] ss:$8 sps:$4 sm:$0xff]   ;;  %v10248_v11 = vld [vmem:[%s11607_s23 + $0xd64] ss:$8 sps:$4 sm:$0xff]  }
 0x275   : > { %v4498_v43 = vld [vmem:[%s12686_s0 + $0x1d0] sm:$0xff]  ;;  %v4483_v46 = vld [vmem:[%s12686_s0 + $0x158] sm:$0xff] }
 0x276   : > { %v4499_v47 = vld [vmem:[%s12686_s0 + $0x1d8] sm:$0xff]  ;;  %v9091_v12 = vcombine.high %v4482_v38, %v4498_v43 }
 0x277   : > { %8437 = vmatpush1.bf16.msra.mxu0 %v10171_v52  ;;  %8490 = vmatpush1.bf16.msra.mxu1 %v10174_v40  ;;  %v9093_v49 = vcombine.high %v4483_v46, %v4499_v47 }
 0x278   : > { %8438 = vmatprep.subr.bf16.mxu0 %v10179_v41  ;;  %8491 = vmatprep.subr.bf16.mxu1 %v10182_v19  ;;  %v10243_v19 = vld [vmem:[%s11607_s23 + $0xc60] ss:$8 sps:$4 sm:$0xff]  }
 0x27b   : > { %8439 = vmatpush1.bf16.msra.mxu0 %v10177_v44  ;;  %8492 = vmatpush1.bf16.msra.mxu1 %v10180_v22  ;;  %v10246_v44 = vld [vmem:[%s11607_s23 + $0xd60] ss:$8 sps:$4 sm:$0xff]  }
 0x27c   : > { %8440 = vmatprep.subr.bf16.mxu0 %v10185_v27  ;;  %8493 = vmatprep.subr.bf16.mxu1 %v10188_v28  ;;  %v10251_v28 = vld [vmem:[%s11607_s23 + $0xc54] ss:$8 sps:$4 sm:$0xff]  }
 0x27f   : > { %8441 = vmatpush1.bf16.msra.mxu0 %v10183_v45  ;;  %8494 = vmatpush1.bf16.msra.mxu1 %v10186_v53  ;;  %v10254_v45 = vld [vmem:[%s11607_s23 + $0xd54] ss:$8 sps:$4 sm:$0xff]  }
 0x280   : > { %8442 = vmatprep.subr.bf16.mxu0 %v10191_v54  ;;  %8495 = vmatprep.subr.bf16.mxu1 %v10194_v55 }
 0x283   : > { %8443 = vmatpush2.bf16.msra.mxu0 %v10189_v57  ;;  %8496 = vmatpush2.bf16.msra.mxu1 %v10192_v59  ;;  %v9090_v59 = vcombine.low %v4482_v38, %v4498_v43  ;;  %v10279_v38 = vld [vmem:[%s11607_s23 + $0xc00] ss:$8 sps:$4 sm:$0xff]   ;;  %v10290_v43 = vld [vmem:[%s11607_s23 + $0xdf4] ss:$8 sps:$4 sm:$0xff]  }
 0x284   : > { %8444 = vmatprep.subr.bf16.mxu0 %v10197_v60  ;;  %8497 = vmatprep.subr.bf16.mxu1 %v10200_v63  ;;  %v9092_v60 = vcombine.low %v4483_v46, %v4499_v47  ;;  %v12273_v63 = vld [vmem:[%s12686_s0 + $0xe0] sm:$0xff]  ;;  %v10285_v46 = vld [vmem:[%s11607_s23 + $0xcf0] ss:$8 sps:$4 sm:$0xff]  }
 0x285   : > { %v10288_v47 = vld [vmem:[%s11607_s23 + $0xdf0] ss:$8 sps:$4 sm:$0xff]  }
 0x287   : > { %8445 = vmatpush2.bf16.msra.mxu0 %v10195_v4  ;;  %8498 = vmatpush2.bf16.msra.mxu1 %v10198_v8  ;;  %v12283_v4 = vld [vmem:[%s12686_s0 + $0xe8] sm:$0xff] }
 0x288   : > { %8446 = vmatprep.subr.bf16.mxu0 %v10203_v9  ;;  %8499 = vmatprep.subr.bf16.mxu1 %v10206_v10  ;;  %v10249_v10 = vld [vmem:[%s11607_s23 + $0xc50] ss:$8 sps:$4 sm:$0xff]  }
 0x28b   : > { %8447 = vmatpush2.bf16.msra.mxu0 %v10201_v58  ;;  %8500 = vmatpush2.bf16.msra.mxu1 %v10204_v61  ;;  %v10252_v58 = vld [vmem:[%s11607_s23 + $0xd50] ss:$8 sps:$4 sm:$0xff]  }
 0x28c   : > { %8448 = vmatprep.subr.bf16.mxu0 %v10209_v62  ;;  %8501 = vmatprep.subr.bf16.mxu1 %v10212_v20  ;;  %v10257_v62 = vld [vmem:[%s11607_s23 + $0xc44] ss:$8 sps:$4 sm:$0xff]  }
 0x28d   : > { %v10260_v20 = vld [vmem:[%s11607_s23 + $0xd44] ss:$8 sps:$4 sm:$0xff]  }
 0x28f   : > { %8449 = vmatpush2.bf16.msra.mxu0 %v10207_v15  ;;  %8502 = vmatpush2.bf16.msra.mxu1 %v10210_v16 }
 0x290   : > { %8450 = vmatprep.subr.bf16.mxu0 %v10215_v17  ;;  %8503 = vmatprep.subr.bf16.mxu1 %v10218_v18 }
 0x293   : > { %8451 = vmatpush2.bf16.msra.mxu0 %v10213_v21  ;;  %8504 = vmatpush2.bf16.msra.mxu1 %v10216_v24  ;;  %v10255_v24 = vld [vmem:[%s11607_s23 + $0xc40] ss:$8 sps:$4 sm:$0xff]  }
 0x294   : > { %8452 = vmatprep.subr.bf16.mxu0 %v10221_v25  ;;  %8505 = vmatprep.subr.bf16.mxu1 %v10224_v26  ;;  %v10258_v25 = vld [vmem:[%s11607_s23 + $0xd40] ss:$8 sps:$4 sm:$0xff]   ;;  %v10266_v26 = vld [vmem:[%s11607_s23 + $0xd34] ss:$8 sps:$4 sm:$0xff]  }
 0x297   : > { %8453 = vmatpush2.bf16.msra.mxu0 %v10219_v0  ;;  %8506 = vmatpush2.bf16.msra.mxu1 %v10222_v29  ;;  %v10261_v0 = vld [vmem:[%s11607_s23 + $0xc30] ss:$8 sps:$4 sm:$0xff]  }
 0x298   : > { %8454 = vmatprep.subr.bf16.mxu0 %v10227_v1  ;;  %8507 = vmatprep.subr.bf16.mxu1 %v10230_v3  ;;  %v10264_v29 = vld [vmem:[%s11607_s23 + $0xd30] ss:$8 sps:$4 sm:$0xff]   ;;  %v10269_v1 = vld [vmem:[%s11607_s23 + $0xc24] ss:$8 sps:$4 sm:$0xff]  }
 0x299   : > { %v10272_v3 = vld [vmem:[%s11607_s23 + $0xd24] ss:$8 sps:$4 sm:$0xff]  }
 0x29b   : > { %8455 = vmatpush2.bf16.msra.mxu0 %v10225_v6  ;;  %8508 = vmatpush2.bf16.msra.mxu1 %v10228_v5  ;;  %v10267_v6 = vld [vmem:[%s11607_s23 + $0xc20] ss:$8 sps:$4 sm:$0xff]  }
 0x29c   : > { %8456 = vmatprep.subr.bf16.mxu0 %v10233_v30  ;;  %8509 = vmatprep.subr.bf16.mxu1 %v10236_v31  ;;  %v10270_v5 = vld [vmem:[%s11607_s23 + $0xd20] ss:$8 sps:$4 sm:$0xff]   ;;  %v10275_v30 = vld [vmem:[%s11607_s23 + $0xc14] ss:$8 sps:$4 sm:$0xff]  }
 0x29d   : > { %v10278_v31 = vld [vmem:[%s11607_s23 + $0xd14] ss:$8 sps:$4 sm:$0xff]  }
 0x29f   : > { %8457 = vmatpush2.bf16.msra.mxu0 %v10231_v32  ;;  %8510 = vmatpush2.bf16.msra.mxu1 %v10234_v33  ;;  %v10273_v32 = vld [vmem:[%s11607_s23 + $0xc10] ss:$8 sps:$4 sm:$0xff]  }
 0x2a0   : > { %8532 = vmatprep.subr.bf16.mxu0 %v10239_v35  ;;  %8585 = vmatprep.subr.bf16.mxu1 %v10242_v36  ;;  %v10276_v33 = vld [vmem:[%s11607_s23 + $0xd10] ss:$8 sps:$4 sm:$0xff]   ;;  %v10281_v35 = vld [vmem:[%s11607_s23 + $0xc04] ss:$8 sps:$4 sm:$0xff]  }
 0x2a1   : > { %v10284_v36 = vld [vmem:[%s11607_s23 + $0xd04] ss:$8 sps:$4 sm:$0xff]  }
 0x2a2   : > { %v8142_v52 = vpop.f32.mrf.mxu0  ;;  %v8195_v40 = vpop.f32.mrf.mxu1  ;;  %8459 = vmatmul.mubr.bf16.vlgmr.msra.gmra.mxu0 %v9058_v37  ;;  %8512 = vmatmul.mubr.bf16.vlgmr.msra.gmra.mxu1 %v9060_v39  ;;  %v10282_v37 = vld [vmem:[%s11607_s23 + $0xd00] ss:$8 sps:$4 sm:$0xff]   ;;  %v10287_v39 = vld [vmem:[%s11607_s23 + $0xcf4] ss:$8 sps:$4 sm:$0xff]  }
 0x2a3   : > { %v8143_v41 = vadd.f32 %v8142_v52, %v12134_v7  ;;  %8533 = vmatpush1.bf16.msra.mxu0 %v10237_v48  ;;  %8586 = vmatpush1.bf16.msra.mxu1 %v10240_v14  ;;  %v12268_v7 = vld [vmem:[%s12686_s0 + $0x60] sm:$0xff]  ;;  %v10297_v52 = vld [vmem:[%s11607_s23 + $0xcd0] ss:$8 sps:$4 sm:$0xff]  }
 0x2a4   : > { %v8144_v22 = vpop.f32.mrf.mxu0  ;;  %v8197_v27 = vpop.f32.mrf.mxu1  ;;  %8534 = vmatprep.subr.bf16.mxu0 %v10245_v56  ;;  %8587 = vmatprep.subr.bf16.mxu1 %v10248_v11  ;;  %v10293_v48 = vld [vmem:[%s11607_s23 + $0xce4] ss:$8 sps:$4 sm:$0xff]   ;;  %v10291_v56 = vld [vmem:[%s11607_s23 + $0xce0] ss:$8 sps:$4 sm:$0xff]  }
 0x2a5   : > { %v12262_v53 = vadd.f32 %v8195_v40, %v8143_v41  ;;  %v8145_v54 = vadd.f32 %v8144_v22, %v12159_v13  ;;  %8468 = vmatprep.mubr.bf16.mxu0 %v9091_v12  ;;  %8521 = vmatprep.mubr.bf16.mxu1 %v9093_v49  ;;  %v12278_v13 = vld [vmem:[%s12686_s0 + $0x68] sm:$0xff]  ;;  %v10299_v12 = vld [vmem:[%s11607_s23 + $0xcd4] ss:$8 sps:$4 sm:$0xff]   ;;  %v10300_v40 = vld [vmem:[%s11607_s23 + $0xdd0] ss:$8 sps:$4 sm:$0xff]  }
 0x2a6   : > { %v8146_v55 = vpop.f32.mrf.mxu0  ;;  %v8199_v57 = vpop.f32.mrf.mxu1  ;;  %v9065_v17 = vcombine.high %v12278_v13, %v12283_v4  ;;  %v10296_v14 = vld [vmem:[%s11607_s23 + $0xde4] ss:$8 sps:$4 sm:$0xff]   ;;  %v10294_v11 = vld [vmem:[%s11607_s23 + $0xde0] ss:$8 sps:$4 sm:$0xff]   ;;  %v10302_v49 = vld [vmem:[%s11607_s23 + $0xdd4] ss:$8 sps:$4 sm:$0xff]  }
 0x2a7   : > { %v12285_v8 = vadd.f32 %v8197_v27, %v8145_v54  ;;  %v8147_v9 = vadd.f32 %v8146_v55, %v12164_v23  ;;  %8535 = vmatpush1.bf16.msra.mxu0 %v10243_v19  ;;  %8588 = vmatpush1.bf16.msra.mxu1 %v10246_v44  ;;  %v9063_v23 = vcombine.high %v12268_v7, %v12273_v63  ;;  %v10305_v41 = vld [vmem:[%s11607_s23 + $0xcc4] ss:$8 sps:$4 sm:$0xff]   ;;  %v10303_v44 = vld [vmem:[%s11607_s23 + $0xcc0] ss:$8 sps:$4 sm:$0xff]   ;;  %v10311_v27 = vld [vmem:[%s11607_s23 + $0xcb4] ss:$8 sps:$4 sm:$0xff]  }
 0x2a8   : > { %v8148_v61 = vpop.f32.mrf.mxu0  ;;  %8536 = vmatprep.subr.bf16.mxu0 %v10251_v28  ;;  %8589 = vmatprep.subr.bf16.mxu1 %v10254_v45  ;;  %v8201_v18 = vpop.f32.mrf.mxu1  ;;  %v10308_v19 = vld [vmem:[%s11607_s23 + $0xdc4] ss:$8 sps:$4 sm:$0xff]   ;;  %v10306_v22 = vld [vmem:[%s11607_s23 + $0xdc0] ss:$8 sps:$4 sm:$0xff]   ;;  %v10314_v28 = vld [vmem:[%s11607_s23 + $0xdb4] ss:$8 sps:$4 sm:$0xff]  }
 0x2a9   : > { %v12292_v15 = vadd.f32 %v8199_v57, %v8147_v9  ;;  %v8149_v16 = vadd.f32 %v8148_v61, %v12173_v2  ;;  %v10263_v2 = vld [vmem:[%s11607_s23 + $0xc34] ss:$8 sps:$4 sm:$0xff]   ;;  %v10309_v45 = vld [vmem:[%s11607_s23 + $0xcb0] ss:$8 sps:$4 sm:$0xff]   ;;  %v10317_v55 = vld [vmem:[%s11607_s23 + $0xca4] ss:$8 sps:$4 sm:$0xff]  }
 0x2aa   : > { %8469 = vmatmul.mubr.bf16.gmra.mxu0 %v9090_v59  ;;  %8522 = vmatmul.mubr.bf16.gmra.mxu1 %v9092_v60  ;;  %v10312_v54 = vld [vmem:[%s11607_s23 + $0xdb0] ss:$8 sps:$4 sm:$0xff]   ;;  %v10320_v57 = vld [vmem:[%s11607_s23 + $0xda4] ss:$8 sps:$4 sm:$0xff]   ;;  %v10315_v59 = vld [vmem:[%s11607_s23 + $0xca0] ss:$8 sps:$4 sm:$0xff]  }
 0x2ab   : > { %v12299_v21 = vadd.f32 %v8201_v18, %v8149_v16  ;;  %8537 = vmatpush1.bf16.msra.mxu0 %v10249_v10  ;;  %8590 = vmatpush1.bf16.msra.mxu1 %v10252_v58  ;;  %v10318_v60 = vld [vmem:[%s11607_s23 + $0xda0] ss:$8 sps:$4 sm:$0xff]   ;;  %v10323_v9 = vld [vmem:[%s11607_s23 + $0xc94] ss:$8 sps:$4 sm:$0xff]   ;;  %v10321_v58 = vld [vmem:[%s11607_s23 + $0xc90] ss:$8 sps:$4 sm:$0xff]  }
 0x2ac   : > { %8538 = vmatprep.subr.bf16.mxu0 %v10257_v62  ;;  %8591 = vmatprep.subr.bf16.mxu1 %v10260_v20  ;;  %v10326_v10 = vld [vmem:[%s11607_s23 + $0xd94] ss:$8 sps:$4 sm:$0xff]   ;;  %v10324_v61 = vld [vmem:[%s11607_s23 + $0xd90] ss:$8 sps:$4 sm:$0xff]   ;;  %v10329_v62 = vld [vmem:[%s11607_s23 + $0xc84] ss:$8 sps:$4 sm:$0xff]  }
 0x2ad   : > { %8564 = vmatprep.mubr.bf16.mxu0 %v9063_v23  ;;  %8617 = vmatprep.mubr.bf16.mxu1 %v9065_v17  ;;  %v10332_v20 = vld [vmem:[%s11607_s23 + $0xd84] ss:$8 sps:$4 sm:$0xff]   ;;  %v10327_v16 = vld [vmem:[%s11607_s23 + $0xc80] ss:$8 sps:$4 sm:$0xff]   ;;  %v10335_v17 = vld [vmem:[%s11607_s23 + $0xe74] ss:$8 sps:$4 sm:$0xff]  }
 0x2ae   : > { %v10330_v23 = vld [vmem:[%s11607_s23 + $0xd80] ss:$8 sps:$4 sm:$0xff]   ;;  %v10338_v18 = vld [vmem:[%s11607_s23 + $0xf74] ss:$8 sps:$4 sm:$0xff]  }
 0x2af   : > { %8539 = vmatpush1.bf16.msra.mxu0 %v10255_v24  ;;  %8592 = vmatpush1.bf16.msra.mxu1 %v10258_v25  ;;  %v4484_v24 = vld [vmem:[%s12686_s0 + $0x160] sm:$0xff]  ;;  %v9062_v25 = vcombine.low %v12268_v7, %v12273_v63  ;;  %v10333_v7 = vld [vmem:[%s11607_s23 + $0xe70] ss:$8 sps:$4 sm:$0xff]  }
 0x2b0   : > { %8540 = vmatprep.subr.bf16.mxu0 %v10263_v2  ;;  %8593 = vmatprep.subr.bf16.mxu1 %v10266_v26  ;;  %v9064_v2 = vcombine.low %v12278_v13, %v12283_v4  ;;  %v4500_v26 = vld [vmem:[%s12686_s0 + $0x1e0] sm:$0xff]  ;;  %v10336_v63 = vld [vmem:[%s11607_s23 + $0xf70] ss:$8 sps:$4 sm:$0xff]  }
 0x2b1   : > { %v10341_v13 = vld [vmem:[%s11607_s23 + $0xe64] ss:$8 sps:$4 sm:$0xff]  }
 0x2b2   : > { %v10344_v4 = vld [vmem:[%s11607_s23 + $0xf64] ss:$8 sps:$4 sm:$0xff]  }
 0x2b3   : > { %8541 = vmatpush1.bf16.msra.mxu0 %v10261_v0  ;;  %8594 = vmatpush1.bf16.msra.mxu1 %v10264_v29  ;;  %v4485_v0 = vld [vmem:[%s12686_s0 + $0x168] sm:$0xff] }
 0x2b4   : > { %8542 = vmatprep.subr.bf16.mxu0 %v10269_v1  ;;  %8595 = vmatprep.subr.bf16.mxu1 %v10272_v3  ;;  %v4501_v29 = vld [vmem:[%s12686_s0 + $0x1e8] sm:$0xff]  ;;  %v9095_v1 = vcombine.high %v4484_v24, %v4500_v26 }
 0x2b5   : > { %v9097_v3 = vcombine.high %v4485_v0, %v4501_v29 }
 0x2b7   : > { %8543 = vmatpush1.bf16.msra.mxu0 %v10267_v6  ;;  %8596 = vmatpush1.bf16.msra.mxu1 %v10270_v5  ;;  %v10339_v6 = vld [vmem:[%s11607_s23 + $0xe60] ss:$8 sps:$4 sm:$0xff]  }
 0x2b8   : > { %8544 = vmatprep.subr.bf16.mxu0 %v10275_v30  ;;  %8597 = vmatprep.subr.bf16.mxu1 %v10278_v31  ;;  %v10342_v5 = vld [vmem:[%s11607_s23 + $0xf60] ss:$8 sps:$4 sm:$0xff]   ;;  %v10347_v30 = vld [vmem:[%s11607_s23 + $0xe54] ss:$8 sps:$4 sm:$0xff]  }
 0x2b9   : > { %v10350_v31 = vld [vmem:[%s11607_s23 + $0xf54] ss:$8 sps:$4 sm:$0xff]  }
 0x2bb   : > { %8545 = vmatpush1.bf16.msra.mxu0 %v10273_v32  ;;  %8598 = vmatpush1.bf16.msra.mxu1 %v10276_v33  ;;  %v12380_v32 = vld [vmem:[%s12686_s0 + $0x70] sm:$0xff]  ;;  %v9094_v33 = vcombine.low %v4484_v24, %v4500_v26  ;;  %v10404_v26 = vld [vmem:[%s11607_s23 + $0xfc4] ss:$8 sps:$4 sm:$0xff]  }
 0x2bc   : > { %8546 = vmatprep.subr.bf16.mxu0 %v10281_v35  ;;  %8599 = vmatprep.subr.bf16.mxu1 %v10284_v36  ;;  %v9096_v35 = vcombine.low %v4485_v0, %v4501_v29  ;;  %v12385_v36 = vld [vmem:[%s12686_s0 + $0xf0] sm:$0xff]  ;;  %v10399_v0 = vld [vmem:[%s11607_s23 + $0xec0] ss:$8 sps:$4 sm:$0xff]  }
 0x2bd   : > { %v10393_v24 = vld [vmem:[%s11607_s23 + $0xed0] ss:$8 sps:$4 sm:$0xff]   ;;  %v10402_v29 = vld [vmem:[%s11607_s23 + $0xfc0] ss:$8 sps:$4 sm:$0xff]  }
 0x2bf   : > { %8547 = vmatpush1.bf16.msra.mxu0 %v10279_v38  ;;  %8600 = vmatpush1.bf16.msra.mxu1 %v10282_v37  ;;  %v12390_v38 = vld [vmem:[%s12686_s0 + $0x78] sm:$0xff] }
 0x2c0   : > { %8548 = vmatprep.subr.bf16.mxu0 %v10287_v39  ;;  %8601 = vmatprep.subr.bf16.mxu1 %v10290_v43  ;;  %v12395_v37 = vld [vmem:[%s12686_s0 + $0xf8] sm:$0xff] }
 0x2c1   : > { %v10345_v39 = vld [vmem:[%s11607_s23 + $0xe50] ss:$8 sps:$4 sm:$0xff]  }
 0x2c2   : > { %v10348_v43 = vld [vmem:[%s11607_s23 + $0xf50] ss:$8 sps:$4 sm:$0xff]  }
 0x2c3   : > { %8549 = vmatpush2.bf16.msra.mxu0 %v10285_v46  ;;  %8602 = vmatpush2.bf16.msra.mxu1 %v10288_v47  ;;  %v10353_v46 = vld [vmem:[%s11607_s23 + $0xe44] ss:$8 sps:$4 sm:$0xff]  }
 0x2c4   : > { %8550 = vmatprep.subr.bf16.mxu0 %v10293_v48  ;;  %8603 = vmatprep.subr.bf16.mxu1 %v10296_v14  ;;  %v10356_v47 = vld [vmem:[%s11607_s23 + $0xf44] ss:$8 sps:$4 sm:$0xff]   ;;  %v9067_v48 = vcombine.high %v12380_v32, %v12385_v36  ;;  %v9069_v14 = vcombine.high %v12390_v38, %v12395_v37 }
 0x2c7   : > { %8551 = vmatpush2.bf16.msra.mxu0 %v10291_v56  ;;  %8604 = vmatpush2.bf16.msra.mxu1 %v10294_v11  ;;  %v10351_v56 = vld [vmem:[%s11607_s23 + $0xe40] ss:$8 sps:$4 sm:$0xff]  }
 0x2c8   : > { %8552 = vmatprep.subr.bf16.mxu0 %v10299_v12  ;;  %8605 = vmatprep.subr.bf16.mxu1 %v10302_v49  ;;  %v10354_v11 = vld [vmem:[%s11607_s23 + $0xf40] ss:$8 sps:$4 sm:$0xff]   ;;  %v10359_v12 = vld [vmem:[%s11607_s23 + $0xe34] ss:$8 sps:$4 sm:$0xff]  }
 0x2c9   : > { %v10362_v49 = vld [vmem:[%s11607_s23 + $0xf34] ss:$8 sps:$4 sm:$0xff]  }
 0x2cb   : > { %8553 = vmatpush2.bf16.msra.mxu0 %v10297_v52  ;;  %8606 = vmatpush2.bf16.msra.mxu1 %v10300_v40  ;;  %v10357_v52 = vld [vmem:[%s11607_s23 + $0xe30] ss:$8 sps:$4 sm:$0xff]  }
 0x2cc   : > { %8554 = vmatprep.subr.bf16.mxu0 %v10305_v41  ;;  %8607 = vmatprep.subr.bf16.mxu1 %v10308_v19  ;;  %v10360_v40 = vld [vmem:[%s11607_s23 + $0xf30] ss:$8 sps:$4 sm:$0xff]   ;;  %v10365_v41 = vld [vmem:[%s11607_s23 + $0xe24] ss:$8 sps:$4 sm:$0xff]  }
 0x2cd   : > { %v10368_v19 = vld [vmem:[%s11607_s23 + $0xf24] ss:$8 sps:$4 sm:$0xff]  }
 0x2cf   : > { %8555 = vmatpush2.bf16.msra.mxu0 %v10303_v44  ;;  %8608 = vmatpush2.bf16.msra.mxu1 %v10306_v22  ;;  %v10363_v44 = vld [vmem:[%s11607_s23 + $0xe20] ss:$8 sps:$4 sm:$0xff]  }
 0x2d0   : > { %8556 = vmatprep.subr.bf16.mxu0 %v10311_v27  ;;  %8609 = vmatprep.subr.bf16.mxu1 %v10314_v28  ;;  %v10366_v22 = vld [vmem:[%s11607_s23 + $0xf20] ss:$8 sps:$4 sm:$0xff]   ;;  %v10371_v27 = vld [vmem:[%s11607_s23 + $0xe14] ss:$8 sps:$4 sm:$0xff]  }
 0x2d1   : > { %v10374_v28 = vld [vmem:[%s11607_s23 + $0xf14] ss:$8 sps:$4 sm:$0xff]  }
 0x2d3   : > { %8557 = vmatpush2.bf16.msra.mxu0 %v10309_v45  ;;  %8610 = vmatpush2.bf16.msra.mxu1 %v10312_v54  ;;  %v10369_v45 = vld [vmem:[%s11607_s23 + $0xe10] ss:$8 sps:$4 sm:$0xff]  }
 0x2d4   : > { %8558 = vmatprep.subr.bf16.mxu0 %v10317_v55  ;;  %8611 = vmatprep.subr.bf16.mxu1 %v10320_v57  ;;  %v10372_v54 = vld [vmem:[%s11607_s23 + $0xf10] ss:$8 sps:$4 sm:$0xff]   ;;  %v10377_v55 = vld [vmem:[%s11607_s23 + $0xe04] ss:$8 sps:$4 sm:$0xff]  }
 0x2d5   : > { %v10380_v57 = vld [vmem:[%s11607_s23 + $0xf04] ss:$8 sps:$4 sm:$0xff]  }
 0x2d7   : > { %8559 = vmatpush2.bf16.msra.mxu0 %v10315_v59  ;;  %8612 = vmatpush2.bf16.msra.mxu1 %v10318_v60  ;;  %v10375_v59 = vld [vmem:[%s11607_s23 + $0xe00] ss:$8 sps:$4 sm:$0xff]  }
 0x2d8   : > { %8560 = vmatprep.subr.bf16.mxu0 %v10323_v9  ;;  %8613 = vmatprep.subr.bf16.mxu1 %v10326_v10  ;;  %v10378_v60 = vld [vmem:[%s11607_s23 + $0xf00] ss:$8 sps:$4 sm:$0xff]   ;;  %v10383_v9 = vld [vmem:[%s11607_s23 + $0xef4] ss:$8 sps:$4 sm:$0xff]  }
 0x2d9   : > { %v10386_v10 = vld [vmem:[%s11607_s23 + $0xff4] ss:$8 sps:$4 sm:$0xff]  }
 0x2db   : > { %8561 = vmatpush2.bf16.msra.mxu0 %v10321_v58  ;;  %8614 = vmatpush2.bf16.msra.mxu1 %v10324_v61  ;;  %v10381_v58 = vld [vmem:[%s11607_s23 + $0xef0] ss:$8 sps:$4 sm:$0xff]  }
 0x2dc   : > { %8562 = vmatprep.subr.bf16.mxu0 %v10329_v62  ;;  %8615 = vmatprep.subr.bf16.mxu1 %v10332_v20  ;;  %v10384_v61 = vld [vmem:[%s11607_s23 + $0xff0] ss:$8 sps:$4 sm:$0xff]   ;;  %v10389_v62 = vld [vmem:[%s11607_s23 + $0xee4] ss:$8 sps:$4 sm:$0xff]  }
 0x2dd   : > { %v10392_v20 = vld [vmem:[%s11607_s23 + $0xfe4] ss:$8 sps:$4 sm:$0xff]  }
 0x2df   : > { %8563 = vmatpush2.bf16.msra.mxu0 %v10327_v16  ;;  %8616 = vmatpush2.bf16.msra.mxu1 %v10330_v23  ;;  %v10387_v16 = vld [vmem:[%s11607_s23 + $0xee0] ss:$8 sps:$4 sm:$0xff]  }
 0x2e0   : > { %8638 = vmatprep.subr.bf16.mxu0 %v10335_v17  ;;  %8691 = vmatprep.subr.bf16.mxu1 %v10338_v18  ;;  %v10390_v23 = vld [vmem:[%s11607_s23 + $0xfe0] ss:$8 sps:$4 sm:$0xff]   ;;  %v10395_v17 = vld [vmem:[%s11607_s23 + $0xed4] ss:$8 sps:$4 sm:$0xff]  }
 0x2e1   : > { %v10398_v18 = vld [vmem:[%s11607_s23 + $0xfd4] ss:$8 sps:$4 sm:$0xff]  }
 0x2e2   : > { %8565 = vmatmul.mubr.bf16.vlgmr.msra.gmra.mxu0 %v9062_v25  ;;  %8618 = vmatmul.mubr.bf16.vlgmr.msra.gmra.mxu1 %v9064_v2  ;;  %v10396_v25 = vld [vmem:[%s11607_s23 + $0xfd0] ss:$8 sps:$4 sm:$0xff]   ;;  %v10401_v2 = vld [vmem:[%s11607_s23 + $0xec4] ss:$8 sps:$4 sm:$0xff]  }
 0x2e3   : > { %8639 = vmatpush1.bf16.msra.mxu0 %v10333_v7  ;;  %8692 = vmatpush1.bf16.msra.mxu1 %v10336_v63  ;;  %v10407_v7 = vld [vmem:[%s11607_s23 + $0xeb4] ss:$8 sps:$4 sm:$0xff]  }
 0x2e4   : > { %8640 = vmatprep.subr.bf16.mxu0 %v10341_v13  ;;  %8693 = vmatprep.subr.bf16.mxu1 %v10344_v4  ;;  %v10410_v63 = vld [vmem:[%s11607_s23 + $0xfb4] ss:$8 sps:$4 sm:$0xff]   ;;  %v10405_v13 = vld [vmem:[%s11607_s23 + $0xeb0] ss:$8 sps:$4 sm:$0xff]  }
 0x2e5   : > { %8574 = vmatprep.mubr.bf16.mxu0 %v9095_v1  ;;  %8627 = vmatprep.mubr.bf16.mxu1 %v9097_v3  ;;  %v10408_v4 = vld [vmem:[%s11607_s23 + $0xfb0] ss:$8 sps:$4 sm:$0xff]   ;;  %v10413_v1 = vld [vmem:[%s11607_s23 + $0xea4] ss:$8 sps:$4 sm:$0xff]  }
 0x2e6   : > { %v10416_v3 = vld [vmem:[%s11607_s23 + $0xfa4] ss:$8 sps:$4 sm:$0xff]  }
 0x2e7   : > { %8641 = vmatpush1.bf16.msra.mxu0 %v10339_v6  ;;  %8694 = vmatpush1.bf16.msra.mxu1 %v10342_v5  ;;  %v10411_v6 = vld [vmem:[%s11607_s23 + $0xea0] ss:$8 sps:$4 sm:$0xff]  }
 0x2e8   : > { %8642 = vmatprep.subr.bf16.mxu0 %v10347_v30  ;;  %8695 = vmatprep.subr.bf16.mxu1 %v10350_v31  ;;  %v10414_v5 = vld [vmem:[%s11607_s23 + $0xfa0] ss:$8 sps:$4 sm:$0xff]   ;;  %v10419_v30 = vld [vmem:[%s11607_s23 + $0xe94] ss:$8 sps:$4 sm:$0xff]  }
 0x2e9   : > { %v10422_v31 = vld [vmem:[%s11607_s23 + $0xf94] ss:$8 sps:$4 sm:$0xff]  }
 0x2ea   : > { %8575 = vmatmul.mubr.bf16.gmra.mxu0 %v9094_v33  ;;  %8628 = vmatmul.mubr.bf16.gmra.mxu1 %v9096_v35  ;;  %v10417_v33 = vld [vmem:[%s11607_s23 + $0xe90] ss:$8 sps:$4 sm:$0xff]  }
 0x2eb   : > { %8643 = vmatpush1.bf16.msra.mxu0 %v10345_v39  ;;  %8696 = vmatpush1.bf16.msra.mxu1 %v10348_v43  ;;  %v10420_v35 = vld [vmem:[%s11607_s23 + $0xf90] ss:$8 sps:$4 sm:$0xff]   ;;  %v10425_v39 = vld [vmem:[%s11607_s23 + $0xe84] ss:$8 sps:$4 sm:$0xff]  }
 0x2ec   : > { %8644 = vmatprep.subr.bf16.mxu0 %v10353_v46  ;;  %8697 = vmatprep.subr.bf16.mxu1 %v10356_v47  ;;  %v10428_v43 = vld [vmem:[%s11607_s23 + $0xf84] ss:$8 sps:$4 sm:$0xff]   ;;  %v10423_v46 = vld [vmem:[%s11607_s23 + $0xe80] ss:$8 sps:$4 sm:$0xff]  }
 0x2ed   : > { %8670 = vmatprep.mubr.bf16.mxu0 %v9067_v48  ;;  %8723 = vmatprep.mubr.bf16.mxu1 %v9069_v14  ;;  %v10426_v47 = vld [vmem:[%s11607_s23 + $0xf80] ss:$8 sps:$4 sm:$0xff]   ;;  %v4486_v48 = vld [vmem:[%s12686_s0 + $0x170] sm:$0xff]  ;;  %s9036_s23 = sshll.u32 %s10463_s17, 1 }
 0x2ee   : > { %v4502_v14 = vld [vmem:[%s12686_s0 + $0x1f0] sm:$0xff]  ;;  %p4430_p11 = scmp.lt.s32.totalorder %s9036_s23, 3 }
 0x2ef   : > { %8645 = vmatpush1.bf16.msra.mxu0 %v10351_v56  ;;  %8698 = vmatpush1.bf16.msra.mxu1 %v10354_v11  ;;  %v4487_v56 = vld [vmem:[%s12686_s0 + $0x178] sm:$0xff] }
 0x2f0   : > { %8646 = vmatprep.subr.bf16.mxu0 %v10359_v12  ;;  %8699 = vmatprep.subr.bf16.mxu1 %v10362_v49  ;;  %v4503_v11 = vld [vmem:[%s12686_s0 + $0x1f8] sm:$0xff]  ;;  %v9066_v12 = vcombine.low %v12380_v32, %v12385_v36  ;;  %v9068_v49 = vcombine.low %v12390_v38, %v12395_v37  ;;  %s12729_s23 = smov (!%p4430_p11, %s9036_s23), 3 }
 0x2f1   : > { %s4432_s11 = scalar_lea.vmem %s12688_s2, %s12729_s23  ;;  %s4437_s14 = scalar_lea.vmem %s12689_s3, %s12729_s23 }
 0x2f3   : > { %8647 = vmatpush1.bf16.msra.mxu0 %v10357_v52  ;;  %8700 = vmatpush1.bf16.msra.mxu1 %v10360_v40  ;;  %v9099_v52 = vcombine.high %v4486_v48, %v4502_v14  ;;  %v9101_v40 = vcombine.high %v4487_v56, %v4503_v11 }
 0x2f4   : > { %8648 = vmatprep.subr.bf16.mxu0 %v10365_v41  ;;  %8701 = vmatprep.subr.bf16.mxu1 %v10368_v19  ;;  %v9098_v41 = vcombine.low %v4486_v48, %v4502_v14  ;;  %v9100_v19 = vcombine.low %v4487_v56, %v4503_v11 }
 0x2f7   : > { %8649 = vmatpush1.bf16.msra.mxu0 %v10363_v44  ;;  %8702 = vmatpush1.bf16.msra.mxu1 %v10366_v22  ;;  %v8152_v44 = vpop.f32.mrf.mxu0 }
 0x2f8   : > { %8650 = vmatprep.subr.bf16.mxu0 %v10371_v27  ;;  %8703 = vmatprep.subr.bf16.mxu1 %v10374_v28  ;;  %v12473_v27 = vpop.f32.mrf.mxu1 }
 0x2f9   : > { %v12471_v22 = vpop.f32.mrf.mxu0 }
 0x2fa   : > { %v12477_v36 = vpop.f32.mrf.mxu1 }
 0x2fb   : > { %8651 = vmatpush1.bf16.msra.mxu0 %v10369_v45  ;;  %8704 = vmatpush1.bf16.msra.mxu1 %v10372_v54  ;;  %v12475_v32 = vpop.f32.mrf.mxu0 }
 0x2fc   : > { %8652 = vmatprep.subr.bf16.mxu0 %v10377_v55  ;;  %8705 = vmatprep.subr.bf16.mxu1 %v10380_v57  ;;  %v12481_v28 = vpop.f32.mrf.mxu1 }
 0x2fd   : > { %v12479_v38 = vpop.f32.mrf.mxu0 }
 0x2fe   : > { %v12483_v54 = vpop.f32.mrf.mxu1 }
 0x2ff   : > { %8653 = vmatpush1.bf16.msra.mxu0 %v10375_v59  ;;  %8706 = vmatpush1.bf16.msra.mxu1 %v10378_v60  ;;  %v8248_v37 = vpop.f32.mrf.mxu0 }
 0x300   : > { %8654 = vmatprep.subr.bf16.mxu0 %v10383_v9  ;;  %8707 = vmatprep.subr.bf16.mxu1 %v10386_v10  ;;  %v8301_v55 = vpop.f32.mrf.mxu1 }
 0x301   : > { %v8250_v45 = vpop.f32.mrf.mxu0 }
 0x302   : > { %v8303_v59 = vpop.f32.mrf.mxu1 }
 0x303   : > { %8655 = vmatpush2.bf16.msra.mxu0 %v10381_v58  ;;  %8708 = vmatpush2.bf16.msra.mxu1 %v10384_v61  ;;  %v8252_v57 = vpop.f32.mrf.mxu0 }
 0x304   : > { %8656 = vmatprep.subr.bf16.mxu0 %v10389_v62  ;;  %8709 = vmatprep.subr.bf16.mxu1 %v10392_v20  ;;  %v8305_v9 = vpop.f32.mrf.mxu1 }
 0x305   : > { %v8254_v60 = vpop.f32.mrf.mxu0 }
 0x306   : > { %v12485_v58 = vpop.f32.mrf.mxu1 }
 0x307   : > { %8657 = vmatpush2.bf16.msra.mxu0 %v10387_v16  ;;  %8710 = vmatpush2.bf16.msra.mxu1 %v10390_v23  ;;  %v8258_v10 = vpop.f32.mrf.mxu0 }
 0x308   : > { %8658 = vmatprep.subr.bf16.mxu0 %v10395_v17  ;;  %8711 = vmatprep.subr.bf16.mxu1 %v10398_v18  ;;  %v12489_v62 = vpop.f32.mrf.mxu1 }
 0x309   : > { %v12487_v61 = vpop.f32.mrf.mxu0 }
 0x30a   : > { %v12493_v16 = vpop.f32.mrf.mxu1 }
 0x30b   : > { %8659 = vmatpush2.bf16.msra.mxu0 %v10393_v24  ;;  %8712 = vmatpush2.bf16.msra.mxu1 %v10396_v25  ;;  %v12491_v20 = vpop.f32.mrf.mxu0 }
 0x30c   : > { %8660 = vmatprep.subr.bf16.mxu0 %v10401_v2  ;;  %8713 = vmatprep.subr.bf16.mxu1 %v10404_v26  ;;  %v12497_v17 = vpop.f32.mrf.mxu1 }
 0x30d   : > { %v12495_v23 = vpop.f32.mrf.mxu0 }
 0x30e   : > { %v12499_v24 = vpop.f32.mrf.mxu1 }
 0x30f   : > { %8661 = vmatpush2.bf16.msra.mxu0 %v10399_v0  ;;  %8714 = vmatpush2.bf16.msra.mxu1 %v10402_v29 }
 0x310   : > { %8662 = vmatprep.subr.bf16.mxu0 %v10407_v7  ;;  %8715 = vmatprep.subr.bf16.mxu1 %v10410_v63 }
 0x313   : > { %8663 = vmatpush2.bf16.msra.mxu0 %v10405_v13  ;;  %8716 = vmatpush2.bf16.msra.mxu1 %v10408_v4 }
 0x314   : > { %8664 = vmatprep.subr.bf16.mxu0 %v10413_v1  ;;  %8717 = vmatprep.subr.bf16.mxu1 %v10416_v3 }
 0x317   : > { %8665 = vmatpush2.bf16.msra.mxu0 %v10411_v6  ;;  %8718 = vmatpush2.bf16.msra.mxu1 %v10414_v5 }
 0x318   : > { %8666 = vmatprep.subr.bf16.mxu0 %v10419_v30  ;;  %8719 = vmatprep.subr.bf16.mxu1 %v10422_v31 }
 0x31b   : > { %8667 = vmatpush2.bf16.msra.mxu0 %v10417_v33  ;;  %8720 = vmatpush2.bf16.msra.mxu1 %v10420_v35 }
 0x31c   : > { %8668 = vmatprep.subr.bf16.mxu0 %v10425_v39  ;;  %8721 = vmatprep.subr.bf16.mxu1 %v10428_v43 }
 0x31f   : > { %8669 = vmatpush2.bf16.msra.mxu0 %v10423_v46  ;;  %8722 = vmatpush2.bf16.msra.mxu1 %v10426_v47 }
 0x322   : > { %8671 = vmatmul.mubr.bf16.vlgmr.msra.gmra.mxu0 %v9066_v12  ;;  %8724 = vmatmul.mubr.bf16.vlgmr.msra.gmra.mxu1 %v9068_v49  ;;  %v8354_v18 = vpop.f32.mrf.mxu0  ;;  %v8407_v2 = vpop.f32.mrf.mxu1 }
 0x323   : > { %8680 = vmatprep.mubr.bf16.mxu0 %v9099_v52  ;;  %8733 = vmatprep.mubr.bf16.mxu1 %v9101_v40 }
 0x324   : > { %v8356_v25 = vpop.f32.mrf.mxu0  ;;  %v8409_v0 = vpop.f32.mrf.mxu1 }
 0x326   : > { %v8358_v26 = vpop.f32.mrf.mxu0  ;;  %v12501_v7 = vpop.f32.mrf.mxu1 }
 0x328   : > { %v8360_v29 = vpop.f32.mrf.mxu0  ;;  %v12505_v13 = vpop.f32.mrf.mxu1 }
 0x32a   : > { %8681 = vmatmul.mubr.bf16.gmra.mxu0 %v9098_v41  ;;  %8734 = vmatmul.mubr.bf16.gmra.mxu1 %v9100_v19  ;;  %v12503_v63 = vpop.f32.mrf.mxu0  ;;  %v12509_v1 = vpop.f32.mrf.mxu1 }
 0x32c   : > { %v12507_v4 = vpop.f32.mrf.mxu0  ;;  %v12513_v6 = vpop.f32.mrf.mxu1 }
 0x32d   : > { %12692 = vst [vmem:[#allocation4_spill] sm:$0xff] %v12513_v6 }
 0x32e   : > { %v12511_v3 = vpop.f32.mrf.mxu0  ;;  %v12517_v30 = vpop.f32.mrf.mxu1 }
 0x32f   : > { %12693 = vst [vmem:[#allocation5_spill] sm:$0xff] %v12517_v30 }
 0x330   : > { %v12515_v5 = vpop.f32.mrf.mxu0  ;;  %v12519_v33 = vpop.f32.mrf.mxu1 }
 0x331   : > { %12694 = vst [vmem:[#allocation6_spill] sm:$0xff] %v12519_v33 }
 0x362   : > { %v8460_v31 = vpop.f32.mrf.mxu0  ;;  %v8513_v35 = vpop.f32.mrf.mxu1 }
 0x364   : > { %v8462_v39 = vpop.f32.mrf.mxu0  ;;  %v12521_v43 = vpop.f32.mrf.mxu1 }
 0x366   : > { %v8464_v46 = vpop.f32.mrf.mxu0  ;;  %v12523_v47 = vpop.f32.mrf.mxu1 }
 0x367   : > { %12695 = vst [vmem:[#allocation7_spill] sm:$0xff] %v12523_v47 }
 0x368   : > { %v12525_v48 = vpop.f32.mrf.mxu0  ;;  %v12527_v14 = vpop.f32.mrf.mxu1 }
 0x369   : > { %12696 = vst [vmem:[#allocation8_spill] sm:$0xff] %v12527_v14 }
 0x36a   : > { %v12529_v56 = vpop.f32.mrf.mxu0  ;;  %v12531_v11 = vpop.f32.mrf.mxu1 }
 0x36b   : > { %12697 = vst [vmem:[#allocation9_spill] sm:$0xff] %v12529_v56  ;;  %12698 = vst [vmem:[#allocation10_spill] sm:$0xff] %v12531_v11  ;;  %v8249_v11 = vadd.f32 %v8248_v37, %v12262_v53  ;;  %v8255_v37 = vadd.f32 %v8254_v60, %v12299_v21 }
 0x36c   : > { %v12533_v12 = vpop.f32.mrf.mxu0  ;;  %v12535_v49 = vpop.f32.mrf.mxu1 }
 0x36d   : > { %12699 = vst [vmem:[#allocation11_spill] sm:$0xff] %v12533_v12  ;;  %12700 = vst [vmem:[#allocation12_spill] sm:$0xff] %v12535_v49  ;;  %v8153_v12 = vadd.f32 %v8152_v44, %v12179_v34  ;;  %v8251_v49 = vadd.f32 %v8250_v45, %v12285_v8  ;;  %v8159_v8 = vadd.f32 %v12479_v38, %v12191_v50 }
 0x36e   : > { %v12537_v52 = vpop.f32.mrf.mxu0  ;;  %v12539_v40 = vpop.f32.mrf.mxu1 }
 0x36f   : > { %12701 = vst [vmem:[#allocation13_spill] sm:$0xff] %v12537_v52  ;;  %12702 = vst [vmem:[#allocation14_spill] sm:$0xff] %v12539_v40  ;;  %v8302_v40 = vadd.f32 %v8301_v55, %v8249_v11  ;;  %v8304_v53 = vadd.f32 %v8303_v59, %v8251_v49  ;;  %v8212_v59 = vadd.f32 %v12483_v54, %v8159_v8  ;;  %v12710_v49 = vld [vmem:[#allocation5_spill] sm:$0xff] }
 0x370   : > { %v12541_v41 = vpop.f32.mrf.mxu0  ;;  %v12543_v19 = vpop.f32.mrf.mxu1 }
 0x371   : > { %12703 = vst [vmem:[#allocation15_spill] sm:$0xff] %v12541_v41  ;;  %12704 = vst [vmem:[#allocation16_spill] sm:$0xff] %v12543_v19  ;;  %v8253_v41 = vadd.f32 %v8252_v57, %v12292_v15  ;;  %v8155_v19 = vadd.f32 %v12471_v22, %v12184_v42  ;;  %v8355_v34 = vadd.f32 %v8354_v18, %v8302_v40 }
 0x372   : > { %v8357_v55 = vadd.f32 %v8356_v25, %v8304_v53 }
 0x373   : > { %v8306_v45 = vadd.f32 %v8305_v9, %v8253_v41  ;;  %v8208_v42 = vadd.f32 %v12477_v36, %v8155_v19  ;;  %v8408_v57 = vadd.f32 %v8407_v2, %v8355_v34  ;;  %v12711_v19 = vld [vmem:[#allocation8_spill] sm:$0xff] }
 0x374   : > { %v8410_v9 = vadd.f32 %v8409_v0, %v8357_v55  ;;  %v12714_v34 = vld [vmem:[#allocation11_spill] sm:$0xff] }
 0x375   : > { %v8359_v21 = vadd.f32 %v8358_v26, %v8306_v45  ;;  %v8261_v50 = vadd.f32 %v12487_v61, %v8208_v42  ;;  %v8461_v36 = vadd.f32 %v8460_v31, %v8408_v57 }
 0x376   : > { %v8463_v26 = vadd.f32 %v8462_v39, %v8410_v9  ;;  %v12715_v8 = vld [vmem:[#allocation13_spill] sm:$0xff] }
 0x377   : > { %v8314_v54 = vadd.f32 %v12493_v16, %v8261_v50 }
 0x3a2   : > { %v8566_v33 = vpop.f32.mrf.mxu0  ;;  %v12545_v30 = vpop.f32.mrf.mxu1 }
 0x3a3   : > { %12705 = vst [vmem:[#allocation17_spill] sm:$0xff] %v12545_v30  ;;  %v8157_v30 = vadd.f32 %v12475_v32, %v12189_v51 }
 0x3a4   : > { %v8568_v14 = vpop.f32.mrf.mxu0  ;;  %v12547_v6 = vpop.f32.mrf.mxu1 }
 0x3a5   : > { %12706 = vst [vmem:[#allocation18_spill] sm:$0xff] %v12547_v6  ;;  %v8206_v6 = vadd.f32 %v12473_v27, %v8153_v12  ;;  %v8210_v22 = vadd.f32 %v12481_v28, %v8157_v30  ;;  %v8308_v27 = vadd.f32 %v12485_v58, %v8255_v37  ;;  %v8265_v28 = vadd.f32 %v12495_v23, %v8212_v59  ;;  %v12709_v12 = vld [vmem:[#allocation4_spill] sm:$0xff]  ;;  %v12718_v59 = vld [vmem:[#allocation15_spill] sm:$0xff] }
 0x3a6   : > { %v8570_v56 = vpop.f32.mrf.mxu0  ;;  %v12552_v52 = vpop.f32.mrf.mxu1  ;;  %v8412_v58 = vadd.f32 %v12501_v7, %v8359_v21  ;;  %v8367_v23 = vadd.f32 %v12507_v4, %v8314_v54 }
 0x3a7   : > { %v8259_v15 = vadd.f32 %v8258_v10, %v8206_v6  ;;  %v8263_v38 = vadd.f32 %v12491_v20, %v8210_v22  ;;  %v8361_v10 = vadd.f32 %v8360_v29, %v8308_v27  ;;  %v8318_v29 = vadd.f32 %v12499_v24, %v8265_v28 }
 0x3a8   : > { %v8572_v47 = vpop.f32.mrf.mxu0  ;;  %v12563_v44 = vpop.f32.mrf.mxu1  ;;  %v8465_v0 = vadd.f32 %v8464_v46, %v8412_v58  ;;  %v12708_v46 = vld [vmem:[#allocation9_spill] sm:$0xff]  ;;  %v8420_v4 = vadd.f32 %v12709_v12, %v8367_v23  ;;  %v12720_v58 = vld [vmem:[#allocation14_spill] sm:$0xff] }
 0x3a9   : > { %v8312_v60 = vadd.f32 %v12489_v62, %v8259_v15  ;;  %v8316_v61 = vadd.f32 %v12497_v17, %v8263_v38  ;;  %v8414_v20 = vadd.f32 %v12505_v13, %v8361_v10  ;;  %v8514_v62 = vadd.f32 %v8513_v35, %v8461_v36  ;;  %v12707_v13 = vld [vmem:[#allocation7_spill] sm:$0xff]  ;;  %v12719_v36 = vld [vmem:[#allocation12_spill] sm:$0xff] }
 0x3aa   : > { %v8576_v51 = vpop.f32.mrf.mxu0  ;;  %v12567_v32 = vpop.f32.mrf.mxu1  ;;  %v8371_v17 = vadd.f32 %v12515_v5, %v8318_v29  ;;  %v8518_v35 = vadd.f32 %v12707_v13, %v8465_v0  ;;  %v12712_v53 = vld [vmem:[#allocation17_spill] sm:$0xff]  ;;  %v8473_v5 = vadd.f32 %v12714_v34, %v8420_v4 }
 0x3ab   : > { %v8365_v2 = vadd.f32 %v12503_v63, %v8312_v60  ;;  %v8369_v6 = vadd.f32 %v12511_v3, %v8316_v61  ;;  %v8516_v63 = vadd.f32 %v12521_v43, %v8463_v26  ;;  %v8467_v16 = vadd.f32 %v12525_v48, %v8414_v20  ;;  %v12713_v48 = vld [vmem:[#allocation6_spill] sm:$0xff] }
 0x3ac   : > { %v8578_v18 = vpop.f32.mrf.mxu0  ;;  %v12575_v25 = vpop.f32.mrf.mxu1  ;;  %v8567_v39 = vadd.f32 %v8566_v33, %v8514_v62  ;;  %v8571_v37 = vadd.f32 %v8570_v56, %v8518_v35  ;;  %v8424_v33 = vadd.f32 %v12713_v48, %v8371_v17  ;;  %v12717_v22 = vld [vmem:[#allocation18_spill] sm:$0xff]  ;;  %v8526_v28 = vadd.f32 %v12719_v36, %v8473_v5  ;;  %v12721_v62 = vld [vmem:[#allocation16_spill] sm:$0xff] }
 0x3ad   : > { %v8418_v7 = vadd.f32 %v12509_v1, %v8365_v2  ;;  %v8569_v24 = vadd.f32 %v8568_v14, %v8516_v63  ;;  %v8422_v3 = vadd.f32 %v12710_v49, %v8369_v6  ;;  %v8520_v1 = vadd.f32 %v12711_v19, %v8467_v16  ;;  %v12716_v14 = vld [vmem:[#allocation10_spill] sm:$0xff] }
 0x3ae   : > { %v8580_v30 = vpop.f32.mrf.mxu0  ;;  %v8633_v31 = vpop.f32.mrf.mxu1  ;;  %v8620_v43 = vadd.f32 %v12712_v53, %v8567_v39  ;;  %v8477_v50 = vadd.f32 %v12718_v59, %v8424_v33  ;;  %v8624_v56 = vadd.f32 %v12552_v52, %v8571_v37  ;;  %v8579_v29 = vadd.f32 %v8578_v18, %v8526_v28 }
 0x3af   : > { %v8471_v11 = vadd.f32 %v12708_v46, %v8418_v7  ;;  %v8475_v45 = vadd.f32 %v12715_v8, %v8422_v3  ;;  %v8622_v27 = vadd.f32 %v12717_v22, %v8569_v24  ;;  %v8573_v57 = vadd.f32 %v8572_v47, %v8520_v1 }
 0x3b0   : > { %v8582_v40 = vpop.f32.mrf.mxu0  ;;  %v8635_v41 = vpop.f32.mrf.mxu1  ;;  %v8530_v0 = vadd.f32 %v12721_v62, %v8477_v50 }
 0x3b1   : > { %v8524_v42 = vadd.f32 %v12716_v14, %v8471_v11  ;;  %v8528_v2 = vadd.f32 %v12720_v58, %v8475_v45  ;;  %v8626_v20 = vadd.f32 %v12563_v44, %v8573_v57 }
 0x3b2   : > { %v8583_v39 = vadd.f32 %v8582_v40, %v8530_v0 }
 0x3b3   : > { %v8577_v9 = vadd.f32 %v8576_v51, %v8524_v42  ;;  %v8581_v23 = vadd.f32 %v8580_v30, %v8528_v2 }
 0x3b4   : > { %v8636_v1 = vadd.f32 %v8635_v41, %v8583_v39 }
 0x3b5   : > { %v8630_v7 = vadd.f32 %v12567_v32, %v8577_v9  ;;  %v8632_v32 = vadd.f32 %v12575_v25, %v8579_v29  ;;  %v8634_v11 = vadd.f32 %v8633_v31, %v8581_v23 }
 0x3e2   : > { %v8672_v15 = vpop.f32.mrf.mxu0  ;;  %v8725_v55 = vpop.f32.mrf.mxu1 }
 0x3e3   : > { %v8673_v21 = vadd.f32 %v8672_v15, %v8620_v43 }
 0x3e4   : > { %v8674_v38 = vpop.f32.mrf.mxu0  ;;  %v8727_v60 = vpop.f32.mrf.mxu1 }
 0x3e5   : > { %v8675_v10 = vadd.f32 %v8674_v38, %v8622_v27  ;;  %v12604_v26 = vadd.f32 %v8725_v55, %v8673_v21 }
 0x3e6   : > { %v8676_v54 = vpop.f32.mrf.mxu0  ;;  %v8729_v61 = vpop.f32.mrf.mxu1 }
 0x3e7   : > { %v8677_v47 = vadd.f32 %v8676_v54, %v8624_v56  ;;  %v12608_v6 = vadd.f32 %v8727_v60, %v8675_v10  ;;  %v8762_v17 = vmul.f32 %v12604_v26, %v12604_v26 }
 0x3e8   : > { %v8678_v52 = vpop.f32.mrf.mxu0  ;;  %v8731_v51 = vpop.f32.mrf.mxu1 }
 0x3e9   : > { %v12611_v63 = vadd.f32 %v8729_v61, %v8677_v47  ;;  %v8679_v16 = vadd.f32 %v8678_v52, %v8626_v20  ;;  %v8763_v24 = vmul.f32 %v12608_v6, %v12608_v6 }
 0x3ea   : > { %v8682_v13 = vpop.f32.mrf.mxu0  ;;  %v8735_v44 = vpop.f32.mrf.mxu1 }
 0x3eb   : > { %v8744_v35 = vadd.f32 %v12611_v63, %v12604_v26  ;;  %v8764_v18 = vmul.f32 %v12611_v63, %v12611_v63  ;;  %v12619_v30 = vadd.f32 %v8731_v51, %v8679_v16  ;;  %v8683_v46 = vadd.f32 %v8682_v13, %v8630_v7 }
 0x3ec   : > { %v8684_v12 = vpop.f32.mrf.mxu0  ;;  %v8737_v4 = vpop.f32.mrf.mxu1 }
 0x3ed   : > { %v8770_v49 = vadd.f32 %v8764_v18, %v8762_v17  ;;  %v8753_v3 = vadd.f32 %v12619_v30, %v12608_v6  ;;  %v8765_v40 = vmul.f32 %v12619_v30, %v12619_v30  ;;  %v12628_v19 = vadd.f32 %v8735_v44, %v8683_v46 }
 0x3ee   : > { %v8685_v53 = vadd.f32 %v8684_v12, %v8632_v32  ;;  %v8686_v43 = vpop.f32.mrf.mxu0  ;;  %v8739_v37 = vpop.f32.mrf.mxu1 }
 0x3ef   : > { %v8779_v25 = vadd.f32 %v8765_v40, %v8763_v24  ;;  %v8745_v31 = vadd.f32 %v8744_v35, %v12628_v19  ;;  %v8766_v48 = vmul.f32 %v12628_v19, %v12628_v19  ;;  %v8687_v33 = vadd.f32 %v8686_v43, %v8634_v11 }
 0x3f0   : > { %v12633_v34 = vadd.f32 %v8737_v4, %v8685_v53  ;;  %v8688_v5 = vpop.f32.mrf.mxu0  ;;  %v8741_v14 = vpop.f32.mrf.mxu1 }
 0x3f1   : > { %v8771_v8 = vadd.f32 %v8770_v49, %v8766_v48  ;;  %v12635_v45 = vadd.f32 %v8739_v37, %v8687_v33  ;;  %v8689_v15 = vadd.f32 %v8688_v5, %v8636_v1  ;;  %v8802_v37 = vlaneseq  ;;  %v8800_v48 = vld [vmem:[%s4432_s11] sm:$0x3] }
 0x3f2   : > { %v8754_v55 = vadd.f32 %v8753_v3, %v12633_v34  ;;  %v8767_v41 = vmul.f32 %v12633_v34, %v12633_v34  ;;  %v8838_v5 = vld [vmem:[%s4437_s14] sm:$0x3] }
 0x3f3   : > { %v8746_v42 = vadd.f32 %v8745_v31, %v12635_v45  ;;  %v8768_v22 = vmul.f32 %v12635_v45, %v12635_v45  ;;  %v12643_v27 = vadd.f32 %v8741_v14, %v8689_v15  ;;  %v8803_v31 = vshrl.u32 %v8802_v37, 7 }
 0x3f4   : > { %v8780_v57 = vadd.f32 %v8779_v25, %v8767_v41 }
 0x3f5   : > { %v8747_v21 = vrot.slane %v8746_v42, 4  ;;  %v8772_v59 = vadd.f32 %v8771_v8, %v8768_v22  ;;  %v8755_v50 = vadd.f32 %v8754_v55, %v12643_v27  ;;  %v8769_v38 = vmul.f32 %v12643_v27, %v12643_v27 }
 0x3f7   : > { %v8748_v60 = vadd.f32 %v8747_v21, %v8746_v42  ;;  %v8773_v56 = vrot.slane %v8772_v59, 4  ;;  %v8756_v9 = vrot.slane %v8755_v50, 4  ;;  %v8781_v10 = vadd.f32 %v8780_v57, %v8769_v38 }
 0x3f9   : > { %v8749_v36 = vrot.slane %v8748_v60, 2  ;;  %v8774_v28 = vadd.f32 %v8773_v56, %v8772_v59  ;;  %v8757_v58 = vadd.f32 %v8756_v9, %v8755_v50  ;;  %v8782_v2 = vrot.slane %v8781_v10, 4 }
 0x3fb   : > { %v8750_v54 = vadd.f32 %v8749_v36, %v8748_v60  ;;  %v8775_v61 = vrot.slane %v8774_v28, 2  ;;  %v8758_v20 = vrot.slane %v8757_v58, 2  ;;  %v8783_v47 = vadd.f32 %v8782_v2, %v8781_v10 }
 0x3fd   : > { %v8751_v62 = vrot.slane %v8750_v54, 1  ;;  %v8776_v0 = vadd.f32 %v8775_v61, %v8774_v28  ;;  %v8759_v29 = vadd.f32 %v8758_v20, %v8757_v58  ;;  %v8784_v23 = vrot.slane %v8783_v47, 2 }
 0x3ff   : > { %v8752_v52 = vadd.f32 %v8751_v62, %v8750_v54  ;;  %v8777_v51 = vrot.slane %v8776_v0, 1  ;;  %v8760_v7 = vrot.slane %v8759_v29, 1  ;;  %v8785_v16 = vadd.f32 %v8784_v23, %v8783_v47 }
 0x401   : > { %v8778_v39 = vadd.f32 %v8777_v51, %v8776_v0  ;;  %v8788_v17 = vmul.f32 0.03125, %v8752_v52  ;;  %v8761_v13 = vadd.f32 %v8760_v7, %v8759_v29  ;;  %v8786_v44 = vrot.slane %v8785_v16, 1 }
 0x403   : > { %v8790_v35 = vmul.f32 0.03125, %v8778_v39  ;;  %v8792_v18 = vmul.f32 %v8788_v17, %v8788_v17  ;;  %v8814_v46 = vsub.f32 %v12604_v26, %v8788_v17  ;;  %v8816_v32 = vsub.f32 %v12611_v63, %v8788_v17 }
 0x404   : > { %v8818_v11 = vsub.f32 %v12628_v19, %v8788_v17  ;;  %v8820_v24 = vsub.f32 %v12635_v45, %v8788_v17  ;;  %v8787_v12 = vadd.f32 %v8786_v44, %v8785_v16  ;;  %v8789_v4 = vmul.f32 0.03125, %v8761_v13 }
 0x405   : > { %v8794_v49 = vsub.f32 %v8790_v35, %v8792_v18 }
 0x406   : > { %v8791_v3 = vmul.f32 0.03125, %v8787_v12  ;;  %v8793_v40 = vmul.f32 %v8789_v4, %v8789_v4  ;;  %v8815_v1 = vsub.f32 %v12608_v6, %v8789_v4  ;;  %v8817_v53 = vsub.f32 %v12619_v30, %v8789_v4 }
 0x407   : > { %v8796_v43 = vadd.f32 1e-05, %v8794_v49  ;;  %v8819_v26 = vsub.f32 %v12633_v34, %v8789_v4  ;;  %v8821_v63 = vsub.f32 %v12643_v27, %v8789_v4  ;;  %v8804_v6 = vsub.s32 0, %v8803_v31 }
 0x408   : > { %v8795_v25 = vsub.f32 %v8791_v3, %v8793_v40  ;;  %v8808_v30 = vsub.s32 1, %v8803_v31 }
 0x409   : > { %10429 = vrsqrt.f32 %v8796_v43  ;;  %v8805_v33 = vrot.slane %v8800_v48, %v8804_v6  ;;  %v8843_v41 = vrot.slane %v8838_v5, %v8804_v6 }
 0x40a   : > { %v8797_v19 = vadd.f32 1e-05, %v8795_v25  ;;  %v8809_v8 = vrot.slane %v8800_v48, %v8808_v30  ;;  %v8847_v59 = vrot.slane %v8838_v5, %v8808_v30 }
 0x40c   : > { %10431 = vrsqrt.f32 %v8797_v19 }
 0x416   : > { %v10430_v34 = vpop.eup %10429 }
 0x417   : > { %v8812_v45 = vmul.f32 %v10430_v34, %v8805_v33 }
 0x419   : > { %v10432_v15 = vpop.eup %10431  ;;  %v8825_v55 = vrot.slane %v8812_v45, %v8804_v6 }
 0x41a   : > { %v8813_v14 = vmul.f32 %v10432_v15, %v8809_v8 }
 0x41b   : > { %v8830_v42 = vmul.f32 %v8825_v55, %v8814_v46  ;;  %v8832_v22 = vmul.f32 %v8825_v55, %v8816_v32  ;;  %v8834_v27 = vmul.f32 %v8825_v55, %v8818_v11  ;;  %v8836_v57 = vmul.f32 %v8825_v55, %v8820_v24 }
 0x41c   : > { %v8829_v21 = vrot.slane %v8813_v14, %v8804_v6 }
 0x41d   : > { %v8850_v50 = vadd.f32 %v8843_v41, %v8830_v42  ;;  %v8852_v38 = vadd.f32 %v8843_v41, %v8832_v22  ;;  %v8854_v60 = vadd.f32 %v8843_v41, %v8834_v27  ;;  %v8856_v56 = vadd.f32 %v8843_v41, %v8836_v57 }
 0x41e   : > { %v8831_v9 = vmul.f32 %v8829_v21, %v8815_v1  ;;  %v8833_v10 = vmul.f32 %v8829_v21, %v8817_v53  ;;  %v8835_v36 = vmul.f32 %v8829_v21, %v8819_v26  ;;  %v8837_v28 = vmul.f32 %v8829_v21, %v8821_v63 }
 0x41f   : > { %v8858_v58 = vmax.f32 %v8850_v50, 0.0  ;;  %v8860_v2 = vmax.f32 %v8852_v38, 0.0  ;;  %v8862_v54 = vmax.f32 %v8854_v60, 0.0  ;;  %v8864_v61 = vmax.f32 %v8856_v56, 0.0 }
 0x420   : > { %v8851_v20 = vadd.f32 %v8847_v59, %v8831_v9  ;;  %v8853_v47 = vadd.f32 %v8847_v59, %v8833_v10  ;;  %v8855_v62 = vadd.f32 %v8847_v59, %v8835_v36  ;;  %v8857_v0 = vadd.f32 %v8847_v59, %v8837_v28 }
 0x421   : > { %8866 = vst [vmem:[%s4420_s15] sm:$0xff] %v8858_v58  ;;  %8868 = vst [vmem:[%s4420_s15 + $0x10] sm:$0xff] %v8860_v2  ;;  %8880 = sbr.rel (!%p10533_p6) target bundleno = 1070 (0x42e), region = 92 }
 0x422   : > { %8870 = vst [vmem:[%s4420_s15 + $0x20] sm:$0xff] %v8862_v54  ;;  %8872 = vst [vmem:[%s4420_s15 + $0x30] sm:$0xff] %v8864_v61  ;;  %v8859_v29 = vmax.f32 %v8851_v20, 0.0  ;;  %v8861_v23 = vmax.f32 %v8853_v47, 0.0  ;;  %v8863_v52 = vmax.f32 %v8855_v62, 0.0  ;;  %v8865_v51 = vmax.f32 %v8857_v0, 0.0 }
 0x424   : > { %8867 = vst [vmem:[%s4420_s15 + $0x8] sm:$0xff] %v8859_v29  ;;  %8869 = vst [vmem:[%s4420_s15 + $0x18] sm:$0xff] %v8861_v23 }
 0x425   : > { %8871 = vst [vmem:[%s4420_s15 + $0x28] sm:$0xff] %v8863_v52  ;;  %8873 = vst [vmem:[%s4420_s15 + $0x38] sm:$0xff] %v8865_v51 }
 0x428   : > { %v8896_v7 = vld [vmem:[%s4420_s15] sm:$0xff]  ;;  %v8900_v39 = vld [vmem:[%s4420_s15 + $0x10] sm:$0xff] }
 0x429   : > { %v8904_v13 = vld [vmem:[%s4420_s15 + $0x20] sm:$0xff]  ;;  %8897 = vst [vmem:[%s8883_s27] sm:$0xff] %v8896_v7  ;;  %8901 = vst [vmem:[%s8883_s27 + $0x20] sm:$0xff] %v8900_v39  ;;  %v8908_v35 = vld [vmem:[%s4420_s15 + $0x30] sm:$0xff] }
 0x42a   : > { %8905 = vst [vmem:[%s8883_s27 + $0x40] sm:$0xff] %v8904_v13  ;;  %8909 = vst [vmem:[%s8883_s27 + $0x60] sm:$0xff] %v8908_v35 }
 0x42b   : > { %v8898_v16 = vld [vmem:[%s4420_s15 + $0x8] sm:$0xff]  ;;  %v8902_v17 = vld [vmem:[%s4420_s15 + $0x18] sm:$0xff] }
 0x42c   : > { %v8906_v44 = vld [vmem:[%s4420_s15 + $0x28] sm:$0xff]  ;;  %8899 = vst [vmem:[%s8883_s27 + $0x8] sm:$0xff] %v8898_v16  ;;  %8903 = vst [vmem:[%s8883_s27 + $0x28] sm:$0xff] %v8902_v17  ;;  %v8910_v18 = vld [vmem:[%s4420_s15 + $0x38] sm:$0xff] }
 0x42d   : > { %8907 = vst [vmem:[%s8883_s27 + $0x48] sm:$0xff] %v8906_v44  ;;  %8911 = vst [vmem:[%s8883_s27 + $0x68] sm:$0xff] %v8910_v18 }
 0x42e PF: > { %s14_s19 = sadd.s32 1, %s10471_s19   ;;  %s12722_s15 = smov %s10459_s16 }
 0x42f   : > { %p11_p12 = scmp.ge.s32.totalorder %s14_s19, 4   ;;  %s12723_s16 = smov %s10538_s25 }
 0x430   : > { %s12724_s17 = smov %s10467_s18  ;;  %s12725_s18 = smov %s12727_s20 }
 0x431   :  { %13 = sbr.rel (!%p11_p12) target bundleno = 3 (0x3), region = 161 }

</bundles_post_ra>
